<compile_context>
chip_gen: v6e
topology: v6e:2x2x1
jax: 0.10.0
libtpu: 0.0.40
codegen_flags: <defaults>
</compile_context>

<pallas_src>
import numpy as np
import jax
import jax.numpy as jnp
from jax.experimental import pallas as pl
from jax.experimental.pallas import tpu as pltpu


# ------------------------- Kernel 1: decode recurrence ---------------------- #

def _attention_recurrence_kernel(feats_ref, fproj_ref, gxemb_ref,
                                 wcomb_ref, bcomb_ref, score_ref, wctx_ref,
                                 hid_ref, hcarry_ref):
    """One grid step processes a block of TS decode steps.

    feats_ref : (nT, nB, NCP)   encoder features (resident)
    fproj_ref : (nT, nB, HP)    hoisted i2h(feats) projection (resident)
    gxemb_ref : (TS, nB, 3*HP)  per-step emb@W_emb + b_ih (streamed per block)
    wcomb_ref : (HP, 4*HP)      [h2h_w | gru_w_hh] fused RHS (resident)
    bcomb_ref : (1, 4*HP)       [h2h_b | gru_b_hh] fused bias
    score_ref : (1, HP)
    wctx_ref  : (NCP, 3*HP)     context half of gru_w_ih
    hid_ref   : (TS, nB, HP)    output hiddens for this block (streamed out)
    hcarry_ref: (nB, HP)        hidden state carried across grid steps (scratch)
    """
    TS, nB, HP = hid_ref.shape

    @pl.when(pl.program_id(0) == 0)
    def _init():
        hcarry_ref[...] = jnp.zeros_like(hcarry_ref)

    feats = feats_ref[...]
    fproj = fproj_ref[...]
    w_comb = wcomb_ref[...]
    b_comb = bcomb_ref[...]
    score_w = score_ref[...]
    w_ctx = wctx_ref[...]

    def step(i, hidden):                         # hidden: (nB, HP)
        # --- single fused matmul on the hidden operand: [h2h | gru W_hh] --- #
        hp_all = jnp.dot(hidden, w_comb,
                         preferred_element_type=jnp.float32) + b_comb  # (nB, 4HP)
        hproj = hp_all[:, :HP]                   # h2h(hidden)
        gh = hp_all[:, HP:]                      # GRU hidden-gate projection

        # --- attention over the full (nT, nB, HP) slab --------------------- #
        e = jnp.tanh(fproj + hproj[None, :, :])                       # (nT, nB, HP)
        sc = jnp.sum(e * score_w, axis=-1, keepdims=True)             # (nT, nB, 1)

        # deferred-normalisation softmax over the time axis
        m = jnp.max(sc, axis=0, keepdims=True)
        p = jnp.exp(sc - m)
        inv_den = pl.reciprocal(jnp.sum(p, axis=0), approx=True)      # (nB, 1)
        ctx = jnp.sum(p * feats, axis=0) * inv_den                    # (nB, NCP)

        # --- fused GRU cell (gate order r, z, n) ---------------------------- #
        gx = jnp.dot(ctx, w_ctx,
                     preferred_element_type=jnp.float32) + gxemb_ref[i]  # (nB, 3HP)
        r = jax.nn.sigmoid(gx[:, :HP] + gh[:, :HP])
        z = jax.nn.sigmoid(gx[:, HP:2 * HP] + gh[:, HP:2 * HP])
        n = jnp.tanh(gx[:, 2 * HP:] + r * gh[:, 2 * HP:])
        h_new = (1.0 - z) * n + z * hidden                            # (nB, HP)

        hid_ref[i] = h_new            # lane-dense store; generator NOT in the loop
        return h_new

    # Unroll is bounded by TS (longer sequences stream over the grid), so code
    # size / vreg pressure stays fixed regardless of text length.
    h_last = jax.lax.fori_loop(0, TS, step, hcarry_ref[...], unroll=True)
    hcarry_ref[...] = h_last


# ------------------------- Kernel 2: generator matmul ----------------------- #

def _generator_kernel(h_ref, w_ref, b_ref, o_ref):
    o_ref[...] = jnp.dot(h_ref[...], w_ref[...],
                         preferred_element_type=jnp.float32) + b_ref[...]


# --------------------------------- Wrapper ---------------------------------- #

def _round_up(x, m):
    return ((x + m - 1) // m) * m


def _nbytes(shape, dtype=jnp.float32):
    return int(np.prod(shape)) * np.dtype(dtype).itemsize


def _vmem_limit(resident_bytes, streamed_bytes):
    # resident operands + double-buffered streamed blocks, generous headroom,
    # capped at 64 MiB so it is valid on v7x as well as v5e/v6e.
    need = resident_bytes + 2 * streamed_bytes
    return int(min(64 << 20, max(32 << 20, 4 * need + (4 << 20))))


def _pad_axis(x, axis, size):
    pad = size - x.shape[axis]
    if pad <= 0:
        return x
    widths = [(0, 0)] * x.ndim
    widths[axis] = (0, pad)
    return jnp.pad(x, widths)


def _pad_gates(x, H, HP):
    """Zero-pad the trailing (3*H) gate axis so each gate [r|z|n] is HP lanes."""
    lead = x.shape[:-1]
    x3 = x.reshape(lead + (3, H))
    x3 = jnp.pad(x3, [(0, 0)] * (len(lead) + 1) + [(0, HP - H)])
    return x3.reshape(lead + (3 * HP,))


def run_attention(feats, text_length, text, params, *, step_block=8):
    """Replicates Attention.forward(feats, text_length, text, test=False)."""
    nT, nB, nC = feats.shape
    H = params["h2h_w"].shape[0]
    C = params["gen_w"].shape[0]

    HP = _round_up(H, 128)          # padded hidden lane width
    CP = _round_up(C, 128)          # padded num_classes lane width
    NCP = _round_up(nC, 128)        # padded channel lane width

    lengths = [int(l) for l in text_length]
    num_steps = max(lengths)
    S_pad = _round_up(num_steps, step_block)   # bucketing: avoid per-length recompiles

    # Target table (host glue, static python-int lengths).
    targets = np.zeros((S_pad + 1, nB), dtype=np.int32)
    text_np = np.asarray(text, dtype=np.int32)
    start = 0
    for b in range(nB):
        L = lengths[b]
        targets[1:1 + L, b] = text_np[start:start + L] + 1
        start += L

    feats32 = jnp.asarray(feats, jnp.float32)
    feats_p = _pad_axis(feats32, 2, NCP)                                       # (nT, nB, NCP)

    # ---- weight prep (transpose + zero-pad to lane-dense layouts) ---------- #
    h2h_wT = _pad_axis(_pad_axis(jnp.asarray(params["h2h_w"], jnp.float32).T,
                                 0, HP), 1, HP)                                # (HP, HP)
    h2h_b = _pad_axis(jnp.asarray(params["h2h_b"], jnp.float32).reshape(1, H), 1, HP)
    whh_T = _pad_axis(_pad_gates(jnp.asarray(params["gru_w_hh"], jnp.float32).T,
                                 H, HP), 0, HP)                                # (HP, 3HP)
    bhh = _pad_gates(jnp.asarray(params["gru_b_hh"], jnp.float32),
                     H, HP).reshape(1, 3 * HP)
    w_comb = jnp.concatenate([h2h_wT, whh_T], axis=1)                          # (HP, 4HP)
    b_comb = jnp.concatenate([h2h_b, bhh], axis=1)                             # (1, 4HP)

    score_w = _pad_axis(jnp.asarray(params["score_w"], jnp.float32).reshape(1, H), 1, HP)

    w_ih_T = jnp.asarray(params["gru_w_ih"], jnp.float32).T                    # (nC+E, 3H)
    w_ctx = _pad_axis(_pad_gates(w_ih_T[:nC], H, HP), 0, NCP)                  # (NCP, 3HP)
    w_emb = _pad_gates(w_ih_T[nC:], H, HP)                                     # (E, 3HP)
    b_ih = _pad_gates(jnp.asarray(params["gru_b_ih"], jnp.float32), H, HP)     # (3HP,)

    gen_wT = _pad_axis(_pad_axis(jnp.asarray(params["gen_w"], jnp.float32).T,
                                 0, HP), 1, CP)                                # (HP, CP)
    gen_b = _pad_axis(jnp.asarray(params["gen_b"], jnp.float32).reshape(1, C), 1, CP)

    # ---- hoisted hidden-independent precompute (plain XLA) ----------------- #
    fproj = _pad_axis(jnp.einsum("tbc,hc->tbh", feats32,
                                 jnp.asarray(params["i2h_w"], jnp.float32)),
                      2, HP)                                                   # (nT, nB, HP)
    embs = jnp.asarray(params["char_embeddings"],
                       jnp.float32)[jnp.asarray(targets[:S_pad])]              # (S_pad, nB, E)
    gx_emb = jnp.einsum("sbe,eg->sbg", embs, w_emb) + b_ih[None, None, :]      # (S_pad, nB, 3HP)

    # ---- kernel 1: recurrence, S streamed over a grid ----------------------- #
    num_blocks = S_pad // step_block
    resident1 = (_nbytes((nT, nB, NCP)) + _nbytes((nT, nB, HP)) +
                 _nbytes((HP, 4 * HP)) + _nbytes((1, 4 * HP)) +
                 _nbytes((1, HP)) + _nbytes((NCP, 3 * HP)) + _nbytes((nB, HP)))
    streamed1 = _nbytes((step_block, nB, 3 * HP)) + _nbytes((step_block, nB, HP))

    hiddens = pl.pallas_call(
        _attention_recurrence_kernel,
        out_shape=jax.ShapeDtypeStruct((S_pad, nB, HP), jnp.float32),
        grid_spec=pltpu.PrefetchScalarGridSpec(
            num_scalar_prefetch=0,
            grid=(num_blocks,),
            in_specs=[
                pl.BlockSpec((nT, nB, NCP), lambda s: (0, 0, 0)),            # feats (resident)
                pl.BlockSpec((nT, nB, HP), lambda s: (0, 0, 0)),             # fproj (resident)
                pl.BlockSpec((step_block, nB, 3 * HP), lambda s: (s, 0, 0)), # gxemb (streamed)
                pl.BlockSpec((HP, 4 * HP), lambda s: (0, 0)),                # w_comb
                pl.BlockSpec((1, 4 * HP), lambda s: (0, 0)),                 # b_comb
                pl.BlockSpec((1, HP), lambda s: (0, 0)),                     # score_w
                pl.BlockSpec((NCP, 3 * HP), lambda s: (0, 0)),               # w_ctx
            ],
            out_specs=pl.BlockSpec((step_block, nB, HP), lambda s: (s, 0, 0)),
            scratch_shapes=[pltpu.VMEM((nB, HP), jnp.float32)],              # hidden carry
        ),
        compiler_params=pltpu.CompilerParams(
            dimension_semantics=("arbitrary",),          # serial recurrence axis
            vmem_limit_bytes=_vmem_limit(resident1, streamed1)),
    )(feats_p, fproj, gx_emb, w_comb, b_comb, score_w, w_ctx)

    # ---- kernel 2: one big generator matmul over all steps/batches --------- #
    M = S_pad * nB
    TM = step_block * nB            # multiple of 8; grow for very large M
    hid2d = hiddens.reshape(M, HP)  # plain XLA reshape outside the kernels
    resident2 = _nbytes((HP, CP)) + _nbytes((1, CP))
    streamed2 = _nbytes((TM, HP)) + _nbytes((TM, CP))

    probs2d = pl.pallas_call(
        _generator_kernel,
        out_shape=jax.ShapeDtypeStruct((M, CP), jnp.float32),
        grid_spec=pltpu.PrefetchScalarGridSpec(
            num_scalar_prefetch=0,
            grid=(M // TM,),
            in_specs=[
                pl.BlockSpec((TM, HP), lambda i: (i, 0)),
                pl.BlockSpec((HP, CP), lambda i: (0, 0)),
                pl.BlockSpec((1, CP), lambda i: (0, 0)),
            ],
            out_specs=pl.BlockSpec((TM, CP), lambda i: (i, 0)),
        ),
        compiler_params=pltpu.CompilerParams(
            dimension_semantics=("parallel",),           # rows independent -> megacore ok
            vmem_limit_bytes=_vmem_limit(resident2, streamed2)),
    )(hid2d, gen_wT, gen_b)

    probs_full = probs2d.reshape(S_pad, nB, CP)

    # Ragged per-sample packing + slice away class/step padding (host/JAX glue).
    probs = jnp.concatenate(
        [probs_full[:lengths[b], b, :C] for b in range(nB)], axis=0)           # (num_labels, C)
    return probs


# --------------------------- Pure-JAX reference ----------------------------- #

def ref_attention(feats, text_length, text, params):
    nT, nB, nC = feats.shape
    H = params["h2h_w"].shape[0]
    lengths = [int(l) for l in text_length]
    num_steps = max(lengths)

    targets = np.zeros((num_steps + 1, nB), dtype=np.int32)
    text_np = np.asarray(text, dtype=np.int32)
    start = 0
    for b in range(nB):
        L = lengths[b]
        targets[1:1 + L, b] = text_np[start:start + L] + 1
        start += L

    def cell(hidden, emb):
        feats_proj = feats.reshape(-1, nC) @ params["i2h_w"].T
        hproj = hidden @ params["h2h_w"].T + params["h2h_b"]
        e = jnp.tanh(feats_proj.reshape(nT, nB, H) + hproj[None])
        emition = jnp.sum(e * params["score_w"].reshape(1, 1, H), axis=-1)
        alpha = jax.nn.softmax(emition, axis=0)
        context = (feats * alpha[:, :, None]).sum(0)
        x = jnp.concatenate([context, emb], axis=1)
        gx = x @ params["gru_w_ih"].T + params["gru_b_ih"]
        gh = hidden @ params["gru_w_hh"].T + params["gru_b_hh"]
        r = jax.nn.sigmoid(gx[:, :H] + gh[:, :H])
        z = jax.nn.sigmoid(gx[:, H:2 * H] + gh[:, H:2 * H])
        n = jnp.tanh(gx[:, 2 * H:] + r * gh[:, 2 * H:])
        return (1.0 - z) * n + z * hidden

    hidden = jnp.zeros((nB, H), jnp.float32)
    out_h = []
    for i in range(num_steps):
        emb = jnp.asarray(params["char_embeddings"])[jnp.asarray(targets[i])]
        hidden = cell(hidden, emb)
        out_h.append(hidden)
    out_h = jnp.stack(out_h, axis=0)
    new_hiddens = jnp.concatenate(
        [out_h[:lengths[b], b, :] for b in range(nB)], axis=0)
    return new_hiddens @ params["gen_w"].T + params["gen_b"]


# ----------------------------------- Main ----------------------------------- #

if __name__ == "__main__":
    nT, nB, nC = 8, 2, 32            # feats: (time, batch, channels)
    H, E, C = 32, 16, 10             # hidden, num_embeddings, num_classes

    key = jax.random.PRNGKey(0)
    ks = jax.random.split(key, 13)

    feats = jax.random.normal(ks[0], (nT, nB, nC), jnp.float32)
    text_length = [3, 5]             # nB == len(text_length)
    text = np.asarray(jax.random.randint(ks[1], (sum(text_length),), 0, C))

    s = 0.1
    params = {
        "i2h_w":           jax.random.normal(ks[2], (H, nC), jnp.float32) * s,
        "h2h_w":           jax.random.normal(ks[3], (H, H), jnp.float32) * s,
        "h2h_b":           jax.random.normal(ks[4], (H,), jnp.float32) * s,
        "score_w":         jax.random.normal(ks[5], (1, H), jnp.float32) * s,
        "gru_w_ih":        jax.random.normal(ks[6], (3 * H, nC + E), jnp.float32) * s,
        "gru_w_hh":        jax.random.normal(ks[7], (3 * H, H), jnp.float32) * s,
        "gru_b_ih":        jax.random.normal(ks[8], (3 * H,), jnp.float32) * s,
        "gru_b_hh":        jax.random.normal(ks[9], (3 * H,), jnp.float32) * s,
        "gen_w":           jax.random.normal(ks[10], (C, H), jnp.float32) * s,
        "gen_b":           jax.random.normal(ks[11], (C,), jnp.float32) * s,
        "char_embeddings": jax.random.normal(ks[12], (C + 1, E), jnp.float32),
    }

    probs = run_attention(feats, text_length, text, params)
    probs = jax.block_until_ready(probs)

    ref = jax.block_until_ready(ref_attention(feats, text_length, text, params))
    # Tolerance 2e-3: the only approximation vs f32 reference is the EUP
    # approximate reciprocal in the deferred softmax normalisation.
    np.testing.assert_allclose(np.asarray(probs), np.asarray(ref),
                               rtol=2e-3, atol=2e-3)
    print("KERNEL_OK")
</pallas_src>

<mosaic_0001>
module attributes {stable_mosaic.version = 11 : i64} {
  func.func @_attention_recurrence_kernel(%arg0: i32, %arg1: memref<8x2x128xf32, #tpu.memory_space<vmem>>, %arg2: memref<8x2x128xf32, #tpu.memory_space<vmem>>, %arg3: memref<8x2x384xf32, #tpu.memory_space<vmem>>, %arg4: memref<128x512xf32, #tpu.memory_space<vmem>>, %arg5: memref<1x512xf32, #tpu.memory_space<vmem>>, %arg6: memref<1x128xf32, #tpu.memory_space<vmem>>, %arg7: memref<128x384xf32, #tpu.memory_space<vmem>>, %arg8: memref<8x2x128xf32, #tpu.memory_space<vmem>>, %arg9: memref<2x128xf32, #tpu.memory_space<vmem>>) attributes {dimension_semantics = [#tpu.dimension_semantics<arbitrary>], iteration_bounds = array<i64: 1>, scalar_prefetch = 0 : i64, scratch_operands = 1 : i64, tpu.core_type = #tpu.core_type<tc>, window_params = [{pipeline_mode = #tpu.pipeline_mode<synchronous>, transform_indices = @transform_0, window_bounds = array<i64: 8, 2, 128>}, {pipeline_mode = #tpu.pipeline_mode<synchronous>, transform_indices = @transform_1, window_bounds = array<i64: 8, 2, 128>}, {transform_indices = @transform_2, window_bounds = array<i64: 8, 2, 384>}, {pipeline_mode = #tpu.pipeline_mode<synchronous>, transform_indices = @transform_3, window_bounds = array<i64: 128, 512>}, {pipeline_mode = #tpu.pipeline_mode<synchronous>, transform_indices = @transform_4, window_bounds = array<i64: 1, 512>}, {pipeline_mode = #tpu.pipeline_mode<synchronous>, transform_indices = @transform_5, window_bounds = array<i64: 1, 128>}, {pipeline_mode = #tpu.pipeline_mode<synchronous>, transform_indices = @transform_6, window_bounds = array<i64: 128, 384>}, {transform_indices = @transform_7, window_bounds = array<i64: 8, 2, 128>}]} {
    %c0_i32 = arith.constant 0 : i32
    %0 = arith.cmpi eq, %arg0, %c0_i32 : i32
    %1 = arith.extui %0 : i1 to i32
    %c0_i32_0 = arith.constant 0 : i32
    %2 = arith.cmpi ne, %1, %c0_i32_0 : i32
    scf.if %2 {
      %cst_122 = arith.constant 0.000000e+00 : f32
      %499 = vector.broadcast %cst_122 : f32 to vector<2x128xf32>
      %c0_123 = arith.constant 0 : index
      %c0_124 = arith.constant 0 : index
      %500 = vector.load %arg9[%c0_123, %c0_124] : memref<2x128xf32, #tpu.memory_space<vmem>>, vector<2x128xf32>
      tpu.vector_store %arg9[%c0_123, %c0_124], %499 {strides = array<i32>} : memref<2x128xf32, #tpu.memory_space<vmem>>, vector<2x128xf32>,
    } else {
    }
    %c0 = arith.constant 0 : index
    %c0_1 = arith.constant 0 : index
    %c0_2 = arith.constant 0 : index
    %3 = vector.load %arg1[%c0, %c0_1, %c0_2] : memref<8x2x128xf32, #tpu.memory_space<vmem>>, vector<8x2x128xf32>
    %c0_3 = arith.constant 0 : index
    %c0_4 = arith.constant 0 : index
    %c0_5 = arith.constant 0 : index
    %4 = vector.load %arg2[%c0_3, %c0_4, %c0_5] : memref<8x2x128xf32, #tpu.memory_space<vmem>>, vector<8x2x128xf32>
    %c0_6 = arith.constant 0 : index
    %c0_7 = arith.constant 0 : index
    %5 = vector.load %arg4[%c0_6, %c0_7] : memref<128x512xf32, #tpu.memory_space<vmem>>, vector<128x512xf32>
    %c0_8 = arith.constant 0 : index
    %c0_9 = arith.constant 0 : index
    %6 = vector.load %arg5[%c0_8, %c0_9] : memref<1x512xf32, #tpu.memory_space<vmem>>, vector<1x512xf32>
    %c0_10 = arith.constant 0 : index
    %c0_11 = arith.constant 0 : index
    %7 = vector.load %arg6[%c0_10, %c0_11] : memref<1x128xf32, #tpu.memory_space<vmem>>, vector<1x128xf32>
    %c0_12 = arith.constant 0 : index
    %c0_13 = arith.constant 0 : index
    %8 = vector.load %arg7[%c0_12, %c0_13] : memref<128x384xf32, #tpu.memory_space<vmem>>, vector<128x384xf32>
    %c0_14 = arith.constant 0 : index
    %c0_15 = arith.constant 0 : index
    %9 = vector.load %arg9[%c0_14, %c0_15] : memref<2x128xf32, #tpu.memory_space<vmem>>, vector<2x128xf32>
    %c0_i32_16 = arith.constant 0 : i32
    %cst = arith.constant dense<0.000000e+00> : vector<2x512xf32>
    %10 = tpu.matmul %9, %5, %cst {dimension_numbers = #tpu.dot_dimension_numbers<[1], [0], [0], [1], [0, 0, 1, 1], [], []>} : vector<2x128xf32>, vector<128x512xf32>, vector<2x512xf32> -> vector<2x512xf32>
    %11 = vector.broadcast %6 : vector<1x512xf32> to vector<2x512xf32>
    %12 = arith.addf %10, %11 : vector<2x512xf32>
    %13 = vector.extract_strided_slice %12 {offsets = [0, 0], sizes = [2, 128], strides = [1, 1]} : vector<2x512xf32> to vector<2x128xf32>
    %14 = vector.extract_strided_slice %12 {offsets = [0, 128], sizes = [2, 384], strides = [1, 1]} : vector<2x512xf32> to vector<2x384xf32>
    %15 = vector.shape_cast %13 : vector<2x128xf32> to vector<1x2x128xf32>
    %16 = vector.broadcast %15 : vector<1x2x128xf32> to vector<8x2x128xf32>
    %17 = arith.addf %4, %16 : vector<8x2x128xf32>
    %18 = math.tanh %17 : vector<8x2x128xf32>
    %19 = vector.shape_cast %7 : vector<1x128xf32> to vector<1x1x128xf32>
    %20 = vector.broadcast %19 : vector<1x1x128xf32> to vector<8x2x128xf32>
    %21 = arith.mulf %18, %20 : vector<8x2x128xf32>
    %cst_17 = arith.constant dense<0.000000e+00> : vector<8x2xf32>
    %22 = vector.multi_reduction <add>, %21, %cst_17 [2] : vector<8x2x128xf32> to vector<8x2xf32>
    %23 = vector.shape_cast %22 : vector<8x2xf32> to vector<8x2x1xf32>
    %cst_18 = arith.constant dense<0xFF800000> : vector<2x1xf32>
    %24 = vector.multi_reduction <maximumf>, %23, %cst_18 [0] : vector<8x2x1xf32> to vector<2x1xf32>
    %25 = vector.shape_cast %24 : vector<2x1xf32> to vector<1x2x1xf32>
    %26 = vector.broadcast %25 : vector<1x2x1xf32> to vector<8x2x1xf32>
    %27 = arith.subf %23, %26 : vector<8x2x1xf32>
    %28 = math.exp %27 : vector<8x2x1xf32>
    %cst_19 = arith.constant dense<0.000000e+00> : vector<2x1xf32>
    %29 = vector.multi_reduction <add>, %28, %cst_19 [0] : vector<8x2x1xf32> to vector<2x1xf32>
    %30 = tpu.reciprocal %29 {approx = true} : vector<2x1xf32> -> vector<2x1xf32>
    %31 = vector.broadcast %28 : vector<8x2x1xf32> to vector<8x2x128xf32>
    %32 = arith.mulf %31, %3 : vector<8x2x128xf32>
    %cst_20 = arith.constant dense<0.000000e+00> : vector<2x128xf32>
    %33 = vector.multi_reduction <add>, %32, %cst_20 [0] : vector<8x2x128xf32> to vector<2x128xf32>
    %34 = vector.broadcast %30 : vector<2x1xf32> to vector<2x128xf32>
    %35 = arith.mulf %33, %34 : vector<2x128xf32>
    %cst_21 = arith.constant dense<0.000000e+00> : vector<2x384xf32>
    %36 = tpu.matmul %35, %8, %cst_21 {dimension_numbers = #tpu.dot_dimension_numbers<[1], [0], [0], [1], [0, 0, 1, 1], [], []>} : vector<2x128xf32>, vector<128x384xf32>, vector<2x384xf32> -> vector<2x384xf32>
    %37 = arith.index_cast %c0_i32_16 : i32 to index
    %c0_22 = arith.constant 0 : index
    %c0_23 = arith.constant 0 : index
    %38 = vector.load %arg3[%37, %c0_22, %c0_23] : memref<8x2x384xf32, #tpu.memory_space<vmem>>, vector<1x2x384xf32>
    %39 = vector.shape_cast %38 : vector<1x2x384xf32> to vector<2x384xf32>
    %40 = arith.addf %36, %39 : vector<2x384xf32>
    %41 = vector.extract_strided_slice %40 {offsets = [0, 0], sizes = [2, 128], strides = [1, 1]} : vector<2x384xf32> to vector<2x128xf32>
    %42 = vector.extract_strided_slice %14 {offsets = [0, 0], sizes = [2, 128], strides = [1, 1]} : vector<2x384xf32> to vector<2x128xf32>
    %43 = arith.addf %41, %42 : vector<2x128xf32>
    %44 = arith.negf %43 : vector<2x128xf32>
    %45 = math.exp %44 : vector<2x128xf32>
    %cst_24 = arith.constant 1.000000e+00 : f32
    %46 = vector.broadcast %cst_24 : f32 to vector<2x128xf32>
    %47 = arith.addf %46, %45 : vector<2x128xf32>
    %48 = arith.divf %46, %47 : vector<2x128xf32>
    %49 = vector.extract_strided_slice %40 {offsets = [0, 128], sizes = [2, 128], strides = [1, 1]} : vector<2x384xf32> to vector<2x128xf32>
    %50 = vector.extract_strided_slice %14 {offsets = [0, 128], sizes = [2, 128], strides = [1, 1]} : vector<2x384xf32> to vector<2x128xf32>
    %51 = arith.addf %49, %50 : vector<2x128xf32>
    %52 = arith.negf %51 : vector<2x128xf32>
    %53 = math.exp %52 : vector<2x128xf32>
    %cst_25 = arith.constant 1.000000e+00 : f32
    %54 = vector.broadcast %cst_25 : f32 to vector<2x128xf32>
    %55 = arith.addf %54, %53 : vector<2x128xf32>
    %56 = arith.divf %54, %55 : vector<2x128xf32>
    %57 = vector.extract_strided_slice %40 {offsets = [0, 256], sizes = [2, 128], strides = [1, 1]} : vector<2x384xf32> to vector<2x128xf32>
    %58 = vector.extract_strided_slice %14 {offsets = [0, 256], sizes = [2, 128], strides = [1, 1]} : vector<2x384xf32> to vector<2x128xf32>
    %59 = arith.mulf %48, %58 : vector<2x128xf32>
    %60 = arith.addf %57, %59 : vector<2x128xf32>
    %61 = math.tanh %60 : vector<2x128xf32>
    %cst_26 = arith.constant 1.000000e+00 : f32
    %62 = vector.broadcast %cst_26 : f32 to vector<2x128xf32>
    %63 = arith.subf %62, %56 : vector<2x128xf32>
    %64 = arith.mulf %63, %61 : vector<2x128xf32>
    %65 = arith.mulf %56, %9 : vector<2x128xf32>
    %66 = arith.addf %64, %65 : vector<2x128xf32>
    %67 = arith.index_cast %c0_i32_16 : i32 to index
    %c0_27 = arith.constant 0 : index
    %c0_28 = arith.constant 0 : index
    %68 = vector.load %arg8[%67, %c0_27, %c0_28] : memref<8x2x128xf32, #tpu.memory_space<vmem>>, vector<1x2x128xf32>
    %69 = vector.shape_cast %68 : vector<1x2x128xf32> to vector<2x128xf32>
    %70 = vector.shape_cast %66 : vector<2x128xf32> to vector<1x2x128xf32>
    tpu.vector_store %arg8[%67, %c0_27, %c0_28], %70 {strides = array<i32>} : memref<8x2x128xf32, #tpu.memory_space<vmem>>, vector<1x2x128xf32>,
    %c1_i32 = arith.constant 1 : i32
    %cst_29 = arith.constant dense<0.000000e+00> : vector<2x512xf32>
    %71 = tpu.matmul %66, %5, %cst_29 {dimension_numbers = #tpu.dot_dimension_numbers<[1], [0], [0], [1], [0, 0, 1, 1], [], []>} : vector<2x128xf32>, vector<128x512xf32>, vector<2x512xf32> -> vector<2x512xf32>
    %72 = vector.broadcast %6 : vector<1x512xf32> to vector<2x512xf32>
    %73 = arith.addf %71, %72 : vector<2x512xf32>
    %74 = vector.extract_strided_slice %73 {offsets = [0, 0], sizes = [2, 128], strides = [1, 1]} : vector<2x512xf32> to vector<2x128xf32>
    %75 = vector.extract_strided_slice %73 {offsets = [0, 128], sizes = [2, 384], strides = [1, 1]} : vector<2x512xf32> to vector<2x384xf32>
    %76 = vector.shape_cast %74 : vector<2x128xf32> to vector<1x2x128xf32>
    %77 = vector.broadcast %76 : vector<1x2x128xf32> to vector<8x2x128xf32>
    %78 = arith.addf %4, %77 : vector<8x2x128xf32>
    %79 = math.tanh %78 : vector<8x2x128xf32>
    %80 = vector.shape_cast %7 : vector<1x128xf32> to vector<1x1x128xf32>
    %81 = vector.broadcast %80 : vector<1x1x128xf32> to vector<8x2x128xf32>
    %82 = arith.mulf %79, %81 : vector<8x2x128xf32>
    %cst_30 = arith.constant dense<0.000000e+00> : vector<8x2xf32>
    %83 = vector.multi_reduction <add>, %82, %cst_30 [2] : vector<8x2x128xf32> to vector<8x2xf32>
    %84 = vector.shape_cast %83 : vector<8x2xf32> to vector<8x2x1xf32>
    %cst_31 = arith.constant dense<0xFF800000> : vector<2x1xf32>
    %85 = vector.multi_reduction <maximumf>, %84, %cst_31 [0] : vector<8x2x1xf32> to vector<2x1xf32>
    %86 = vector.shape_cast %85 : vector<2x1xf32> to vector<1x2x1xf32>
    %87 = vector.broadcast %86 : vector<1x2x1xf32> to vector<8x2x1xf32>
    %88 = arith.subf %84, %87 : vector<8x2x1xf32>
    %89 = math.exp %88 : vector<8x2x1xf32>
    %cst_32 = arith.constant dense<0.000000e+00> : vector<2x1xf32>
    %90 = vector.multi_reduction <add>, %89, %cst_32 [0] : vector<8x2x1xf32> to vector<2x1xf32>
    %91 = tpu.reciprocal %90 {approx = true} : vector<2x1xf32> -> vector<2x1xf32>
    %92 = vector.broadcast %89 : vector<8x2x1xf32> to vector<8x2x128xf32>
    %93 = arith.mulf %92, %3 : vector<8x2x128xf32>
    %cst_33 = arith.constant dense<0.000000e+00> : vector<2x128xf32>
    %94 = vector.multi_reduction <add>, %93, %cst_33 [0] : vector<8x2x128xf32> to vector<2x128xf32>
    %95 = vector.broadcast %91 : vector<2x1xf32> to vector<2x128xf32>
    %96 = arith.mulf %94, %95 : vector<2x128xf32>
    %cst_34 = arith.constant dense<0.000000e+00> : vector<2x384xf32>
    %97 = tpu.matmul %96, %8, %cst_34 {dimension_numbers = #tpu.dot_dimension_numbers<[1], [0], [0], [1], [0, 0, 1, 1], [], []>} : vector<2x128xf32>, vector<128x384xf32>, vector<2x384xf32> -> vector<2x384xf32>
    %98 = arith.index_cast %c1_i32 : i32 to index
    %c0_35 = arith.constant 0 : index
    %c0_36 = arith.constant 0 : index
    %99 = vector.load %arg3[%98, %c0_35, %c0_36] : memref<8x2x384xf32, #tpu.memory_space<vmem>>, vector<1x2x384xf32>
    %100 = vector.shape_cast %99 : vector<1x2x384xf32> to vector<2x384xf32>
    %101 = arith.addf %97, %100 : vector<2x384xf32>
    %102 = vector.extract_strided_slice %101 {offsets = [0, 0], sizes = [2, 128], strides = [1, 1]} : vector<2x384xf32> to vector<2x128xf32>
    %103 = vector.extract_strided_slice %75 {offsets = [0, 0], sizes = [2, 128], strides = [1, 1]} : vector<2x384xf32> to vector<2x128xf32>
    %104 = arith.addf %102, %103 : vector<2x128xf32>
    %105 = arith.negf %104 : vector<2x128xf32>
    %106 = math.exp %105 : vector<2x128xf32>
    %cst_37 = arith.constant 1.000000e+00 : f32
    %107 = vector.broadcast %cst_37 : f32 to vector<2x128xf32>
    %108 = arith.addf %107, %106 : vector<2x128xf32>
    %109 = arith.divf %107, %108 : vector<2x128xf32>
    %110 = vector.extract_strided_slice %101 {offsets = [0, 128], sizes = [2, 128], strides = [1, 1]} : vector<2x384xf32> to vector<2x128xf32>
    %111 = vector.extract_strided_slice %75 {offsets = [0, 128], sizes = [2, 128], strides = [1, 1]} : vector<2x384xf32> to vector<2x128xf32>
    %112 = arith.addf %110, %111 : vector<2x128xf32>
    %113 = arith.negf %112 : vector<2x128xf32>
    %114 = math.exp %113 : vector<2x128xf32>
    %cst_38 = arith.constant 1.000000e+00 : f32
    %115 = vector.broadcast %cst_38 : f32 to vector<2x128xf32>
    %116 = arith.addf %115, %114 : vector<2x128xf32>
    %117 = arith.divf %115, %116 : vector<2x128xf32>
    %118 = vector.extract_strided_slice %101 {offsets = [0, 256], sizes = [2, 128], strides = [1, 1]} : vector<2x384xf32> to vector<2x128xf32>
    %119 = vector.extract_strided_slice %75 {offsets = [0, 256], sizes = [2, 128], strides = [1, 1]} : vector<2x384xf32> to vector<2x128xf32>
    %120 = arith.mulf %109, %119 : vector<2x128xf32>
    %121 = arith.addf %118, %120 : vector<2x128xf32>
    %122 = math.tanh %121 : vector<2x128xf32>
    %cst_39 = arith.constant 1.000000e+00 : f32
    %123 = vector.broadcast %cst_39 : f32 to vector<2x128xf32>
    %124 = arith.subf %123, %117 : vector<2x128xf32>
    %125 = arith.mulf %124, %122 : vector<2x128xf32>
    %126 = arith.mulf %117, %66 : vector<2x128xf32>
    %127 = arith.addf %125, %126 : vector<2x128xf32>
    %128 = arith.index_cast %c1_i32 : i32 to index
    %c0_40 = arith.constant 0 : index
    %c0_41 = arith.constant 0 : index
    %129 = vector.load %arg8[%128, %c0_40, %c0_41] : memref<8x2x128xf32, #tpu.memory_space<vmem>>, vector<1x2x128xf32>
    %130 = vector.shape_cast %129 : vector<1x2x128xf32> to vector<2x128xf32>
    %131 = vector.shape_cast %127 : vector<2x128xf32> to vector<1x2x128xf32>
    tpu.vector_store %arg8[%128, %c0_40, %c0_41], %131 {strides = array<i32>} : memref<8x2x128xf32, #tpu.memory_space<vmem>>, vector<1x2x128xf32>,
    %c2_i32 = arith.constant 2 : i32
    %cst_42 = arith.constant dense<0.000000e+00> : vector<2x512xf32>
    %132 = tpu.matmul %127, %5, %cst_42 {dimension_numbers = #tpu.dot_dimension_numbers<[1], [0], [0], [1], [0, 0, 1, 1], [], []>} : vector<2x128xf32>, vector<128x512xf32>, vector<2x512xf32> -> vector<2x512xf32>
    %133 = vector.broadcast %6 : vector<1x512xf32> to vector<2x512xf32>
    %134 = arith.addf %132, %133 : vector<2x512xf32>
    %135 = vector.extract_strided_slice %134 {offsets = [0, 0], sizes = [2, 128], strides = [1, 1]} : vector<2x512xf32> to vector<2x128xf32>
    %136 = vector.extract_strided_slice %134 {offsets = [0, 128], sizes = [2, 384], strides = [1, 1]} : vector<2x512xf32> to vector<2x384xf32>
    %137 = vector.shape_cast %135 : vector<2x128xf32> to vector<1x2x128xf32>
    %138 = vector.broadcast %137 : vector<1x2x128xf32> to vector<8x2x128xf32>
    %139 = arith.addf %4, %138 : vector<8x2x128xf32>
    %140 = math.tanh %139 : vector<8x2x128xf32>
    %141 = vector.shape_cast %7 : vector<1x128xf32> to vector<1x1x128xf32>
    %142 = vector.broadcast %141 : vector<1x1x128xf32> to vector<8x2x128xf32>
    %143 = arith.mulf %140, %142 : vector<8x2x128xf32>
    %cst_43 = arith.constant dense<0.000000e+00> : vector<8x2xf32>
    %144 = vector.multi_reduction <add>, %143, %cst_43 [2] : vector<8x2x128xf32> to vector<8x2xf32>
    %145 = vector.shape_cast %144 : vector<8x2xf32> to vector<8x2x1xf32>
    %cst_44 = arith.constant dense<0xFF800000> : vector<2x1xf32>
    %146 = vector.multi_reduction <maximumf>, %145, %cst_44 [0] : vector<8x2x1xf32> to vector<2x1xf32>
    %147 = vector.shape_cast %146 : vector<2x1xf32> to vector<1x2x1xf32>
    %148 = vector.broadcast %147 : vector<1x2x1xf32> to vector<8x2x1xf32>
    %149 = arith.subf %145, %148 : vector<8x2x1xf32>
    %150 = math.exp %149 : vector<8x2x1xf32>
    %cst_45 = arith.constant dense<0.000000e+00> : vector<2x1xf32>
    %151 = vector.multi_reduction <add>, %150, %cst_45 [0] : vector<8x2x1xf32> to vector<2x1xf32>
    %152 = tpu.reciprocal %151 {approx = true} : vector<2x1xf32> -> vector<2x1xf32>
    %153 = vector.broadcast %150 : vector<8x2x1xf32> to vector<8x2x128xf32>
    %154 = arith.mulf %153, %3 : vector<8x2x128xf32>
    %cst_46 = arith.constant dense<0.000000e+00> : vector<2x128xf32>
    %155 = vector.multi_reduction <add>, %154, %cst_46 [0] : vector<8x2x128xf32> to vector<2x128xf32>
    %156 = vector.broadcast %152 : vector<2x1xf32> to vector<2x128xf32>
    %157 = arith.mulf %155, %156 : vector<2x128xf32>
    %cst_47 = arith.constant dense<0.000000e+00> : vector<2x384xf32>
    %158 = tpu.matmul %157, %8, %cst_47 {dimension_numbers = #tpu.dot_dimension_numbers<[1], [0], [0], [1], [0, 0, 1, 1], [], []>} : vector<2x128xf32>, vector<128x384xf32>, vector<2x384xf32> -> vector<2x384xf32>
    %159 = arith.index_cast %c2_i32 : i32 to index
    %c0_48 = arith.constant 0 : index
    %c0_49 = arith.constant 0 : index
    %160 = vector.load %arg3[%159, %c0_48, %c0_49] : memref<8x2x384xf32, #tpu.memory_space<vmem>>, vector<1x2x384xf32>
    %161 = vector.shape_cast %160 : vector<1x2x384xf32> to vector<2x384xf32>
    %162 = arith.addf %158, %161 : vector<2x384xf32>
    %163 = vector.extract_strided_slice %162 {offsets = [0, 0], sizes = [2, 128], strides = [1, 1]} : vector<2x384xf32> to vector<2x128xf32>
    %164 = vector.extract_strided_slice %136 {offsets = [0, 0], sizes = [2, 128], strides = [1, 1]} : vector<2x384xf32> to vector<2x128xf32>
    %165 = arith.addf %163, %164 : vector<2x128xf32>
    %166 = arith.negf %165 : vector<2x128xf32>
    %167 = math.exp %166 : vector<2x128xf32>
    %cst_50 = arith.constant 1.000000e+00 : f32
    %168 = vector.broadcast %cst_50 : f32 to vector<2x128xf32>
    %169 = arith.addf %168, %167 : vector<2x128xf32>
    %170 = arith.divf %168, %169 : vector<2x128xf32>
    %171 = vector.extract_strided_slice %162 {offsets = [0, 128], sizes = [2, 128], strides = [1, 1]} : vector<2x384xf32> to vector<2x128xf32>
    %172 = vector.extract_strided_slice %136 {offsets = [0, 128], sizes = [2, 128], strides = [1, 1]} : vector<2x384xf32> to vector<2x128xf32>
    %173 = arith.addf %171, %172 : vector<2x128xf32>
    %174 = arith.negf %173 : vector<2x128xf32>
    %175 = math.exp %174 : vector<2x128xf32>
    %cst_51 = arith.constant 1.000000e+00 : f32
    %176 = vector.broadcast %cst_51 : f32 to vector<2x128xf32>
    %177 = arith.addf %176, %175 : vector<2x128xf32>
    %178 = arith.divf %176, %177 : vector<2x128xf32>
    %179 = vector.extract_strided_slice %162 {offsets = [0, 256], sizes = [2, 128], strides = [1, 1]} : vector<2x384xf32> to vector<2x128xf32>
    %180 = vector.extract_strided_slice %136 {offsets = [0, 256], sizes = [2, 128], strides = [1, 1]} : vector<2x384xf32> to vector<2x128xf32>
    %181 = arith.mulf %170, %180 : vector<2x128xf32>
    %182 = arith.addf %179, %181 : vector<2x128xf32>
    %183 = math.tanh %182 : vector<2x128xf32>
    %cst_52 = arith.constant 1.000000e+00 : f32
    %184 = vector.broadcast %cst_52 : f32 to vector<2x128xf32>
    %185 = arith.subf %184, %178 : vector<2x128xf32>
    %186 = arith.mulf %185, %183 : vector<2x128xf32>
    %187 = arith.mulf %178, %127 : vector<2x128xf32>
    %188 = arith.addf %186, %187 : vector<2x128xf32>
    %189 = arith.index_cast %c2_i32 : i32 to index
    %c0_53 = arith.constant 0 : index
    %c0_54 = arith.constant 0 : index
    %190 = vector.load %arg8[%189, %c0_53, %c0_54] : memref<8x2x128xf32, #tpu.memory_space<vmem>>, vector<1x2x128xf32>
    %191 = vector.shape_cast %190 : vector<1x2x128xf32> to vector<2x128xf32>
    %192 = vector.shape_cast %188 : vector<2x128xf32> to vector<1x2x128xf32>
    tpu.vector_store %arg8[%189, %c0_53, %c0_54], %192 {strides = array<i32>} : memref<8x2x128xf32, #tpu.memory_space<vmem>>, vector<1x2x128xf32>,
    %c3_i32 = arith.constant 3 : i32
    %cst_55 = arith.constant dense<0.000000e+00> : vector<2x512xf32>
    %193 = tpu.matmul %188, %5, %cst_55 {dimension_numbers = #tpu.dot_dimension_numbers<[1], [0], [0], [1], [0, 0, 1, 1], [], []>} : vector<2x128xf32>, vector<128x512xf32>, vector<2x512xf32> -> vector<2x512xf32>
    %194 = vector.broadcast %6 : vector<1x512xf32> to vector<2x512xf32>
    %195 = arith.addf %193, %194 : vector<2x512xf32>
    %196 = vector.extract_strided_slice %195 {offsets = [0, 0], sizes = [2, 128], strides = [1, 1]} : vector<2x512xf32> to vector<2x128xf32>
    %197 = vector.extract_strided_slice %195 {offsets = [0, 128], sizes = [2, 384], strides = [1, 1]} : vector<2x512xf32> to vector<2x384xf32>
    %198 = vector.shape_cast %196 : vector<2x128xf32> to vector<1x2x128xf32>
    %199 = vector.broadcast %198 : vector<1x2x128xf32> to vector<8x2x128xf32>
    %200 = arith.addf %4, %199 : vector<8x2x128xf32>
    %201 = math.tanh %200 : vector<8x2x128xf32>
    %202 = vector.shape_cast %7 : vector<1x128xf32> to vector<1x1x128xf32>
    %203 = vector.broadcast %202 : vector<1x1x128xf32> to vector<8x2x128xf32>
    %204 = arith.mulf %201, %203 : vector<8x2x128xf32>
    %cst_56 = arith.constant dense<0.000000e+00> : vector<8x2xf32>
    %205 = vector.multi_reduction <add>, %204, %cst_56 [2] : vector<8x2x128xf32> to vector<8x2xf32>
    %206 = vector.shape_cast %205 : vector<8x2xf32> to vector<8x2x1xf32>
    %cst_57 = arith.constant dense<0xFF800000> : vector<2x1xf32>
    %207 = vector.multi_reduction <maximumf>, %206, %cst_57 [0] : vector<8x2x1xf32> to vector<2x1xf32>
    %208 = vector.shape_cast %207 : vector<2x1xf32> to vector<1x2x1xf32>
    %209 = vector.broadcast %208 : vector<1x2x1xf32> to vector<8x2x1xf32>
    %210 = arith.subf %206, %209 : vector<8x2x1xf32>
    %211 = math.exp %210 : vector<8x2x1xf32>
    %cst_58 = arith.constant dense<0.000000e+00> : vector<2x1xf32>
    %212 = vector.multi_reduction <add>, %211, %cst_58 [0] : vector<8x2x1xf32> to vector<2x1xf32>
    %213 = tpu.reciprocal %212 {approx = true} : vector<2x1xf32> -> vector<2x1xf32>
    %214 = vector.broadcast %211 : vector<8x2x1xf32> to vector<8x2x128xf32>
    %215 = arith.mulf %214, %3 : vector<8x2x128xf32>
    %cst_59 = arith.constant dense<0.000000e+00> : vector<2x128xf32>
    %216 = vector.multi_reduction <add>, %215, %cst_59 [0] : vector<8x2x128xf32> to vector<2x128xf32>
    %217 = vector.broadcast %213 : vector<2x1xf32> to vector<2x128xf32>
    %218 = arith.mulf %216, %217 : vector<2x128xf32>
    %cst_60 = arith.constant dense<0.000000e+00> : vector<2x384xf32>
    %219 = tpu.matmul %218, %8, %cst_60 {dimension_numbers = #tpu.dot_dimension_numbers<[1], [0], [0], [1], [0, 0, 1, 1], [], []>} : vector<2x128xf32>, vector<128x384xf32>, vector<2x384xf32> -> vector<2x384xf32>
    %220 = arith.index_cast %c3_i32 : i32 to index
    %c0_61 = arith.constant 0 : index
    %c0_62 = arith.constant 0 : index
    %221 = vector.load %arg3[%220, %c0_61, %c0_62] : memref<8x2x384xf32, #tpu.memory_space<vmem>>, vector<1x2x384xf32>
    %222 = vector.shape_cast %221 : vector<1x2x384xf32> to vector<2x384xf32>
    %223 = arith.addf %219, %222 : vector<2x384xf32>
    %224 = vector.extract_strided_slice %223 {offsets = [0, 0], sizes = [2, 128], strides = [1, 1]} : vector<2x384xf32> to vector<2x128xf32>
    %225 = vector.extract_strided_slice %197 {offsets = [0, 0], sizes = [2, 128], strides = [1, 1]} : vector<2x384xf32> to vector<2x128xf32>
    %226 = arith.addf %224, %225 : vector<2x128xf32>
    %227 = arith.negf %226 : vector<2x128xf32>
    %228 = math.exp %227 : vector<2x128xf32>
    %cst_63 = arith.constant 1.000000e+00 : f32
    %229 = vector.broadcast %cst_63 : f32 to vector<2x128xf32>
    %230 = arith.addf %229, %228 : vector<2x128xf32>
    %231 = arith.divf %229, %230 : vector<2x128xf32>
    %232 = vector.extract_strided_slice %223 {offsets = [0, 128], sizes = [2, 128], strides = [1, 1]} : vector<2x384xf32> to vector<2x128xf32>
    %233 = vector.extract_strided_slice %197 {offsets = [0, 128], sizes = [2, 128], strides = [1, 1]} : vector<2x384xf32> to vector<2x128xf32>
    %234 = arith.addf %232, %233 : vector<2x128xf32>
    %235 = arith.negf %234 : vector<2x128xf32>
    %236 = math.exp %235 : vector<2x128xf32>
    %cst_64 = arith.constant 1.000000e+00 : f32
    %237 = vector.broadcast %cst_64 : f32 to vector<2x128xf32>
    %238 = arith.addf %237, %236 : vector<2x128xf32>
    %239 = arith.divf %237, %238 : vector<2x128xf32>
    %240 = vector.extract_strided_slice %223 {offsets = [0, 256], sizes = [2, 128], strides = [1, 1]} : vector<2x384xf32> to vector<2x128xf32>
    %241 = vector.extract_strided_slice %197 {offsets = [0, 256], sizes = [2, 128], strides = [1, 1]} : vector<2x384xf32> to vector<2x128xf32>
    %242 = arith.mulf %231, %241 : vector<2x128xf32>
    %243 = arith.addf %240, %242 : vector<2x128xf32>
    %244 = math.tanh %243 : vector<2x128xf32>
    %cst_65 = arith.constant 1.000000e+00 : f32
    %245 = vector.broadcast %cst_65 : f32 to vector<2x128xf32>
    %246 = arith.subf %245, %239 : vector<2x128xf32>
    %247 = arith.mulf %246, %244 : vector<2x128xf32>
    %248 = arith.mulf %239, %188 : vector<2x128xf32>
    %249 = arith.addf %247, %248 : vector<2x128xf32>
    %250 = arith.index_cast %c3_i32 : i32 to index
    %c0_66 = arith.constant 0 : index
    %c0_67 = arith.constant 0 : index
    %251 = vector.load %arg8[%250, %c0_66, %c0_67] : memref<8x2x128xf32, #tpu.memory_space<vmem>>, vector<1x2x128xf32>
    %252 = vector.shape_cast %251 : vector<1x2x128xf32> to vector<2x128xf32>
    %253 = vector.shape_cast %249 : vector<2x128xf32> to vector<1x2x128xf32>
    tpu.vector_store %arg8[%250, %c0_66, %c0_67], %253 {strides = array<i32>} : memref<8x2x128xf32, #tpu.memory_space<vmem>>, vector<1x2x128xf32>,
    %c4_i32 = arith.constant 4 : i32
    %cst_68 = arith.constant dense<0.000000e+00> : vector<2x512xf32>
    %254 = tpu.matmul %249, %5, %cst_68 {dimension_numbers = #tpu.dot_dimension_numbers<[1], [0], [0], [1], [0, 0, 1, 1], [], []>} : vector<2x128xf32>, vector<128x512xf32>, vector<2x512xf32> -> vector<2x512xf32>
    %255 = vector.broadcast %6 : vector<1x512xf32> to vector<2x512xf32>
    %256 = arith.addf %254, %255 : vector<2x512xf32>
    %257 = vector.extract_strided_slice %256 {offsets = [0, 0], sizes = [2, 128], strides = [1, 1]} : vector<2x512xf32> to vector<2x128xf32>
    %258 = vector.extract_strided_slice %256 {offsets = [0, 128], sizes = [2, 384], strides = [1, 1]} : vector<2x512xf32> to vector<2x384xf32>
    %259 = vector.shape_cast %257 : vector<2x128xf32> to vector<1x2x128xf32>
    %260 = vector.broadcast %259 : vector<1x2x128xf32> to vector<8x2x128xf32>
    %261 = arith.addf %4, %260 : vector<8x2x128xf32>
    %262 = math.tanh %261 : vector<8x2x128xf32>
    %263 = vector.shape_cast %7 : vector<1x128xf32> to vector<1x1x128xf32>
    %264 = vector.broadcast %263 : vector<1x1x128xf32> to vector<8x2x128xf32>
    %265 = arith.mulf %262, %264 : vector<8x2x128xf32>
    %cst_69 = arith.constant dense<0.000000e+00> : vector<8x2xf32>
    %266 = vector.multi_reduction <add>, %265, %cst_69 [2] : vector<8x2x128xf32> to vector<8x2xf32>
    %267 = vector.shape_cast %266 : vector<8x2xf32> to vector<8x2x1xf32>
    %cst_70 = arith.constant dense<0xFF800000> : vector<2x1xf32>
    %268 = vector.multi_reduction <maximumf>, %267, %cst_70 [0] : vector<8x2x1xf32> to vector<2x1xf32>
    %269 = vector.shape_cast %268 : vector<2x1xf32> to vector<1x2x1xf32>
    %270 = vector.broadcast %269 : vector<1x2x1xf32> to vector<8x2x1xf32>
    %271 = arith.subf %267, %270 : vector<8x2x1xf32>
    %272 = math.exp %271 : vector<8x2x1xf32>
    %cst_71 = arith.constant dense<0.000000e+00> : vector<2x1xf32>
    %273 = vector.multi_reduction <add>, %272, %cst_71 [0] : vector<8x2x1xf32> to vector<2x1xf32>
    %274 = tpu.reciprocal %273 {approx = true} : vector<2x1xf32> -> vector<2x1xf32>
    %275 = vector.broadcast %272 : vector<8x2x1xf32> to vector<8x2x128xf32>
    %276 = arith.mulf %275, %3 : vector<8x2x128xf32>
    %cst_72 = arith.constant dense<0.000000e+00> : vector<2x128xf32>
    %277 = vector.multi_reduction <add>, %276, %cst_72 [0] : vector<8x2x128xf32> to vector<2x128xf32>
    %278 = vector.broadcast %274 : vector<2x1xf32> to vector<2x128xf32>
    %279 = arith.mulf %277, %278 : vector<2x128xf32>
    %cst_73 = arith.constant dense<0.000000e+00> : vector<2x384xf32>
    %280 = tpu.matmul %279, %8, %cst_73 {dimension_numbers = #tpu.dot_dimension_numbers<[1], [0], [0], [1], [0, 0, 1, 1], [], []>} : vector<2x128xf32>, vector<128x384xf32>, vector<2x384xf32> -> vector<2x384xf32>
    %281 = arith.index_cast %c4_i32 : i32 to index
    %c0_74 = arith.constant 0 : index
    %c0_75 = arith.constant 0 : index
    %282 = vector.load %arg3[%281, %c0_74, %c0_75] : memref<8x2x384xf32, #tpu.memory_space<vmem>>, vector<1x2x384xf32>
    %283 = vector.shape_cast %282 : vector<1x2x384xf32> to vector<2x384xf32>
    %284 = arith.addf %280, %283 : vector<2x384xf32>
    %285 = vector.extract_strided_slice %284 {offsets = [0, 0], sizes = [2, 128], strides = [1, 1]} : vector<2x384xf32> to vector<2x128xf32>
    %286 = vector.extract_strided_slice %258 {offsets = [0, 0], sizes = [2, 128], strides = [1, 1]} : vector<2x384xf32> to vector<2x128xf32>
    %287 = arith.addf %285, %286 : vector<2x128xf32>
    %288 = arith.negf %287 : vector<2x128xf32>
    %289 = math.exp %288 : vector<2x128xf32>
    %cst_76 = arith.constant 1.000000e+00 : f32
    %290 = vector.broadcast %cst_76 : f32 to vector<2x128xf32>
    %291 = arith.addf %290, %289 : vector<2x128xf32>
    %292 = arith.divf %290, %291 : vector<2x128xf32>
    %293 = vector.extract_strided_slice %284 {offsets = [0, 128], sizes = [2, 128], strides = [1, 1]} : vector<2x384xf32> to vector<2x128xf32>
    %294 = vector.extract_strided_slice %258 {offsets = [0, 128], sizes = [2, 128], strides = [1, 1]} : vector<2x384xf32> to vector<2x128xf32>
    %295 = arith.addf %293, %294 : vector<2x128xf32>
    %296 = arith.negf %295 : vector<2x128xf32>
    %297 = math.exp %296 : vector<2x128xf32>
    %cst_77 = arith.constant 1.000000e+00 : f32
    %298 = vector.broadcast %cst_77 : f32 to vector<2x128xf32>
    %299 = arith.addf %298, %297 : vector<2x128xf32>
    %300 = arith.divf %298, %299 : vector<2x128xf32>
    %301 = vector.extract_strided_slice %284 {offsets = [0, 256], sizes = [2, 128], strides = [1, 1]} : vector<2x384xf32> to vector<2x128xf32>
    %302 = vector.extract_strided_slice %258 {offsets = [0, 256], sizes = [2, 128], strides = [1, 1]} : vector<2x384xf32> to vector<2x128xf32>
    %303 = arith.mulf %292, %302 : vector<2x128xf32>
    %304 = arith.addf %301, %303 : vector<2x128xf32>
    %305 = math.tanh %304 : vector<2x128xf32>
    %cst_78 = arith.constant 1.000000e+00 : f32
    %306 = vector.broadcast %cst_78 : f32 to vector<2x128xf32>
    %307 = arith.subf %306, %300 : vector<2x128xf32>
    %308 = arith.mulf %307, %305 : vector<2x128xf32>
    %309 = arith.mulf %300, %249 : vector<2x128xf32>
    %310 = arith.addf %308, %309 : vector<2x128xf32>
    %311 = arith.index_cast %c4_i32 : i32 to index
    %c0_79 = arith.constant 0 : index
    %c0_80 = arith.constant 0 : index
    %312 = vector.load %arg8[%311, %c0_79, %c0_80] : memref<8x2x128xf32, #tpu.memory_space<vmem>>, vector<1x2x128xf32>
    %313 = vector.shape_cast %312 : vector<1x2x128xf32> to vector<2x128xf32>
    %314 = vector.shape_cast %310 : vector<2x128xf32> to vector<1x2x128xf32>
    tpu.vector_store %arg8[%311, %c0_79, %c0_80], %314 {strides = array<i32>} : memref<8x2x128xf32, #tpu.memory_space<vmem>>, vector<1x2x128xf32>,
    %c5_i32 = arith.constant 5 : i32
    %cst_81 = arith.constant dense<0.000000e+00> : vector<2x512xf32>
    %315 = tpu.matmul %310, %5, %cst_81 {dimension_numbers = #tpu.dot_dimension_numbers<[1], [0], [0], [1], [0, 0, 1, 1], [], []>} : vector<2x128xf32>, vector<128x512xf32>, vector<2x512xf32> -> vector<2x512xf32>
    %316 = vector.broadcast %6 : vector<1x512xf32> to vector<2x512xf32>
    %317 = arith.addf %315, %316 : vector<2x512xf32>
    %318 = vector.extract_strided_slice %317 {offsets = [0, 0], sizes = [2, 128], strides = [1, 1]} : vector<2x512xf32> to vector<2x128xf32>
    %319 = vector.extract_strided_slice %317 {offsets = [0, 128], sizes = [2, 384], strides = [1, 1]} : vector<2x512xf32> to vector<2x384xf32>
    %320 = vector.shape_cast %318 : vector<2x128xf32> to vector<1x2x128xf32>
    %321 = vector.broadcast %320 : vector<1x2x128xf32> to vector<8x2x128xf32>
    %322 = arith.addf %4, %321 : vector<8x2x128xf32>
    %323 = math.tanh %322 : vector<8x2x128xf32>
    %324 = vector.shape_cast %7 : vector<1x128xf32> to vector<1x1x128xf32>
    %325 = vector.broadcast %324 : vector<1x1x128xf32> to vector<8x2x128xf32>
    %326 = arith.mulf %323, %325 : vector<8x2x128xf32>
    %cst_82 = arith.constant dense<0.000000e+00> : vector<8x2xf32>
    %327 = vector.multi_reduction <add>, %326, %cst_82 [2] : vector<8x2x128xf32> to vector<8x2xf32>
    %328 = vector.shape_cast %327 : vector<8x2xf32> to vector<8x2x1xf32>
    %cst_83 = arith.constant dense<0xFF800000> : vector<2x1xf32>
    %329 = vector.multi_reduction <maximumf>, %328, %cst_83 [0] : vector<8x2x1xf32> to vector<2x1xf32>
    %330 = vector.shape_cast %329 : vector<2x1xf32> to vector<1x2x1xf32>
    %331 = vector.broadcast %330 : vector<1x2x1xf32> to vector<8x2x1xf32>
    %332 = arith.subf %328, %331 : vector<8x2x1xf32>
    %333 = math.exp %332 : vector<8x2x1xf32>
    %cst_84 = arith.constant dense<0.000000e+00> : vector<2x1xf32>
    %334 = vector.multi_reduction <add>, %333, %cst_84 [0] : vector<8x2x1xf32> to vector<2x1xf32>
    %335 = tpu.reciprocal %334 {approx = true} : vector<2x1xf32> -> vector<2x1xf32>
    %336 = vector.broadcast %333 : vector<8x2x1xf32> to vector<8x2x128xf32>
    %337 = arith.mulf %336, %3 : vector<8x2x128xf32>
    %cst_85 = arith.constant dense<0.000000e+00> : vector<2x128xf32>
    %338 = vector.multi_reduction <add>, %337, %cst_85 [0] : vector<8x2x128xf32> to vector<2x128xf32>
    %339 = vector.broadcast %335 : vector<2x1xf32> to vector<2x128xf32>
    %340 = arith.mulf %338, %339 : vector<2x128xf32>
    %cst_86 = arith.constant dense<0.000000e+00> : vector<2x384xf32>
    %341 = tpu.matmul %340, %8, %cst_86 {dimension_numbers = #tpu.dot_dimension_numbers<[1], [0], [0], [1], [0, 0, 1, 1], [], []>} : vector<2x128xf32>, vector<128x384xf32>, vector<2x384xf32> -> vector<2x384xf32>
    %342 = arith.index_cast %c5_i32 : i32 to index
    %c0_87 = arith.constant 0 : index
    %c0_88 = arith.constant 0 : index
    %343 = vector.load %arg3[%342, %c0_87, %c0_88] : memref<8x2x384xf32, #tpu.memory_space<vmem>>, vector<1x2x384xf32>
    %344 = vector.shape_cast %343 : vector<1x2x384xf32> to vector<2x384xf32>
    %345 = arith.addf %341, %344 : vector<2x384xf32>
    %346 = vector.extract_strided_slice %345 {offsets = [0, 0], sizes = [2, 128], strides = [1, 1]} : vector<2x384xf32> to vector<2x128xf32>
    %347 = vector.extract_strided_slice %319 {offsets = [0, 0], sizes = [2, 128], strides = [1, 1]} : vector<2x384xf32> to vector<2x128xf32>
    %348 = arith.addf %346, %347 : vector<2x128xf32>
    %349 = arith.negf %348 : vector<2x128xf32>
    %350 = math.exp %349 : vector<2x128xf32>
    %cst_89 = arith.constant 1.000000e+00 : f32
    %351 = vector.broadcast %cst_89 : f32 to vector<2x128xf32>
    %352 = arith.addf %351, %350 : vector<2x128xf32>
    %353 = arith.divf %351, %352 : vector<2x128xf32>
    %354 = vector.extract_strided_slice %345 {offsets = [0, 128], sizes = [2, 128], strides = [1, 1]} : vector<2x384xf32> to vector<2x128xf32>
    %355 = vector.extract_strided_slice %319 {offsets = [0, 128], sizes = [2, 128], strides = [1, 1]} : vector<2x384xf32> to vector<2x128xf32>
    %356 = arith.addf %354, %355 : vector<2x128xf32>
    %357 = arith.negf %356 : vector<2x128xf32>
    %358 = math.exp %357 : vector<2x128xf32>
    %cst_90 = arith.constant 1.000000e+00 : f32
    %359 = vector.broadcast %cst_90 : f32 to vector<2x128xf32>
    %360 = arith.addf %359, %358 : vector<2x128xf32>
    %361 = arith.divf %359, %360 : vector<2x128xf32>
    %362 = vector.extract_strided_slice %345 {offsets = [0, 256], sizes = [2, 128], strides = [1, 1]} : vector<2x384xf32> to vector<2x128xf32>
    %363 = vector.extract_strided_slice %319 {offsets = [0, 256], sizes = [2, 128], strides = [1, 1]} : vector<2x384xf32> to vector<2x128xf32>
    %364 = arith.mulf %353, %363 : vector<2x128xf32>
    %365 = arith.addf %362, %364 : vector<2x128xf32>
    %366 = math.tanh %365 : vector<2x128xf32>
    %cst_91 = arith.constant 1.000000e+00 : f32
    %367 = vector.broadcast %cst_91 : f32 to vector<2x128xf32>
    %368 = arith.subf %367, %361 : vector<2x128xf32>
    %369 = arith.mulf %368, %366 : vector<2x128xf32>
    %370 = arith.mulf %361, %310 : vector<2x128xf32>
    %371 = arith.addf %369, %370 : vector<2x128xf32>
    %372 = arith.index_cast %c5_i32 : i32 to index
    %c0_92 = arith.constant 0 : index
    %c0_93 = arith.constant 0 : index
    %373 = vector.load %arg8[%372, %c0_92, %c0_93] : memref<8x2x128xf32, #tpu.memory_space<vmem>>, vector<1x2x128xf32>
    %374 = vector.shape_cast %373 : vector<1x2x128xf32> to vector<2x128xf32>
    %375 = vector.shape_cast %371 : vector<2x128xf32> to vector<1x2x128xf32>
    tpu.vector_store %arg8[%372, %c0_92, %c0_93], %375 {strides = array<i32>} : memref<8x2x128xf32, #tpu.memory_space<vmem>>, vector<1x2x128xf32>,
    %c6_i32 = arith.constant 6 : i32
    %cst_94 = arith.constant dense<0.000000e+00> : vector<2x512xf32>
    %376 = tpu.matmul %371, %5, %cst_94 {dimension_numbers = #tpu.dot_dimension_numbers<[1], [0], [0], [1], [0, 0, 1, 1], [], []>} : vector<2x128xf32>, vector<128x512xf32>, vector<2x512xf32> -> vector<2x512xf32>
    %377 = vector.broadcast %6 : vector<1x512xf32> to vector<2x512xf32>
    %378 = arith.addf %376, %377 : vector<2x512xf32>
    %379 = vector.extract_strided_slice %378 {offsets = [0, 0], sizes = [2, 128], strides = [1, 1]} : vector<2x512xf32> to vector<2x128xf32>
    %380 = vector.extract_strided_slice %378 {offsets = [0, 128], sizes = [2, 384], strides = [1, 1]} : vector<2x512xf32> to vector<2x384xf32>
    %381 = vector.shape_cast %379 : vector<2x128xf32> to vector<1x2x128xf32>
    %382 = vector.broadcast %381 : vector<1x2x128xf32> to vector<8x2x128xf32>
    %383 = arith.addf %4, %382 : vector<8x2x128xf32>
    %384 = math.tanh %383 : vector<8x2x128xf32>
    %385 = vector.shape_cast %7 : vector<1x128xf32> to vector<1x1x128xf32>
    %386 = vector.broadcast %385 : vector<1x1x128xf32> to vector<8x2x128xf32>
    %387 = arith.mulf %384, %386 : vector<8x2x128xf32>
    %cst_95 = arith.constant dense<0.000000e+00> : vector<8x2xf32>
    %388 = vector.multi_reduction <add>, %387, %cst_95 [2] : vector<8x2x128xf32> to vector<8x2xf32>
    %389 = vector.shape_cast %388 : vector<8x2xf32> to vector<8x2x1xf32>
    %cst_96 = arith.constant dense<0xFF800000> : vector<2x1xf32>
    %390 = vector.multi_reduction <maximumf>, %389, %cst_96 [0] : vector<8x2x1xf32> to vector<2x1xf32>
    %391 = vector.shape_cast %390 : vector<2x1xf32> to vector<1x2x1xf32>
    %392 = vector.broadcast %391 : vector<1x2x1xf32> to vector<8x2x1xf32>
    %393 = arith.subf %389, %392 : vector<8x2x1xf32>
    %394 = math.exp %393 : vector<8x2x1xf32>
    %cst_97 = arith.constant dense<0.000000e+00> : vector<2x1xf32>
    %395 = vector.multi_reduction <add>, %394, %cst_97 [0] : vector<8x2x1xf32> to vector<2x1xf32>
    %396 = tpu.reciprocal %395 {approx = true} : vector<2x1xf32> -> vector<2x1xf32>
    %397 = vector.broadcast %394 : vector<8x2x1xf32> to vector<8x2x128xf32>
    %398 = arith.mulf %397, %3 : vector<8x2x128xf32>
    %cst_98 = arith.constant dense<0.000000e+00> : vector<2x128xf32>
    %399 = vector.multi_reduction <add>, %398, %cst_98 [0] : vector<8x2x128xf32> to vector<2x128xf32>
    %400 = vector.broadcast %396 : vector<2x1xf32> to vector<2x128xf32>
    %401 = arith.mulf %399, %400 : vector<2x128xf32>
    %cst_99 = arith.constant dense<0.000000e+00> : vector<2x384xf32>
    %402 = tpu.matmul %401, %8, %cst_99 {dimension_numbers = #tpu.dot_dimension_numbers<[1], [0], [0], [1], [0, 0, 1, 1], [], []>} : vector<2x128xf32>, vector<128x384xf32>, vector<2x384xf32> -> vector<2x384xf32>
    %403 = arith.index_cast %c6_i32 : i32 to index
    %c0_100 = arith.constant 0 : index
    %c0_101 = arith.constant 0 : index
    %404 = vector.load %arg3[%403, %c0_100, %c0_101] : memref<8x2x384xf32, #tpu.memory_space<vmem>>, vector<1x2x384xf32>
    %405 = vector.shape_cast %404 : vector<1x2x384xf32> to vector<2x384xf32>
    %406 = arith.addf %402, %405 : vector<2x384xf32>
    %407 = vector.extract_strided_slice %406 {offsets = [0, 0], sizes = [2, 128], strides = [1, 1]} : vector<2x384xf32> to vector<2x128xf32>
    %408 = vector.extract_strided_slice %380 {offsets = [0, 0], sizes = [2, 128], strides = [1, 1]} : vector<2x384xf32> to vector<2x128xf32>
    %409 = arith.addf %407, %408 : vector<2x128xf32>
    %410 = arith.negf %409 : vector<2x128xf32>
    %411 = math.exp %410 : vector<2x128xf32>
    %cst_102 = arith.constant 1.000000e+00 : f32
    %412 = vector.broadcast %cst_102 : f32 to vector<2x128xf32>
    %413 = arith.addf %412, %411 : vector<2x128xf32>
    %414 = arith.divf %412, %413 : vector<2x128xf32>
    %415 = vector.extract_strided_slice %406 {offsets = [0, 128], sizes = [2, 128], strides = [1, 1]} : vector<2x384xf32> to vector<2x128xf32>
    %416 = vector.extract_strided_slice %380 {offsets = [0, 128], sizes = [2, 128], strides = [1, 1]} : vector<2x384xf32> to vector<2x128xf32>
    %417 = arith.addf %415, %416 : vector<2x128xf32>
    %418 = arith.negf %417 : vector<2x128xf32>
    %419 = math.exp %418 : vector<2x128xf32>
    %cst_103 = arith.constant 1.000000e+00 : f32
    %420 = vector.broadcast %cst_103 : f32 to vector<2x128xf32>
    %421 = arith.addf %420, %419 : vector<2x128xf32>
    %422 = arith.divf %420, %421 : vector<2x128xf32>
    %423 = vector.extract_strided_slice %406 {offsets = [0, 256], sizes = [2, 128], strides = [1, 1]} : vector<2x384xf32> to vector<2x128xf32>
    %424 = vector.extract_strided_slice %380 {offsets = [0, 256], sizes = [2, 128], strides = [1, 1]} : vector<2x384xf32> to vector<2x128xf32>
    %425 = arith.mulf %414, %424 : vector<2x128xf32>
    %426 = arith.addf %423, %425 : vector<2x128xf32>
    %427 = math.tanh %426 : vector<2x128xf32>
    %cst_104 = arith.constant 1.000000e+00 : f32
    %428 = vector.broadcast %cst_104 : f32 to vector<2x128xf32>
    %429 = arith.subf %428, %422 : vector<2x128xf32>
    %430 = arith.mulf %429, %427 : vector<2x128xf32>
    %431 = arith.mulf %422, %371 : vector<2x128xf32>
    %432 = arith.addf %430, %431 : vector<2x128xf32>
    %433 = arith.index_cast %c6_i32 : i32 to index
    %c0_105 = arith.constant 0 : index
    %c0_106 = arith.constant 0 : index
    %434 = vector.load %arg8[%433, %c0_105, %c0_106] : memref<8x2x128xf32, #tpu.memory_space<vmem>>, vector<1x2x128xf32>
    %435 = vector.shape_cast %434 : vector<1x2x128xf32> to vector<2x128xf32>
    %436 = vector.shape_cast %432 : vector<2x128xf32> to vector<1x2x128xf32>
    tpu.vector_store %arg8[%433, %c0_105, %c0_106], %436 {strides = array<i32>} : memref<8x2x128xf32, #tpu.memory_space<vmem>>, vector<1x2x128xf32>,
    %c7_i32 = arith.constant 7 : i32
    %cst_107 = arith.constant dense<0.000000e+00> : vector<2x512xf32>
    %437 = tpu.matmul %432, %5, %cst_107 {dimension_numbers = #tpu.dot_dimension_numbers<[1], [0], [0], [1], [0, 0, 1, 1], [], []>} : vector<2x128xf32>, vector<128x512xf32>, vector<2x512xf32> -> vector<2x512xf32>
    %438 = vector.broadcast %6 : vector<1x512xf32> to vector<2x512xf32>
    %439 = arith.addf %437, %438 : vector<2x512xf32>
    %440 = vector.extract_strided_slice %439 {offsets = [0, 0], sizes = [2, 128], strides = [1, 1]} : vector<2x512xf32> to vector<2x128xf32>
    %441 = vector.extract_strided_slice %439 {offsets = [0, 128], sizes = [2, 384], strides = [1, 1]} : vector<2x512xf32> to vector<2x384xf32>
    %442 = vector.shape_cast %440 : vector<2x128xf32> to vector<1x2x128xf32>
    %443 = vector.broadcast %442 : vector<1x2x128xf32> to vector<8x2x128xf32>
    %444 = arith.addf %4, %443 : vector<8x2x128xf32>
    %445 = math.tanh %444 : vector<8x2x128xf32>
    %446 = vector.shape_cast %7 : vector<1x128xf32> to vector<1x1x128xf32>
    %447 = vector.broadcast %446 : vector<1x1x128xf32> to vector<8x2x128xf32>
    %448 = arith.mulf %445, %447 : vector<8x2x128xf32>
    %cst_108 = arith.constant dense<0.000000e+00> : vector<8x2xf32>
    %449 = vector.multi_reduction <add>, %448, %cst_108 [2] : vector<8x2x128xf32> to vector<8x2xf32>
    %450 = vector.shape_cast %449 : vector<8x2xf32> to vector<8x2x1xf32>
    %cst_109 = arith.constant dense<0xFF800000> : vector<2x1xf32>
    %451 = vector.multi_reduction <maximumf>, %450, %cst_109 [0] : vector<8x2x1xf32> to vector<2x1xf32>
    %452 = vector.shape_cast %451 : vector<2x1xf32> to vector<1x2x1xf32>
    %453 = vector.broadcast %452 : vector<1x2x1xf32> to vector<8x2x1xf32>
    %454 = arith.subf %450, %453 : vector<8x2x1xf32>
    %455 = math.exp %454 : vector<8x2x1xf32>
    %cst_110 = arith.constant dense<0.000000e+00> : vector<2x1xf32>
    %456 = vector.multi_reduction <add>, %455, %cst_110 [0] : vector<8x2x1xf32> to vector<2x1xf32>
    %457 = tpu.reciprocal %456 {approx = true} : vector<2x1xf32> -> vector<2x1xf32>
    %458 = vector.broadcast %455 : vector<8x2x1xf32> to vector<8x2x128xf32>
    %459 = arith.mulf %458, %3 : vector<8x2x128xf32>
    %cst_111 = arith.constant dense<0.000000e+00> : vector<2x128xf32>
    %460 = vector.multi_reduction <add>, %459, %cst_111 [0] : vector<8x2x128xf32> to vector<2x128xf32>
    %461 = vector.broadcast %457 : vector<2x1xf32> to vector<2x128xf32>
    %462 = arith.mulf %460, %461 : vector<2x128xf32>
    %cst_112 = arith.constant dense<0.000000e+00> : vector<2x384xf32>
    %463 = tpu.matmul %462, %8, %cst_112 {dimension_numbers = #tpu.dot_dimension_numbers<[1], [0], [0], [1], [0, 0, 1, 1], [], []>} : vector<2x128xf32>, vector<128x384xf32>, vector<2x384xf32> -> vector<2x384xf32>
    %464 = arith.index_cast %c7_i32 : i32 to index
    %c0_113 = arith.constant 0 : index
    %c0_114 = arith.constant 0 : index
    %465 = vector.load %arg3[%464, %c0_113, %c0_114] : memref<8x2x384xf32, #tpu.memory_space<vmem>>, vector<1x2x384xf32>
    %466 = vector.shape_cast %465 : vector<1x2x384xf32> to vector<2x384xf32>
    %467 = arith.addf %463, %466 : vector<2x384xf32>
    %468 = vector.extract_strided_slice %467 {offsets = [0, 0], sizes = [2, 128], strides = [1, 1]} : vector<2x384xf32> to vector<2x128xf32>
    %469 = vector.extract_strided_slice %441 {offsets = [0, 0], sizes = [2, 128], strides = [1, 1]} : vector<2x384xf32> to vector<2x128xf32>
    %470 = arith.addf %468, %469 : vector<2x128xf32>
    %471 = arith.negf %470 : vector<2x128xf32>
    %472 = math.exp %471 : vector<2x128xf32>
    %cst_115 = arith.constant 1.000000e+00 : f32
    %473 = vector.broadcast %cst_115 : f32 to vector<2x128xf32>
    %474 = arith.addf %473, %472 : vector<2x128xf32>
    %475 = arith.divf %473, %474 : vector<2x128xf32>
    %476 = vector.extract_strided_slice %467 {offsets = [0, 128], sizes = [2, 128], strides = [1, 1]} : vector<2x384xf32> to vector<2x128xf32>
    %477 = vector.extract_strided_slice %441 {offsets = [0, 128], sizes = [2, 128], strides = [1, 1]} : vector<2x384xf32> to vector<2x128xf32>
    %478 = arith.addf %476, %477 : vector<2x128xf32>
    %479 = arith.negf %478 : vector<2x128xf32>
    %480 = math.exp %479 : vector<2x128xf32>
    %cst_116 = arith.constant 1.000000e+00 : f32
    %481 = vector.broadcast %cst_116 : f32 to vector<2x128xf32>
    %482 = arith.addf %481, %480 : vector<2x128xf32>
    %483 = arith.divf %481, %482 : vector<2x128xf32>
    %484 = vector.extract_strided_slice %467 {offsets = [0, 256], sizes = [2, 128], strides = [1, 1]} : vector<2x384xf32> to vector<2x128xf32>
    %485 = vector.extract_strided_slice %441 {offsets = [0, 256], sizes = [2, 128], strides = [1, 1]} : vector<2x384xf32> to vector<2x128xf32>
    %486 = arith.mulf %475, %485 : vector<2x128xf32>
    %487 = arith.addf %484, %486 : vector<2x128xf32>
    %488 = math.tanh %487 : vector<2x128xf32>
    %cst_117 = arith.constant 1.000000e+00 : f32
    %489 = vector.broadcast %cst_117 : f32 to vector<2x128xf32>
    %490 = arith.subf %489, %483 : vector<2x128xf32>
    %491 = arith.mulf %490, %488 : vector<2x128xf32>
    %492 = arith.mulf %483, %432 : vector<2x128xf32>
    %493 = arith.addf %491, %492 : vector<2x128xf32>
    %494 = arith.index_cast %c7_i32 : i32 to index
    %c0_118 = arith.constant 0 : index
    %c0_119 = arith.constant 0 : index
    %495 = vector.load %arg8[%494, %c0_118, %c0_119] : memref<8x2x128xf32, #tpu.memory_space<vmem>>, vector<1x2x128xf32>
    %496 = vector.shape_cast %495 : vector<1x2x128xf32> to vector<2x128xf32>
    %497 = vector.shape_cast %493 : vector<2x128xf32> to vector<1x2x128xf32>
    tpu.vector_store %arg8[%494, %c0_118, %c0_119], %497 {strides = array<i32>} : memref<8x2x128xf32, #tpu.memory_space<vmem>>, vector<1x2x128xf32>,
    %c8_i32 = arith.constant 8 : i32
    %c0_120 = arith.constant 0 : index
    %c0_121 = arith.constant 0 : index
    %498 = vector.load %arg9[%c0_120, %c0_121] : memref<2x128xf32, #tpu.memory_space<vmem>>, vector<2x128xf32>
    tpu.vector_store %arg9[%c0_120, %c0_121], %493 {strides = array<i32>} : memref<2x128xf32, #tpu.memory_space<vmem>>, vector<2x128xf32>,
    return
  }
  func.func @transform_0(%arg0: i32) -> (i32, i32, i32) {
    %c0_i32 = arith.constant 0 : i32
    %c0_i32_0 = arith.constant 0 : i32
    %c0_i32_1 = arith.constant 0 : i32
    %c0_i32_2 = arith.constant 0 : i32
    return %c0_i32, %c0_i32_0, %c0_i32_1 : i32, i32, i32
  }
  func.func @transform_1(%arg0: i32) -> (i32, i32, i32) {
    %c0_i32 = arith.constant 0 : i32
    %c0_i32_0 = arith.constant 0 : i32
    %c0_i32_1 = arith.constant 0 : i32
    %c0_i32_2 = arith.constant 0 : i32
    return %c0_i32, %c0_i32_0, %c0_i32_1 : i32, i32, i32
  }
  func.func @transform_2(%arg0: i32) -> (i32, i32, i32) {
    %c0_i32 = arith.constant 0 : i32
    %c0_i32_0 = arith.constant 0 : i32
    %c0_i32_1 = arith.constant 0 : i32
    return %arg0, %c0_i32, %c0_i32_0 : i32, i32, i32
  }
  func.func @transform_3(%arg0: i32) -> (i32, i32) {
    %c0_i32 = arith.constant 0 : i32
    %c0_i32_0 = arith.constant 0 : i32
    %c0_i32_1 = arith.constant 0 : i32
    return %c0_i32, %c0_i32_0 : i32, i32
  }
  func.func @transform_4(%arg0: i32) -> (i32, i32) {
    %c0_i32 = arith.constant 0 : i32
    %c0_i32_0 = arith.constant 0 : i32
    %c0_i32_1 = arith.constant 0 : i32
    return %c0_i32, %c0_i32_0 : i32, i32
  }
  func.func @transform_5(%arg0: i32) -> (i32, i32) {
    %c0_i32 = arith.constant 0 : i32
    %c0_i32_0 = arith.constant 0 : i32
    %c0_i32_1 = arith.constant 0 : i32
    return %c0_i32, %c0_i32_0 : i32, i32
  }
  func.func @transform_6(%arg0: i32) -> (i32, i32) {
    %c0_i32 = arith.constant 0 : i32
    %c0_i32_0 = arith.constant 0 : i32
    %c0_i32_1 = arith.constant 0 : i32
    return %c0_i32, %c0_i32_0 : i32, i32
  }
  func.func @transform_7(%arg0: i32) -> (i32, i32, i32) {
    %c0_i32 = arith.constant 0 : i32
    %c0_i32_0 = arith.constant 0 : i32
    %c0_i32_1 = arith.constant 0 : i32
    return %arg0, %c0_i32, %c0_i32_0 : i32, i32, i32
  }
}

</mosaic_0001>

<bundles_post_ra>
// kernel: tpu_custom_call.1
= control target key start
LH: loop header
LB: loop body
LE: loop exit
PB: predicated region body
PF: predicated region fallthrough
CT: control target
= control target key end

     0   :  { %12 = vsyncpa [#allocation4], 0  ;;  %s7962_s0 = inlined_call_operand.hbm [shape: f32[8,2,128], index: 0, kind: input, shape index: {}]   ;;  %s7963_s1 = inlined_call_operand.hbm [shape: f32[8,2,128], index: 1, kind: input, shape index: {}]   ;;  %s7964_s2 = inlined_call_operand.hbm [shape: f32[8,2,384], index: 2, kind: input, shape index: {}]   ;;  %s7965_s3 = inlined_call_operand.hbm [shape: f32[128,512], index: 3, kind: input, shape index: {}]   ;;  %s7966_s4 = inlined_call_operand.vmem [shape: f32[1,512], index: 4, kind: input, shape index: {}]   ;;  %s7967_s5 = inlined_call_operand.vmem [shape: f32[1,128], index: 5, kind: input, shape index: {}]   ;;  %s7968_s6 = inlined_call_operand.hbm [shape: f32[128,384], index: 6, kind: input, shape index: {}]   ;;  %s7969_s7 = inlined_call_operand.hbm [shape: f32[8,2,128], index: 7, kind: output, shape index: {}]  }
   0x1   :  { %13 = vsyncpa [#allocation7], 0 }
   0x2   :  { %14 = vsyncpa [#allocation10], 0 }
   0x3   :  { %15 = vsyncpa [#allocation5], 0  ;;  %s5250_s24 = smov [#allocation6]   ;;  %s5251_s26 = smov [#allocation9]  }
   0x4   :  { %s33_s25 = sshll.u32 %s5250_s24, 4  ;;  %s57_s27 = sshll.u32 %s5251_s26, 4  ;;  %s34_s25 = int_to_ptr.vmem [resolvable:$true] %s33_s25  ;;  %s58_s27 = int_to_ptr.vmem [resolvable:$true] %s57_s27 }
   0x5   :  { %s5130_s28 = scalar_lea.vmem %s34_s25, 256  ;;  %p5135_p1 = scmp.lt.s32.totalorder %s34_s25, %s34_s25 }
   0x6   :  { %p5131_p0 = scmp.ne.s32.totalorder %s34_s25, %s5130_s28  ;;  %p5136_p2 = scmp.lt.s32.totalorder %s5130_s28, %s5130_s28 }
   0x8   :  { %p5137_p3 = por %p5136_p2, %p5135_p1 }
   0xa   :  { %p5138_p4 = pnand %p5137_p3, %p5131_p0 }
   0xc   :  { %5141 = shalt.err (!%p5138_p4)
}
   0xd   :  { %s5252_s29 = smov 32   ;;  %s5253_s30 = smov 2  }
   0xe   :  { %39 = dma.hbm_to_vmem [thread:$0]  %s7963_s1, 256, %s34_s25, [#allocation7], %s5252_s29, %s5252_s29, %s5253_s30  }
   0xf   :  { %s5150_s10 = scalar_lea.vmem %s58_s27, 8192  ;;  %p5155_p6 = scmp.lt.s32.totalorder %s58_s27, %s58_s27 }
  0x10   :  { %p5151_p5 = scmp.ne.s32.totalorder %s58_s27, %s5150_s10  ;;  %p5156_p7 = scmp.lt.s32.totalorder %s5150_s10, %s5150_s10 }
  0x12   :  { %p5157_p8 = por %p5156_p7, %p5155_p6 }
  0x14   :  { %p5158_p9 = pnand %p5157_p8, %p5151_p5 }
  0x16   :  { %5161 = shalt.err (!%p5158_p9)
}
  0x17   :  { %s5254_s11 = smov 512   ;;  %s5255_s14 = smov [#allocation3]  }
  0x18   :  { %63 = dma.hbm_to_vmem [thread:$0]  %s7965_s3, 8192, %s58_s27, [#allocation10], %s5254_s11, %s5254_s11, %s5252_s29  }
  0x19   :  { %s21_s15 = sshll.u32 %s5255_s14, 4  ;;  %s5256_s16 = smov [#allocation8]   ;;  %s22_s15 = int_to_ptr.vmem [resolvable:$true] %s21_s15 }
  0x1a   :  { %s45_s17 = sshll.u32 %s5256_s16, 4  ;;  %s5170_s18 = scalar_lea.vmem %s22_s15, 256  ;;  %s46_s17 = int_to_ptr.vmem [resolvable:$true] %s45_s17 }
  0x1b   :  { %p5171_p10 = scmp.ne.s32.totalorder %s22_s15, %s5170_s18  ;;  %p5175_p11 = scmp.lt.s32.totalorder %s22_s15, %s22_s15 }
  0x1c   :  { %p5176_p12 = scmp.lt.s32.totalorder %s5170_s18, %s5170_s18 }
  0x1e   :  { %p5177_p13 = por %p5176_p12, %p5175_p11 }
  0x20   :  { %p5178_p0 = pnand %p5177_p13, %p5171_p10 }
  0x22   :  { %5181 = shalt.err (!%p5178_p0)
}
  0x23   :  { %27 = dma.hbm_to_vmem [thread:$0]  %s7962_s0, 256, %s22_s15, [#allocation4], %s5252_s29, %s5252_s29, %s5253_s30  }
  0x24   :  { %s5190_s3 = scalar_lea.vmem %s46_s17, 768  ;;  %p5195_p2 = scmp.lt.s32.totalorder %s46_s17, %s46_s17 }
  0x25   :  { %p5191_p1 = scmp.ne.s32.totalorder %s46_s17, %s5190_s3  ;;  %p5196_p3 = scmp.lt.s32.totalorder %s5190_s3, %s5190_s3 }
  0x27   :  { %p5197_p4 = por %p5196_p3, %p5195_p2 }
  0x29   :  { %p5198_p5 = pnand %p5197_p4, %p5191_p1 }
  0x2b   :  { %5201 = shalt.err (!%p5198_p5)
}
  0x2c   :  { %s5257_s20 = smov 96   ;;  %s5258_s21 = smov 6  }
  0x2d   :  { %51 = dma.hbm_to_vmem [thread:$0]  %s7964_s2, 768, %s46_s17, [#allocation7], %s5257_s20, %s5257_s20, %s5258_s21  }
  0x2e   :  { %s5259_s24 = smov [#allocation11]  }
  0x2f   :  { %s73_s25 = sshll.u32 %s5259_s24, 4  ;;  %s74_s25 = int_to_ptr.vmem [resolvable:$true] %s73_s25 }
  0x30   :  { %s5210_s26 = scalar_lea.vmem %s74_s25, 6144  ;;  %p5215_p7 = scmp.lt.s32.totalorder %s74_s25, %s74_s25 }
  0x31   :  { %p5211_p6 = scmp.ne.s32.totalorder %s74_s25, %s5210_s26  ;;  %p5216_p8 = scmp.lt.s32.totalorder %s5210_s26, %s5210_s26 }
  0x33   :  { %p5217_p9 = por %p5216_p8, %p5215_p7 }
  0x35   :  { %p5218_p10 = pnand %p5217_p9, %p5211_p6 }
  0x37   :  { %5221 = shalt.err (!%p5218_p10)
}
  0x38   :  { %s5260_s0 = smov 384   ;;  %s5261_s27 = smov 24  }
  0x39   :  { %79 = dma.hbm_to_vmem [thread:$0]  %s7968_s6, 6144, %s74_s25, [#allocation10], %s5260_s0, %s5260_s0, %s5261_s27  }
  0x3a   :  { %5242 = dma.done.wait [#allocation4], 256  }
  0x3b   :  { %5243 = vsyncadd [#allocation4], 4294967040 }
  0x3c   :  { %5244 = dma.done.wait [#allocation7], 1024  }
  0x3d   :  { %5245 = vsyncadd [#allocation7], 4294966272 }
  0x3e   :  { %5246 = dma.done.wait [#allocation10], 14336  }
  0x3f   :  { %5247 = vsyncadd [#allocation10], 4294952960  ;;  %v7970_v0 = vmov 0.0   ;;  %v5331_v1 = vld [vmem:[#allocation9 + $0x1e8] sm:$0xff]  ;;  %v5333_v2 = vld [vmem:[#allocation9 + $0x1e0] sm:$0xff]  ;;  %v232_v34 = vlaneseq  ;;  %vm424_vm0 = vcmask 1041408  }
  0x40   :  { %316 = vmatprep.mubr.f32.mxu0 %v7970_v0  ;;  %99 = vst [vmem:[#allocation2] sm:$0x3] %v7970_v0  ;;  %387 = vmatprep.mubr.f32.mxu1 %v7970_v0  ;;  %v5335_v3 = vld [vmem:[#allocation9 + $0x1c8] sm:$0xff]  ;;  %v5338_v4 = vld [vmem:[#allocation9 + $0x1c0] sm:$0xff]  ;;  %vm5263_vm1 = vmmov 0  }
  0x41   :  { %252 = vmatprep.subr.mxu0 %v5331_v1  ;;  %v5341_v5 = vld [vmem:[#allocation9 + $0x1a8] sm:$0xff]  ;;  %v5344_v6 = vld [vmem:[#allocation9 + $0x1a0] sm:$0xff]  ;;  %v5431_v35 = vshrl.u32 %v232_v34, 7 }
  0x42   :  { %253 = vmatpush1.msra.mxu0 %v5333_v2  ;;  %v5347_v7 = vld [vmem:[#allocation9 + $0x188] sm:$0xff]  ;;  %v5350_v8 = vld [vmem:[#allocation9 + $0x180] sm:$0xff] }
  0x43   :  { %254 = vmatprep.subr.mxu0 %v5335_v3  ;;  %v5353_v9 = vld [vmem:[#allocation9 + $0x168] sm:$0xff]  ;;  %v5356_v10 = vld [vmem:[#allocation9 + $0x160] sm:$0xff]  ;;  %8323 = vst [vmem:[#allocation32_spill] sm:$0xff] %v5431_v35  ;;  %v234_v36 = vsub.s32 0, %v5431_v35  ;;  %v5544_v35 = vld [vmem:[#allocation9 + $0x18] sm:$0xff] }
  0x44   :  { %255 = vmatpush1.msra.mxu0 %v5338_v4  ;;  %v5359_v11 = vld [vmem:[#allocation9 + $0x148] sm:$0xff]  ;;  %v5362_v12 = vld [vmem:[#allocation9 + $0x140] sm:$0xff]  ;;  %8339 = vst [vmem:[#allocation48_spill] sm:$0xff] %v5544_v35 }
  0x45   :  { %256 = vmatprep.subr.mxu0 %v5341_v5  ;;  %v5365_v13 = vld [vmem:[#allocation9 + $0x128] sm:$0xff]  ;;  %v5368_v14 = vld [vmem:[#allocation9 + $0x120] sm:$0xff] }
  0x46   :  { %257 = vmatpush1.msra.mxu0 %v5344_v6  ;;  %v5371_v15 = vld [vmem:[#allocation9 + $0x108] sm:$0xff]  ;;  %v5374_v16 = vld [vmem:[#allocation9 + $0x100] sm:$0xff] }
  0x47   :  { %258 = vmatprep.subr.mxu0 %v5347_v7  ;;  %v5377_v17 = vld [vmem:[#allocation9 + $0xe8] sm:$0xff]  ;;  %v5380_v18 = vld [vmem:[#allocation9 + $0xe0] sm:$0xff] }
  0x48   :  { %259 = vmatpush1.msra.mxu0 %v5350_v8  ;;  %v5383_v19 = vld [vmem:[#allocation9 + $0xc8] sm:$0xff]  ;;  %v5386_v20 = vld [vmem:[#allocation9 + $0xc0] sm:$0xff] }
  0x49   :  { %260 = vmatprep.subr.mxu0 %v5353_v9  ;;  %8308 = vst [vmem:[#allocation17_spill] sm:$0xff] %v5383_v19  ;;  %8309 = vst [vmem:[#allocation18_spill] sm:$0xff] %v5386_v20  ;;  %v5389_v21 = vld [vmem:[#allocation9 + $0xa8] sm:$0xff]  ;;  %v5392_v22 = vld [vmem:[#allocation9 + $0xa0] sm:$0xff] }
  0x4a   :  { %261 = vmatpush1.msra.mxu0 %v5356_v10  ;;  %8310 = vst [vmem:[#allocation19_spill] sm:$0xff] %v5389_v21  ;;  %8311 = vst [vmem:[#allocation20_spill] sm:$0xff] %v5392_v22  ;;  %v5395_v23 = vld [vmem:[#allocation9 + $0x88] sm:$0xff]  ;;  %v5398_v24 = vld [vmem:[#allocation9 + $0x80] sm:$0xff] }
  0x4b   :  { %262 = vmatprep.subr.mxu0 %v5359_v11  ;;  %8312 = vst [vmem:[#allocation21_spill] sm:$0xff] %v5395_v23  ;;  %8313 = vst [vmem:[#allocation22_spill] sm:$0xff] %v5398_v24  ;;  %v5401_v25 = vld [vmem:[#allocation9 + $0x68] sm:$0xff]  ;;  %v5404_v26 = vld [vmem:[#allocation9 + $0x60] sm:$0xff] }
  0x4c   :  { %263 = vmatpush1.msra.mxu0 %v5362_v12  ;;  %8314 = vst [vmem:[#allocation23_spill] sm:$0xff] %v5401_v25  ;;  %8315 = vst [vmem:[#allocation24_spill] sm:$0xff] %v5404_v26  ;;  %v5407_v27 = vld [vmem:[#allocation9 + $0x48] sm:$0xff]  ;;  %v5410_v28 = vld [vmem:[#allocation9 + $0x40] sm:$0xff] }
  0x4d   :  { %264 = vmatprep.subr.mxu0 %v5365_v13  ;;  %8316 = vst [vmem:[#allocation25_spill] sm:$0xff] %v5407_v27  ;;  %8317 = vst [vmem:[#allocation26_spill] sm:$0xff] %v5410_v28  ;;  %v5413_v29 = vld [vmem:[#allocation9 + $0x28] sm:$0xff]  ;;  %v5416_v30 = vld [vmem:[#allocation9 + $0x20] sm:$0xff] }
  0x4e   :  { %265 = vmatpush1.msra.mxu0 %v5368_v14  ;;  %8318 = vst [vmem:[#allocation27_spill] sm:$0xff] %v5413_v29  ;;  %8319 = vst [vmem:[#allocation28_spill] sm:$0xff] %v5416_v30  ;;  %v5419_v31 = vld [vmem:[#allocation9 + $0x8] sm:$0xff]  ;;  %v5422_v32 = vld [vmem:[#allocation9] sm:$0xff] }
  0x4f   :  { %266 = vmatprep.subr.mxu0 %v5371_v15  ;;  %8320 = vst [vmem:[#allocation29_spill] sm:$0xff] %v5419_v31  ;;  %8321 = vst [vmem:[#allocation30_spill] sm:$0xff] %v5422_v32  ;;  %v5425_v33 = vld [vmem:[#allocation2] sm:$0x3]  ;;  %v110_v40 = vld [vmem:[#allocation6 + $0x4] sm:$0x3] }
  0x50   :  { %267 = vmatpush1.msra.mxu0 %v5374_v16  ;;  %8322 = vst [vmem:[#allocation31_spill] sm:$0xff] %v5425_v33  ;;  %v5437_v37 = vld [vmem:[%s7966_s4] sm:$0xf]  ;;  %v108_v41 = vld [vmem:[#allocation6] sm:$0x3] }
  0x51   :  { %268 = vmatprep.subr.mxu0 %v5377_v17  ;;  %8324 = vst [vmem:[#allocation33_spill] sm:$0xff] %v5437_v37  ;;  %v5440_v38 = vrot.slane %v5437_v37, %v234_v36  ;;  %v111_v42 = vld [vmem:[#allocation6 + $0x6] sm:$0x3]  ;;  %v109_v44 = vld [vmem:[#allocation6 + $0x2] sm:$0x3]  ;;  %v5541_v37 = vld [vmem:[#allocation9 + $0x30] sm:$0xff] }
  0x52   :  { %269 = vmatpush1.msra.mxu0 %v5380_v18  ;;  %v113_v45 = vld [vmem:[#allocation6 + $0xa] sm:$0x3]  ;;  %v112_v49 = vld [vmem:[#allocation6 + $0x8] sm:$0x3]  ;;  %v115_v53 = vld [vmem:[#allocation6 + $0xe] sm:$0x3] }
  0x53   :  { %270 = vmatprep.subr.mxu0 %v5383_v19  ;;  %8325 = vst [vmem:[#allocation34_spill] sm:$0xff] %v5440_v38  ;;  %v114_v54 = vld [vmem:[#allocation6 + $0xc] sm:$0x3]  ;;  %v3917_v57 = vld [vmem:[%s7967_s5] ss:$0 sm:$0xff]  ;;  %8338 = vst [vmem:[#allocation47_spill] sm:$0xff] %v5541_v37 }
  0x54   :  { %271 = vmatpush1.msra.mxu0 %v5386_v20 }
  0x55   :  { %272 = vmatprep.subr.mxu0 %v5389_v21 }
  0x56   :  { %273 = vmatpush1.msra.mxu0 %v5392_v22 }
  0x57   :  { %274 = vmatprep.subr.mxu0 %v5395_v23 }
  0x58   :  { %275 = vmatpush1.msra.mxu0 %v5398_v24 }
  0x59   :  { %276 = vmatprep.subr.mxu0 %v5401_v25 }
  0x5a   :  { %277 = vmatpush1.msra.mxu0 %v5404_v26 }
  0x5b   :  { %278 = vmatprep.subr.mxu0 %v5407_v27 }
  0x5c   :  { %279 = vmatpush1.msra.mxu0 %v5410_v28  ;;  %v5626_v28 = vld [vmem:[#allocation11 + $0xb0] sm:$0xff] }
  0x5d   :  { %280 = vmatprep.subr.mxu0 %v5413_v29  ;;  %v5554_v29 = vld [vmem:[#allocation11 + $0x168] sm:$0xff]  ;;  %8366 = vst [vmem:[#allocation74_spill] sm:$0xff] %v5626_v28 }
  0x5e   :  { %281 = vmatpush1.msra.mxu0 %v5416_v30  ;;  %v8342_v30 = vmov 0.0   ;;  %8343 = vst [vmem:[#allocation51_spill] sm:$0xff] %v5554_v29 }
  0x5f   :  { %282 = vmatprep.subr.mxu0 %v5419_v31  ;;  %v5550_v31 = vld [vmem:[#allocation11 + $0x170] sm:$0xff] }
  0x60   :  { %283 = vmatpush1.msra.mxu0 %v5422_v32  ;;  %v5547_v32 = vld [vmem:[#allocation9 + $0x10] sm:$0xff]  ;;  %8341 = vst [vmem:[#allocation50_spill] sm:$0xff] %v5550_v31 }
  0x61   :  { %317 = vmatmul.mubr.f32.vlgmr.msra.gmra.mxu0 %v5425_v33  ;;  %8340 = vst [vmem:[#allocation49_spill] sm:$0xff] %v5547_v32  ;;  %549 = vmatprep.subr.mxu0 %v5550_v31  ;;  %v5570_v31 = vld [vmem:[#allocation11 + $0x140] sm:$0xff] }
  0x62   :  { %613 = vmatprep.mubr.f32.mxu0 %v7970_v0  ;;  %v5535_v0 = vld [vmem:[#allocation9 + $0x50] sm:$0xff]  ;;  %550 = vmatpush1.msra.mxu0 %v5554_v29  ;;  %8348 = vst [vmem:[#allocation56_spill] sm:$0xff] %v5570_v31  ;;  %v5574_v29 = vld [vmem:[#allocation11 + $0x138] sm:$0xff] }
  0x63   :  { %8336 = vst [vmem:[#allocation45_spill] sm:$0xff] %v5535_v0  ;;  %8349 = vst [vmem:[#allocation57_spill] sm:$0xff] %v5574_v29 }
 0x121   :  { %v318_v39 = vpop.f32.mrf.mxu0 }
 0x122   :  { %v319_v43 = vadd.f32 %v318_v39, %v5440_v38  ;;  %v5538_v38 = vld [vmem:[#allocation9 + $0x38] sm:$0xff] }
 0x123   :  { %8337 = vst [vmem:[#allocation46_spill] sm:$0xff] %v5538_v38 }
 0x124   :  { %v396_v46 = vadd.f32 %v319_v43, %v110_v40  ;;  %v394_v47 = vadd.f32 %v319_v43, %v108_v41  ;;  %v397_v48 = vadd.f32 %v319_v43, %v111_v42  ;;  %v395_v50 = vadd.f32 %v319_v43, %v109_v44 }
 0x125   :  { %v399_v51 = vadd.f32 %v319_v43, %v113_v45  ;;  %v398_v52 = vadd.f32 %v319_v43, %v112_v49  ;;  %v401_v55 = vadd.f32 %v319_v43, %v115_v53  ;;  %v400_v56 = vadd.f32 %v319_v43, %v114_v54 }
 0x126   :  { %4374 = vtanh.f32 %v396_v46 }
 0x127   :  { %4376 = vtanh.f32 %v394_v47 }
 0x128   :  { %4378 = vtanh.f32 %v397_v48 }
 0x129   :  { %4380 = vtanh.f32 %v395_v50 }
 0x12a   :  { %4382 = vtanh.f32 %v399_v51 }
 0x12b   :  { %4384 = vtanh.f32 %v398_v52 }
 0x12c   :  { %4386 = vtanh.f32 %v401_v55  ;;  %v5454_v55 = vld [vmem:[#allocation9 + $0x1f8] sm:$0xff] }
 0x12d   :  { %4388 = vtanh.f32 %v400_v56  ;;  %8326 = vst [vmem:[#allocation35_spill] sm:$0xff] %v5454_v55  ;;  %v5456_v56 = vld [vmem:[#allocation9 + $0x1f0] sm:$0xff]  ;;  %323 = vmatprep.subr.mxu1 %v5454_v55 }
 0x12e   :  { %324 = vmatpush1.msra.mxu1 %v5456_v56 }
 0x133   :  { %v4375_v58 = vpop.eup %4374 }
 0x134   :  { %v4377_v59 = vpop.eup %4376  ;;  %v418_v60 = vmul.f32 %v4375_v58, %v3917_v57  ;;  %v5458_v58 = vld [vmem:[#allocation9 + $0x1d8] sm:$0xff] }
 0x135   :  { %v4379_v61 = vpop.eup %4378  ;;  %v416_v62 = vmul.f32 %v4377_v59, %v3917_v57  ;;  %v5461_v59 = vld [vmem:[#allocation9 + $0x1d0] sm:$0xff]  ;;  %325 = vmatprep.subr.mxu1 %v5458_v58 }
 0x136   :  { %v4381_v63 = vpop.eup %4380  ;;  %v431_v34 = vsel %vm424_vm0, %v418_v60, 0.0  ;;  %v419_v36 = vmul.f32 %v4379_v61, %v3917_v57  ;;  %326 = vmatpush1.msra.mxu1 %v5461_v59  ;;  %v5468_v60 = vld [vmem:[#allocation9 + $0x1b0] sm:$0xff]  ;;  %v5470_v61 = vld [vmem:[#allocation9 + $0x198] sm:$0xff] }
 0x137   :  { %v4383_v39 = vpop.eup %4382  ;;  %432 = vadd.xlane.f32.xlu1 %v431_v34  ;;  %v425_v40 = vsel %vm424_vm0, %v416_v62, 0.0  ;;  %v417_v41 = vmul.f32 %v4381_v63, %v3917_v57  ;;  %v5473_v62 = vld [vmem:[#allocation9 + $0x190] sm:$0xff]  ;;  %v5478_v63 = vld [vmem:[#allocation9 + $0x178] sm:$0xff] }
 0x138   :  { %v4385_v42 = vpop.eup %4384  ;;  %426 = vadd.xlane.f32.xlu0 %v425_v40  ;;  %v434_v43 = vsel %vm424_vm0, %v419_v36, 0.0  ;;  %v421_v44 = vmul.f32 %v4383_v39, %v3917_v57  ;;  %v5481_v34 = vld [vmem:[#allocation9 + $0x170] sm:$0xff]  ;;  %v5484_v36 = vld [vmem:[#allocation9 + $0x158] sm:$0xff] }
 0x139   :  { %v4387_v45 = vpop.eup %4386  ;;  %v428_v46 = vsel %vm424_vm0, %v417_v41, 0.0  ;;  %v420_v47 = vmul.f32 %v4385_v42, %v3917_v57  ;;  %v5487_v39 = vld [vmem:[#allocation9 + $0x150] sm:$0xff]  ;;  %v5490_v40 = vld [vmem:[#allocation9 + $0x138] sm:$0xff] }
 0x13a   :  { %v4389_v48 = vpop.eup %4388  ;;  %v440_v49 = vsel %vm424_vm0, %v421_v44, 0.0  ;;  %v423_v50 = vmul.f32 %v4387_v45, %v3917_v57  ;;  %v5493_v41 = vld [vmem:[#allocation9 + $0x130] sm:$0xff]  ;;  %v5496_v42 = vld [vmem:[#allocation9 + $0x118] sm:$0xff] }
 0x13b   :  { %435 = vadd.xlane.f32.xlu1 %v434_v43  ;;  %v437_v51 = vsel %vm424_vm0, %v420_v47, 0.0  ;;  %v422_v52 = vmul.f32 %v4389_v48, %v3917_v57  ;;  %v5466_v57 = vld [vmem:[#allocation9 + $0x1b8] sm:$0xff]  ;;  %v5499_v43 = vld [vmem:[#allocation9 + $0x110] sm:$0xff] }
 0x13c   :  { %429 = vadd.xlane.f32.xlu0 %v428_v46  ;;  %v446_v53 = vsel %vm424_vm0, %v423_v50, 0.0  ;;  %327 = vmatprep.subr.mxu1 %v5466_v57  ;;  %v5502_v44 = vld [vmem:[#allocation9 + $0xf8] sm:$0xff]  ;;  %v5505_v45 = vld [vmem:[#allocation9 + $0xf0] sm:$0xff] }
 0x13d   :  { %v443_v54 = vsel %vm424_vm0, %v422_v52, 0.0  ;;  %328 = vmatpush1.msra.mxu1 %v5468_v60  ;;  %v5508_v46 = vld [vmem:[#allocation9 + $0xd8] sm:$0xff]  ;;  %v5511_v47 = vld [vmem:[#allocation9 + $0xd0] sm:$0xff] }
 0x13e   :  { %329 = vmatprep.subr.mxu1 %v5470_v61  ;;  %8327 = vst [vmem:[#allocation36_spill] sm:$0xff] %v5508_v46  ;;  %8328 = vst [vmem:[#allocation37_spill] sm:$0xff] %v5511_v47  ;;  %v5514_v48 = vld [vmem:[#allocation9 + $0xb8] sm:$0xff] }
 0x13f   :  { %441 = vadd.xlane.f32.xlu1 %v440_v49  ;;  %330 = vmatpush1.msra.mxu1 %v5473_v62  ;;  %8329 = vst [vmem:[#allocation38_spill] sm:$0xff] %v5514_v48  ;;  %v5517_v49 = vld [vmem:[#allocation9 + $0xb0] sm:$0xff]  ;;  %v5520_v50 = vld [vmem:[#allocation9 + $0x98] sm:$0xff] }
 0x140   :  { %438 = vadd.xlane.f32.xlu0 %v437_v51  ;;  %331 = vmatprep.subr.mxu1 %v5478_v63  ;;  %8330 = vst [vmem:[#allocation39_spill] sm:$0xff] %v5517_v49  ;;  %8331 = vst [vmem:[#allocation40_spill] sm:$0xff] %v5520_v50  ;;  %v5523_v51 = vld [vmem:[#allocation9 + $0x90] sm:$0xff]  ;;  %v5526_v52 = vld [vmem:[#allocation9 + $0x78] sm:$0xff] }
 0x141   :  { %332 = vmatpush1.msra.mxu1 %v5481_v34  ;;  %8332 = vst [vmem:[#allocation41_spill] sm:$0xff] %v5523_v51  ;;  %8333 = vst [vmem:[#allocation42_spill] sm:$0xff] %v5526_v52 }
 0x142   :  { %333 = vmatprep.subr.mxu1 %v5484_v36 }
 0x143   :  { %447 = vadd.xlane.f32.xlu1 %v446_v53  ;;  %334 = vmatpush1.msra.mxu1 %v5487_v39  ;;  %v5529_v53 = vld [vmem:[#allocation9 + $0x70] sm:$0xff] }
 0x144   :  { %444 = vadd.xlane.f32.xlu0 %v443_v54  ;;  %335 = vmatprep.subr.mxu1 %v5490_v40  ;;  %8334 = vst [vmem:[#allocation43_spill] sm:$0xff] %v5529_v53  ;;  %v5532_v54 = vld [vmem:[#allocation9 + $0x58] sm:$0xff] }
 0x145   :  { %336 = vmatpush1.msra.mxu1 %v5493_v41  ;;  %8335 = vst [vmem:[#allocation44_spill] sm:$0xff] %v5532_v54 }
 0x146   :  { %337 = vmatprep.subr.mxu1 %v5496_v42 }
 0x147   :  { %338 = vmatpush1.msra.mxu1 %v5499_v43 }
 0x148   :  { %339 = vmatprep.subr.mxu1 %v5502_v44 }
 0x149   :  { %340 = vmatpush1.msra.mxu1 %v5505_v45 }
 0x14a   :  { %341 = vmatprep.subr.mxu1 %v5508_v46 }
 0x14b   :  { %342 = vmatpush1.msra.mxu1 %v5511_v47 }
 0x14c   :  { %343 = vmatprep.subr.mxu1 %v5514_v48 }
 0x14d   :  { %344 = vmatpush1.msra.mxu1 %v5517_v49 }
 0x14e   :  { %345 = vmatprep.subr.mxu1 %v5520_v50 }
 0x14f   :  { %346 = vmatpush1.msra.mxu1 %v5523_v51 }
 0x150   :  { %347 = vmatprep.subr.mxu1 %v5526_v52 }
 0x151   :  { %348 = vmatpush1.msra.mxu1 %v5529_v53 }
 0x152   :  { %349 = vmatprep.subr.mxu1 %v5532_v54 }
 0x153   :  { %350 = vmatpush1.msra.mxu1 %v5535_v0  ;;  %v5614_v0 = vld [vmem:[#allocation11 + $0xe8] sm:$0xff] }
 0x154   :  { %351 = vmatprep.subr.mxu1 %v5538_v38  ;;  %v5556_v38 = vld [vmem:[#allocation11 + $0x178] sm:$0xff]  ;;  %8362 = vst [vmem:[#allocation70_spill] sm:$0xff] %v5614_v0 }
 0x155   :  { %352 = vmatpush1.msra.mxu1 %v5541_v37  ;;  %8344 = vst [vmem:[#allocation52_spill] sm:$0xff] %v5556_v38  ;;  %v5560_v37 = vld [vmem:[#allocation11 + $0x158] sm:$0xff] }
 0x156   :  { %353 = vmatprep.subr.mxu1 %v5544_v35  ;;  %8345 = vst [vmem:[#allocation53_spill] sm:$0xff] %v5560_v37  ;;  %551 = vmatprep.subr.mxu0 %v5560_v37  ;;  %v5566_v35 = vld [vmem:[#allocation11 + $0x160] sm:$0xff]  ;;  %v5580_v37 = vld [vmem:[#allocation11 + $0x128] sm:$0xff] }
 0x157   :  { %354 = vmatpush1.msra.mxu1 %v5547_v32  ;;  %v5564_v32 = vld [vmem:[#allocation11 + $0x150] sm:$0xff]  ;;  %8347 = vst [vmem:[#allocation55_spill] sm:$0xff] %v5566_v35  ;;  %8351 = vst [vmem:[#allocation59_spill] sm:$0xff] %v5580_v37 }
 0x158   :  { %4070 = vmatprep.subr.mxu1 %v8342_v30  ;;  %388 = vmatmul.mubr.f32.vlgmr.msra.gmra.mxu1 %v5425_v33  ;;  %8346 = vst [vmem:[#allocation54_spill] sm:$0xff] %v5564_v32  ;;  %v5576_v33 = vld [vmem:[#allocation11 + $0x148] sm:$0xff] }
 0x159   :  { %4071 = vmatpush3.msra.mxu1 %v5556_v38  ;;  %552 = vmatpush1.msra.mxu0 %v5564_v32  ;;  %8350 = vst [vmem:[#allocation58_spill] sm:$0xff] %v5576_v33  ;;  %v5584_v32 = vld [vmem:[#allocation11 + $0x120] sm:$0xff]  ;;  %v5586_v38 = vld [vmem:[#allocation11 + $0x130] sm:$0xff] }
 0x15a   :  { %4072 = vmatprep.subr.mxu1 %v8342_v30  ;;  %553 = vmatprep.subr.mxu0 %v5570_v31  ;;  %8352 = vst [vmem:[#allocation60_spill] sm:$0xff] %v5584_v32  ;;  %8353 = vst [vmem:[#allocation61_spill] sm:$0xff] %v5586_v38  ;;  %v5590_v31 = vld [vmem:[#allocation11 + $0x110] sm:$0xff] }
 0x15b   :  { %4073 = vmatpush3.msra.mxu1 %v5566_v35  ;;  %554 = vmatpush1.msra.mxu0 %v5574_v29  ;;  %8354 = vst [vmem:[#allocation62_spill] sm:$0xff] %v5590_v31  ;;  %v5594_v29 = vld [vmem:[#allocation11 + $0x108] sm:$0xff]  ;;  %v5596_v35 = vld [vmem:[#allocation11 + $0x118] sm:$0xff] }
 0x15c   :  { %4074 = vmatprep.subr.mxu1 %v8342_v30  ;;  %555 = vmatprep.subr.mxu0 %v5580_v37  ;;  %8355 = vst [vmem:[#allocation63_spill] sm:$0xff] %v5594_v29  ;;  %8356 = vst [vmem:[#allocation64_spill] sm:$0xff] %v5596_v35  ;;  %v5600_v37 = vld [vmem:[#allocation11 + $0xf8] sm:$0xff] }
 0x15d   :  { %4075 = vmatpush3.msra.mxu1 %v5576_v33  ;;  %556 = vmatpush1.msra.mxu0 %v5584_v32  ;;  %8357 = vst [vmem:[#allocation65_spill] sm:$0xff] %v5600_v37  ;;  %v5604_v32 = vld [vmem:[#allocation11 + $0xf0] sm:$0xff]  ;;  %v5606_v33 = vld [vmem:[#allocation11 + $0x100] sm:$0xff] }
 0x15e   :  { %4076 = vmatprep.subr.mxu1 %v8342_v30  ;;  %557 = vmatprep.subr.mxu0 %v5590_v31  ;;  %8358 = vst [vmem:[#allocation66_spill] sm:$0xff] %v5604_v32  ;;  %8359 = vst [vmem:[#allocation67_spill] sm:$0xff] %v5606_v33  ;;  %v5612_v31 = vld [vmem:[#allocation11 + $0xd8] sm:$0xff] }
 0x15f   :  { %4077 = vmatpush3.msra.mxu1 %v5586_v38  ;;  %558 = vmatpush1.msra.mxu0 %v5594_v29  ;;  %v5608_v38 = vld [vmem:[#allocation11 + $0xe0] sm:$0xff]  ;;  %8361 = vst [vmem:[#allocation69_spill] sm:$0xff] %v5612_v31  ;;  %v5616_v29 = vld [vmem:[#allocation11 + $0xc8] sm:$0xff] }
 0x160   :  { %4078 = vmatprep.subr.mxu1 %v8342_v30  ;;  %559 = vmatprep.subr.mxu0 %v5600_v37  ;;  %8360 = vst [vmem:[#allocation68_spill] sm:$0xff] %v5608_v38  ;;  %8363 = vst [vmem:[#allocation71_spill] sm:$0xff] %v5616_v29  ;;  %v5620_v37 = vld [vmem:[#allocation11 + $0xc0] sm:$0xff] }
 0x161   :  { %4079 = vmatpush3.msra.mxu1 %v5596_v35  ;;  %560 = vmatpush1.msra.mxu0 %v5604_v32  ;;  %8364 = vst [vmem:[#allocation72_spill] sm:$0xff] %v5620_v37  ;;  %v5624_v35 = vld [vmem:[#allocation11 + $0xd0] sm:$0xff]  ;;  %v5630_v32 = vld [vmem:[#allocation11 + $0xa8] sm:$0xff] }
 0x162   :  { %4080 = vmatprep.subr.mxu1 %v8342_v30  ;;  %561 = vmatprep.subr.mxu0 %v5608_v38  ;;  %8365 = vst [vmem:[#allocation73_spill] sm:$0xff] %v5624_v35  ;;  %8367 = vst [vmem:[#allocation75_spill] sm:$0xff] %v5630_v32  ;;  %v5634_v38 = vld [vmem:[#allocation11 + $0xb8] sm:$0xff] }
 0x163   :  { %4081 = vmatpush3.msra.mxu1 %v5606_v33  ;;  %562 = vmatpush1.msra.mxu0 %v5612_v31  ;;  %8368 = vst [vmem:[#allocation76_spill] sm:$0xff] %v5634_v38  ;;  %v5636_v33 = vld [vmem:[#allocation11 + $0x98] sm:$0xff]  ;;  %v5640_v31 = vld [vmem:[#allocation11 + $0x90] sm:$0xff] }
 0x164   :  { %4082 = vmatprep.subr.mxu1 %v8342_v30  ;;  %563 = vmatprep.subr.mxu0 %v5616_v29  ;;  %8369 = vst [vmem:[#allocation77_spill] sm:$0xff] %v5636_v33  ;;  %8370 = vst [vmem:[#allocation78_spill] sm:$0xff] %v5640_v31  ;;  %v5644_v29 = vld [vmem:[#allocation11 + $0xa0] sm:$0xff] }
 0x165   :  { %4083 = vmatpush3.msra.mxu1 %v5614_v0  ;;  %564 = vmatpush1.msra.mxu0 %v5620_v37  ;;  %8371 = vst [vmem:[#allocation79_spill] sm:$0xff] %v5644_v29  ;;  %v5646_v0 = vld [vmem:[#allocation11 + $0x80] sm:$0xff]  ;;  %v5650_v37 = vld [vmem:[#allocation11 + $0x78] sm:$0xff] }
 0x166   :  { %4084 = vmatprep.subr.mxu1 %v8342_v30  ;;  %565 = vmatprep.subr.mxu0 %v5626_v28  ;;  %8372 = vst [vmem:[#allocation80_spill] sm:$0xff] %v5646_v0  ;;  %8373 = vst [vmem:[#allocation81_spill] sm:$0xff] %v5650_v37  ;;  %v5654_v28 = vld [vmem:[#allocation11 + $0x88] sm:$0xff] }
 0x167   :  { %4085 = vmatpush3.msra.mxu1 %v5624_v35  ;;  %566 = vmatpush1.msra.mxu0 %v5630_v32  ;;  %8374 = vst [vmem:[#allocation82_spill] sm:$0xff] %v5654_v28  ;;  %v5656_v35 = vld [vmem:[#allocation11 + $0x68] sm:$0xff]  ;;  %v5660_v32 = vld [vmem:[#allocation11 + $0x60] sm:$0xff] }
 0x168   :  { %4086 = vmatprep.subr.mxu1 %v8342_v30  ;;  %567 = vmatprep.subr.mxu0 %v5636_v33  ;;  %8375 = vst [vmem:[#allocation83_spill] sm:$0xff] %v5656_v35  ;;  %8376 = vst [vmem:[#allocation84_spill] sm:$0xff] %v5660_v32  ;;  %v5664_v33 = vld [vmem:[#allocation11 + $0x70] sm:$0xff] }
 0x169   :  { %4087 = vmatpush3.msra.mxu1 %v5634_v38  ;;  %568 = vmatpush1.msra.mxu0 %v5640_v31  ;;  %8377 = vst [vmem:[#allocation85_spill] sm:$0xff] %v5664_v33  ;;  %v5666_v38 = vld [vmem:[#allocation11 + $0x50] sm:$0xff]  ;;  %v5670_v31 = vld [vmem:[#allocation11 + $0x48] sm:$0xff] }
 0x16a   :  { %4088 = vmatprep.subr.mxu1 %v8342_v30  ;;  %569 = vmatprep.subr.mxu0 %v5646_v0  ;;  %8378 = vst [vmem:[#allocation86_spill] sm:$0xff] %v5666_v38  ;;  %8379 = vst [vmem:[#allocation87_spill] sm:$0xff] %v5670_v31  ;;  %v5674_v0 = vld [vmem:[#allocation11 + $0x58] sm:$0xff] }
 0x16b   :  { %4089 = vmatpush3.msra.mxu1 %v5644_v29  ;;  %570 = vmatpush1.msra.mxu0 %v5650_v37  ;;  %8380 = vst [vmem:[#allocation88_spill] sm:$0xff] %v5674_v0  ;;  %v5676_v29 = vld [vmem:[#allocation11 + $0x38] sm:$0xff]  ;;  %v5680_v37 = vld [vmem:[#allocation11 + $0x30] sm:$0xff] }
 0x16c   :  { %4090 = vmatprep.subr.mxu1 %v8342_v30  ;;  %571 = vmatprep.subr.mxu0 %v5656_v35  ;;  %8381 = vst [vmem:[#allocation89_spill] sm:$0xff] %v5676_v29  ;;  %8382 = vst [vmem:[#allocation90_spill] sm:$0xff] %v5680_v37  ;;  %v5684_v35 = vld [vmem:[#allocation11 + $0x40] sm:$0xff] }
 0x16d   :  { %4091 = vmatpush3.msra.mxu1 %v5654_v28  ;;  %572 = vmatpush1.msra.mxu0 %v5660_v32  ;;  %8383 = vst [vmem:[#allocation91_spill] sm:$0xff] %v5684_v35  ;;  %v5686_v28 = vld [vmem:[#allocation11 + $0x20] sm:$0xff]  ;;  %v5690_v32 = vld [vmem:[#allocation11 + $0x18] sm:$0xff] }
 0x16e   :  { %4092 = vmatprep.subr.mxu1 %v8342_v30  ;;  %573 = vmatprep.subr.mxu0 %v5666_v38  ;;  %8384 = vst [vmem:[#allocation92_spill] sm:$0xff] %v5686_v28  ;;  %8385 = vst [vmem:[#allocation93_spill] sm:$0xff] %v5690_v32  ;;  %v5694_v38 = vld [vmem:[#allocation11 + $0x28] sm:$0xff] }
 0x16f   :  { %4093 = vmatpush3.msra.mxu1 %v5664_v33  ;;  %574 = vmatpush1.msra.mxu0 %v5670_v31  ;;  %8386 = vst [vmem:[#allocation94_spill] sm:$0xff] %v5694_v38  ;;  %v5696_v33 = vld [vmem:[#allocation11 + $0x8] sm:$0xff]  ;;  %v5700_v31 = vld [vmem:[#allocation11] sm:$0xff] }
 0x170   :  { %4094 = vmatprep.subr.mxu1 %v8342_v30  ;;  %575 = vmatprep.subr.mxu0 %v5676_v29  ;;  %8387 = vst [vmem:[#allocation95_spill] sm:$0xff] %v5696_v33  ;;  %8388 = vst [vmem:[#allocation96_spill] sm:$0xff] %v5700_v31  ;;  %v5704_v29 = vld [vmem:[#allocation11 + $0x10] sm:$0xff] }
 0x171   :  { %4095 = vmatpush3.msra.mxu1 %v5674_v0  ;;  %576 = vmatpush1.msra.mxu0 %v5680_v37  ;;  %8389 = vst [vmem:[#allocation97_spill] sm:$0xff] %v5704_v29 }
 0x172   :  { %4096 = vmatprep.subr.mxu1 %v8342_v30  ;;  %577 = vmatprep.subr.mxu0 %v5686_v28 }
 0x173   :  { %4097 = vmatpush3.msra.mxu1 %v5684_v35  ;;  %578 = vmatpush1.msra.mxu0 %v5690_v32 }
 0x174   :  { %4098 = vmatprep.subr.mxu1 %v8342_v30  ;;  %579 = vmatprep.subr.mxu0 %v5696_v33 }
 0x175   :  { %4099 = vmatpush3.msra.mxu1 %v5694_v38  ;;  %580 = vmatpush1.msra.mxu0 %v5700_v31 }
 0x176   :  { %4100 = vmatprep.subr.mxu1 %v8342_v30  ;;  %4102 = vmatprep.mubr.msk.f32.mxu1 %vm5263_vm1, %v8342_v30 }
 0x177   :  { %4101 = vmatpush3.msra.mxu1 %v5704_v29  ;;  %712 = vmatprep.subr.mxu0 %v5331_v1 }
 0x178   :  { %783 = vmatprep.subr.mxu1 %v5454_v55 }
 0x1c0   :  { %v433_v32 = vpop.xlane.xlu1 %432 }
 0x1c1   :  { %v427_v28 = vpop.xlane.xlu0 %426  ;;  %v451_v52 = vsel %vm424_vm0, %v433_v32, -inf }
 0x1c2   :  { %v449_v29 = vsel %vm424_vm0, %v427_v28, -inf }
 0x1c4   :  { %v436_v35 = vpop.xlane.xlu1 %435 }
 0x1c5   :  { %v430_v38 = vpop.xlane.xlu0 %429  ;;  %v452_v30 = vsel %vm424_vm0, %v436_v35, -inf }
 0x1c6   :  { %v450_v54 = vsel %vm424_vm0, %v430_v38, -inf }
 0x1c8   :  { %v442_v37 = vpop.xlane.xlu1 %441 }
 0x1c9   :  { %v439_v33 = vpop.xlane.xlu0 %438  ;;  %v455_v0 = vsel %vm424_vm0, %v442_v37, -inf }
 0x1ca   :  { %v453_v31 = vsel %vm424_vm0, %v439_v33, -inf  ;;  %v456_v1 = vmax.f32 %v450_v54, %v455_v0 }
 0x1cb   :  { %v454_v53 = vmax.f32 %v449_v29, %v453_v31 }
 0x1cc   :  { %v448_v27 = vpop.xlane.xlu1 %447 }
 0x1cd   :  { %v459_v55 = vsel %vm424_vm0, %v448_v27, -inf  ;;  %v445_v26 = vpop.xlane.xlu0 %444  ;;  %v461_v50 = vmax.f32 %v454_v53, %v456_v1 }
 0x1ce   :  { %v460_v25 = vmax.f32 %v452_v30, %v459_v55  ;;  %v457_v51 = vsel %vm424_vm0, %v445_v26, -inf }
 0x1cf   :  { %v458_v24 = vmax.f32 %v451_v52, %v457_v51  ;;  %v5737_v52 = vld [vmem:[#allocation3 + $0x6] sm:$0x3] }
 0x1d1   :  { %v462_v23 = vmax.f32 %v458_v24, %v460_v25  ;;  %v5723_v25 = vld [vmem:[#allocation3] sm:$0x3] }
 0x1d3   :  { %v463_v49 = vmax.f32 %v461_v50, %v462_v23 }
 0x1d5   :  { %v464_v22 = vsub.f32 %v427_v28, %v463_v49  ;;  %v465_v48 = vsub.f32 %v430_v38, %v463_v49  ;;  %v466_v21 = vsub.f32 %v433_v32, %v463_v49  ;;  %v467_v47 = vsub.f32 %v436_v35, %v463_v49  ;;  %v5728_v32 = vld [vmem:[#allocation3 + $0x4] sm:$0x3] }
 0x1d6   :  { %v468_v20 = vsub.f32 %v439_v33, %v463_v49  ;;  %v469_v31 = vsub.f32 %v442_v37, %v463_v49  ;;  %v470_v19 = vsub.f32 %v445_v26, %v463_v49  ;;  %v471_v55 = vsub.f32 %v448_v27, %v463_v49 }
 0x1d7   :  { %v472_v46 = vmul.f32 1.442695, %v464_v22  ;;  %v474_v0 = vmul.f32 1.442695, %v465_v48  ;;  %v476_v29 = vmul.f32 1.442695, %v466_v21 }
 0x1d8   :  { %v478_v54 = vmul.f32 1.442695, %v467_v47  ;;  %v480_v30 = vmul.f32 1.442695, %v468_v20  ;;  %v482_v51 = vmul.f32 1.442695, %v469_v31 }
 0x1d9   :  { %4390 = vpow2.f32 %v472_v46  ;;  %v484_v23 = vmul.f32 1.442695, %v470_v19  ;;  %v486_v24 = vmul.f32 1.442695, %v471_v55  ;;  %v5725_v22 = vld [vmem:[#allocation3 + $0x2] sm:$0x3] }
 0x1da   :  { %4392 = vpow2.f32 %v474_v0 }
 0x1db   :  { %4394 = vpow2.f32 %v476_v29 }
 0x1dc   :  { %4396 = vpow2.f32 %v478_v54 }
 0x1dd   :  { %4398 = vpow2.f32 %v480_v30 }
 0x1de   :  { %4400 = vpow2.f32 %v482_v51 }
 0x1df   :  { %4402 = vpow2.f32 %v484_v23  ;;  %v5743_v23 = vld [vmem:[#allocation3 + $0x8] sm:$0x3] }
 0x1e0   :  { %4404 = vpow2.f32 %v486_v24 }
 0x1e6   :  { %v4391_v21 = vpop.eup %4390 }
 0x1e7   :  { %v4393_v28 = vpop.eup %4392  ;;  %v488_v26 = vsel %vm424_vm0, %v4391_v21, 0.0  ;;  %v504_v20 = vmul.f32 %v4391_v21, %v5723_v25 }
 0x1e8   :  { %v4395_v27 = vpop.eup %4394  ;;  %v489_v33 = vsel %vm424_vm0, %v4393_v28, 0.0  ;;  %v505_v19 = vmul.f32 %v4393_v28, %v5725_v22 }
 0x1e9   :  { %v4397_v35 = vpop.eup %4396  ;;  %v490_v37 = vadd.f32 %v489_v33, %v488_v26  ;;  %v512_v38 = vsel %vm424_vm0, %v504_v20, 0.0  ;;  %v491_v46 = vsel %vm424_vm0, %v4395_v27, 0.0  ;;  %v506_v47 = vmul.f32 %v4395_v27, %v5728_v32 }
 0x1ea   :  { %v513_v48 = vsel %vm424_vm0, %v505_v19, 0.0  ;;  %v4399_v49 = vpop.eup %4398  ;;  %v493_v1 = vsel %vm424_vm0, %v4397_v35, 0.0  ;;  %v507_v54 = vmul.f32 %v4397_v35, %v5737_v52 }
 0x1eb   :  { %v492_v50 = vadd.f32 %v491_v46, %v490_v37  ;;  %v514_v53 = vadd.f32 %v513_v48, %v512_v38  ;;  %v4401_v0 = vpop.eup %4400  ;;  %v495_v31 = vsel %vm424_vm0, %v4399_v49, 0.0  ;;  %v515_v30 = vsel %vm424_vm0, %v506_v47, 0.0  ;;  %v5749_v37 = vld [vmem:[#allocation3 + $0xa] sm:$0x3] }
 0x1ec   :  { %v4403_v55 = vpop.eup %4402  ;;  %v497_v21 = vsel %vm424_vm0, %v4401_v0, 0.0  ;;  %v508_v27 = vmul.f32 %v4399_v49, %v5743_v23  ;;  %v517_v33 = vsel %vm424_vm0, %v507_v54, 0.0  ;;  %v509_v47 = vmul.f32 %v4401_v0, %v5749_v37 }
 0x1ed   :  { %v494_v29 = vadd.f32 %v493_v1, %v492_v50  ;;  %v516_v24 = vadd.f32 %v515_v30, %v514_v53  ;;  %v4405_v28 = vpop.eup %4404  ;;  %v499_v20 = vsel %vm424_vm0, %v4403_v55, 0.0  ;;  %v5754_v50 = vld [vmem:[#allocation3 + $0xc] sm:$0x3] }
 0x1ee   :  { %v501_v38 = vsel %vm424_vm0, %v4405_v28, 0.0  ;;  %v519_v48 = vsel %vm424_vm0, %v508_v27, 0.0  ;;  %v510_v1 = vmul.f32 %v4403_v55, %v5754_v50  ;;  %v521_v49 = vsel %vm424_vm0, %v509_v47, 0.0  ;;  %v8420_v55 = vld [vmem:[#allocation32_spill] sm:$0xff]  ;;  %v320_v47 = vpop.f32.mrf.mxu0 }
 0x1ef   :  { %v496_v51 = vadd.f32 %v495_v31, %v494_v29  ;;  %v518_v35 = vadd.f32 %v517_v33, %v516_v24  ;;  %v5758_v29 = vld [vmem:[#allocation3 + $0xe] sm:$0x3]  ;;  %v528_v33 = vld [vmem:[#allocation8] sm:$0x3f] }
 0x1f0   :  { %v511_v54 = vmul.f32 %v4405_v28, %v5758_v29  ;;  %v523_v30 = vsel %vm424_vm0, %v510_v1, 0.0 }
 0x1f1   :  { %v498_v26 = vadd.f32 %v497_v21, %v496_v51  ;;  %v520_v53 = vadd.f32 %v519_v48, %v518_v35 }
 0x1f2   :  { %v525_v0 = vsel %vm424_vm0, %v511_v54, 0.0 }
 0x1f3   :  { %v500_v19 = vadd.f32 %v499_v20, %v498_v26  ;;  %v522_v31 = vadd.f32 %v521_v49, %v520_v53  ;;  %v238_v20 = vsub.s32 1, %v8420_v55 }
 0x1f5   :  { %v502_v46 = vadd.f32 %v501_v38, %v500_v19  ;;  %v524_v51 = vadd.f32 %v523_v30, %v522_v31  ;;  %v8421_v19 = vld [vmem:[#allocation33_spill] sm:$0xff]  ;;  %v242_v38 = vsub.s32 2, %v8420_v55 }
 0x1f6   :  { %v5834_v35 = vrot.slane %v8421_v19, %v238_v20  ;;  %v8435_v20 = vld [vmem:[#allocation63_spill] sm:$0xff] }
 0x1f7   :  { %4406 = vrcp.f32 %v502_v46  ;;  %v526_v24 = vadd.f32 %v525_v0, %v524_v51  ;;  %v5840_v49 = vrot.slane %v8421_v19, %v242_v38  ;;  %v8439_v38 = vld [vmem:[#allocation67_spill] sm:$0xff] }
 0x1f8   :  { %v321_v1 = vadd.f32 %v320_v47, %v5834_v35  ;;  %v8441_v47 = vld [vmem:[#allocation69_spill] sm:$0xff] }
 0x204   :  { %v4407_v21 = vpop.eup %4406 }
 0x205   :  { %v527_v26 = vmul.f32 %v4407_v21, %v526_v24 }
 0x207   :  { %614 = vmatmul.mubr.f32.vlgmr.msra.gmra.mxu0 %v527_v26  ;;  %4103 = vmatmul.mubr.f32.vlgmr.msra.gmra.mxu1 %v527_v26 }
 0x208   :  { %713 = vmatpush1.msra.mxu0 %v5333_v2  ;;  %784 = vmatpush1.msra.mxu1 %v5456_v56  ;;  %v8390_v2 = vld [vmem:[#allocation17_spill] sm:$0xff]  ;;  %v8407_v56 = vld [vmem:[#allocation44_spill] sm:$0xff] }
 0x209   :  { %714 = vmatprep.subr.mxu0 %v5335_v3  ;;  %785 = vmatprep.subr.mxu1 %v5458_v58  ;;  %v8391_v3 = vld [vmem:[#allocation36_spill] sm:$0xff]  ;;  %v8408_v58 = vld [vmem:[#allocation26_spill] sm:$0xff] }
 0x20a   :  { %715 = vmatpush1.msra.mxu0 %v5338_v4  ;;  %786 = vmatpush1.msra.mxu1 %v5461_v59  ;;  %v8392_v4 = vld [vmem:[#allocation18_spill] sm:$0xff]  ;;  %v8409_v59 = vld [vmem:[#allocation45_spill] sm:$0xff] }
 0x20b   :  { %716 = vmatprep.subr.mxu0 %v5341_v5  ;;  %787 = vmatprep.subr.mxu1 %v5466_v57  ;;  %v8393_v5 = vld [vmem:[#allocation37_spill] sm:$0xff]  ;;  %v8410_v57 = vld [vmem:[#allocation27_spill] sm:$0xff] }
 0x20c   :  { %717 = vmatpush1.msra.mxu0 %v5344_v6  ;;  %788 = vmatpush1.msra.mxu1 %v5468_v60  ;;  %v8394_v6 = vld [vmem:[#allocation19_spill] sm:$0xff]  ;;  %v8411_v60 = vld [vmem:[#allocation46_spill] sm:$0xff] }
 0x20d   :  { %718 = vmatprep.subr.mxu0 %v5347_v7  ;;  %789 = vmatprep.subr.mxu1 %v5470_v61  ;;  %v8395_v7 = vld [vmem:[#allocation38_spill] sm:$0xff]  ;;  %v8412_v61 = vld [vmem:[#allocation28_spill] sm:$0xff] }
 0x20e   :  { %719 = vmatpush1.msra.mxu0 %v5350_v8  ;;  %790 = vmatpush1.msra.mxu1 %v5473_v62  ;;  %v8396_v8 = vld [vmem:[#allocation20_spill] sm:$0xff]  ;;  %v8413_v62 = vld [vmem:[#allocation47_spill] sm:$0xff] }
 0x20f   :  { %720 = vmatprep.subr.mxu0 %v5353_v9  ;;  %791 = vmatprep.subr.mxu1 %v5478_v63  ;;  %v8397_v9 = vld [vmem:[#allocation39_spill] sm:$0xff]  ;;  %v8414_v63 = vld [vmem:[#allocation29_spill] sm:$0xff] }
 0x210   :  { %721 = vmatpush1.msra.mxu0 %v5356_v10  ;;  %792 = vmatpush1.msra.mxu1 %v5481_v34  ;;  %v8398_v10 = vld [vmem:[#allocation21_spill] sm:$0xff]  ;;  %v8415_v34 = vld [vmem:[#allocation48_spill] sm:$0xff] }
 0x211   :  { %722 = vmatprep.subr.mxu0 %v5359_v11  ;;  %793 = vmatprep.subr.mxu1 %v5484_v36  ;;  %v8399_v11 = vld [vmem:[#allocation40_spill] sm:$0xff]  ;;  %v8416_v36 = vld [vmem:[#allocation30_spill] sm:$0xff] }
 0x212   :  { %723 = vmatpush1.msra.mxu0 %v5362_v12  ;;  %794 = vmatpush1.msra.mxu1 %v5487_v39  ;;  %v8400_v12 = vld [vmem:[#allocation22_spill] sm:$0xff]  ;;  %v8417_v39 = vmov 0.0  }
 0x213   :  { %724 = vmatprep.subr.mxu0 %v5365_v13  ;;  %795 = vmatprep.subr.mxu1 %v5490_v40  ;;  %v8401_v13 = vld [vmem:[#allocation41_spill] sm:$0xff] }
 0x214   :  { %725 = vmatpush1.msra.mxu0 %v5368_v14  ;;  %796 = vmatpush1.msra.mxu1 %v5493_v41  ;;  %v8402_v14 = vld [vmem:[#allocation23_spill] sm:$0xff]  ;;  %v8418_v40 = vld [vmem:[#allocation49_spill] sm:$0xff]  ;;  %v8419_v41 = vld [vmem:[#allocation50_spill] sm:$0xff] }
 0x215   :  { %726 = vmatprep.subr.mxu0 %v5371_v15  ;;  %797 = vmatprep.subr.mxu1 %v5496_v42  ;;  %v8403_v15 = vld [vmem:[#allocation42_spill] sm:$0xff]  ;;  %v5264_v42 = vmov 1983009808  }
 0x216   :  { %727 = vmatpush1.msra.mxu0 %v5374_v16  ;;  %798 = vmatpush1.msra.mxu1 %v5499_v43  ;;  %v8404_v16 = vld [vmem:[#allocation24_spill] sm:$0xff]  ;;  %v532_v43 = vunpack.c.l.s4 %v5264_v42  ;;  %v8430_v42 = vld [vmem:[#allocation58_spill] sm:$0xff] }
 0x217   :  { %728 = vmatprep.subr.mxu0 %v5377_v17  ;;  %799 = vmatprep.subr.mxu1 %v5502_v44  ;;  %v8405_v17 = vld [vmem:[#allocation43_spill] sm:$0xff] }
 0x218   :  { %729 = vmatpush1.msra.mxu0 %v5380_v18  ;;  %800 = vmatpush1.msra.mxu1 %v5505_v45  ;;  %v8406_v18 = vld [vmem:[#allocation25_spill] sm:$0xff]  ;;  %v533_v44 = vunpack.c.0.s8 %v532_v43  ;;  %v389_v45 = vpop.f32.mrf.mxu1  ;;  %v8431_v43 = vld [vmem:[#allocation59_spill] sm:$0xff] }
 0x219   :  { %730 = vmatprep.subr.mxu0 %v8390_v2  ;;  %801 = vmatprep.subr.mxu1 %v8391_v3  ;;  %v390_v24 = vadd.f32 %v389_v45, %v5840_v49  ;;  %v8433_v45 = vld [vmem:[#allocation61_spill] sm:$0xff] }
 0x21a   :  { %731 = vmatpush1.msra.mxu0 %v8392_v4  ;;  %802 = vmatpush1.msra.mxu1 %v8393_v5  ;;  %v5830_v28 = vsub.s32 %v533_v44, %v8420_v55  ;;  %v391_v27 = vpop.f32.mrf.mxu1  ;;  %v8432_v44 = vld [vmem:[#allocation60_spill] sm:$0xff] }
 0x21b   :  { %732 = vmatprep.subr.mxu0 %v8394_v6  ;;  %803 = vmatprep.subr.mxu1 %v8395_v7  ;;  %v246_v6 = vsub.s32 3, %v8420_v55  ;;  %v530_v7 = vcombine.high %v528_v33, %v528_v33  ;;  %v8434_v55 = vld [vmem:[#allocation62_spill] sm:$0xff] }
 0x21c   :  { %733 = vmatpush1.msra.mxu0 %v8396_v8  ;;  %804 = vmatpush1.msra.mxu1 %v8397_v9  ;;  %v537_v46 = vrot.slane %v528_v33, %v5830_v28  ;;  %v8437_v33 = vld [vmem:[#allocation65_spill] sm:$0xff] }
 0x21d   :  { %734 = vmatprep.subr.mxu0 %v8398_v10  ;;  %805 = vmatprep.subr.mxu1 %v8399_v11  ;;  %v5845_v9 = vrot.slane %v8421_v19, %v246_v6  ;;  %v544_v10 = vrot.slane %v530_v7, %v5830_v28  ;;  %v8438_v19 = vld [vmem:[#allocation66_spill] sm:$0xff]  ;;  %v8457_v6 = vld [vmem:[#allocation85_spill] sm:$0xff] }
 0x21e   :  { %735 = vmatpush1.msra.mxu0 %v8400_v12  ;;  %806 = vmatpush1.msra.mxu1 %v8401_v13  ;;  %v545_v54 = vcombine.high %v537_v46, %v537_v46  ;;  %v8458_v7 = vld [vmem:[#allocation86_spill] sm:$0xff] }
 0x21f   :  { %736 = vmatprep.subr.mxu0 %v8402_v14  ;;  %807 = vmatprep.subr.mxu1 %v8403_v15  ;;  %v392_v12 = vadd.f32 %v391_v27, %v5845_v9  ;;  %v8436_v27 = vld [vmem:[#allocation64_spill] sm:$0xff] }
 0x220   :  { %737 = vmatpush1.msra.mxu0 %v8404_v16  ;;  %808 = vmatpush1.msra.mxu1 %v8405_v17 }
 0x221   :  { %738 = vmatprep.subr.mxu0 %v8406_v18  ;;  %809 = vmatprep.subr.mxu1 %v8407_v56 }
 0x222   :  { %739 = vmatpush1.msra.mxu0 %v8408_v58  ;;  %810 = vmatpush1.msra.mxu1 %v8409_v59  ;;  %v8422_v59 = vld [vmem:[#allocation31_spill] sm:$0xff] }
 0x223   :  { %740 = vmatprep.subr.mxu0 %v8410_v57  ;;  %811 = vmatprep.subr.mxu1 %v8411_v60 }
 0x224   :  { %741 = vmatpush1.msra.mxu0 %v8412_v61  ;;  %812 = vmatpush1.msra.mxu1 %v8413_v62  ;;  %v8423_v61 = vld [vmem:[#allocation51_spill] sm:$0xff]  ;;  %v8424_v62 = vld [vmem:[#allocation52_spill] sm:$0xff] }
 0x225   :  { %742 = vmatprep.subr.mxu0 %v8414_v63  ;;  %813 = vmatprep.subr.mxu1 %v8415_v34  ;;  %v8425_v63 = vld [vmem:[#allocation53_spill] sm:$0xff]  ;;  %v8426_v34 = vld [vmem:[#allocation54_spill] sm:$0xff] }
 0x226   :  { %743 = vmatpush1.msra.mxu0 %v8416_v36  ;;  %776 = vmatprep.mubr.f32.mxu0 %v8417_v39  ;;  %v8427_v36 = vld [vmem:[#allocation55_spill] sm:$0xff] }
 0x227   :  { %814 = vmatpush1.msra.mxu1 %v8418_v40  ;;  %847 = vmatprep.mubr.f32.mxu1 %v8417_v39  ;;  %v8428_v40 = vld [vmem:[#allocation56_spill] sm:$0xff] }
 0x228   :  { %1003 = vmatprep.subr.mxu0 %v8419_v41  ;;  %4105 = vmatprep.subr.mxu1 %v8417_v39  ;;  %v8429_v41 = vld [vmem:[#allocation57_spill] sm:$0xff] }
 0x2c7   :  { %v615_v48 = vpop.f32.mrf.mxu0  ;;  %v686_v53 = vpop.f32.mrf.mxu1 }
 0x2c8   :  { %v616_v31 = vadd.f32 %v615_v48, %v537_v46  ;;  %v687_v14 = vadd.f32 %v686_v53, %v544_v10  ;;  %v8440_v46 = vld [vmem:[#allocation68_spill] sm:$0xff]  ;;  %v8442_v48 = vld [vmem:[#allocation70_spill] sm:$0xff]  ;;  %v8443_v53 = vld [vmem:[#allocation71_spill] sm:$0xff] }
 0x2c9   :  { %v617_v30 = vpop.f32.mrf.mxu0  ;;  %v4104_v51 = vpop.f32.mrf.mxu1  ;;  %v8460_v10 = vld [vmem:[#allocation88_spill] sm:$0xff] }
 0x2ca   :  { %v690_v0 = vadd.f32 %v616_v31, %v321_v1  ;;  %v618_v26 = vadd.f32 %v617_v30, %v545_v54  ;;  %v8444_v1 = vld [vmem:[#allocation72_spill] sm:$0xff]  ;;  %v8445_v31 = vld [vmem:[#allocation73_spill] sm:$0xff]  ;;  %v8446_v54 = vld [vmem:[#allocation74_spill] sm:$0xff] }
 0x2cb   :  { %v8447_v30 = vld [vmem:[#allocation75_spill] sm:$0xff]  ;;  %v8448_v51 = vld [vmem:[#allocation76_spill] sm:$0xff] }
 0x2cc   :  { %v3918_v21 = vmul.f32 -1.442695, %v690_v0  ;;  %v697_v2 = vadd.f32 %v618_v26, %v390_v24  ;;  %v8449_v0 = vld [vmem:[#allocation77_spill] sm:$0xff]  ;;  %v8450_v24 = vld [vmem:[#allocation78_spill] sm:$0xff]  ;;  %v8452_v26 = vld [vmem:[#allocation80_spill] sm:$0xff] }
 0x2ce   :  { %4408 = vpow2.f32 %v3918_v21  ;;  %v3919_v3 = vmul.f32 -1.442695, %v697_v2  ;;  %v8451_v21 = vld [vmem:[#allocation79_spill] sm:$0xff]  ;;  %v8453_v2 = vld [vmem:[#allocation81_spill] sm:$0xff] }
 0x2d0   :  { %4410 = vpow2.f32 %v3919_v3  ;;  %v8454_v3 = vld [vmem:[#allocation82_spill] sm:$0xff] }
 0x2db   :  { %v4409_v4 = vpop.eup %4408 }
 0x2dc   :  { %v694_v5 = vadd.f32 1.0, %v4409_v4  ;;  %v8455_v4 = vld [vmem:[#allocation83_spill] sm:$0xff] }
 0x2dd   :  { %v4411_v8 = vpop.eup %4410 }
 0x2de   :  { %4412 = vrcp.f32 %v694_v5  ;;  %v701_v11 = vadd.f32 1.0, %v4411_v8  ;;  %v8456_v5 = vld [vmem:[#allocation84_spill] sm:$0xff]  ;;  %v8459_v8 = vld [vmem:[#allocation87_spill] sm:$0xff] }
 0x2e0   :  { %4414 = vrcp.f32 %v701_v11  ;;  %v8461_v11 = vld [vmem:[#allocation89_spill] sm:$0xff] }
 0x2eb   :  { %v4413_v13 = vpop.eup %4412 }
 0x2ec   :  { %v704_v15 = vmul.f32 %v4413_v13, %v392_v12  ;;  %v8462_v12 = vld [vmem:[#allocation90_spill] sm:$0xff]  ;;  %v8463_v13 = vld [vmem:[#allocation91_spill] sm:$0xff] }
 0x2ed   :  { %v4415_v17 = vpop.eup %4414 }
 0x2ee   :  { %v705_v16 = vadd.f32 %v704_v15, %v687_v14  ;;  %v707_v18 = vsub.f32 1.0, %v4415_v17  ;;  %v709_v57 = vmul.f32 %v4415_v17, %v8422_v59  ;;  %v8464_v14 = vld [vmem:[#allocation92_spill] sm:$0xff]  ;;  %v8465_v15 = vld [vmem:[#allocation93_spill] sm:$0xff]  ;;  %v8467_v17 = vld [vmem:[#allocation95_spill] sm:$0xff] }
 0x2ef   :  { %v8470_v59 = vld [vmem:[#allocation35_spill] sm:$0xff] }
 0x2f0   :  { %4416 = vtanh.f32 %v705_v16  ;;  %v8466_v16 = vld [vmem:[#allocation94_spill] sm:$0xff] }
 0x2fd   :  { %v4417_v56 = vpop.eup %4416 }
 0x2fe   :  { %v708_v58 = vmul.f32 %v4417_v56, %v707_v18  ;;  %v8468_v18 = vld [vmem:[#allocation96_spill] sm:$0xff]  ;;  %v8469_v56 = vld [vmem:[#allocation97_spill] sm:$0xff] }
 0x300   :  { %v5850_v60 = vadd.f32 %v709_v57, %v708_v58  ;;  %v5920_v58 = vld [vmem:[#allocation9 + $0x1e8] sm:$0xff] }
 0x302   :  { %711 = vst [vmem:[#allocation12] sm:$0x3] %v5850_v60  ;;  %777 = vmatmul.mubr.f32.vlgmr.msra.gmra.mxu0 %v5850_v60  ;;  %848 = vmatmul.mubr.f32.vlgmr.msra.gmra.mxu1 %v5850_v60 }
 0x303   :  { %1004 = vmatpush1.msra.mxu0 %v8423_v61  ;;  %4106 = vmatpush3.msra.mxu1 %v8424_v62  ;;  %v8471_v61 = vld [vmem:[#allocation34_spill] sm:$0xff] }
 0x304   :  { %1005 = vmatprep.subr.mxu0 %v8425_v63  ;;  %4107 = vmatprep.subr.mxu1 %v8417_v39  ;;  %v5925_v63 = vld [vmem:[#allocation6 + $0x2] sm:$0x3] }
 0x305   :  { %1006 = vmatpush1.msra.mxu0 %v8426_v34  ;;  %4108 = vmatpush3.msra.mxu1 %v8427_v36  ;;  %v5928_v36 = vld [vmem:[#allocation6] sm:$0x3] }
 0x306   :  { %1007 = vmatprep.subr.mxu0 %v8428_v40  ;;  %4109 = vmatprep.subr.mxu1 %v8417_v39 }
 0x307   :  { %1008 = vmatpush1.msra.mxu0 %v8429_v41  ;;  %4110 = vmatpush3.msra.mxu1 %v8430_v42  ;;  %v5931_v41 = vld [vmem:[#allocation6 + $0x6] sm:$0x3] }
 0x308   :  { %1009 = vmatprep.subr.mxu0 %v8431_v43  ;;  %4111 = vmatprep.subr.mxu1 %v8417_v39  ;;  %v5934_v43 = vld [vmem:[#allocation6 + $0x4] sm:$0x3] }
 0x309   :  { %1010 = vmatpush1.msra.mxu0 %v8432_v44  ;;  %4112 = vmatpush3.msra.mxu1 %v8433_v45  ;;  %v5937_v45 = vld [vmem:[#allocation6 + $0xa] sm:$0x3] }
 0x30a   :  { %1011 = vmatprep.subr.mxu0 %v8434_v55  ;;  %4113 = vmatprep.subr.mxu1 %v8417_v39 }
 0x30b   :  { %1012 = vmatpush1.msra.mxu0 %v8435_v20  ;;  %4114 = vmatpush3.msra.mxu1 %v8436_v27  ;;  %v5940_v20 = vld [vmem:[#allocation6 + $0x8] sm:$0x3] }
 0x30c   :  { %1013 = vmatprep.subr.mxu0 %v8437_v33  ;;  %4115 = vmatprep.subr.mxu1 %v8417_v39  ;;  %v5943_v33 = vld [vmem:[#allocation6 + $0xe] sm:$0x3] }
 0x30d   :  { %1014 = vmatpush1.msra.mxu0 %v8438_v19  ;;  %4116 = vmatpush3.msra.mxu1 %v8439_v38  ;;  %v5946_v38 = vld [vmem:[#allocation6 + $0xc] sm:$0x3] }
 0x30e   :  { %1015 = vmatprep.subr.mxu0 %v8440_v46  ;;  %4117 = vmatprep.subr.mxu1 %v8417_v39 }
 0x30f   :  { %1016 = vmatpush1.msra.mxu0 %v8441_v47  ;;  %4118 = vmatpush3.msra.mxu1 %v8442_v48 }
 0x310   :  { %1017 = vmatprep.subr.mxu0 %v8443_v53  ;;  %4119 = vmatprep.subr.mxu1 %v8417_v39  ;;  %v5952_v53 = vld [vmem:[%s7967_s5] ss:$0 sm:$0xff] }
 0x311   :  { %1018 = vmatpush1.msra.mxu0 %v8444_v1  ;;  %4120 = vmatpush3.msra.mxu1 %v8445_v31 }
 0x312   :  { %1019 = vmatprep.subr.mxu0 %v8446_v54  ;;  %4121 = vmatprep.subr.mxu1 %v8417_v39 }
 0x313   :  { %1020 = vmatpush1.msra.mxu0 %v8447_v30  ;;  %4122 = vmatpush3.msra.mxu1 %v8448_v51 }
 0x314   :  { %1021 = vmatprep.subr.mxu0 %v8449_v0  ;;  %4123 = vmatprep.subr.mxu1 %v8417_v39 }
 0x315   :  { %1022 = vmatpush1.msra.mxu0 %v8450_v24  ;;  %4124 = vmatpush3.msra.mxu1 %v8451_v21 }
 0x316   :  { %1023 = vmatprep.subr.mxu0 %v8452_v26  ;;  %4125 = vmatprep.subr.mxu1 %v8417_v39 }
 0x317   :  { %1024 = vmatpush1.msra.mxu0 %v8453_v2  ;;  %4126 = vmatpush3.msra.mxu1 %v8454_v3 }
 0x318   :  { %1025 = vmatprep.subr.mxu0 %v8455_v4  ;;  %4127 = vmatprep.subr.mxu1 %v8417_v39 }
 0x319   :  { %1026 = vmatpush1.msra.mxu0 %v8456_v5  ;;  %4128 = vmatpush3.msra.mxu1 %v8457_v6 }
 0x31a   :  { %1027 = vmatprep.subr.mxu0 %v8458_v7  ;;  %4129 = vmatprep.subr.mxu1 %v8417_v39 }
 0x31b   :  { %1028 = vmatpush1.msra.mxu0 %v8459_v8  ;;  %4130 = vmatpush3.msra.mxu1 %v8460_v10 }
 0x31c   :  { %1029 = vmatprep.subr.mxu0 %v8461_v11  ;;  %4131 = vmatprep.subr.mxu1 %v8417_v39 }
 0x31d   :  { %1030 = vmatpush1.msra.mxu0 %v8462_v12  ;;  %4132 = vmatpush3.msra.mxu1 %v8463_v13 }
 0x31e   :  { %1031 = vmatprep.subr.mxu0 %v8464_v14  ;;  %4133 = vmatprep.subr.mxu1 %v8417_v39 }
 0x31f   :  { %1032 = vmatpush1.msra.mxu0 %v8465_v15  ;;  %4134 = vmatpush3.msra.mxu1 %v8466_v16 }
 0x320   :  { %1033 = vmatprep.subr.mxu0 %v8467_v17  ;;  %4135 = vmatprep.subr.mxu1 %v8417_v39 }
 0x321   :  { %1034 = vmatpush1.msra.mxu0 %v8468_v18  ;;  %1067 = vmatprep.mubr.f32.mxu0 %v8417_v39 }
 0x322   :  { %4136 = vmatpush3.msra.mxu1 %v8469_v56  ;;  %4137 = vmatprep.mubr.msk.f32.mxu1 %vm5263_vm1, %v8417_v39 }
 0x323   :  { %1167 = vmatprep.subr.mxu0 %v5920_v58  ;;  %1238 = vmatprep.subr.mxu1 %v8470_v59 }
 0x3c2   :  { %v778_v57 = vpop.f32.mrf.mxu0 }
 0x3c3   :  { %v779_v62 = vadd.f32 %v778_v57, %v8471_v61 }
 0x3c5   :  { %v855_v34 = vadd.f32 %v5925_v63, %v779_v62  ;;  %v854_v40 = vadd.f32 %v5928_v36, %v779_v62  ;;  %v857_v42 = vadd.f32 %v5931_v41, %v779_v62  ;;  %v856_v44 = vadd.f32 %v5934_v43, %v779_v62 }
 0x3c6   :  { %v859_v55 = vadd.f32 %v5937_v45, %v779_v62  ;;  %v858_v27 = vadd.f32 %v5940_v20, %v779_v62  ;;  %v861_v19 = vadd.f32 %v5943_v33, %v779_v62  ;;  %v860_v46 = vadd.f32 %v5946_v38, %v779_v62 }
 0x3c7   :  { %4418 = vtanh.f32 %v855_v34 }
 0x3c8   :  { %4420 = vtanh.f32 %v854_v40 }
 0x3c9   :  { %4422 = vtanh.f32 %v857_v42 }
 0x3ca   :  { %4424 = vtanh.f32 %v856_v44 }
 0x3cb   :  { %4426 = vtanh.f32 %v859_v55 }
 0x3cc   :  { %4428 = vtanh.f32 %v858_v27 }
 0x3cd   :  { %4430 = vtanh.f32 %v861_v19 }
 0x3ce   :  { %4432 = vtanh.f32 %v860_v46 }
 0x3d4   :  { %v4419_v47 = vpop.eup %4418 }
 0x3d5   :  { %v4421_v48 = vpop.eup %4420  ;;  %v871_v1 = vmul.f32 %v5952_v53, %v4419_v47 }
 0x3d6   :  { %v4423_v31 = vpop.eup %4422  ;;  %v870_v54 = vmul.f32 %v5952_v53, %v4421_v48 }
 0x3d7   :  { %v4425_v30 = vpop.eup %4424  ;;  %v881_v51 = vsel %vm424_vm0, %v871_v1, 0.0  ;;  %v873_v0 = vmul.f32 %v5952_v53, %v4423_v31 }
 0x3d8   :  { %v4427_v24 = vpop.eup %4426  ;;  %882 = vadd.xlane.f32.xlu1 %v881_v51  ;;  %v878_v21 = vsel %vm424_vm0, %v870_v54, 0.0  ;;  %v872_v26 = vmul.f32 %v5952_v53, %v4425_v30 }
 0x3d9   :  { %v4429_v2 = vpop.eup %4428  ;;  %879 = vadd.xlane.f32.xlu0 %v878_v21  ;;  %v887_v3 = vsel %vm424_vm0, %v873_v0, 0.0  ;;  %v875_v4 = vmul.f32 %v5952_v53, %v4427_v24 }
 0x3da   :  { %v4431_v5 = vpop.eup %4430  ;;  %v884_v6 = vsel %vm424_vm0, %v872_v26, 0.0  ;;  %v874_v7 = vmul.f32 %v5952_v53, %v4429_v2 }
 0x3db   :  { %v4433_v8 = vpop.eup %4432  ;;  %v893_v10 = vsel %vm424_vm0, %v875_v4, 0.0  ;;  %v877_v11 = vmul.f32 %v5952_v53, %v4431_v5 }
 0x3dc   :  { %888 = vadd.xlane.f32.xlu1 %v887_v3  ;;  %v890_v12 = vsel %vm424_vm0, %v874_v7, 0.0  ;;  %v876_v13 = vmul.f32 %v5952_v53, %v4433_v8 }
 0x3dd   :  { %885 = vadd.xlane.f32.xlu0 %v884_v6  ;;  %v899_v14 = vsel %vm424_vm0, %v877_v11, 0.0 }
 0x3de   :  { %v896_v15 = vsel %vm424_vm0, %v876_v13, 0.0 }
 0x3e0   :  { %894 = vadd.xlane.f32.xlu1 %v893_v10 }
 0x3e1   :  { %891 = vadd.xlane.f32.xlu0 %v890_v12 }
 0x3e4   :  { %900 = vadd.xlane.f32.xlu1 %v899_v14 }
 0x3e5   :  { %897 = vadd.xlane.f32.xlu0 %v896_v15 }
 0x461   :  { %v883_v16 = vpop.xlane.xlu1 %882 }
 0x462   :  { %v880_v17 = vpop.xlane.xlu0 %879  ;;  %v903_v40 = vsel %vm424_vm0, %v883_v16, -inf }
 0x463   :  { %v902_v42 = vsel %vm424_vm0, %v880_v17, -inf }
 0x465   :  { %v889_v18 = vpop.xlane.xlu1 %888 }
 0x466   :  { %v886_v56 = vpop.xlane.xlu0 %885  ;;  %v905_v55 = vsel %vm424_vm0, %v889_v18, -inf }
 0x467   :  { %v904_v48 = vsel %vm424_vm0, %v886_v56, -inf }
 0x469   :  { %v895_v59 = vpop.xlane.xlu1 %894 }
 0x46a   :  { %v892_v57 = vpop.xlane.xlu0 %891  ;;  %v908_v62 = vsel %vm424_vm0, %v895_v59, -inf }
 0x46b   :  { %v906_v34 = vsel %vm424_vm0, %v892_v57, -inf  ;;  %v909_v27 = vmax.f32 %v903_v40, %v908_v62 }
 0x46c   :  { %v907_v19 = vmax.f32 %v902_v42, %v906_v34 }
 0x46d   :  { %v901_v44 = vpop.xlane.xlu1 %900 }
 0x46e   :  { %v912_v46 = vsel %vm424_vm0, %v901_v44, -inf  ;;  %v898_v47 = vpop.xlane.xlu0 %897  ;;  %v914_v30 = vmax.f32 %v907_v19, %v909_v27 }
 0x46f   :  { %v913_v1 = vmax.f32 %v905_v55, %v912_v46  ;;  %v910_v31 = vsel %vm424_vm0, %v898_v47, -inf }
 0x470   :  { %v911_v54 = vmax.f32 %v904_v48, %v910_v31 }
 0x472   :  { %v915_v51 = vmax.f32 %v911_v54, %v913_v1 }
 0x474   :  { %v916_v0 = vmax.f32 %v914_v30, %v915_v51 }
 0x476   :  { %v917_v24 = vsub.f32 %v880_v17, %v916_v0  ;;  %v918_v21 = vsub.f32 %v883_v16, %v916_v0  ;;  %v919_v26 = vsub.f32 %v886_v56, %v916_v0  ;;  %v920_v2 = vsub.f32 %v889_v18, %v916_v0 }
 0x477   :  { %v921_v3 = vsub.f32 %v892_v57, %v916_v0  ;;  %v922_v7 = vsub.f32 %v895_v59, %v916_v0  ;;  %v923_v10 = vsub.f32 %v898_v47, %v916_v0  ;;  %v924_v12 = vsub.f32 %v901_v44, %v916_v0 }
 0x478   :  { %v925_v4 = vmul.f32 1.442695, %v917_v24  ;;  %v927_v5 = vmul.f32 1.442695, %v918_v21  ;;  %v929_v6 = vmul.f32 1.442695, %v919_v26 }
 0x479   :  { %v931_v8 = vmul.f32 1.442695, %v920_v2  ;;  %v933_v11 = vmul.f32 1.442695, %v921_v3  ;;  %v935_v13 = vmul.f32 1.442695, %v922_v7 }
 0x47a   :  { %4434 = vpow2.f32 %v925_v4  ;;  %v937_v14 = vmul.f32 1.442695, %v923_v10  ;;  %v939_v15 = vmul.f32 1.442695, %v924_v12 }
 0x47b   :  { %4436 = vpow2.f32 %v927_v5 }
 0x47c   :  { %4438 = vpow2.f32 %v929_v6 }
 0x47d   :  { %4440 = vpow2.f32 %v931_v8 }
 0x47e   :  { %4442 = vpow2.f32 %v933_v11 }
 0x47f   :  { %4444 = vpow2.f32 %v935_v13 }
 0x480   :  { %4446 = vpow2.f32 %v937_v14 }
 0x481   :  { %4448 = vpow2.f32 %v939_v15 }
 0x487   :  { %v4435_v16 = vpop.eup %4434 }
 0x488   :  { %v4437_v17 = vpop.eup %4436  ;;  %v941_v18 = vsel %vm424_vm0, %v4435_v16, 0.0  ;;  %v957_v56 = vmul.f32 %v4435_v16, %v5723_v25 }
 0x489   :  { %v4439_v59 = vpop.eup %4438  ;;  %v942_v57 = vsel %vm424_vm0, %v4437_v17, 0.0  ;;  %v958_v62 = vmul.f32 %v4437_v17, %v5725_v22 }
 0x48a   :  { %v4441_v34 = vpop.eup %4440  ;;  %v943_v40 = vadd.f32 %v942_v57, %v941_v18  ;;  %v965_v42 = vsel %vm424_vm0, %v957_v56, 0.0  ;;  %v944_v44 = vsel %vm424_vm0, %v4439_v59, 0.0  ;;  %v959_v55 = vmul.f32 %v4439_v59, %v5728_v32  ;;  %v6008_v59 = vld [vmem:[#allocation9 + $0x1c8] sm:$0xff]  ;;  %v6014_v57 = vld [vmem:[#allocation9 + $0x1c0] sm:$0xff] }
 0x48b   :  { %v966_v27 = vsel %vm424_vm0, %v958_v62, 0.0  ;;  %v4443_v19 = vpop.eup %4442  ;;  %v946_v25 = vsel %vm424_vm0, %v4441_v34, 0.0  ;;  %v960_v22 = vmul.f32 %v4441_v34, %v5737_v52  ;;  %v6017_v62 = vld [vmem:[#allocation9 + $0x1d0] sm:$0xff]  ;;  %v6020_v34 = vld [vmem:[#allocation9 + $0x1a8] sm:$0xff] }
 0x48c   :  { %v945_v46 = vadd.f32 %v944_v44, %v943_v40  ;;  %v967_v47 = vadd.f32 %v966_v27, %v965_v42  ;;  %v4445_v48 = vpop.eup %4444  ;;  %v948_v31 = vsel %vm424_vm0, %v4443_v19, 0.0  ;;  %v968_v54 = vsel %vm424_vm0, %v959_v55, 0.0  ;;  %v6023_v40 = vld [vmem:[#allocation9 + $0x1b8] sm:$0xff]  ;;  %v6026_v42 = vld [vmem:[#allocation9 + $0x1a0] sm:$0xff]  ;;  %v6029_v44 = vld [vmem:[#allocation9 + $0x1b0] sm:$0xff] }
 0x48d   :  { %v4447_v30 = vpop.eup %4446  ;;  %v950_v32 = vsel %vm424_vm0, %v4445_v48, 0.0  ;;  %v961_v2 = vmul.f32 %v4443_v19, %v5743_v23  ;;  %v970_v3 = vsel %vm424_vm0, %v960_v22, 0.0  ;;  %v962_v7 = vmul.f32 %v4445_v48, %v5749_v37  ;;  %v6002_v37 = vld [vmem:[#allocation9 + $0x1e0] sm:$0xff]  ;;  %v6032_v55 = vld [vmem:[#allocation9 + $0x188] sm:$0xff]  ;;  %v6035_v27 = vld [vmem:[#allocation9 + $0x198] sm:$0xff] }
 0x48e   :  { %v947_v1 = vadd.f32 %v946_v25, %v945_v46  ;;  %v969_v0 = vadd.f32 %v968_v54, %v967_v47  ;;  %v4449_v24 = vpop.eup %4448  ;;  %v952_v26 = vsel %vm424_vm0, %v4447_v30, 0.0  ;;  %v963_v11 = vmul.f32 %v4447_v30, %v5754_v50  ;;  %v6005_v50 = vld [vmem:[#allocation9 + $0x1f0] sm:$0xff]  ;;  %v6038_v19 = vld [vmem:[#allocation9 + $0x180] sm:$0xff]  ;;  %v6044_v47 = vld [vmem:[#allocation9 + $0x168] sm:$0xff] }
 0x48f   :  { %v954_v6 = vsel %vm424_vm0, %v4449_v24, 0.0  ;;  %v972_v8 = vsel %vm424_vm0, %v961_v2, 0.0  ;;  %v974_v12 = vsel %vm424_vm0, %v962_v7, 0.0  ;;  %v964_v23 = vmul.f32 %v4449_v24, %v5758_v29  ;;  %v6011_v29 = vld [vmem:[#allocation9 + $0x1d8] sm:$0xff]  ;;  %v6041_v46 = vld [vmem:[#allocation9 + $0x190] sm:$0xff]  ;;  %v6050_v48 = vld [vmem:[#allocation9 + $0x160] sm:$0xff] }
 0x490   :  { %v949_v51 = vadd.f32 %v948_v31, %v947_v1  ;;  %v971_v5 = vadd.f32 %v970_v3, %v969_v0  ;;  %v976_v14 = vsel %vm424_vm0, %v963_v11, 0.0  ;;  %v6047_v25 = vld [vmem:[#allocation9 + $0x178] sm:$0xff]  ;;  %v6053_v1 = vld [vmem:[#allocation9 + $0x170] sm:$0xff]  ;;  %v6056_v31 = vld [vmem:[#allocation9 + $0x148] sm:$0xff] }
 0x491   :  { %v978_v16 = vsel %vm424_vm0, %v964_v23, 0.0  ;;  %v6059_v22 = vld [vmem:[#allocation9 + $0x158] sm:$0xff]  ;;  %v6062_v54 = vld [vmem:[#allocation9 + $0x140] sm:$0xff]  ;;  %v6065_v30 = vld [vmem:[#allocation9 + $0x150] sm:$0xff] }
 0x492   :  { %v951_v21 = vadd.f32 %v950_v32, %v949_v51  ;;  %v973_v10 = vadd.f32 %v972_v8, %v971_v5  ;;  %v6068_v51 = vld [vmem:[#allocation9 + $0x128] sm:$0xff]  ;;  %v6071_v0 = vld [vmem:[#allocation9 + $0x138] sm:$0xff]  ;;  %v6074_v32 = vld [vmem:[#allocation9 + $0x120] sm:$0xff] }
 0x493   :  { %v6077_v24 = vld [vmem:[#allocation9 + $0x130] sm:$0xff]  ;;  %v6086_v2 = vld [vmem:[#allocation9 + $0x100] sm:$0xff]  ;;  %v6095_v5 = vld [vmem:[#allocation9 + $0xf8] sm:$0xff] }
 0x494   :  { %v953_v4 = vadd.f32 %v952_v26, %v951_v21  ;;  %v975_v13 = vadd.f32 %v974_v12, %v973_v10  ;;  %8472 = vst [vmem:[#allocation17_spill] sm:$0xff] %v6077_v24  ;;  %v6080_v21 = vld [vmem:[#allocation9 + $0x108] sm:$0xff]  ;;  %v6083_v26 = vld [vmem:[#allocation9 + $0x118] sm:$0xff]  ;;  %8475 = vst [vmem:[#allocation37_spill] sm:$0xff] %v6086_v2 }
 0x495   :  { %8473 = vst [vmem:[#allocation36_spill] sm:$0xff] %v6080_v21  ;;  %8474 = vst [vmem:[#allocation18_spill] sm:$0xff] %v6083_v26  ;;  %v6089_v3 = vld [vmem:[#allocation9 + $0x110] sm:$0xff]  ;;  %v6104_v7 = vld [vmem:[#allocation9 + $0xc8] sm:$0xff] }
 0x496   :  { %v955_v52 = vadd.f32 %v954_v6, %v953_v4  ;;  %v977_v15 = vadd.f32 %v976_v14, %v975_v13  ;;  %8476 = vst [vmem:[#allocation19_spill] sm:$0xff] %v6089_v3  ;;  %v6092_v4 = vld [vmem:[#allocation9 + $0xe8] sm:$0xff]  ;;  %8478 = vst [vmem:[#allocation20_spill] sm:$0xff] %v6095_v5  ;;  %v6098_v6 = vld [vmem:[#allocation9 + $0xe0] sm:$0xff] }
 0x497   :  { %8477 = vst [vmem:[#allocation38_spill] sm:$0xff] %v6092_v4  ;;  %8479 = vst [vmem:[#allocation39_spill] sm:$0xff] %v6098_v6  ;;  %v6107_v8 = vld [vmem:[#allocation9 + $0xd8] sm:$0xff]  ;;  %v6110_v10 = vld [vmem:[#allocation9 + $0xc0] sm:$0xff] }
 0x498   :  { %4450 = vrcp.f32 %v955_v52  ;;  %v979_v17 = vadd.f32 %v978_v16, %v977_v15  ;;  %v6101_v52 = vld [vmem:[#allocation9 + $0xf0] sm:$0xff]  ;;  %8481 = vst [vmem:[#allocation40_spill] sm:$0xff] %v6104_v7  ;;  %8482 = vst [vmem:[#allocation22_spill] sm:$0xff] %v6107_v8  ;;  %v6116_v12 = vld [vmem:[#allocation9 + $0xa8] sm:$0xff] }
 0x499   :  { %8480 = vst [vmem:[#allocation21_spill] sm:$0xff] %v6101_v52  ;;  %8483 = vst [vmem:[#allocation41_spill] sm:$0xff] %v6110_v10  ;;  %v6113_v11 = vld [vmem:[#allocation9 + $0xd0] sm:$0xff]  ;;  %v6119_v13 = vld [vmem:[#allocation9 + $0xb8] sm:$0xff] }
 0x49a   :  { %8484 = vst [vmem:[#allocation23_spill] sm:$0xff] %v6113_v11  ;;  %8485 = vst [vmem:[#allocation42_spill] sm:$0xff] %v6116_v12  ;;  %v6122_v23 = vld [vmem:[#allocation9 + $0xa0] sm:$0xff]  ;;  %v6125_v14 = vld [vmem:[#allocation9 + $0xb0] sm:$0xff] }
 0x49b   :  { %8486 = vst [vmem:[#allocation24_spill] sm:$0xff] %v6119_v13  ;;  %8487 = vst [vmem:[#allocation43_spill] sm:$0xff] %v6122_v23  ;;  %v6128_v15 = vld [vmem:[#allocation9 + $0x88] sm:$0xff]  ;;  %v6131_v16 = vld [vmem:[#allocation9 + $0x98] sm:$0xff] }
 0x49c   :  { %8488 = vst [vmem:[#allocation25_spill] sm:$0xff] %v6125_v14  ;;  %8489 = vst [vmem:[#allocation44_spill] sm:$0xff] %v6128_v15 }
 0x49d   :  { %8490 = vst [vmem:[#allocation26_spill] sm:$0xff] %v6131_v16 }
 0x4a5   :  { %v4451_v18 = vpop.eup %4450 }
 0x4a6   :  { %v980_v56 = vmul.f32 %v4451_v18, %v979_v17  ;;  %v6134_v17 = vld [vmem:[#allocation9 + $0x80] sm:$0xff]  ;;  %v6137_v18 = vld [vmem:[#allocation9 + $0x90] sm:$0xff] }
 0x4a7   :  { %8491 = vst [vmem:[#allocation45_spill] sm:$0xff] %v6134_v17  ;;  %8492 = vst [vmem:[#allocation27_spill] sm:$0xff] %v6137_v18 }
 0x4a8   :  { %1068 = vmatmul.mubr.f32.vlgmr.msra.gmra.mxu0 %v980_v56  ;;  %4138 = vmatmul.mubr.f32.vlgmr.msra.gmra.mxu1 %v980_v56  ;;  %v6140_v56 = vld [vmem:[#allocation9 + $0x68] sm:$0xff] }
 0x4a9   :  { %1168 = vmatpush1.msra.mxu0 %v6002_v37  ;;  %1239 = vmatpush1.msra.mxu1 %v6005_v50  ;;  %8493 = vst [vmem:[#allocation46_spill] sm:$0xff] %v6140_v56 }
 0x4aa   :  { %1169 = vmatprep.subr.mxu0 %v6008_v59  ;;  %1240 = vmatprep.subr.mxu1 %v6011_v29 }
 0x4ab   :  { %1170 = vmatpush1.msra.mxu0 %v6014_v57  ;;  %1241 = vmatpush1.msra.mxu1 %v6017_v62 }
 0x4ac   :  { %1171 = vmatprep.subr.mxu0 %v6020_v34  ;;  %1242 = vmatprep.subr.mxu1 %v6023_v40 }
 0x4ad   :  { %1172 = vmatpush1.msra.mxu0 %v6026_v42  ;;  %1243 = vmatpush1.msra.mxu1 %v6029_v44 }
 0x4ae   :  { %1173 = vmatprep.subr.mxu0 %v6032_v55  ;;  %1244 = vmatprep.subr.mxu1 %v6035_v27 }
 0x4af   :  { %1174 = vmatpush1.msra.mxu0 %v6038_v19  ;;  %1245 = vmatpush1.msra.mxu1 %v6041_v46 }
 0x4b0   :  { %1175 = vmatprep.subr.mxu0 %v6044_v47  ;;  %1246 = vmatprep.subr.mxu1 %v6047_v25 }
 0x4b1   :  { %1176 = vmatpush1.msra.mxu0 %v6050_v48  ;;  %1247 = vmatpush1.msra.mxu1 %v6053_v1 }
 0x4b2   :  { %1177 = vmatprep.subr.mxu0 %v6056_v31  ;;  %1248 = vmatprep.subr.mxu1 %v6059_v22 }
 0x4b3   :  { %1178 = vmatpush1.msra.mxu0 %v6062_v54  ;;  %1249 = vmatpush1.msra.mxu1 %v6065_v30 }
 0x4b4   :  { %1179 = vmatprep.subr.mxu0 %v6068_v51  ;;  %1250 = vmatprep.subr.mxu1 %v6071_v0 }
 0x4b5   :  { %1180 = vmatpush1.msra.mxu0 %v6074_v32  ;;  %1251 = vmatpush1.msra.mxu1 %v6077_v24 }
 0x4b6   :  { %1181 = vmatprep.subr.mxu0 %v6080_v21  ;;  %1252 = vmatprep.subr.mxu1 %v6083_v26 }
 0x4b7   :  { %1182 = vmatpush1.msra.mxu0 %v6086_v2  ;;  %1253 = vmatpush1.msra.mxu1 %v6089_v3 }
 0x4b8   :  { %1183 = vmatprep.subr.mxu0 %v6092_v4  ;;  %1254 = vmatprep.subr.mxu1 %v6095_v5 }
 0x4b9   :  { %1184 = vmatpush1.msra.mxu0 %v6098_v6  ;;  %1255 = vmatpush1.msra.mxu1 %v6101_v52 }
 0x4ba   :  { %1185 = vmatprep.subr.mxu0 %v6104_v7  ;;  %1256 = vmatprep.subr.mxu1 %v6107_v8 }
 0x4bb   :  { %1186 = vmatpush1.msra.mxu0 %v6110_v10  ;;  %1257 = vmatpush1.msra.mxu1 %v6113_v11 }
 0x4bc   :  { %1187 = vmatprep.subr.mxu0 %v6116_v12  ;;  %1258 = vmatprep.subr.mxu1 %v6119_v13 }
 0x4bd   :  { %1188 = vmatpush1.msra.mxu0 %v6122_v23  ;;  %1259 = vmatpush1.msra.mxu1 %v6125_v14  ;;  %v6143_v14 = vld [vmem:[#allocation9 + $0x78] sm:$0xff]  ;;  %v780_v23 = vpop.f32.mrf.mxu0 }
 0x4be   :  { %1189 = vmatprep.subr.mxu0 %v6128_v15  ;;  %1260 = vmatprep.subr.mxu1 %v6131_v16  ;;  %8494 = vst [vmem:[#allocation28_spill] sm:$0xff] %v6143_v14  ;;  %v6146_v15 = vld [vmem:[#allocation9 + $0x60] sm:$0xff]  ;;  %v6149_v16 = vld [vmem:[#allocation9 + $0x70] sm:$0xff]  ;;  %v781_v11 = vadd.f32 %v780_v23, %v5834_v35 }
 0x4bf   :  { %1190 = vmatpush1.msra.mxu0 %v6134_v17  ;;  %1261 = vmatpush1.msra.mxu1 %v6137_v18  ;;  %8495 = vst [vmem:[#allocation47_spill] sm:$0xff] %v6146_v15  ;;  %8496 = vst [vmem:[#allocation29_spill] sm:$0xff] %v6149_v16  ;;  %v6152_v17 = vld [vmem:[#allocation9 + $0x48] sm:$0xff]  ;;  %v6155_v18 = vld [vmem:[#allocation9 + $0x58] sm:$0xff] }
 0x4c0   :  { %1191 = vmatprep.subr.mxu0 %v6140_v56  ;;  %1262 = vmatprep.subr.mxu1 %v6143_v14  ;;  %8497 = vst [vmem:[#allocation48_spill] sm:$0xff] %v6152_v17  ;;  %8498 = vst [vmem:[#allocation30_spill] sm:$0xff] %v6155_v18  ;;  %v6158_v56 = vld [vmem:[#allocation9 + $0x40] sm:$0xff]  ;;  %v6161_v14 = vld [vmem:[#allocation9 + $0x50] sm:$0xff] }
 0x4c1   :  { %1192 = vmatpush1.msra.mxu0 %v6146_v15  ;;  %1263 = vmatpush1.msra.mxu1 %v6149_v16  ;;  %8499 = vst [vmem:[#allocation49_spill] sm:$0xff] %v6158_v56  ;;  %8500 = vst [vmem:[#allocation50_spill] sm:$0xff] %v6161_v14  ;;  %v6164_v15 = vld [vmem:[#allocation9 + $0x28] sm:$0xff]  ;;  %v6167_v16 = vld [vmem:[#allocation9 + $0x38] sm:$0xff] }
 0x4c2   :  { %1193 = vmatprep.subr.mxu0 %v6152_v17  ;;  %1264 = vmatprep.subr.mxu1 %v6155_v18  ;;  %8501 = vst [vmem:[#allocation32_spill] sm:$0xff] %v6164_v15  ;;  %8502 = vst [vmem:[#allocation33_spill] sm:$0xff] %v6167_v16  ;;  %v6170_v17 = vld [vmem:[#allocation9 + $0x20] sm:$0xff]  ;;  %v6173_v18 = vld [vmem:[#allocation9 + $0x30] sm:$0xff] }
 0x4c3   :  { %1194 = vmatpush1.msra.mxu0 %v6158_v56  ;;  %1265 = vmatpush1.msra.mxu1 %v6161_v14  ;;  %8503 = vst [vmem:[#allocation31_spill] sm:$0xff] %v6170_v17  ;;  %8504 = vst [vmem:[#allocation51_spill] sm:$0xff] %v6173_v18  ;;  %v6176_v56 = vld [vmem:[#allocation9 + $0x8] sm:$0xff]  ;;  %v6179_v14 = vld [vmem:[#allocation9 + $0x18] sm:$0xff] }
 0x4c4   :  { %1195 = vmatprep.subr.mxu0 %v6164_v15  ;;  %1266 = vmatprep.subr.mxu1 %v6167_v16  ;;  %8505 = vst [vmem:[#allocation52_spill] sm:$0xff] %v6176_v56  ;;  %8506 = vst [vmem:[#allocation53_spill] sm:$0xff] %v6179_v14  ;;  %v6182_v15 = vld [vmem:[#allocation9] sm:$0xff]  ;;  %v6186_v16 = vld [vmem:[#allocation9 + $0x10] sm:$0xff] }
 0x4c5   :  { %1196 = vmatpush1.msra.mxu0 %v6170_v17  ;;  %1267 = vmatpush1.msra.mxu1 %v6173_v18  ;;  %8507 = vst [vmem:[#allocation54_spill] sm:$0xff] %v6182_v15  ;;  %8508 = vst [vmem:[#allocation55_spill] sm:$0xff] %v6186_v16  ;;  %v6190_v18 = vld [vmem:[#allocation11 + $0x170] sm:$0xff] }
 0x4c6   :  { %1197 = vmatprep.subr.mxu0 %v6176_v56  ;;  %1268 = vmatprep.subr.mxu1 %v6179_v14  ;;  %8509 = vst [vmem:[#allocation56_spill] sm:$0xff] %v6190_v18  ;;  %v849_v56 = vpop.f32.mrf.mxu1  ;;  %v982_v14 = vld [vmem:[#allocation8 + $0x6] sm:$0x3f] }
 0x4c7   :  { %1198 = vmatpush1.msra.mxu0 %v6182_v15  ;;  %1231 = vmatprep.mubr.f32.mxu0 %v8417_v39  ;;  %v991_v17 = vrot.slane %v982_v14, %v5830_v28  ;;  %v984_v21 = vcombine.high %v982_v14, %v982_v14  ;;  %v6221_v14 = vld [vmem:[#allocation11 + $0x140] sm:$0xff] }
 0x4c8   :  { %1269 = vmatpush1.msra.mxu1 %v6186_v16  ;;  %1302 = vmatprep.mubr.f32.mxu1 %v8417_v39  ;;  %v851_v15 = vpop.f32.mrf.mxu1  ;;  %8512 = vst [vmem:[#allocation59_spill] sm:$0xff] %v6221_v14 }
 0x4c9   :  { %1458 = vmatprep.subr.mxu0 %v6190_v18  ;;  %4140 = vmatprep.subr.mxu1 %v8417_v39  ;;  %v999_v16 = vcombine.high %v991_v17, %v991_v17  ;;  %v850_v18 = vadd.f32 %v849_v56, %v5840_v49  ;;  %v998_v23 = vrot.slane %v984_v21, %v5830_v28  ;;  %v6208_v21 = vld [vmem:[#allocation11 + $0x178] sm:$0xff]  ;;  %v6235_v56 = vld [vmem:[#allocation11 + $0x120] sm:$0xff] }
 0x4ca   :  { %8516 = vst [vmem:[#allocation63_spill] sm:$0xff] %v6235_v56 }
 0x568   :  { %v1069_v13 = vpop.f32.mrf.mxu0  ;;  %v1140_v12 = vpop.f32.mrf.mxu1 }
 0x569   :  { %v1070_v10 = vadd.f32 %v1069_v13, %v991_v17  ;;  %v852_v17 = vadd.f32 %v851_v15, %v5845_v9  ;;  %v6225_v15 = vld [vmem:[#allocation11 + $0x138] sm:$0xff] }
 0x56a   :  { %v1071_v8 = vpop.f32.mrf.mxu0  ;;  %v4139_v7 = vpop.f32.mrf.mxu1  ;;  %8513 = vst [vmem:[#allocation60_spill] sm:$0xff] %v6225_v15 }
 0x56b   :  { %v1144_v52 = vadd.f32 %v1070_v10, %v781_v11  ;;  %v1072_v5 = vadd.f32 %v1071_v8, %v999_v16  ;;  %v1141_v10 = vadd.f32 %v1140_v12, %v998_v23  ;;  %v6211_v11 = vld [vmem:[#allocation11 + $0x158] sm:$0xff]  ;;  %v6218_v12 = vld [vmem:[#allocation11 + $0x160] sm:$0xff]  ;;  %v6228_v16 = vld [vmem:[#allocation11 + $0x148] sm:$0xff] }
 0x56c   :  { %8511 = vst [vmem:[#allocation58_spill] sm:$0xff] %v6218_v12  ;;  %8514 = vst [vmem:[#allocation61_spill] sm:$0xff] %v6228_v16  ;;  %v6238_v23 = vld [vmem:[#allocation11 + $0x130] sm:$0xff] }
 0x56d   :  { %v3920_v6 = vmul.f32 -1.442695, %v1144_v52  ;;  %v1151_v4 = vadd.f32 %v1072_v5, %v850_v18  ;;  %v6231_v18 = vld [vmem:[#allocation11 + $0x128] sm:$0xff]  ;;  %8517 = vst [vmem:[#allocation64_spill] sm:$0xff] %v6238_v23 }
 0x56e   :  { %8515 = vst [vmem:[#allocation62_spill] sm:$0xff] %v6231_v18 }
 0x56f   :  { %4452 = vpow2.f32 %v3920_v6  ;;  %v3921_v3 = vmul.f32 -1.442695, %v1151_v4 }
 0x571   :  { %4454 = vpow2.f32 %v3921_v3 }
 0x57c   :  { %v4453_v2 = vpop.eup %4452 }
 0x57d   :  { %v1148_v26 = vadd.f32 1.0, %v4453_v2 }
 0x57e   :  { %v4455_v24 = vpop.eup %4454 }
 0x57f   :  { %4456 = vrcp.f32 %v1148_v26  ;;  %v1155_v13 = vadd.f32 1.0, %v4455_v24  ;;  %v6205_v24 = vld [vmem:[#allocation11 + $0x168] sm:$0xff] }
 0x581   :  { %4458 = vrcp.f32 %v1155_v13  ;;  %v6241_v13 = vld [vmem:[#allocation11 + $0x110] sm:$0xff] }
 0x582   :  { %8518 = vst [vmem:[#allocation65_spill] sm:$0xff] %v6241_v13 }
 0x58c   :  { %v4457_v7 = vpop.eup %4456 }
 0x58d   :  { %v1158_v52 = vmul.f32 %v4457_v7, %v852_v17  ;;  %v6245_v17 = vld [vmem:[#allocation11 + $0x108] sm:$0xff]  ;;  %v6248_v7 = vld [vmem:[#allocation11 + $0x118] sm:$0xff] }
 0x58e   :  { %v4459_v6 = vpop.eup %4458  ;;  %8519 = vst [vmem:[#allocation66_spill] sm:$0xff] %v6245_v17  ;;  %8520 = vst [vmem:[#allocation67_spill] sm:$0xff] %v6248_v7 }
 0x58f   :  { %v1159_v8 = vadd.f32 %v1158_v52, %v1141_v10  ;;  %v1161_v5 = vsub.f32 1.0, %v4459_v6  ;;  %v1163_v2 = vmul.f32 %v4459_v6, %v5850_v60  ;;  %v6215_v60 = vld [vmem:[#allocation11 + $0x150] sm:$0xff]  ;;  %v6251_v10 = vld [vmem:[#allocation11 + $0xf8] sm:$0xff]  ;;  %v6261_v6 = vld [vmem:[#allocation11 + $0xe0] sm:$0xff] }
 0x590   :  { %8510 = vst [vmem:[#allocation57_spill] sm:$0xff] %v6215_v60  ;;  %8521 = vst [vmem:[#allocation68_spill] sm:$0xff] %v6251_v10  ;;  %v6255_v52 = vld [vmem:[#allocation11 + $0xf0] sm:$0xff] }
 0x591   :  { %4460 = vtanh.f32 %v1159_v8  ;;  %8522 = vst [vmem:[#allocation69_spill] sm:$0xff] %v6255_v52  ;;  %v6258_v8 = vld [vmem:[#allocation11 + $0x100] sm:$0xff]  ;;  %8524 = vst [vmem:[#allocation71_spill] sm:$0xff] %v6261_v6 }
 0x592   :  { %8523 = vst [vmem:[#allocation70_spill] sm:$0xff] %v6258_v8 }
 0x59e   :  { %v4461_v4 = vpop.eup %4460 }
 0x59f   :  { %v1162_v3 = vmul.f32 %v4461_v4, %v1161_v5  ;;  %v6265_v5 = vld [vmem:[#allocation11 + $0xd8] sm:$0xff]  ;;  %v6268_v4 = vld [vmem:[#allocation11 + $0xe8] sm:$0xff] }
 0x5a0   :  { %8525 = vst [vmem:[#allocation72_spill] sm:$0xff] %v6265_v5  ;;  %8526 = vst [vmem:[#allocation73_spill] sm:$0xff] %v6268_v4 }
 0x5a1   :  { %v6200_v26 = vadd.f32 %v1163_v2, %v1162_v3  ;;  %v6271_v3 = vld [vmem:[#allocation11 + $0xc8] sm:$0xff]  ;;  %v6275_v2 = vld [vmem:[#allocation11 + $0xc0] sm:$0xff] }
 0x5a2   :  { %8527 = vst [vmem:[#allocation74_spill] sm:$0xff] %v6271_v3  ;;  %8528 = vst [vmem:[#allocation75_spill] sm:$0xff] %v6275_v2 }
 0x5a3   :  { %1166 = vst [vmem:[#allocation12 + $0x2] sm:$0x3] %v6200_v26  ;;  %1232 = vmatmul.mubr.f32.vlgmr.msra.gmra.mxu0 %v6200_v26  ;;  %1303 = vmatmul.mubr.f32.vlgmr.msra.gmra.mxu1 %v6200_v26 }
 0x5a4   :  { %1459 = vmatpush1.msra.mxu0 %v6205_v24  ;;  %4141 = vmatpush3.msra.mxu1 %v6208_v21 }
 0x5a5   :  { %1460 = vmatprep.subr.mxu0 %v6211_v11  ;;  %4142 = vmatprep.subr.mxu1 %v8417_v39 }
 0x5a6   :  { %1461 = vmatpush1.msra.mxu0 %v6215_v60  ;;  %4143 = vmatpush3.msra.mxu1 %v6218_v12 }
 0x5a7   :  { %1462 = vmatprep.subr.mxu0 %v6221_v14  ;;  %4144 = vmatprep.subr.mxu1 %v8417_v39 }
 0x5a8   :  { %1463 = vmatpush1.msra.mxu0 %v6225_v15  ;;  %4145 = vmatpush3.msra.mxu1 %v6228_v16 }
 0x5a9   :  { %1464 = vmatprep.subr.mxu0 %v6231_v18  ;;  %4146 = vmatprep.subr.mxu1 %v8417_v39 }
 0x5aa   :  { %1465 = vmatpush1.msra.mxu0 %v6235_v56  ;;  %4147 = vmatpush3.msra.mxu1 %v6238_v23 }
 0x5ab   :  { %1466 = vmatprep.subr.mxu0 %v6241_v13  ;;  %4148 = vmatprep.subr.mxu1 %v8417_v39 }
 0x5ac   :  { %1467 = vmatpush1.msra.mxu0 %v6245_v17  ;;  %4149 = vmatpush3.msra.mxu1 %v6248_v7 }
 0x5ad   :  { %1468 = vmatprep.subr.mxu0 %v6251_v10  ;;  %4150 = vmatprep.subr.mxu1 %v8417_v39 }
 0x5ae   :  { %1469 = vmatpush1.msra.mxu0 %v6255_v52  ;;  %4151 = vmatpush3.msra.mxu1 %v6258_v8  ;;  %v6281_v8 = vld [vmem:[#allocation11 + $0xb0] sm:$0xff] }
 0x5af   :  { %1470 = vmatprep.subr.mxu0 %v6261_v6  ;;  %4152 = vmatprep.subr.mxu1 %v8417_v39  ;;  %v6278_v6 = vld [vmem:[#allocation11 + $0xd0] sm:$0xff]  ;;  %8530 = vst [vmem:[#allocation77_spill] sm:$0xff] %v6281_v8 }
 0x5b0   :  { %1471 = vmatpush1.msra.mxu0 %v6265_v5  ;;  %4153 = vmatpush3.msra.mxu1 %v6268_v4  ;;  %8529 = vst [vmem:[#allocation76_spill] sm:$0xff] %v6278_v6  ;;  %v6285_v4 = vld [vmem:[#allocation11 + $0xa8] sm:$0xff]  ;;  %v6291_v5 = vld [vmem:[#allocation11 + $0x98] sm:$0xff] }
 0x5b1   :  { %1472 = vmatprep.subr.mxu0 %v6271_v3  ;;  %4154 = vmatprep.subr.mxu1 %v8417_v39  ;;  %8531 = vst [vmem:[#allocation78_spill] sm:$0xff] %v6285_v4  ;;  %v6288_v3 = vld [vmem:[#allocation11 + $0xb8] sm:$0xff]  ;;  %8533 = vst [vmem:[#allocation80_spill] sm:$0xff] %v6291_v5 }
 0x5b2   :  { %1473 = vmatpush1.msra.mxu0 %v6275_v2  ;;  %4155 = vmatpush3.msra.mxu1 %v6278_v6  ;;  %8532 = vst [vmem:[#allocation79_spill] sm:$0xff] %v6288_v3  ;;  %v6295_v6 = vld [vmem:[#allocation11 + $0x90] sm:$0xff]  ;;  %v6301_v2 = vld [vmem:[#allocation11 + $0x80] sm:$0xff] }
 0x5b3   :  { %1474 = vmatprep.subr.mxu0 %v6281_v8  ;;  %4156 = vmatprep.subr.mxu1 %v8417_v39  ;;  %8534 = vst [vmem:[#allocation81_spill] sm:$0xff] %v6295_v6  ;;  %v6298_v8 = vld [vmem:[#allocation11 + $0xa0] sm:$0xff]  ;;  %8536 = vst [vmem:[#allocation83_spill] sm:$0xff] %v6301_v2 }
 0x5b4   :  { %1475 = vmatpush1.msra.mxu0 %v6285_v4  ;;  %4157 = vmatpush3.msra.mxu1 %v6288_v3  ;;  %8535 = vst [vmem:[#allocation82_spill] sm:$0xff] %v6298_v8  ;;  %v6305_v3 = vld [vmem:[#allocation11 + $0x78] sm:$0xff]  ;;  %v6311_v4 = vld [vmem:[#allocation11 + $0x68] sm:$0xff] }
 0x5b5   :  { %1476 = vmatprep.subr.mxu0 %v6291_v5  ;;  %4158 = vmatprep.subr.mxu1 %v8417_v39  ;;  %8537 = vst [vmem:[#allocation84_spill] sm:$0xff] %v6305_v3  ;;  %v6308_v5 = vld [vmem:[#allocation11 + $0x88] sm:$0xff]  ;;  %8539 = vst [vmem:[#allocation86_spill] sm:$0xff] %v6311_v4 }
 0x5b6   :  { %1477 = vmatpush1.msra.mxu0 %v6295_v6  ;;  %4159 = vmatpush3.msra.mxu1 %v6298_v8  ;;  %8538 = vst [vmem:[#allocation85_spill] sm:$0xff] %v6308_v5  ;;  %v6315_v8 = vld [vmem:[#allocation11 + $0x60] sm:$0xff]  ;;  %v6321_v6 = vld [vmem:[#allocation11 + $0x50] sm:$0xff] }
 0x5b7   :  { %1478 = vmatprep.subr.mxu0 %v6301_v2  ;;  %4160 = vmatprep.subr.mxu1 %v8417_v39  ;;  %8540 = vst [vmem:[#allocation87_spill] sm:$0xff] %v6315_v8  ;;  %v6318_v2 = vld [vmem:[#allocation11 + $0x70] sm:$0xff]  ;;  %8542 = vst [vmem:[#allocation89_spill] sm:$0xff] %v6321_v6 }
 0x5b8   :  { %1479 = vmatpush1.msra.mxu0 %v6305_v3  ;;  %4161 = vmatpush3.msra.mxu1 %v6308_v5  ;;  %8541 = vst [vmem:[#allocation88_spill] sm:$0xff] %v6318_v2  ;;  %v6325_v5 = vld [vmem:[#allocation11 + $0x48] sm:$0xff]  ;;  %v6331_v3 = vld [vmem:[#allocation11 + $0x38] sm:$0xff] }
 0x5b9   :  { %1480 = vmatprep.subr.mxu0 %v6311_v4  ;;  %4162 = vmatprep.subr.mxu1 %v8417_v39  ;;  %8543 = vst [vmem:[#allocation90_spill] sm:$0xff] %v6325_v5  ;;  %v6328_v4 = vld [vmem:[#allocation11 + $0x58] sm:$0xff]  ;;  %8545 = vst [vmem:[#allocation92_spill] sm:$0xff] %v6331_v3 }
 0x5ba   :  { %1481 = vmatpush1.msra.mxu0 %v6315_v8  ;;  %4163 = vmatpush3.msra.mxu1 %v6318_v2  ;;  %8544 = vst [vmem:[#allocation91_spill] sm:$0xff] %v6328_v4  ;;  %v6335_v2 = vld [vmem:[#allocation11 + $0x30] sm:$0xff]  ;;  %v6341_v8 = vld [vmem:[#allocation11 + $0x20] sm:$0xff] }
 0x5bb   :  { %1482 = vmatprep.subr.mxu0 %v6321_v6  ;;  %4164 = vmatprep.subr.mxu1 %v8417_v39  ;;  %8546 = vst [vmem:[#allocation93_spill] sm:$0xff] %v6335_v2  ;;  %v6338_v6 = vld [vmem:[#allocation11 + $0x40] sm:$0xff]  ;;  %8548 = vst [vmem:[#allocation95_spill] sm:$0xff] %v6341_v8 }
 0x5bc   :  { %1483 = vmatpush1.msra.mxu0 %v6325_v5  ;;  %4165 = vmatpush3.msra.mxu1 %v6328_v4  ;;  %8547 = vst [vmem:[#allocation94_spill] sm:$0xff] %v6338_v6  ;;  %v6345_v4 = vld [vmem:[#allocation11 + $0x18] sm:$0xff]  ;;  %v6351_v5 = vld [vmem:[#allocation11 + $0x8] sm:$0xff] }
 0x5bd   :  { %1484 = vmatprep.subr.mxu0 %v6331_v3  ;;  %4166 = vmatprep.subr.mxu1 %v8417_v39  ;;  %8549 = vst [vmem:[#allocation96_spill] sm:$0xff] %v6345_v4  ;;  %v6348_v3 = vld [vmem:[#allocation11 + $0x28] sm:$0xff]  ;;  %8551 = vst [vmem:[#allocation35_spill] sm:$0xff] %v6351_v5 }
 0x5be   :  { %1485 = vmatpush1.msra.mxu0 %v6335_v2  ;;  %4167 = vmatpush3.msra.mxu1 %v6338_v6  ;;  %8550 = vst [vmem:[#allocation97_spill] sm:$0xff] %v6348_v3  ;;  %v6355_v6 = vld [vmem:[#allocation11] sm:$0xff] }
 0x5bf   :  { %1486 = vmatprep.subr.mxu0 %v6341_v8  ;;  %4168 = vmatprep.subr.mxu1 %v8417_v39  ;;  %8552 = vst [vmem:[#allocation98_spill] sm:$0xff] %v6355_v6  ;;  %v6359_v8 = vld [vmem:[#allocation11 + $0x10] sm:$0xff] }
 0x5c0   :  { %1487 = vmatpush1.msra.mxu0 %v6345_v4  ;;  %4169 = vmatpush3.msra.mxu1 %v6348_v3  ;;  %8553 = vst [vmem:[#allocation99_spill] sm:$0xff] %v6359_v8  ;;  %v6365_v3 = vld [vmem:[#allocation9 + $0x1f8] sm:$0xff] }
 0x5c1   :  { %1488 = vmatprep.subr.mxu0 %v6351_v5  ;;  %4170 = vmatprep.subr.mxu1 %v8417_v39  ;;  %8554 = vst [vmem:[#allocation100_spill] sm:$0xff] %v6365_v3 }
 0x5c2   :  { %1489 = vmatpush1.msra.mxu0 %v6355_v6  ;;  %1522 = vmatprep.mubr.f32.mxu0 %v8417_v39 }
 0x5c3   :  { %4171 = vmatpush3.msra.mxu1 %v6359_v8  ;;  %4172 = vmatprep.mubr.msk.f32.mxu1 %vm5263_vm1, %v8417_v39 }
 0x5c4   :  { %1622 = vmatprep.subr.mxu0 %v5920_v58  ;;  %1693 = vmatprep.subr.mxu1 %v6365_v3 }
 0x663   :  { %v1233_v5 = vpop.f32.mrf.mxu0 }
 0x664   :  { %v1234_v4 = vadd.f32 %v1233_v5, %v8471_v61 }
 0x666   :  { %v1310_v6 = vadd.f32 %v5925_v63, %v1234_v4  ;;  %v1309_v2 = vadd.f32 %v5928_v36, %v1234_v4  ;;  %v1312_v52 = vadd.f32 %v5931_v41, %v1234_v4  ;;  %v1311_v8 = vadd.f32 %v5934_v43, %v1234_v4 }
 0x667   :  { %v1314_v10 = vadd.f32 %v5937_v45, %v1234_v4  ;;  %v1313_v58 = vadd.f32 %v5940_v20, %v1234_v4  ;;  %v1316_v3 = vadd.f32 %v5943_v33, %v1234_v4  ;;  %v1315_v63 = vadd.f32 %v5946_v38, %v1234_v4 }
 0x668   :  { %4462 = vtanh.f32 %v1310_v6 }
 0x669   :  { %4464 = vtanh.f32 %v1309_v2 }
 0x66a   :  { %4466 = vtanh.f32 %v1312_v52 }
 0x66b   :  { %4468 = vtanh.f32 %v1311_v8 }
 0x66c   :  { %4470 = vtanh.f32 %v1314_v10 }
 0x66d   :  { %4472 = vtanh.f32 %v1313_v58 }
 0x66e   :  { %4474 = vtanh.f32 %v1316_v3 }
 0x66f   :  { %4476 = vtanh.f32 %v1315_v63 }
 0x675   :  { %v4463_v36 = vpop.eup %4462 }
 0x676   :  { %v4465_v41 = vpop.eup %4464  ;;  %v1326_v43 = vmul.f32 %v5952_v53, %v4463_v36 }
 0x677   :  { %v4467_v6 = vpop.eup %4466  ;;  %v1325_v45 = vmul.f32 %v5952_v53, %v4465_v41 }
 0x678   :  { %v4469_v5 = vpop.eup %4468  ;;  %v1336_v20 = vsel %vm424_vm0, %v1326_v43, 0.0  ;;  %v1328_v52 = vmul.f32 %v5952_v53, %v4467_v6 }
 0x679   :  { %v4471_v10 = vpop.eup %4470  ;;  %1337 = vadd.xlane.f32.xlu1 %v1336_v20  ;;  %v1333_v33 = vsel %vm424_vm0, %v1325_v45, 0.0  ;;  %v1327_v38 = vmul.f32 %v5952_v53, %v4469_v5 }
 0x67a   :  { %v4473_v8 = vpop.eup %4472  ;;  %1334 = vadd.xlane.f32.xlu0 %v1333_v33  ;;  %v1342_v4 = vsel %vm424_vm0, %v1328_v52, 0.0  ;;  %v1330_v3 = vmul.f32 %v5952_v53, %v4471_v10 }
 0x67b   :  { %v4475_v2 = vpop.eup %4474  ;;  %v1339_v58 = vsel %vm424_vm0, %v1327_v38, 0.0  ;;  %v1329_v63 = vmul.f32 %v5952_v53, %v4473_v8 }
 0x67c   :  { %v4477_v36 = vpop.eup %4476  ;;  %v1348_v41 = vsel %vm424_vm0, %v1330_v3, 0.0  ;;  %v1332_v43 = vmul.f32 %v5952_v53, %v4475_v2 }
 0x67d   :  { %1343 = vadd.xlane.f32.xlu1 %v1342_v4  ;;  %v1345_v6 = vsel %vm424_vm0, %v1329_v63, 0.0  ;;  %v1331_v45 = vmul.f32 %v5952_v53, %v4477_v36 }
 0x67e   :  { %1340 = vadd.xlane.f32.xlu0 %v1339_v58  ;;  %v1354_v5 = vsel %vm424_vm0, %v1332_v43, 0.0 }
 0x67f   :  { %v1351_v20 = vsel %vm424_vm0, %v1331_v45, 0.0 }
 0x681   :  { %1349 = vadd.xlane.f32.xlu1 %v1348_v41 }
 0x682   :  { %1346 = vadd.xlane.f32.xlu0 %v1345_v6 }
 0x685   :  { %1355 = vadd.xlane.f32.xlu1 %v1354_v5 }
 0x686   :  { %1352 = vadd.xlane.f32.xlu0 %v1351_v20 }
 0x702   :  { %v1338_v52 = vpop.xlane.xlu1 %1337 }
 0x703   :  { %v1335_v10 = vpop.xlane.xlu0 %1334  ;;  %v1358_v58 = vsel %vm424_vm0, %v1338_v52, -inf }
 0x704   :  { %v1357_v53 = vsel %vm424_vm0, %v1335_v10, -inf }
 0x706   :  { %v1344_v33 = vpop.xlane.xlu1 %1343 }
 0x707   :  { %v1341_v38 = vpop.xlane.xlu0 %1340  ;;  %v1360_v36 = vsel %vm424_vm0, %v1344_v33, -inf }
 0x708   :  { %v1359_v5 = vsel %vm424_vm0, %v1341_v38, -inf }
 0x70a   :  { %v1350_v8 = vpop.xlane.xlu1 %1349 }
 0x70b   :  { %v1347_v4 = vpop.xlane.xlu0 %1346  ;;  %v1363_v3 = vsel %vm424_vm0, %v1350_v8, -inf }
 0x70c   :  { %v1361_v2 = vsel %vm424_vm0, %v1347_v4, -inf  ;;  %v1364_v41 = vmax.f32 %v1358_v58, %v1363_v3 }
 0x70d   :  { %v1362_v43 = vmax.f32 %v1357_v53, %v1361_v2 }
 0x70e   :  { %v1356_v63 = vpop.xlane.xlu1 %1355 }
 0x70f   :  { %v1367_v6 = vsel %vm424_vm0, %v1356_v63, -inf  ;;  %v1353_v45 = vpop.xlane.xlu0 %1352  ;;  %v1369_v17 = vmax.f32 %v1362_v43, %v1364_v41 }
 0x710   :  { %v1368_v20 = vmax.f32 %v1360_v36, %v1367_v6  ;;  %v1365_v61 = vsel %vm424_vm0, %v1353_v45, -inf }
 0x711   :  { %v1366_v7 = vmax.f32 %v1359_v5, %v1365_v61 }
 0x713   :  { %v1370_v13 = vmax.f32 %v1366_v7, %v1368_v20 }
 0x715   :  { %v1371_v23 = vmax.f32 %v1369_v17, %v1370_v13 }
 0x717   :  { %v1372_v56 = vsub.f32 %v1335_v10, %v1371_v23  ;;  %v1373_v18 = vsub.f32 %v1338_v52, %v1371_v23  ;;  %v1374_v16 = vsub.f32 %v1341_v38, %v1371_v23  ;;  %v1375_v15 = vsub.f32 %v1344_v33, %v1371_v23 }
 0x718   :  { %v1376_v14 = vsub.f32 %v1347_v4, %v1371_v23  ;;  %v1377_v58 = vsub.f32 %v1350_v8, %v1371_v23  ;;  %v1378_v60 = vsub.f32 %v1353_v45, %v1371_v23  ;;  %v1379_v6 = vsub.f32 %v1356_v63, %v1371_v23  ;;  %v6406_v23 = vld [vmem:[#allocation3 + $0x2] sm:$0x3]  ;;  %v6411_v8 = vld [vmem:[#allocation3 + $0x4] sm:$0x3] }
 0x719   :  { %v1380_v12 = vmul.f32 1.442695, %v1372_v56  ;;  %v1382_v3 = vmul.f32 1.442695, %v1373_v18  ;;  %v1384_v2 = vmul.f32 1.442695, %v1374_v16 }
 0x71a   :  { %v1386_v53 = vmul.f32 1.442695, %v1375_v15  ;;  %v1388_v36 = vmul.f32 1.442695, %v1376_v14  ;;  %v1390_v61 = vmul.f32 1.442695, %v1377_v58 }
 0x71b   :  { %4478 = vpow2.f32 %v1380_v12  ;;  %v1392_v13 = vmul.f32 1.442695, %v1378_v60  ;;  %v1394_v17 = vmul.f32 1.442695, %v1379_v6  ;;  %v6402_v18 = vld [vmem:[#allocation3] sm:$0x3] }
 0x71c   :  { %4480 = vpow2.f32 %v1382_v3  ;;  %v6417_v58 = vld [vmem:[#allocation3 + $0x6] sm:$0x3] }
 0x71d   :  { %4482 = vpow2.f32 %v1384_v2 }
 0x71e   :  { %4484 = vpow2.f32 %v1386_v53 }
 0x71f   :  { %4486 = vpow2.f32 %v1388_v36 }
 0x720   :  { %4488 = vpow2.f32 %v1390_v61 }
 0x721   :  { %4490 = vpow2.f32 %v1392_v13 }
 0x722   :  { %4492 = vpow2.f32 %v1394_v17 }
 0x728   :  { %v4479_v7 = vpop.eup %4478 }
 0x729   :  { %v4481_v56 = vpop.eup %4480  ;;  %v1396_v16 = vsel %vm424_vm0, %v4479_v7, 0.0  ;;  %v1412_v12 = vmul.f32 %v6402_v18, %v4479_v7 }
 0x72a   :  { %v4483_v15 = vpop.eup %4482  ;;  %v1397_v14 = vsel %vm424_vm0, %v4481_v56, 0.0  ;;  %v1413_v52 = vmul.f32 %v6406_v23, %v4481_v56 }
 0x72b   :  { %v4485_v60 = vpop.eup %4484  ;;  %v1398_v10 = vadd.f32 %v1397_v14, %v1396_v16  ;;  %v1420_v33 = vsel %vm424_vm0, %v1412_v12, 0.0  ;;  %v1399_v38 = vsel %vm424_vm0, %v4483_v15, 0.0  ;;  %v1414_v4 = vmul.f32 %v6411_v8, %v4483_v15  ;;  %v6423_v12 = vld [vmem:[#allocation3 + $0x8] sm:$0x3] }
 0x72c   :  { %v1421_v63 = vsel %vm424_vm0, %v1413_v52, 0.0  ;;  %v4487_v41 = vpop.eup %4486  ;;  %v1401_v5 = vsel %vm424_vm0, %v4485_v60, 0.0  ;;  %v1415_v53 = vmul.f32 %v6417_v58, %v4485_v60 }
 0x72d   :  { %v1400_v43 = vadd.f32 %v1399_v38, %v1398_v10  ;;  %v1422_v45 = vadd.f32 %v1421_v63, %v1420_v33  ;;  %v4489_v20 = vpop.eup %4488  ;;  %v1403_v2 = vsel %vm424_vm0, %v4487_v41, 0.0  ;;  %v1423_v36 = vsel %vm424_vm0, %v1414_v4, 0.0  ;;  %v6428_v38 = vld [vmem:[#allocation3 + $0xa] sm:$0x3] }
 0x72e   :  { %v4491_v6 = vpop.eup %4490  ;;  %v1405_v17 = vsel %vm424_vm0, %v4489_v20, 0.0  ;;  %v1416_v15 = vmul.f32 %v6423_v12, %v4487_v41  ;;  %v1425_v14 = vsel %vm424_vm0, %v1415_v53, 0.0  ;;  %v1417_v4 = vmul.f32 %v6428_v38, %v4489_v20 }
 0x72f   :  { %v1402_v3 = vadd.f32 %v1401_v5, %v1400_v43  ;;  %v1424_v13 = vadd.f32 %v1423_v36, %v1422_v45  ;;  %v4493_v7 = vpop.eup %4492  ;;  %v1407_v16 = vsel %vm424_vm0, %v4491_v6, 0.0  ;;  %v6432_v45 = vld [vmem:[#allocation3 + $0xc] sm:$0x3] }
 0x730   :  { %v1409_v60 = vsel %vm424_vm0, %v4493_v7, 0.0  ;;  %v1427_v63 = vsel %vm424_vm0, %v1416_v15, 0.0  ;;  %v1418_v5 = vmul.f32 %v6432_v45, %v4491_v6  ;;  %v1429_v41 = vsel %vm424_vm0, %v1417_v4, 0.0  ;;  %v8580_v6 = vld [vmem:[#allocation48_spill] sm:$0xff]  ;;  %v8583_v15 = vld [vmem:[#allocation50_spill] sm:$0xff]  ;;  %v8589_v4 = vld [vmem:[#allocation53_spill] sm:$0xff] }
 0x731   :  { %v1404_v61 = vadd.f32 %v1403_v2, %v1402_v3  ;;  %v1426_v10 = vadd.f32 %v1425_v14, %v1424_v13  ;;  %v6436_v2 = vld [vmem:[#allocation3 + $0xe] sm:$0x3]  ;;  %v8584_v14 = vld [vmem:[#allocation32_spill] sm:$0xff] }
 0x732   :  { %v1419_v53 = vmul.f32 %v6436_v2, %v4493_v7  ;;  %v1431_v36 = vsel %vm424_vm0, %v1418_v5, 0.0  ;;  %v8581_v7 = vld [vmem:[#allocation30_spill] sm:$0xff]  ;;  %v8592_v5 = vld [vmem:[#allocation56_spill] sm:$0xff] }
 0x733   :  { %v1406_v56 = vadd.f32 %v1405_v17, %v1404_v61  ;;  %v1428_v43 = vadd.f32 %v1427_v63, %v1426_v10  ;;  %v8586_v10 = vld [vmem:[#allocation31_spill] sm:$0xff]  ;;  %v8590_v63 = vld [vmem:[#allocation54_spill] sm:$0xff] }
 0x734   :  { %v1433_v20 = vsel %vm424_vm0, %v1419_v53, 0.0 }
 0x735   :  { %v1408_v52 = vadd.f32 %v1407_v16, %v1406_v56  ;;  %v1430_v3 = vadd.f32 %v1429_v41, %v1428_v43  ;;  %v8582_v16 = vld [vmem:[#allocation49_spill] sm:$0xff]  ;;  %v8591_v43 = vld [vmem:[#allocation55_spill] sm:$0xff]  ;;  %v1304_v41 = vpop.f32.mrf.mxu1 }
 0x737   :  { %v1410_v33 = vadd.f32 %v1409_v60, %v1408_v52  ;;  %v1432_v61 = vadd.f32 %v1431_v36, %v1430_v3  ;;  %v8585_v52 = vld [vmem:[#allocation33_spill] sm:$0xff]  ;;  %v8587_v60 = vld [vmem:[#allocation51_spill] sm:$0xff]  ;;  %v1235_v36 = vpop.f32.mrf.mxu0 }
 0x738   :  { %v1437_v3 = vld [vmem:[#allocation8 + $0xc] sm:$0x3f] }
 0x739   :  { %4494 = vrcp.f32 %v1410_v33  ;;  %v1434_v13 = vadd.f32 %v1433_v20, %v1432_v61  ;;  %v8588_v33 = vld [vmem:[#allocation52_spill] sm:$0xff]  ;;  %v1446_v53 = vrot.slane %v1437_v3, %v5830_v28  ;;  %v1306_v61 = vpop.f32.mrf.mxu1 }
 0x746   :  { %v4495_v17 = vpop.eup %4494 }
 0x747   :  { %v1435_v56 = vmul.f32 %v4495_v17, %v1434_v13  ;;  %v1236_v17 = vadd.f32 %v1235_v36, %v5834_v35  ;;  %v8612_v36 = vld [vmem:[#allocation76_spill] sm:$0xff] }
 0x749   :  { %1523 = vmatmul.mubr.f32.vlgmr.msra.gmra.mxu0 %v1435_v56  ;;  %4173 = vmatmul.mubr.f32.vlgmr.msra.gmra.mxu1 %v1435_v56 }
 0x74a   :  { %1623 = vmatpush1.msra.mxu0 %v6002_v37  ;;  %1694 = vmatpush1.msra.mxu1 %v6005_v50  ;;  %v8555_v37 = vld [vmem:[#allocation17_spill] sm:$0xff]  ;;  %v8556_v50 = vld [vmem:[#allocation36_spill] sm:$0xff] }
 0x74b   :  { %1624 = vmatprep.subr.mxu0 %v6008_v59  ;;  %1695 = vmatprep.subr.mxu1 %v6011_v29  ;;  %v8557_v59 = vld [vmem:[#allocation18_spill] sm:$0xff]  ;;  %v8558_v29 = vld [vmem:[#allocation37_spill] sm:$0xff] }
 0x74c   :  { %1625 = vmatpush1.msra.mxu0 %v6014_v57  ;;  %1696 = vmatpush1.msra.mxu1 %v6017_v62  ;;  %v8559_v57 = vld [vmem:[#allocation19_spill] sm:$0xff]  ;;  %v8560_v62 = vld [vmem:[#allocation38_spill] sm:$0xff] }
 0x74d   :  { %1626 = vmatprep.subr.mxu0 %v6020_v34  ;;  %1697 = vmatprep.subr.mxu1 %v6023_v40  ;;  %v8561_v34 = vld [vmem:[#allocation20_spill] sm:$0xff]  ;;  %v8562_v40 = vld [vmem:[#allocation39_spill] sm:$0xff] }
 0x74e   :  { %1627 = vmatpush1.msra.mxu0 %v6026_v42  ;;  %1698 = vmatpush1.msra.mxu1 %v6029_v44  ;;  %v8563_v42 = vld [vmem:[#allocation21_spill] sm:$0xff]  ;;  %v8564_v44 = vld [vmem:[#allocation40_spill] sm:$0xff] }
 0x74f   :  { %1628 = vmatprep.subr.mxu0 %v6032_v55  ;;  %1699 = vmatprep.subr.mxu1 %v6035_v27  ;;  %v8565_v55 = vld [vmem:[#allocation22_spill] sm:$0xff]  ;;  %v8566_v27 = vld [vmem:[#allocation41_spill] sm:$0xff] }
 0x750   :  { %1629 = vmatpush1.msra.mxu0 %v6038_v19  ;;  %1700 = vmatpush1.msra.mxu1 %v6041_v46  ;;  %v8567_v19 = vld [vmem:[#allocation23_spill] sm:$0xff]  ;;  %v8568_v46 = vld [vmem:[#allocation42_spill] sm:$0xff] }
 0x751   :  { %1630 = vmatprep.subr.mxu0 %v6044_v47  ;;  %1701 = vmatprep.subr.mxu1 %v6047_v25  ;;  %v8569_v47 = vld [vmem:[#allocation24_spill] sm:$0xff]  ;;  %v8570_v25 = vld [vmem:[#allocation43_spill] sm:$0xff] }
 0x752   :  { %1631 = vmatpush1.msra.mxu0 %v6050_v48  ;;  %1702 = vmatpush1.msra.mxu1 %v6053_v1  ;;  %v8571_v48 = vld [vmem:[#allocation25_spill] sm:$0xff]  ;;  %v8572_v1 = vld [vmem:[#allocation44_spill] sm:$0xff] }
 0x753   :  { %1632 = vmatprep.subr.mxu0 %v6056_v31  ;;  %1703 = vmatprep.subr.mxu1 %v6059_v22  ;;  %v8573_v31 = vld [vmem:[#allocation26_spill] sm:$0xff]  ;;  %v8574_v22 = vld [vmem:[#allocation45_spill] sm:$0xff] }
 0x754   :  { %1633 = vmatpush1.msra.mxu0 %v6062_v54  ;;  %1704 = vmatpush1.msra.mxu1 %v6065_v30  ;;  %v8575_v54 = vld [vmem:[#allocation27_spill] sm:$0xff]  ;;  %v8576_v30 = vld [vmem:[#allocation46_spill] sm:$0xff] }
 0x755   :  { %1634 = vmatprep.subr.mxu0 %v6068_v51  ;;  %1705 = vmatprep.subr.mxu1 %v6071_v0  ;;  %v8577_v51 = vld [vmem:[#allocation28_spill] sm:$0xff]  ;;  %v8578_v0 = vld [vmem:[#allocation47_spill] sm:$0xff] }
 0x756   :  { %1635 = vmatpush1.msra.mxu0 %v6074_v32  ;;  %1706 = vmatpush1.msra.mxu1 %v8555_v37  ;;  %v8579_v32 = vld [vmem:[#allocation29_spill] sm:$0xff]  ;;  %v1454_v37 = vcombine.high %v1446_v53, %v1446_v53 }
 0x757   :  { %1636 = vmatprep.subr.mxu0 %v8556_v50  ;;  %1707 = vmatprep.subr.mxu1 %v8557_v59 }
 0x758   :  { %1637 = vmatpush1.msra.mxu0 %v8558_v29  ;;  %1708 = vmatpush1.msra.mxu1 %v8559_v57 }
 0x759   :  { %1638 = vmatprep.subr.mxu0 %v8560_v62  ;;  %1709 = vmatprep.subr.mxu1 %v8561_v34  ;;  %v1305_v34 = vadd.f32 %v1304_v41, %v5840_v49  ;;  %v8609_v41 = vld [vmem:[#allocation73_spill] sm:$0xff] }
 0x75a   :  { %1639 = vmatpush1.msra.mxu0 %v8562_v40  ;;  %1710 = vmatpush1.msra.mxu1 %v8563_v42 }
 0x75b   :  { %1640 = vmatprep.subr.mxu0 %v8564_v44  ;;  %1711 = vmatprep.subr.mxu1 %v8565_v55 }
 0x75c   :  { %1641 = vmatpush1.msra.mxu0 %v8566_v27  ;;  %1712 = vmatpush1.msra.mxu1 %v8567_v19  ;;  %v1439_v27 = vcombine.high %v1437_v3, %v1437_v3  ;;  %v8610_v3 = vld [vmem:[#allocation74_spill] sm:$0xff] }
 0x75d   :  { %1642 = vmatprep.subr.mxu0 %v8568_v46  ;;  %1713 = vmatprep.subr.mxu1 %v8569_v47 }
 0x75e   :  { %1643 = vmatpush1.msra.mxu0 %v8570_v25  ;;  %1714 = vmatpush1.msra.mxu1 %v8571_v48  ;;  %v1453_v46 = vrot.slane %v1439_v27, %v5830_v28  ;;  %v1307_v25 = vadd.f32 %v1306_v61, %v5845_v9  ;;  %v8613_v61 = vld [vmem:[#allocation77_spill] sm:$0xff] }
 0x75f   :  { %1644 = vmatprep.subr.mxu0 %v8572_v1  ;;  %1715 = vmatprep.subr.mxu1 %v8573_v31  ;;  %v8629_v27 = vld [vmem:[#allocation93_spill] sm:$0xff] }
 0x760   :  { %1645 = vmatpush1.msra.mxu0 %v8574_v22  ;;  %1716 = vmatpush1.msra.mxu1 %v8575_v54 }
 0x761   :  { %1646 = vmatprep.subr.mxu0 %v8576_v30  ;;  %1717 = vmatprep.subr.mxu1 %v8577_v51 }
 0x762   :  { %1647 = vmatpush1.msra.mxu0 %v8578_v0  ;;  %1718 = vmatpush1.msra.mxu1 %v8579_v32 }
 0x763   :  { %1648 = vmatprep.subr.mxu0 %v8580_v6  ;;  %1719 = vmatprep.subr.mxu1 %v8581_v7  ;;  %v8593_v7 = vld [vmem:[#allocation57_spill] sm:$0xff] }
 0x764   :  { %1649 = vmatpush1.msra.mxu0 %v8582_v16  ;;  %1720 = vmatpush1.msra.mxu1 %v8583_v15  ;;  %v8594_v16 = vld [vmem:[#allocation58_spill] sm:$0xff]  ;;  %v8596_v15 = vld [vmem:[#allocation60_spill] sm:$0xff] }
 0x765   :  { %1650 = vmatprep.subr.mxu0 %v8584_v14  ;;  %1721 = vmatprep.subr.mxu1 %v8585_v52  ;;  %v8597_v14 = vld [vmem:[#allocation61_spill] sm:$0xff]  ;;  %v8598_v52 = vld [vmem:[#allocation62_spill] sm:$0xff] }
 0x766   :  { %1651 = vmatpush1.msra.mxu0 %v8586_v10  ;;  %1722 = vmatpush1.msra.mxu1 %v8587_v60  ;;  %v8602_v10 = vld [vmem:[#allocation66_spill] sm:$0xff]  ;;  %v8603_v60 = vld [vmem:[#allocation67_spill] sm:$0xff] }
 0x767   :  { %1652 = vmatprep.subr.mxu0 %v8588_v33  ;;  %1723 = vmatprep.subr.mxu1 %v8589_v4  ;;  %v8604_v33 = vld [vmem:[#allocation68_spill] sm:$0xff]  ;;  %v8605_v4 = vld [vmem:[#allocation69_spill] sm:$0xff] }
 0x768   :  { %1653 = vmatpush1.msra.mxu0 %v8590_v63  ;;  %1686 = vmatprep.mubr.f32.mxu0 %v8417_v39  ;;  %v8606_v63 = vld [vmem:[#allocation70_spill] sm:$0xff] }
 0x769   :  { %1724 = vmatpush1.msra.mxu1 %v8591_v43  ;;  %1757 = vmatprep.mubr.f32.mxu1 %v8417_v39  ;;  %v8607_v43 = vld [vmem:[#allocation71_spill] sm:$0xff] }
 0x76a   :  { %1913 = vmatprep.subr.mxu0 %v8592_v5  ;;  %4175 = vmatprep.subr.mxu1 %v8417_v39  ;;  %v8608_v5 = vld [vmem:[#allocation72_spill] sm:$0xff] }
 0x809   :  { %v1524_v20 = vpop.f32.mrf.mxu0  ;;  %v1595_v13 = vpop.f32.mrf.mxu1 }
 0x80a   :  { %v1525_v56 = vadd.f32 %v1524_v20, %v1446_v53  ;;  %v1596_v1 = vadd.f32 %v1595_v13, %v1453_v46  ;;  %v8611_v53 = vld [vmem:[#allocation75_spill] sm:$0xff]  ;;  %v8614_v20 = vld [vmem:[#allocation78_spill] sm:$0xff] }
 0x80b   :  { %v1526_v50 = vpop.f32.mrf.mxu0  ;;  %v4174_v59 = vpop.f32.mrf.mxu1  ;;  %v8615_v13 = vld [vmem:[#allocation79_spill] sm:$0xff] }
 0x80c   :  { %v1599_v29 = vadd.f32 %v1525_v56, %v1236_v17  ;;  %v1527_v62 = vadd.f32 %v1526_v50, %v1454_v37  ;;  %v8616_v17 = vld [vmem:[#allocation80_spill] sm:$0xff]  ;;  %v8617_v56 = vld [vmem:[#allocation81_spill] sm:$0xff]  ;;  %v8618_v37 = vld [vmem:[#allocation82_spill] sm:$0xff] }
 0x80d   :  { %v8619_v50 = vld [vmem:[#allocation83_spill] sm:$0xff]  ;;  %v8620_v59 = vld [vmem:[#allocation84_spill] sm:$0xff] }
 0x80e   :  { %v3922_v57 = vmul.f32 -1.442695, %v1599_v29  ;;  %v1606_v40 = vadd.f32 %v1527_v62, %v1305_v34  ;;  %v8621_v29 = vld [vmem:[#allocation85_spill] sm:$0xff]  ;;  %v8623_v62 = vld [vmem:[#allocation87_spill] sm:$0xff]  ;;  %v8624_v34 = vld [vmem:[#allocation88_spill] sm:$0xff] }
 0x80f   :  { %v8631_v46 = vld [vmem:[#allocation95_spill] sm:$0xff] }
 0x810   :  { %4496 = vpow2.f32 %v3922_v57  ;;  %v3923_v42 = vmul.f32 -1.442695, %v1606_v40  ;;  %v8622_v57 = vld [vmem:[#allocation86_spill] sm:$0xff]  ;;  %v8625_v40 = vld [vmem:[#allocation89_spill] sm:$0xff] }
 0x812   :  { %4498 = vpow2.f32 %v3923_v42  ;;  %v8626_v42 = vld [vmem:[#allocation90_spill] sm:$0xff] }
 0x81d   :  { %v4497_v44 = vpop.eup %4496 }
 0x81e   :  { %v1603_v55 = vadd.f32 1.0, %v4497_v44  ;;  %v8627_v44 = vld [vmem:[#allocation91_spill] sm:$0xff] }
 0x81f   :  { %v4499_v19 = vpop.eup %4498 }
 0x820   :  { %4500 = vrcp.f32 %v1603_v55  ;;  %v1610_v47 = vadd.f32 1.0, %v4499_v19  ;;  %v8628_v55 = vld [vmem:[#allocation92_spill] sm:$0xff]  ;;  %v8630_v19 = vld [vmem:[#allocation94_spill] sm:$0xff] }
 0x822   :  { %4502 = vrcp.f32 %v1610_v47  ;;  %v8632_v47 = vld [vmem:[#allocation96_spill] sm:$0xff] }
 0x82d   :  { %v4501_v48 = vpop.eup %4500 }
 0x82e   :  { %v1613_v31 = vmul.f32 %v4501_v48, %v1307_v25  ;;  %v8633_v25 = vld [vmem:[#allocation97_spill] sm:$0xff]  ;;  %v8634_v48 = vld [vmem:[#allocation35_spill] sm:$0xff] }
 0x82f   :  { %v4503_v54 = vpop.eup %4502 }
 0x830   :  { %v1614_v22 = vadd.f32 %v1613_v31, %v1596_v1  ;;  %v1616_v30 = vsub.f32 1.0, %v4503_v54  ;;  %v1618_v32 = vmul.f32 %v4503_v54, %v6200_v26  ;;  %v8595_v26 = vld [vmem:[#allocation59_spill] sm:$0xff]  ;;  %v8635_v1 = vld [vmem:[#allocation98_spill] sm:$0xff]  ;;  %v8637_v54 = vld [vmem:[#allocation100_spill] sm:$0xff] }
 0x831   :  { %v8636_v31 = vld [vmem:[#allocation99_spill] sm:$0xff] }
 0x832   :  { %4504 = vtanh.f32 %v1614_v22  ;;  %v6583_v22 = vld [vmem:[#allocation9 + $0x1e8] sm:$0xff] }
 0x83f   :  { %v4505_v51 = vpop.eup %4504 }
 0x840   :  { %v1617_v0 = vmul.f32 %v4505_v51, %v1616_v30  ;;  %v8638_v51 = vld [vmem:[#allocation34_spill] sm:$0xff] }
 0x842   :  { %v6513_v6 = vadd.f32 %v1618_v32, %v1617_v0  ;;  %v6588_v32 = vld [vmem:[#allocation6 + $0x2] sm:$0x3] }
 0x844   :  { %1621 = vst [vmem:[#allocation12 + $0x4] sm:$0x3] %v6513_v6  ;;  %1687 = vmatmul.mubr.f32.vlgmr.msra.gmra.mxu0 %v6513_v6  ;;  %1758 = vmatmul.mubr.f32.vlgmr.msra.gmra.mxu1 %v6513_v6 }
 0x845   :  { %1914 = vmatpush1.msra.mxu0 %v6205_v24  ;;  %4176 = vmatpush3.msra.mxu1 %v6208_v21  ;;  %v8599_v24 = vld [vmem:[#allocation63_spill] sm:$0xff]  ;;  %v8600_v21 = vld [vmem:[#allocation64_spill] sm:$0xff] }
 0x846   :  { %1915 = vmatprep.subr.mxu0 %v6211_v11  ;;  %4177 = vmatprep.subr.mxu1 %v8417_v39  ;;  %v8601_v11 = vld [vmem:[#allocation65_spill] sm:$0xff] }
 0x847   :  { %1916 = vmatpush1.msra.mxu0 %v8593_v7  ;;  %4178 = vmatpush3.msra.mxu1 %v8594_v16  ;;  %v6591_v16 = vld [vmem:[#allocation6] sm:$0x3] }
 0x848   :  { %1917 = vmatprep.subr.mxu0 %v8595_v26  ;;  %4179 = vmatprep.subr.mxu1 %v8417_v39 }
 0x849   :  { %1918 = vmatpush1.msra.mxu0 %v8596_v15  ;;  %4180 = vmatpush3.msra.mxu1 %v8597_v14  ;;  %v6594_v15 = vld [vmem:[#allocation6 + $0x6] sm:$0x3] }
 0x84a   :  { %1919 = vmatprep.subr.mxu0 %v8598_v52  ;;  %4181 = vmatprep.subr.mxu1 %v8417_v39  ;;  %v6597_v52 = vld [vmem:[#allocation6 + $0x4] sm:$0x3] }
 0x84b   :  { %1920 = vmatpush1.msra.mxu0 %v8599_v24  ;;  %4182 = vmatpush3.msra.mxu1 %v8600_v21  ;;  %v6600_v21 = vld [vmem:[#allocation6 + $0xa] sm:$0x3] }
 0x84c   :  { %1921 = vmatprep.subr.mxu0 %v8601_v11  ;;  %4183 = vmatprep.subr.mxu1 %v8417_v39 }
 0x84d   :  { %1922 = vmatpush1.msra.mxu0 %v8602_v10  ;;  %4184 = vmatpush3.msra.mxu1 %v8603_v60  ;;  %v6603_v10 = vld [vmem:[#allocation6 + $0x8] sm:$0x3] }
 0x84e   :  { %1923 = vmatprep.subr.mxu0 %v8604_v33  ;;  %4185 = vmatprep.subr.mxu1 %v8417_v39  ;;  %v6606_v33 = vld [vmem:[#allocation6 + $0xe] sm:$0x3] }
 0x84f   :  { %1924 = vmatpush1.msra.mxu0 %v8605_v4  ;;  %4186 = vmatpush3.msra.mxu1 %v8606_v63  ;;  %v6609_v63 = vld [vmem:[#allocation6 + $0xc] sm:$0x3] }
 0x850   :  { %1925 = vmatprep.subr.mxu0 %v8607_v43  ;;  %4187 = vmatprep.subr.mxu1 %v8417_v39 }
 0x851   :  { %1926 = vmatpush1.msra.mxu0 %v8608_v5  ;;  %4188 = vmatpush3.msra.mxu1 %v8609_v41 }
 0x852   :  { %1927 = vmatprep.subr.mxu0 %v8610_v3  ;;  %4189 = vmatprep.subr.mxu1 %v8417_v39  ;;  %v6615_v3 = vld [vmem:[%s7967_s5] ss:$0 sm:$0xff] }
 0x853   :  { %1928 = vmatpush1.msra.mxu0 %v8611_v53  ;;  %4190 = vmatpush3.msra.mxu1 %v8612_v36 }
 0x854   :  { %1929 = vmatprep.subr.mxu0 %v8613_v61  ;;  %4191 = vmatprep.subr.mxu1 %v8417_v39 }
 0x855   :  { %1930 = vmatpush1.msra.mxu0 %v8614_v20  ;;  %4192 = vmatpush3.msra.mxu1 %v8615_v13 }
 0x856   :  { %1931 = vmatprep.subr.mxu0 %v8616_v17  ;;  %4193 = vmatprep.subr.mxu1 %v8417_v39 }
 0x857   :  { %1932 = vmatpush1.msra.mxu0 %v8617_v56  ;;  %4194 = vmatpush3.msra.mxu1 %v8618_v37 }
 0x858   :  { %1933 = vmatprep.subr.mxu0 %v8619_v50  ;;  %4195 = vmatprep.subr.mxu1 %v8417_v39 }
 0x859   :  { %1934 = vmatpush1.msra.mxu0 %v8620_v59  ;;  %4196 = vmatpush3.msra.mxu1 %v8621_v29 }
 0x85a   :  { %1935 = vmatprep.subr.mxu0 %v8622_v57  ;;  %4197 = vmatprep.subr.mxu1 %v8417_v39 }
 0x85b   :  { %1936 = vmatpush1.msra.mxu0 %v8623_v62  ;;  %4198 = vmatpush3.msra.mxu1 %v8624_v34 }
 0x85c   :  { %1937 = vmatprep.subr.mxu0 %v8625_v40  ;;  %4199 = vmatprep.subr.mxu1 %v8417_v39 }
 0x85d   :  { %1938 = vmatpush1.msra.mxu0 %v8626_v42  ;;  %4200 = vmatpush3.msra.mxu1 %v8627_v44 }
 0x85e   :  { %1939 = vmatprep.subr.mxu0 %v8628_v55  ;;  %4201 = vmatprep.subr.mxu1 %v8417_v39 }
 0x85f   :  { %1940 = vmatpush1.msra.mxu0 %v8629_v27  ;;  %4202 = vmatpush3.msra.mxu1 %v8630_v19 }
 0x860   :  { %1941 = vmatprep.subr.mxu0 %v8631_v46  ;;  %4203 = vmatprep.subr.mxu1 %v8417_v39 }
 0x861   :  { %1942 = vmatpush1.msra.mxu0 %v8632_v47  ;;  %4204 = vmatpush3.msra.mxu1 %v8633_v25 }
 0x862   :  { %1943 = vmatprep.subr.mxu0 %v8634_v48  ;;  %4205 = vmatprep.subr.mxu1 %v8417_v39 }
 0x863   :  { %1944 = vmatpush1.msra.mxu0 %v8635_v1  ;;  %1977 = vmatprep.mubr.f32.mxu0 %v8417_v39 }
 0x864   :  { %4206 = vmatpush3.msra.mxu1 %v8636_v31  ;;  %4207 = vmatprep.mubr.msk.f32.mxu1 %vm5263_vm1, %v8417_v39 }
 0x865   :  { %2077 = vmatprep.subr.mxu0 %v6583_v22  ;;  %2148 = vmatprep.subr.mxu1 %v8637_v54 }
 0x904   :  { %v1688_v30 = vpop.f32.mrf.mxu0 }
 0x905   :  { %v1689_v0 = vadd.f32 %v1688_v30, %v8638_v51 }
 0x907   :  { %v1765_v7 = vadd.f32 %v6588_v32, %v1689_v0  ;;  %v1764_v26 = vadd.f32 %v6591_v16, %v1689_v0  ;;  %v1767_v14 = vadd.f32 %v6594_v15, %v1689_v0  ;;  %v1766_v24 = vadd.f32 %v6597_v52, %v1689_v0 }
 0x908   :  { %v1769_v11 = vadd.f32 %v6600_v21, %v1689_v0  ;;  %v1768_v60 = vadd.f32 %v6603_v10, %v1689_v0  ;;  %v1771_v4 = vadd.f32 %v6606_v33, %v1689_v0  ;;  %v1770_v43 = vadd.f32 %v6609_v63, %v1689_v0 }
 0x909   :  { %4506 = vtanh.f32 %v1765_v7 }
 0x90a   :  { %4508 = vtanh.f32 %v1764_v26 }
 0x90b   :  { %4510 = vtanh.f32 %v1767_v14 }
 0x90c   :  { %4512 = vtanh.f32 %v1766_v24 }
 0x90d   :  { %4514 = vtanh.f32 %v1769_v11 }
 0x90e   :  { %4516 = vtanh.f32 %v1768_v60 }
 0x90f   :  { %4518 = vtanh.f32 %v1771_v4 }
 0x910   :  { %4520 = vtanh.f32 %v1770_v43 }
 0x916   :  { %v4507_v5 = vpop.eup %4506 }
 0x917   :  { %v4509_v41 = vpop.eup %4508  ;;  %v1781_v53 = vmul.f32 %v6615_v3, %v4507_v5 }
 0x918   :  { %v4511_v36 = vpop.eup %4510  ;;  %v1780_v61 = vmul.f32 %v6615_v3, %v4509_v41 }
 0x919   :  { %v4513_v20 = vpop.eup %4512  ;;  %v1791_v13 = vsel %vm424_vm0, %v1781_v53, 0.0  ;;  %v1783_v17 = vmul.f32 %v6615_v3, %v4511_v36 }
 0x91a   :  { %v4515_v56 = vpop.eup %4514  ;;  %1792 = vadd.xlane.f32.xlu1 %v1791_v13  ;;  %v1788_v37 = vsel %vm424_vm0, %v1780_v61, 0.0  ;;  %v1782_v50 = vmul.f32 %v6615_v3, %v4513_v20 }
 0x91b   :  { %v4517_v59 = vpop.eup %4516  ;;  %1789 = vadd.xlane.f32.xlu0 %v1788_v37  ;;  %v1797_v29 = vsel %vm424_vm0, %v1783_v17, 0.0  ;;  %v1785_v57 = vmul.f32 %v6615_v3, %v4515_v56 }
 0x91c   :  { %v4519_v62 = vpop.eup %4518  ;;  %v1794_v34 = vsel %vm424_vm0, %v1782_v50, 0.0  ;;  %v1784_v40 = vmul.f32 %v6615_v3, %v4517_v59 }
 0x91d   :  { %v4521_v42 = vpop.eup %4520  ;;  %v1803_v44 = vsel %vm424_vm0, %v1785_v57, 0.0  ;;  %v1787_v55 = vmul.f32 %v6615_v3, %v4519_v62 }
 0x91e   :  { %1798 = vadd.xlane.f32.xlu1 %v1797_v29  ;;  %v1800_v27 = vsel %vm424_vm0, %v1784_v40, 0.0  ;;  %v1786_v19 = vmul.f32 %v6615_v3, %v4521_v42 }
 0x91f   :  { %1795 = vadd.xlane.f32.xlu0 %v1794_v34  ;;  %v1809_v46 = vsel %vm424_vm0, %v1787_v55, 0.0 }
 0x920   :  { %v1806_v47 = vsel %vm424_vm0, %v1786_v19, 0.0 }
 0x922   :  { %1804 = vadd.xlane.f32.xlu1 %v1803_v44 }
 0x923   :  { %1801 = vadd.xlane.f32.xlu0 %v1800_v27 }
 0x926   :  { %1810 = vadd.xlane.f32.xlu1 %v1809_v46 }
 0x927   :  { %1807 = vadd.xlane.f32.xlu0 %v1806_v47 }
 0x9a3   :  { %v1793_v25 = vpop.xlane.xlu1 %1792 }
 0x9a4   :  { %v1790_v48 = vpop.xlane.xlu0 %1789  ;;  %v1813_v26 = vsel %vm424_vm0, %v1793_v25, -inf }
 0x9a5   :  { %v1812_v14 = vsel %vm424_vm0, %v1790_v48, -inf }
 0x9a7   :  { %v1799_v1 = vpop.xlane.xlu1 %1798 }
 0x9a8   :  { %v1796_v31 = vpop.xlane.xlu0 %1795  ;;  %v1815_v11 = vsel %vm424_vm0, %v1799_v1, -inf }
 0x9a9   :  { %v1814_v41 = vsel %vm424_vm0, %v1796_v31, -inf }
 0x9ab   :  { %v1805_v54 = vpop.xlane.xlu1 %1804 }
 0x9ac   :  { %v1802_v30 = vpop.xlane.xlu0 %1801  ;;  %v1818_v0 = vsel %vm424_vm0, %v1805_v54, -inf }
 0x9ad   :  { %v1816_v7 = vsel %vm424_vm0, %v1802_v30, -inf  ;;  %v1819_v60 = vmax.f32 %v1813_v26, %v1818_v0 }
 0x9ae   :  { %v1817_v4 = vmax.f32 %v1812_v14, %v1816_v7 }
 0x9af   :  { %v1811_v24 = vpop.xlane.xlu1 %1810 }
 0x9b0   :  { %v1822_v43 = vsel %vm424_vm0, %v1811_v24, -inf  ;;  %v1808_v5 = vpop.xlane.xlu0 %1807  ;;  %v1824_v20 = vmax.f32 %v1817_v4, %v1819_v60 }
 0x9b1   :  { %v1823_v53 = vmax.f32 %v1815_v11, %v1822_v43  ;;  %v1820_v36 = vsel %vm424_vm0, %v1808_v5, -inf }
 0x9b2   :  { %v1821_v61 = vmax.f32 %v1814_v41, %v1820_v36 }
 0x9b4   :  { %v1825_v13 = vmax.f32 %v1821_v61, %v1823_v53 }
 0x9b6   :  { %v1826_v17 = vmax.f32 %v1824_v20, %v1825_v13 }
 0x9b8   :  { %v1827_v56 = vsub.f32 %v1790_v48, %v1826_v17  ;;  %v1828_v37 = vsub.f32 %v1793_v25, %v1826_v17  ;;  %v1829_v50 = vsub.f32 %v1796_v31, %v1826_v17  ;;  %v1830_v59 = vsub.f32 %v1799_v1, %v1826_v17 }
 0x9b9   :  { %v1831_v29 = vsub.f32 %v1802_v30, %v1826_v17  ;;  %v1832_v40 = vsub.f32 %v1805_v54, %v1826_v17  ;;  %v1833_v44 = vsub.f32 %v1808_v5, %v1826_v17  ;;  %v1834_v27 = vsub.f32 %v1811_v24, %v1826_v17 }
 0x9ba   :  { %v1835_v57 = vmul.f32 1.442695, %v1827_v56  ;;  %v1837_v62 = vmul.f32 1.442695, %v1828_v37  ;;  %v1839_v34 = vmul.f32 1.442695, %v1829_v50 }
 0x9bb   :  { %v1841_v42 = vmul.f32 1.442695, %v1830_v59  ;;  %v1843_v55 = vmul.f32 1.442695, %v1831_v29  ;;  %v1845_v19 = vmul.f32 1.442695, %v1832_v40 }
 0x9bc   :  { %4522 = vpow2.f32 %v1835_v57  ;;  %v1847_v46 = vmul.f32 1.442695, %v1833_v44  ;;  %v1849_v47 = vmul.f32 1.442695, %v1834_v27 }
 0x9bd   :  { %4524 = vpow2.f32 %v1837_v62 }
 0x9be   :  { %4526 = vpow2.f32 %v1839_v34 }
 0x9bf   :  { %4528 = vpow2.f32 %v1841_v42 }
 0x9c0   :  { %4530 = vpow2.f32 %v1843_v55 }
 0x9c1   :  { %4532 = vpow2.f32 %v1845_v19 }
 0x9c2   :  { %4534 = vpow2.f32 %v1847_v46 }
 0x9c3   :  { %4536 = vpow2.f32 %v1849_v47 }
 0x9c9   :  { %v4523_v25 = vpop.eup %4522 }
 0x9ca   :  { %v4525_v48 = vpop.eup %4524  ;;  %v1851_v1 = vsel %vm424_vm0, %v4523_v25, 0.0  ;;  %v1867_v31 = vmul.f32 %v6402_v18, %v4523_v25 }
 0x9cb   :  { %v4527_v54 = vpop.eup %4526  ;;  %v1852_v30 = vsel %vm424_vm0, %v4525_v48, 0.0  ;;  %v1868_v0 = vmul.f32 %v6406_v23, %v4525_v48 }
 0x9cc   :  { %v4529_v7 = vpop.eup %4528  ;;  %v1853_v26 = vadd.f32 %v1852_v30, %v1851_v1  ;;  %v1875_v14 = vsel %vm424_vm0, %v1867_v31, 0.0  ;;  %v1854_v24 = vsel %vm424_vm0, %v4527_v54, 0.0  ;;  %v1869_v11 = vmul.f32 %v6411_v8, %v4527_v54  ;;  %v6671_v54 = vld [vmem:[#allocation9 + $0x1c8] sm:$0xff]  ;;  %v6677_v30 = vld [vmem:[#allocation9 + $0x1c0] sm:$0xff] }
 0x9cd   :  { %v1876_v60 = vsel %vm424_vm0, %v1868_v0, 0.0  ;;  %v4531_v4 = vpop.eup %4530  ;;  %v1856_v18 = vsel %vm424_vm0, %v4529_v7, 0.0  ;;  %v1870_v23 = vmul.f32 %v6417_v58, %v4529_v7  ;;  %v6680_v0 = vld [vmem:[#allocation9 + $0x1d0] sm:$0xff]  ;;  %v6683_v7 = vld [vmem:[#allocation9 + $0x1a8] sm:$0xff] }
 0x9ce   :  { %v1855_v43 = vadd.f32 %v1854_v24, %v1853_v26  ;;  %v1877_v5 = vadd.f32 %v1876_v60, %v1875_v14  ;;  %v4533_v41 = vpop.eup %4532  ;;  %v1858_v36 = vsel %vm424_vm0, %v4531_v4, 0.0  ;;  %v1878_v61 = vsel %vm424_vm0, %v1869_v11, 0.0  ;;  %v6686_v26 = vld [vmem:[#allocation9 + $0x1b8] sm:$0xff]  ;;  %v6689_v14 = vld [vmem:[#allocation9 + $0x1a0] sm:$0xff]  ;;  %v6692_v24 = vld [vmem:[#allocation9 + $0x1b0] sm:$0xff] }
 0x9cf   :  { %v4535_v20 = vpop.eup %4534  ;;  %v1860_v8 = vsel %vm424_vm0, %v4533_v41, 0.0  ;;  %v1871_v59 = vmul.f32 %v6423_v12, %v4531_v4  ;;  %v1880_v29 = vsel %vm424_vm0, %v1870_v23, 0.0  ;;  %v1872_v40 = vmul.f32 %v6428_v38, %v4533_v41  ;;  %v6665_v38 = vld [vmem:[#allocation9 + $0x1e0] sm:$0xff]  ;;  %v6695_v11 = vld [vmem:[#allocation9 + $0x188] sm:$0xff]  ;;  %v6698_v60 = vld [vmem:[#allocation9 + $0x198] sm:$0xff] }
 0x9d0   :  { %v1857_v53 = vadd.f32 %v1856_v18, %v1855_v43  ;;  %v1879_v17 = vadd.f32 %v1878_v61, %v1877_v5  ;;  %v4537_v56 = vpop.eup %4536  ;;  %v1862_v50 = vsel %vm424_vm0, %v4535_v20, 0.0  ;;  %v1873_v55 = vmul.f32 %v6432_v45, %v4535_v20  ;;  %v6668_v45 = vld [vmem:[#allocation9 + $0x1f0] sm:$0xff]  ;;  %v6701_v4 = vld [vmem:[#allocation9 + $0x180] sm:$0xff]  ;;  %v6707_v5 = vld [vmem:[#allocation9 + $0x168] sm:$0xff] }
 0x9d1   :  { %v1864_v34 = vsel %vm424_vm0, %v4537_v56, 0.0  ;;  %v1882_v42 = vsel %vm424_vm0, %v1871_v59, 0.0  ;;  %v1884_v27 = vsel %vm424_vm0, %v1872_v40, 0.0  ;;  %v1874_v12 = vmul.f32 %v6436_v2, %v4537_v56  ;;  %v6674_v2 = vld [vmem:[#allocation9 + $0x1d8] sm:$0xff]  ;;  %v6704_v43 = vld [vmem:[#allocation9 + $0x190] sm:$0xff]  ;;  %v6713_v41 = vld [vmem:[#allocation9 + $0x160] sm:$0xff] }
 0x9d2   :  { %v1859_v13 = vadd.f32 %v1858_v36, %v1857_v53  ;;  %v1881_v62 = vadd.f32 %v1880_v29, %v1879_v17  ;;  %v1886_v46 = vsel %vm424_vm0, %v1873_v55, 0.0  ;;  %v6710_v18 = vld [vmem:[#allocation9 + $0x178] sm:$0xff]  ;;  %v6716_v53 = vld [vmem:[#allocation9 + $0x170] sm:$0xff]  ;;  %v6719_v36 = vld [vmem:[#allocation9 + $0x148] sm:$0xff] }
 0x9d3   :  { %v1888_v25 = vsel %vm424_vm0, %v1874_v12, 0.0  ;;  %v6722_v23 = vld [vmem:[#allocation9 + $0x158] sm:$0xff]  ;;  %v6725_v61 = vld [vmem:[#allocation9 + $0x140] sm:$0xff]  ;;  %v6728_v20 = vld [vmem:[#allocation9 + $0x150] sm:$0xff] }
 0x9d4   :  { %v1861_v37 = vadd.f32 %v1860_v8, %v1859_v13  ;;  %v1883_v44 = vadd.f32 %v1882_v42, %v1881_v62  ;;  %v6731_v13 = vld [vmem:[#allocation9 + $0x128] sm:$0xff]  ;;  %v6734_v17 = vld [vmem:[#allocation9 + $0x138] sm:$0xff]  ;;  %v6737_v8 = vld [vmem:[#allocation9 + $0x120] sm:$0xff] }
 0x9d5   :  { %v6740_v56 = vld [vmem:[#allocation9 + $0x130] sm:$0xff]  ;;  %v6749_v59 = vld [vmem:[#allocation9 + $0x100] sm:$0xff]  ;;  %v6758_v62 = vld [vmem:[#allocation9 + $0xf8] sm:$0xff] }
 0x9d6   :  { %v1863_v57 = vadd.f32 %v1862_v50, %v1861_v37  ;;  %v1885_v19 = vadd.f32 %v1884_v27, %v1883_v44  ;;  %8639 = vst [vmem:[#allocation17_spill] sm:$0xff] %v6740_v56  ;;  %v6743_v37 = vld [vmem:[#allocation9 + $0x108] sm:$0xff]  ;;  %v6746_v50 = vld [vmem:[#allocation9 + $0x118] sm:$0xff]  ;;  %8642 = vst [vmem:[#allocation37_spill] sm:$0xff] %v6749_v59 }
 0x9d7   :  { %8640 = vst [vmem:[#allocation36_spill] sm:$0xff] %v6743_v37  ;;  %8641 = vst [vmem:[#allocation18_spill] sm:$0xff] %v6746_v50  ;;  %v6752_v29 = vld [vmem:[#allocation9 + $0x110] sm:$0xff]  ;;  %v6767_v40 = vld [vmem:[#allocation9 + $0xc8] sm:$0xff] }
 0x9d8   :  { %v1865_v58 = vadd.f32 %v1864_v34, %v1863_v57  ;;  %v1887_v47 = vadd.f32 %v1886_v46, %v1885_v19  ;;  %8643 = vst [vmem:[#allocation19_spill] sm:$0xff] %v6752_v29  ;;  %v6755_v57 = vld [vmem:[#allocation9 + $0xe8] sm:$0xff]  ;;  %8645 = vst [vmem:[#allocation20_spill] sm:$0xff] %v6758_v62  ;;  %v6761_v34 = vld [vmem:[#allocation9 + $0xe0] sm:$0xff] }
 0x9d9   :  { %8644 = vst [vmem:[#allocation38_spill] sm:$0xff] %v6755_v57  ;;  %8646 = vst [vmem:[#allocation39_spill] sm:$0xff] %v6761_v34  ;;  %v6770_v42 = vld [vmem:[#allocation9 + $0xd8] sm:$0xff]  ;;  %v6773_v44 = vld [vmem:[#allocation9 + $0xc0] sm:$0xff] }
 0x9da   :  { %4538 = vrcp.f32 %v1865_v58  ;;  %v1889_v48 = vadd.f32 %v1888_v25, %v1887_v47  ;;  %v6764_v58 = vld [vmem:[#allocation9 + $0xf0] sm:$0xff]  ;;  %8648 = vst [vmem:[#allocation40_spill] sm:$0xff] %v6767_v40  ;;  %8649 = vst [vmem:[#allocation22_spill] sm:$0xff] %v6770_v42  ;;  %v6779_v27 = vld [vmem:[#allocation9 + $0xa8] sm:$0xff] }
 0x9db   :  { %8647 = vst [vmem:[#allocation21_spill] sm:$0xff] %v6764_v58  ;;  %8650 = vst [vmem:[#allocation41_spill] sm:$0xff] %v6773_v44  ;;  %v6776_v55 = vld [vmem:[#allocation9 + $0xd0] sm:$0xff]  ;;  %v6782_v19 = vld [vmem:[#allocation9 + $0xb8] sm:$0xff] }
 0x9dc   :  { %8651 = vst [vmem:[#allocation23_spill] sm:$0xff] %v6776_v55  ;;  %8652 = vst [vmem:[#allocation42_spill] sm:$0xff] %v6779_v27  ;;  %v6785_v12 = vld [vmem:[#allocation9 + $0xa0] sm:$0xff]  ;;  %v6788_v46 = vld [vmem:[#allocation9 + $0xb0] sm:$0xff] }
 0x9dd   :  { %8653 = vst [vmem:[#allocation24_spill] sm:$0xff] %v6782_v19  ;;  %8654 = vst [vmem:[#allocation43_spill] sm:$0xff] %v6785_v12  ;;  %v6791_v47 = vld [vmem:[#allocation9 + $0x88] sm:$0xff]  ;;  %v6794_v25 = vld [vmem:[#allocation9 + $0x98] sm:$0xff] }
 0x9de   :  { %8655 = vst [vmem:[#allocation25_spill] sm:$0xff] %v6788_v46  ;;  %8656 = vst [vmem:[#allocation44_spill] sm:$0xff] %v6791_v47 }
 0x9df   :  { %8657 = vst [vmem:[#allocation26_spill] sm:$0xff] %v6794_v25 }
 0x9e7   :  { %v4539_v1 = vpop.eup %4538 }
 0x9e8   :  { %v1890_v31 = vmul.f32 %v4539_v1, %v1889_v48  ;;  %v6797_v48 = vld [vmem:[#allocation9 + $0x80] sm:$0xff]  ;;  %v6800_v1 = vld [vmem:[#allocation9 + $0x90] sm:$0xff] }
 0x9e9   :  { %8658 = vst [vmem:[#allocation45_spill] sm:$0xff] %v6797_v48  ;;  %8659 = vst [vmem:[#allocation27_spill] sm:$0xff] %v6800_v1 }
 0x9ea   :  { %1978 = vmatmul.mubr.f32.vlgmr.msra.gmra.mxu0 %v1890_v31  ;;  %4208 = vmatmul.mubr.f32.vlgmr.msra.gmra.mxu1 %v1890_v31  ;;  %v6803_v31 = vld [vmem:[#allocation9 + $0x68] sm:$0xff] }
 0x9eb   :  { %2078 = vmatpush1.msra.mxu0 %v6665_v38  ;;  %2149 = vmatpush1.msra.mxu1 %v6668_v45  ;;  %8660 = vst [vmem:[#allocation46_spill] sm:$0xff] %v6803_v31 }
 0x9ec   :  { %2079 = vmatprep.subr.mxu0 %v6671_v54  ;;  %2150 = vmatprep.subr.mxu1 %v6674_v2 }
 0x9ed   :  { %2080 = vmatpush1.msra.mxu0 %v6677_v30  ;;  %2151 = vmatpush1.msra.mxu1 %v6680_v0 }
 0x9ee   :  { %2081 = vmatprep.subr.mxu0 %v6683_v7  ;;  %2152 = vmatprep.subr.mxu1 %v6686_v26 }
 0x9ef   :  { %2082 = vmatpush1.msra.mxu0 %v6689_v14  ;;  %2153 = vmatpush1.msra.mxu1 %v6692_v24 }
 0x9f0   :  { %2083 = vmatprep.subr.mxu0 %v6695_v11  ;;  %2154 = vmatprep.subr.mxu1 %v6698_v60 }
 0x9f1   :  { %2084 = vmatpush1.msra.mxu0 %v6701_v4  ;;  %2155 = vmatpush1.msra.mxu1 %v6704_v43 }
 0x9f2   :  { %2085 = vmatprep.subr.mxu0 %v6707_v5  ;;  %2156 = vmatprep.subr.mxu1 %v6710_v18 }
 0x9f3   :  { %2086 = vmatpush1.msra.mxu0 %v6713_v41  ;;  %2157 = vmatpush1.msra.mxu1 %v6716_v53 }
 0x9f4   :  { %2087 = vmatprep.subr.mxu0 %v6719_v36  ;;  %2158 = vmatprep.subr.mxu1 %v6722_v23 }
 0x9f5   :  { %2088 = vmatpush1.msra.mxu0 %v6725_v61  ;;  %2159 = vmatpush1.msra.mxu1 %v6728_v20 }
 0x9f6   :  { %2089 = vmatprep.subr.mxu0 %v6731_v13  ;;  %2160 = vmatprep.subr.mxu1 %v6734_v17 }
 0x9f7   :  { %2090 = vmatpush1.msra.mxu0 %v6737_v8  ;;  %2161 = vmatpush1.msra.mxu1 %v6740_v56 }
 0x9f8   :  { %2091 = vmatprep.subr.mxu0 %v6743_v37  ;;  %2162 = vmatprep.subr.mxu1 %v6746_v50 }
 0x9f9   :  { %2092 = vmatpush1.msra.mxu0 %v6749_v59  ;;  %2163 = vmatpush1.msra.mxu1 %v6752_v29 }
 0x9fa   :  { %2093 = vmatprep.subr.mxu0 %v6755_v57  ;;  %2164 = vmatprep.subr.mxu1 %v6758_v62 }
 0x9fb   :  { %2094 = vmatpush1.msra.mxu0 %v6761_v34  ;;  %2165 = vmatpush1.msra.mxu1 %v6764_v58 }
 0x9fc   :  { %2095 = vmatprep.subr.mxu0 %v6767_v40  ;;  %2166 = vmatprep.subr.mxu1 %v6770_v42 }
 0x9fd   :  { %2096 = vmatpush1.msra.mxu0 %v6773_v44  ;;  %2167 = vmatpush1.msra.mxu1 %v6776_v55 }
 0x9fe   :  { %2097 = vmatprep.subr.mxu0 %v6779_v27  ;;  %2168 = vmatprep.subr.mxu1 %v6782_v19 }
 0x9ff   :  { %2098 = vmatpush1.msra.mxu0 %v6785_v12  ;;  %2169 = vmatpush1.msra.mxu1 %v6788_v46  ;;  %v6806_v46 = vld [vmem:[#allocation9 + $0x78] sm:$0xff]  ;;  %v1690_v12 = vpop.f32.mrf.mxu0 }
 0xa00   :  { %2099 = vmatprep.subr.mxu0 %v6791_v47  ;;  %2170 = vmatprep.subr.mxu1 %v6794_v25  ;;  %8661 = vst [vmem:[#allocation28_spill] sm:$0xff] %v6806_v46  ;;  %v6809_v47 = vld [vmem:[#allocation9 + $0x60] sm:$0xff]  ;;  %v6812_v25 = vld [vmem:[#allocation9 + $0x70] sm:$0xff]  ;;  %v1691_v55 = vadd.f32 %v1690_v12, %v5834_v35 }
 0xa01   :  { %2100 = vmatpush1.msra.mxu0 %v6797_v48  ;;  %2171 = vmatpush1.msra.mxu1 %v6800_v1  ;;  %8662 = vst [vmem:[#allocation47_spill] sm:$0xff] %v6809_v47  ;;  %8663 = vst [vmem:[#allocation29_spill] sm:$0xff] %v6812_v25  ;;  %v6815_v48 = vld [vmem:[#allocation9 + $0x48] sm:$0xff]  ;;  %v6818_v1 = vld [vmem:[#allocation9 + $0x58] sm:$0xff] }
 0xa02   :  { %2101 = vmatprep.subr.mxu0 %v6803_v31  ;;  %2172 = vmatprep.subr.mxu1 %v6806_v46  ;;  %8664 = vst [vmem:[#allocation48_spill] sm:$0xff] %v6815_v48  ;;  %8665 = vst [vmem:[#allocation30_spill] sm:$0xff] %v6818_v1  ;;  %v6821_v31 = vld [vmem:[#allocation9 + $0x40] sm:$0xff]  ;;  %v6824_v46 = vld [vmem:[#allocation9 + $0x50] sm:$0xff] }
 0xa03   :  { %2102 = vmatpush1.msra.mxu0 %v6809_v47  ;;  %2173 = vmatpush1.msra.mxu1 %v6812_v25  ;;  %8666 = vst [vmem:[#allocation49_spill] sm:$0xff] %v6821_v31  ;;  %8667 = vst [vmem:[#allocation50_spill] sm:$0xff] %v6824_v46  ;;  %v6827_v47 = vld [vmem:[#allocation9 + $0x28] sm:$0xff]  ;;  %v6830_v25 = vld [vmem:[#allocation9 + $0x38] sm:$0xff] }
 0xa04   :  { %2103 = vmatprep.subr.mxu0 %v6815_v48  ;;  %2174 = vmatprep.subr.mxu1 %v6818_v1  ;;  %8668 = vst [vmem:[#allocation32_spill] sm:$0xff] %v6827_v47  ;;  %8669 = vst [vmem:[#allocation33_spill] sm:$0xff] %v6830_v25  ;;  %v6833_v48 = vld [vmem:[#allocation9 + $0x20] sm:$0xff]  ;;  %v6836_v1 = vld [vmem:[#allocation9 + $0x30] sm:$0xff] }
 0xa05   :  { %2104 = vmatpush1.msra.mxu0 %v6821_v31  ;;  %2175 = vmatpush1.msra.mxu1 %v6824_v46  ;;  %8670 = vst [vmem:[#allocation31_spill] sm:$0xff] %v6833_v48  ;;  %8671 = vst [vmem:[#allocation51_spill] sm:$0xff] %v6836_v1  ;;  %v6839_v31 = vld [vmem:[#allocation9 + $0x8] sm:$0xff]  ;;  %v6842_v46 = vld [vmem:[#allocation9 + $0x18] sm:$0xff] }
 0xa06   :  { %2105 = vmatprep.subr.mxu0 %v6827_v47  ;;  %2176 = vmatprep.subr.mxu1 %v6830_v25  ;;  %8672 = vst [vmem:[#allocation52_spill] sm:$0xff] %v6839_v31  ;;  %8673 = vst [vmem:[#allocation53_spill] sm:$0xff] %v6842_v46  ;;  %v6845_v47 = vld [vmem:[#allocation9] sm:$0xff]  ;;  %v6849_v25 = vld [vmem:[#allocation9 + $0x10] sm:$0xff] }
 0xa07   :  { %2106 = vmatpush1.msra.mxu0 %v6833_v48  ;;  %2177 = vmatpush1.msra.mxu1 %v6836_v1  ;;  %8674 = vst [vmem:[#allocation54_spill] sm:$0xff] %v6845_v47  ;;  %8675 = vst [vmem:[#allocation55_spill] sm:$0xff] %v6849_v25  ;;  %v6853_v1 = vld [vmem:[#allocation11 + $0x170] sm:$0xff] }
 0xa08   :  { %2107 = vmatprep.subr.mxu0 %v6839_v31  ;;  %2178 = vmatprep.subr.mxu1 %v6842_v46  ;;  %8676 = vst [vmem:[#allocation56_spill] sm:$0xff] %v6853_v1  ;;  %v1759_v31 = vpop.f32.mrf.mxu1  ;;  %v1892_v46 = vld [vmem:[#allocation8 + $0x12] sm:$0x3f] }
 0xa09   :  { %2108 = vmatpush1.msra.mxu0 %v6845_v47  ;;  %2141 = vmatprep.mubr.f32.mxu0 %v8417_v39  ;;  %v1901_v48 = vrot.slane %v1892_v46, %v5830_v28  ;;  %v1894_v37 = vcombine.high %v1892_v46, %v1892_v46  ;;  %v6884_v46 = vld [vmem:[#allocation11 + $0x140] sm:$0xff] }
 0xa0a   :  { %2179 = vmatpush1.msra.mxu1 %v6849_v25  ;;  %2212 = vmatprep.mubr.f32.mxu1 %v8417_v39  ;;  %v1761_v47 = vpop.f32.mrf.mxu1  ;;  %8679 = vst [vmem:[#allocation59_spill] sm:$0xff] %v6884_v46 }
 0xa0b   :  { %2368 = vmatprep.subr.mxu0 %v6853_v1  ;;  %4210 = vmatprep.subr.mxu1 %v8417_v39  ;;  %v1909_v25 = vcombine.high %v1901_v48, %v1901_v48  ;;  %v1760_v1 = vadd.f32 %v1759_v31, %v5840_v49  ;;  %v1908_v12 = vrot.slane %v1894_v37, %v5830_v28  ;;  %v6871_v37 = vld [vmem:[#allocation11 + $0x178] sm:$0xff]  ;;  %v6898_v31 = vld [vmem:[#allocation11 + $0x120] sm:$0xff] }
 0xa0c   :  { %8683 = vst [vmem:[#allocation63_spill] sm:$0xff] %v6898_v31 }
 0xaaa   :  { %v1979_v19 = vpop.f32.mrf.mxu0  ;;  %v2050_v27 = vpop.f32.mrf.mxu1 }
 0xaab   :  { %v1980_v44 = vadd.f32 %v1979_v19, %v1901_v48  ;;  %v1762_v48 = vadd.f32 %v1761_v47, %v5845_v9  ;;  %v6888_v47 = vld [vmem:[#allocation11 + $0x138] sm:$0xff] }
 0xaac   :  { %v1981_v42 = vpop.f32.mrf.mxu0  ;;  %v4209_v40 = vpop.f32.mrf.mxu1  ;;  %8680 = vst [vmem:[#allocation60_spill] sm:$0xff] %v6888_v47 }
 0xaad   :  { %v2054_v58 = vadd.f32 %v1980_v44, %v1691_v55  ;;  %v1982_v62 = vadd.f32 %v1981_v42, %v1909_v25  ;;  %v2051_v44 = vadd.f32 %v2050_v27, %v1908_v12  ;;  %v6874_v55 = vld [vmem:[#allocation11 + $0x158] sm:$0xff]  ;;  %v6881_v27 = vld [vmem:[#allocation11 + $0x160] sm:$0xff]  ;;  %v6891_v25 = vld [vmem:[#allocation11 + $0x148] sm:$0xff] }
 0xaae   :  { %8678 = vst [vmem:[#allocation58_spill] sm:$0xff] %v6881_v27  ;;  %8681 = vst [vmem:[#allocation61_spill] sm:$0xff] %v6891_v25  ;;  %v6901_v12 = vld [vmem:[#allocation11 + $0x130] sm:$0xff] }
 0xaaf   :  { %v3924_v34 = vmul.f32 -1.442695, %v2054_v58  ;;  %v2061_v57 = vadd.f32 %v1982_v62, %v1760_v1  ;;  %v6894_v1 = vld [vmem:[#allocation11 + $0x128] sm:$0xff]  ;;  %8684 = vst [vmem:[#allocation64_spill] sm:$0xff] %v6901_v12 }
 0xab0   :  { %8682 = vst [vmem:[#allocation62_spill] sm:$0xff] %v6894_v1 }
 0xab1   :  { %4540 = vpow2.f32 %v3924_v34  ;;  %v3925_v29 = vmul.f32 -1.442695, %v2061_v57 }
 0xab3   :  { %4542 = vpow2.f32 %v3925_v29 }
 0xabe   :  { %v4541_v59 = vpop.eup %4540 }
 0xabf   :  { %v2058_v50 = vadd.f32 1.0, %v4541_v59 }
 0xac0   :  { %v4543_v56 = vpop.eup %4542 }
 0xac1   :  { %4544 = vrcp.f32 %v2058_v50  ;;  %v2065_v19 = vadd.f32 1.0, %v4543_v56  ;;  %v6868_v56 = vld [vmem:[#allocation11 + $0x168] sm:$0xff] }
 0xac3   :  { %4546 = vrcp.f32 %v2065_v19  ;;  %v6904_v19 = vld [vmem:[#allocation11 + $0x110] sm:$0xff] }
 0xac4   :  { %8685 = vst [vmem:[#allocation65_spill] sm:$0xff] %v6904_v19 }
 0xace   :  { %v4545_v40 = vpop.eup %4544 }
 0xacf   :  { %v2068_v58 = vmul.f32 %v4545_v40, %v1762_v48  ;;  %v6908_v48 = vld [vmem:[#allocation11 + $0x108] sm:$0xff]  ;;  %v6911_v40 = vld [vmem:[#allocation11 + $0x118] sm:$0xff] }
 0xad0   :  { %v4547_v34 = vpop.eup %4546  ;;  %8686 = vst [vmem:[#allocation66_spill] sm:$0xff] %v6908_v48  ;;  %8687 = vst [vmem:[#allocation67_spill] sm:$0xff] %v6911_v40 }
 0xad1   :  { %v2069_v42 = vadd.f32 %v2068_v58, %v2051_v44  ;;  %v2071_v62 = vsub.f32 1.0, %v4547_v34  ;;  %v2073_v59 = vmul.f32 %v4547_v34, %v6513_v6  ;;  %v6878_v6 = vld [vmem:[#allocation11 + $0x150] sm:$0xff]  ;;  %v6914_v44 = vld [vmem:[#allocation11 + $0xf8] sm:$0xff]  ;;  %v6924_v34 = vld [vmem:[#allocation11 + $0xe0] sm:$0xff] }
 0xad2   :  { %8677 = vst [vmem:[#allocation57_spill] sm:$0xff] %v6878_v6  ;;  %8688 = vst [vmem:[#allocation68_spill] sm:$0xff] %v6914_v44  ;;  %v6918_v58 = vld [vmem:[#allocation11 + $0xf0] sm:$0xff] }
 0xad3   :  { %4548 = vtanh.f32 %v2069_v42  ;;  %8689 = vst [vmem:[#allocation69_spill] sm:$0xff] %v6918_v58  ;;  %v6921_v42 = vld [vmem:[#allocation11 + $0x100] sm:$0xff]  ;;  %8691 = vst [vmem:[#allocation71_spill] sm:$0xff] %v6924_v34 }
 0xad4   :  { %8690 = vst [vmem:[#allocation70_spill] sm:$0xff] %v6921_v42 }
 0xae0   :  { %v4549_v57 = vpop.eup %4548 }
 0xae1   :  { %v2072_v29 = vmul.f32 %v4549_v57, %v2071_v62  ;;  %v6928_v62 = vld [vmem:[#allocation11 + $0xd8] sm:$0xff]  ;;  %v6931_v57 = vld [vmem:[#allocation11 + $0xe8] sm:$0xff] }
 0xae2   :  { %8692 = vst [vmem:[#allocation72_spill] sm:$0xff] %v6928_v62  ;;  %8693 = vst [vmem:[#allocation73_spill] sm:$0xff] %v6931_v57 }
 0xae3   :  { %v6863_v50 = vadd.f32 %v2073_v59, %v2072_v29  ;;  %v6934_v29 = vld [vmem:[#allocation11 + $0xc8] sm:$0xff]  ;;  %v6938_v59 = vld [vmem:[#allocation11 + $0xc0] sm:$0xff] }
 0xae4   :  { %8694 = vst [vmem:[#allocation74_spill] sm:$0xff] %v6934_v29  ;;  %8695 = vst [vmem:[#allocation75_spill] sm:$0xff] %v6938_v59 }
 0xae5   :  { %2076 = vst [vmem:[#allocation12 + $0x6] sm:$0x3] %v6863_v50  ;;  %2142 = vmatmul.mubr.f32.vlgmr.msra.gmra.mxu0 %v6863_v50  ;;  %2213 = vmatmul.mubr.f32.vlgmr.msra.gmra.mxu1 %v6863_v50 }
 0xae6   :  { %2369 = vmatpush1.msra.mxu0 %v6868_v56  ;;  %4211 = vmatpush3.msra.mxu1 %v6871_v37 }
 0xae7   :  { %2370 = vmatprep.subr.mxu0 %v6874_v55  ;;  %4212 = vmatprep.subr.mxu1 %v8417_v39 }
 0xae8   :  { %2371 = vmatpush1.msra.mxu0 %v6878_v6  ;;  %4213 = vmatpush3.msra.mxu1 %v6881_v27 }
 0xae9   :  { %2372 = vmatprep.subr.mxu0 %v6884_v46  ;;  %4214 = vmatprep.subr.mxu1 %v8417_v39 }
 0xaea   :  { %2373 = vmatpush1.msra.mxu0 %v6888_v47  ;;  %4215 = vmatpush3.msra.mxu1 %v6891_v25 }
 0xaeb   :  { %2374 = vmatprep.subr.mxu0 %v6894_v1  ;;  %4216 = vmatprep.subr.mxu1 %v8417_v39 }
 0xaec   :  { %2375 = vmatpush1.msra.mxu0 %v6898_v31  ;;  %4217 = vmatpush3.msra.mxu1 %v6901_v12 }
 0xaed   :  { %2376 = vmatprep.subr.mxu0 %v6904_v19  ;;  %4218 = vmatprep.subr.mxu1 %v8417_v39 }
 0xaee   :  { %2377 = vmatpush1.msra.mxu0 %v6908_v48  ;;  %4219 = vmatpush3.msra.mxu1 %v6911_v40 }
 0xaef   :  { %2378 = vmatprep.subr.mxu0 %v6914_v44  ;;  %4220 = vmatprep.subr.mxu1 %v8417_v39 }
 0xaf0   :  { %2379 = vmatpush1.msra.mxu0 %v6918_v58  ;;  %4221 = vmatpush3.msra.mxu1 %v6921_v42  ;;  %v6944_v42 = vld [vmem:[#allocation11 + $0xb0] sm:$0xff] }
 0xaf1   :  { %2380 = vmatprep.subr.mxu0 %v6924_v34  ;;  %4222 = vmatprep.subr.mxu1 %v8417_v39  ;;  %v6941_v34 = vld [vmem:[#allocation11 + $0xd0] sm:$0xff]  ;;  %8697 = vst [vmem:[#allocation77_spill] sm:$0xff] %v6944_v42 }
 0xaf2   :  { %2381 = vmatpush1.msra.mxu0 %v6928_v62  ;;  %4223 = vmatpush3.msra.mxu1 %v6931_v57  ;;  %8696 = vst [vmem:[#allocation76_spill] sm:$0xff] %v6941_v34  ;;  %v6948_v57 = vld [vmem:[#allocation11 + $0xa8] sm:$0xff]  ;;  %v6954_v62 = vld [vmem:[#allocation11 + $0x98] sm:$0xff] }
 0xaf3   :  { %2382 = vmatprep.subr.mxu0 %v6934_v29  ;;  %4224 = vmatprep.subr.mxu1 %v8417_v39  ;;  %8698 = vst [vmem:[#allocation78_spill] sm:$0xff] %v6948_v57  ;;  %v6951_v29 = vld [vmem:[#allocation11 + $0xb8] sm:$0xff]  ;;  %8700 = vst [vmem:[#allocation80_spill] sm:$0xff] %v6954_v62 }
 0xaf4   :  { %2383 = vmatpush1.msra.mxu0 %v6938_v59  ;;  %4225 = vmatpush3.msra.mxu1 %v6941_v34  ;;  %8699 = vst [vmem:[#allocation79_spill] sm:$0xff] %v6951_v29  ;;  %v6958_v34 = vld [vmem:[#allocation11 + $0x90] sm:$0xff]  ;;  %v6964_v59 = vld [vmem:[#allocation11 + $0x80] sm:$0xff] }
 0xaf5   :  { %2384 = vmatprep.subr.mxu0 %v6944_v42  ;;  %4226 = vmatprep.subr.mxu1 %v8417_v39  ;;  %8701 = vst [vmem:[#allocation81_spill] sm:$0xff] %v6958_v34  ;;  %v6961_v42 = vld [vmem:[#allocation11 + $0xa0] sm:$0xff]  ;;  %8703 = vst [vmem:[#allocation83_spill] sm:$0xff] %v6964_v59 }
 0xaf6   :  { %2385 = vmatpush1.msra.mxu0 %v6948_v57  ;;  %4227 = vmatpush3.msra.mxu1 %v6951_v29  ;;  %8702 = vst [vmem:[#allocation82_spill] sm:$0xff] %v6961_v42  ;;  %v6968_v29 = vld [vmem:[#allocation11 + $0x78] sm:$0xff]  ;;  %v6974_v57 = vld [vmem:[#allocation11 + $0x68] sm:$0xff] }
 0xaf7   :  { %2386 = vmatprep.subr.mxu0 %v6954_v62  ;;  %4228 = vmatprep.subr.mxu1 %v8417_v39  ;;  %8704 = vst [vmem:[#allocation84_spill] sm:$0xff] %v6968_v29  ;;  %v6971_v62 = vld [vmem:[#allocation11 + $0x88] sm:$0xff]  ;;  %8706 = vst [vmem:[#allocation86_spill] sm:$0xff] %v6974_v57 }
 0xaf8   :  { %2387 = vmatpush1.msra.mxu0 %v6958_v34  ;;  %4229 = vmatpush3.msra.mxu1 %v6961_v42  ;;  %8705 = vst [vmem:[#allocation85_spill] sm:$0xff] %v6971_v62  ;;  %v6978_v42 = vld [vmem:[#allocation11 + $0x60] sm:$0xff]  ;;  %v6984_v34 = vld [vmem:[#allocation11 + $0x50] sm:$0xff] }
 0xaf9   :  { %2388 = vmatprep.subr.mxu0 %v6964_v59  ;;  %4230 = vmatprep.subr.mxu1 %v8417_v39  ;;  %8707 = vst [vmem:[#allocation87_spill] sm:$0xff] %v6978_v42  ;;  %v6981_v59 = vld [vmem:[#allocation11 + $0x70] sm:$0xff]  ;;  %8709 = vst [vmem:[#allocation89_spill] sm:$0xff] %v6984_v34 }
 0xafa   :  { %2389 = vmatpush1.msra.mxu0 %v6968_v29  ;;  %4231 = vmatpush3.msra.mxu1 %v6971_v62  ;;  %8708 = vst [vmem:[#allocation88_spill] sm:$0xff] %v6981_v59  ;;  %v6988_v62 = vld [vmem:[#allocation11 + $0x48] sm:$0xff]  ;;  %v6994_v29 = vld [vmem:[#allocation11 + $0x38] sm:$0xff] }
 0xafb   :  { %2390 = vmatprep.subr.mxu0 %v6974_v57  ;;  %4232 = vmatprep.subr.mxu1 %v8417_v39  ;;  %8710 = vst [vmem:[#allocation90_spill] sm:$0xff] %v6988_v62  ;;  %v6991_v57 = vld [vmem:[#allocation11 + $0x58] sm:$0xff]  ;;  %8712 = vst [vmem:[#allocation92_spill] sm:$0xff] %v6994_v29 }
 0xafc   :  { %2391 = vmatpush1.msra.mxu0 %v6978_v42  ;;  %4233 = vmatpush3.msra.mxu1 %v6981_v59  ;;  %8711 = vst [vmem:[#allocation91_spill] sm:$0xff] %v6991_v57  ;;  %v6998_v59 = vld [vmem:[#allocation11 + $0x30] sm:$0xff]  ;;  %v7004_v42 = vld [vmem:[#allocation11 + $0x20] sm:$0xff] }
 0xafd   :  { %2392 = vmatprep.subr.mxu0 %v6984_v34  ;;  %4234 = vmatprep.subr.mxu1 %v8417_v39  ;;  %8713 = vst [vmem:[#allocation93_spill] sm:$0xff] %v6998_v59  ;;  %v7001_v34 = vld [vmem:[#allocation11 + $0x40] sm:$0xff]  ;;  %8715 = vst [vmem:[#allocation95_spill] sm:$0xff] %v7004_v42 }
 0xafe   :  { %2393 = vmatpush1.msra.mxu0 %v6988_v62  ;;  %4235 = vmatpush3.msra.mxu1 %v6991_v57  ;;  %8714 = vst [vmem:[#allocation94_spill] sm:$0xff] %v7001_v34  ;;  %v7008_v57 = vld [vmem:[#allocation11 + $0x18] sm:$0xff]  ;;  %v7014_v62 = vld [vmem:[#allocation11 + $0x8] sm:$0xff] }
 0xaff   :  { %2394 = vmatprep.subr.mxu0 %v6994_v29  ;;  %4236 = vmatprep.subr.mxu1 %v8417_v39  ;;  %8716 = vst [vmem:[#allocation96_spill] sm:$0xff] %v7008_v57  ;;  %v7011_v29 = vld [vmem:[#allocation11 + $0x28] sm:$0xff]  ;;  %8718 = vst [vmem:[#allocation35_spill] sm:$0xff] %v7014_v62 }
 0xb00   :  { %2395 = vmatpush1.msra.mxu0 %v6998_v59  ;;  %4237 = vmatpush3.msra.mxu1 %v7001_v34  ;;  %8717 = vst [vmem:[#allocation97_spill] sm:$0xff] %v7011_v29  ;;  %v7018_v34 = vld [vmem:[#allocation11] sm:$0xff] }
 0xb01   :  { %2396 = vmatprep.subr.mxu0 %v7004_v42  ;;  %4238 = vmatprep.subr.mxu1 %v8417_v39  ;;  %8719 = vst [vmem:[#allocation98_spill] sm:$0xff] %v7018_v34  ;;  %v7022_v42 = vld [vmem:[#allocation11 + $0x10] sm:$0xff] }
 0xb02   :  { %2397 = vmatpush1.msra.mxu0 %v7008_v57  ;;  %4239 = vmatpush3.msra.mxu1 %v7011_v29  ;;  %8720 = vst [vmem:[#allocation99_spill] sm:$0xff] %v7022_v42  ;;  %v7028_v29 = vld [vmem:[#allocation9 + $0x1f8] sm:$0xff] }
 0xb03   :  { %2398 = vmatprep.subr.mxu0 %v7014_v62  ;;  %4240 = vmatprep.subr.mxu1 %v8417_v39  ;;  %8721 = vst [vmem:[#allocation100_spill] sm:$0xff] %v7028_v29 }
 0xb04   :  { %2399 = vmatpush1.msra.mxu0 %v7018_v34  ;;  %2432 = vmatprep.mubr.f32.mxu0 %v8417_v39 }
 0xb05   :  { %4241 = vmatpush3.msra.mxu1 %v7022_v42  ;;  %4242 = vmatprep.mubr.msk.f32.mxu1 %vm5263_vm1, %v8417_v39 }
 0xb06   :  { %2532 = vmatprep.subr.mxu0 %v6583_v22  ;;  %2603 = vmatprep.subr.mxu1 %v7028_v29 }
 0xba5   :  { %v2143_v62 = vpop.f32.mrf.mxu0 }
 0xba6   :  { %v2144_v57 = vadd.f32 %v2143_v62, %v8638_v51 }
 0xba8   :  { %v2220_v34 = vadd.f32 %v6588_v32, %v2144_v57  ;;  %v2219_v59 = vadd.f32 %v6591_v16, %v2144_v57  ;;  %v2222_v58 = vadd.f32 %v6594_v15, %v2144_v57  ;;  %v2221_v42 = vadd.f32 %v6597_v52, %v2144_v57 }
 0xba9   :  { %v2224_v44 = vadd.f32 %v6600_v21, %v2144_v57  ;;  %v2223_v22 = vadd.f32 %v6603_v10, %v2144_v57  ;;  %v2226_v29 = vadd.f32 %v6606_v33, %v2144_v57  ;;  %v2225_v32 = vadd.f32 %v6609_v63, %v2144_v57 }
 0xbaa   :  { %4550 = vtanh.f32 %v2220_v34 }
 0xbab   :  { %4552 = vtanh.f32 %v2219_v59 }
 0xbac   :  { %4554 = vtanh.f32 %v2222_v58 }
 0xbad   :  { %4556 = vtanh.f32 %v2221_v42 }
 0xbae   :  { %4558 = vtanh.f32 %v2224_v44 }
 0xbaf   :  { %4560 = vtanh.f32 %v2223_v22 }
 0xbb0   :  { %4562 = vtanh.f32 %v2226_v29 }
 0xbb1   :  { %4564 = vtanh.f32 %v2225_v32 }
 0xbb7   :  { %v4551_v16 = vpop.eup %4550 }
 0xbb8   :  { %v4553_v15 = vpop.eup %4552  ;;  %v2236_v52 = vmul.f32 %v6615_v3, %v4551_v16 }
 0xbb9   :  { %v4555_v34 = vpop.eup %4554  ;;  %v2235_v21 = vmul.f32 %v6615_v3, %v4553_v15 }
 0xbba   :  { %v4557_v62 = vpop.eup %4556  ;;  %v2246_v10 = vsel %vm424_vm0, %v2236_v52, 0.0  ;;  %v2238_v58 = vmul.f32 %v6615_v3, %v4555_v34 }
 0xbbb   :  { %v4559_v44 = vpop.eup %4558  ;;  %2247 = vadd.xlane.f32.xlu1 %v2246_v10  ;;  %v2243_v33 = vsel %vm424_vm0, %v2235_v21, 0.0  ;;  %v2237_v63 = vmul.f32 %v6615_v3, %v4557_v62 }
 0xbbc   :  { %v4561_v42 = vpop.eup %4560  ;;  %2244 = vadd.xlane.f32.xlu0 %v2243_v33  ;;  %v2252_v57 = vsel %vm424_vm0, %v2238_v58, 0.0  ;;  %v2240_v29 = vmul.f32 %v6615_v3, %v4559_v44 }
 0xbbd   :  { %v4563_v59 = vpop.eup %4562  ;;  %v2249_v22 = vsel %vm424_vm0, %v2237_v63, 0.0  ;;  %v2239_v32 = vmul.f32 %v6615_v3, %v4561_v42 }
 0xbbe   :  { %v4565_v16 = vpop.eup %4564  ;;  %v2258_v15 = vsel %vm424_vm0, %v2240_v29, 0.0  ;;  %v2242_v52 = vmul.f32 %v6615_v3, %v4563_v59 }
 0xbbf   :  { %2253 = vadd.xlane.f32.xlu1 %v2252_v57  ;;  %v2255_v34 = vsel %vm424_vm0, %v2239_v32, 0.0  ;;  %v2241_v21 = vmul.f32 %v6615_v3, %v4565_v16 }
 0xbc0   :  { %2250 = vadd.xlane.f32.xlu0 %v2249_v22  ;;  %v2264_v62 = vsel %vm424_vm0, %v2242_v52, 0.0 }
 0xbc1   :  { %v2261_v10 = vsel %vm424_vm0, %v2241_v21, 0.0 }
 0xbc3   :  { %2259 = vadd.xlane.f32.xlu1 %v2258_v15 }
 0xbc4   :  { %2256 = vadd.xlane.f32.xlu0 %v2255_v34 }
 0xbc7   :  { %2265 = vadd.xlane.f32.xlu1 %v2264_v62 }
 0xbc8   :  { %2262 = vadd.xlane.f32.xlu0 %v2261_v10 }
 0xc44   :  { %v2248_v58 = vpop.xlane.xlu1 %2247 }
 0xc45   :  { %v2245_v44 = vpop.xlane.xlu0 %2244  ;;  %v2268_v22 = vsel %vm424_vm0, %v2248_v58, -inf }
 0xc46   :  { %v2267_v3 = vsel %vm424_vm0, %v2245_v44, -inf }
 0xc48   :  { %v2254_v33 = vpop.xlane.xlu1 %2253 }
 0xc49   :  { %v2251_v63 = vpop.xlane.xlu0 %2250  ;;  %v2270_v16 = vsel %vm424_vm0, %v2254_v33, -inf }
 0xc4a   :  { %v2269_v62 = vsel %vm424_vm0, %v2251_v63, -inf }
 0xc4c   :  { %v2260_v42 = vpop.xlane.xlu1 %2259 }
 0xc4d   :  { %v2257_v57 = vpop.xlane.xlu0 %2256  ;;  %v2273_v29 = vsel %vm424_vm0, %v2260_v42, -inf }
 0xc4e   :  { %v2271_v59 = vsel %vm424_vm0, %v2257_v57, -inf  ;;  %v2274_v15 = vmax.f32 %v2268_v22, %v2273_v29 }
 0xc4f   :  { %v2272_v52 = vmax.f32 %v2267_v3, %v2271_v59 }
 0xc50   :  { %v2266_v32 = vpop.xlane.xlu1 %2265 }
 0xc51   :  { %v2277_v34 = vsel %vm424_vm0, %v2266_v32, -inf  ;;  %v2263_v21 = vpop.xlane.xlu0 %2262  ;;  %v2279_v48 = vmax.f32 %v2272_v52, %v2274_v15 }
 0xc52   :  { %v2278_v10 = vmax.f32 %v2270_v16, %v2277_v34  ;;  %v2275_v51 = vsel %vm424_vm0, %v2263_v21, -inf }
 0xc53   :  { %v2276_v40 = vmax.f32 %v2269_v62, %v2275_v51 }
 0xc55   :  { %v2280_v19 = vmax.f32 %v2276_v40, %v2278_v10 }
 0xc57   :  { %v2281_v12 = vmax.f32 %v2279_v48, %v2280_v19 }
 0xc59   :  { %v2282_v31 = vsub.f32 %v2245_v44, %v2281_v12  ;;  %v2283_v1 = vsub.f32 %v2248_v58, %v2281_v12  ;;  %v2284_v25 = vsub.f32 %v2251_v63, %v2281_v12  ;;  %v2285_v47 = vsub.f32 %v2254_v33, %v2281_v12 }
 0xc5a   :  { %v2286_v46 = vsub.f32 %v2257_v57, %v2281_v12  ;;  %v2287_v22 = vsub.f32 %v2260_v42, %v2281_v12  ;;  %v2288_v6 = vsub.f32 %v2263_v21, %v2281_v12  ;;  %v2289_v34 = vsub.f32 %v2266_v32, %v2281_v12  ;;  %v7069_v12 = vld [vmem:[#allocation3 + $0x2] sm:$0x3]  ;;  %v7074_v42 = vld [vmem:[#allocation3 + $0x4] sm:$0x3] }
 0xc5b   :  { %v2290_v27 = vmul.f32 1.442695, %v2282_v31  ;;  %v2292_v29 = vmul.f32 1.442695, %v2283_v1  ;;  %v2294_v59 = vmul.f32 1.442695, %v2284_v25 }
 0xc5c   :  { %v2296_v3 = vmul.f32 1.442695, %v2285_v47  ;;  %v2298_v16 = vmul.f32 1.442695, %v2286_v46  ;;  %v2300_v51 = vmul.f32 1.442695, %v2287_v22 }
 0xc5d   :  { %4566 = vpow2.f32 %v2290_v27  ;;  %v2302_v19 = vmul.f32 1.442695, %v2288_v6  ;;  %v2304_v48 = vmul.f32 1.442695, %v2289_v34  ;;  %v7065_v1 = vld [vmem:[#allocation3] sm:$0x3] }
 0xc5e   :  { %4568 = vpow2.f32 %v2292_v29  ;;  %v7080_v22 = vld [vmem:[#allocation3 + $0x6] sm:$0x3] }
 0xc5f   :  { %4570 = vpow2.f32 %v2294_v59 }
 0xc60   :  { %4572 = vpow2.f32 %v2296_v3 }
 0xc61   :  { %4574 = vpow2.f32 %v2298_v16 }
 0xc62   :  { %4576 = vpow2.f32 %v2300_v51 }
 0xc63   :  { %4578 = vpow2.f32 %v2302_v19 }
 0xc64   :  { %4580 = vpow2.f32 %v2304_v48 }
 0xc6a   :  { %v4567_v40 = vpop.eup %4566 }
 0xc6b   :  { %v4569_v31 = vpop.eup %4568  ;;  %v2306_v25 = vsel %vm424_vm0, %v4567_v40, 0.0  ;;  %v2322_v27 = vmul.f32 %v7065_v1, %v4567_v40 }
 0xc6c   :  { %v4571_v47 = vpop.eup %4570  ;;  %v2307_v46 = vsel %vm424_vm0, %v4569_v31, 0.0  ;;  %v2323_v58 = vmul.f32 %v7069_v12, %v4569_v31 }
 0xc6d   :  { %v4573_v6 = vpop.eup %4572  ;;  %v2308_v44 = vadd.f32 %v2307_v46, %v2306_v25  ;;  %v2330_v33 = vsel %vm424_vm0, %v2322_v27, 0.0  ;;  %v2309_v63 = vsel %vm424_vm0, %v4571_v47, 0.0  ;;  %v2324_v57 = vmul.f32 %v7074_v42, %v4571_v47  ;;  %v7086_v27 = vld [vmem:[#allocation3 + $0x8] sm:$0x3] }
 0xc6e   :  { %v2331_v32 = vsel %vm424_vm0, %v2323_v58, 0.0  ;;  %v4575_v15 = vpop.eup %4574  ;;  %v2311_v62 = vsel %vm424_vm0, %v4573_v6, 0.0  ;;  %v2325_v3 = vmul.f32 %v7080_v22, %v4573_v6 }
 0xc6f   :  { %v2310_v52 = vadd.f32 %v2309_v63, %v2308_v44  ;;  %v2332_v21 = vadd.f32 %v2331_v32, %v2330_v33  ;;  %v4577_v10 = vpop.eup %4576  ;;  %v2313_v59 = vsel %vm424_vm0, %v4575_v15, 0.0  ;;  %v2333_v16 = vsel %vm424_vm0, %v2324_v57, 0.0  ;;  %v7091_v63 = vld [vmem:[#allocation3 + $0xa] sm:$0x3] }
 0xc70   :  { %v4579_v34 = vpop.eup %4578  ;;  %v2315_v48 = vsel %vm424_vm0, %v4577_v10, 0.0  ;;  %v2326_v47 = vmul.f32 %v7086_v27, %v4575_v15  ;;  %v2335_v46 = vsel %vm424_vm0, %v2325_v3, 0.0  ;;  %v2327_v57 = vmul.f32 %v7091_v63, %v4577_v10 }
 0xc71   :  { %v2312_v29 = vadd.f32 %v2311_v62, %v2310_v52  ;;  %v2334_v19 = vadd.f32 %v2333_v16, %v2332_v21  ;;  %v4581_v40 = vpop.eup %4580  ;;  %v2317_v25 = vsel %vm424_vm0, %v4579_v34, 0.0  ;;  %v7095_v21 = vld [vmem:[#allocation3 + $0xc] sm:$0x3] }
 0xc72   :  { %v2319_v6 = vsel %vm424_vm0, %v4581_v40, 0.0  ;;  %v2337_v32 = vsel %vm424_vm0, %v2326_v47, 0.0  ;;  %v2328_v62 = vmul.f32 %v7095_v21, %v4579_v34  ;;  %v2339_v15 = vsel %vm424_vm0, %v2327_v57, 0.0  ;;  %v8747_v34 = vld [vmem:[#allocation48_spill] sm:$0xff]  ;;  %v8750_v47 = vld [vmem:[#allocation50_spill] sm:$0xff]  ;;  %v8756_v57 = vld [vmem:[#allocation53_spill] sm:$0xff] }
 0xc73   :  { %v2314_v51 = vadd.f32 %v2313_v59, %v2312_v29  ;;  %v2336_v44 = vadd.f32 %v2335_v46, %v2334_v19  ;;  %v7099_v59 = vld [vmem:[#allocation3 + $0xe] sm:$0x3]  ;;  %v8751_v46 = vld [vmem:[#allocation32_spill] sm:$0xff] }
 0xc74   :  { %v2329_v3 = vmul.f32 %v7099_v59, %v4581_v40  ;;  %v2341_v16 = vsel %vm424_vm0, %v2328_v62, 0.0  ;;  %v8748_v40 = vld [vmem:[#allocation30_spill] sm:$0xff]  ;;  %v8759_v62 = vld [vmem:[#allocation56_spill] sm:$0xff] }
 0xc75   :  { %v2316_v31 = vadd.f32 %v2315_v48, %v2314_v51  ;;  %v2338_v52 = vadd.f32 %v2337_v32, %v2336_v44  ;;  %v8753_v44 = vld [vmem:[#allocation31_spill] sm:$0xff]  ;;  %v8757_v32 = vld [vmem:[#allocation54_spill] sm:$0xff] }
 0xc76   :  { %v2343_v10 = vsel %vm424_vm0, %v2329_v3, 0.0 }
 0xc77   :  { %v2318_v58 = vadd.f32 %v2317_v25, %v2316_v31  ;;  %v2340_v29 = vadd.f32 %v2339_v15, %v2338_v52  ;;  %v8749_v25 = vld [vmem:[#allocation49_spill] sm:$0xff]  ;;  %v8758_v52 = vld [vmem:[#allocation55_spill] sm:$0xff]  ;;  %v2214_v15 = vpop.f32.mrf.mxu1 }
 0xc79   :  { %v2320_v33 = vadd.f32 %v2319_v6, %v2318_v58  ;;  %v2342_v51 = vadd.f32 %v2341_v16, %v2340_v29  ;;  %v8752_v58 = vld [vmem:[#allocation33_spill] sm:$0xff]  ;;  %v8754_v6 = vld [vmem:[#allocation51_spill] sm:$0xff]  ;;  %v2347_v29 = vld [vmem:[#allocation8 + $0x18] sm:$0x3f]  ;;  %v2145_v16 = vpop.f32.mrf.mxu0 }
 0xc7a   :  { %v2356_v3 = vrot.slane %v2347_v29, %v5830_v28 }
 0xc7b   :  { %4582 = vrcp.f32 %v2320_v33  ;;  %v2344_v19 = vadd.f32 %v2343_v10, %v2342_v51  ;;  %v8755_v33 = vld [vmem:[#allocation52_spill] sm:$0xff]  ;;  %v2216_v51 = vpop.f32.mrf.mxu1 }
 0xc88   :  { %v4583_v48 = vpop.eup %4582 }
 0xc89   :  { %v2345_v31 = vmul.f32 %v4583_v48, %v2344_v19  ;;  %v2146_v48 = vadd.f32 %v2145_v16, %v5834_v35  ;;  %v8779_v16 = vld [vmem:[#allocation76_spill] sm:$0xff] }
 0xc8b   :  { %2433 = vmatmul.mubr.f32.vlgmr.msra.gmra.mxu0 %v2345_v31  ;;  %4243 = vmatmul.mubr.f32.vlgmr.msra.gmra.mxu1 %v2345_v31 }
 0xc8c   :  { %2533 = vmatpush1.msra.mxu0 %v6665_v38  ;;  %2604 = vmatpush1.msra.mxu1 %v6668_v45  ;;  %v8722_v38 = vld [vmem:[#allocation17_spill] sm:$0xff]  ;;  %v8723_v45 = vld [vmem:[#allocation36_spill] sm:$0xff] }
 0xc8d   :  { %2534 = vmatprep.subr.mxu0 %v6671_v54  ;;  %2605 = vmatprep.subr.mxu1 %v6674_v2  ;;  %v8724_v54 = vld [vmem:[#allocation18_spill] sm:$0xff]  ;;  %v8725_v2 = vld [vmem:[#allocation37_spill] sm:$0xff] }
 0xc8e   :  { %2535 = vmatpush1.msra.mxu0 %v6677_v30  ;;  %2606 = vmatpush1.msra.mxu1 %v6680_v0  ;;  %v8726_v30 = vld [vmem:[#allocation19_spill] sm:$0xff]  ;;  %v8727_v0 = vld [vmem:[#allocation38_spill] sm:$0xff] }
 0xc8f   :  { %2536 = vmatprep.subr.mxu0 %v6683_v7  ;;  %2607 = vmatprep.subr.mxu1 %v6686_v26  ;;  %v8728_v7 = vld [vmem:[#allocation20_spill] sm:$0xff]  ;;  %v8729_v26 = vld [vmem:[#allocation39_spill] sm:$0xff] }
 0xc90   :  { %2537 = vmatpush1.msra.mxu0 %v6689_v14  ;;  %2608 = vmatpush1.msra.mxu1 %v6692_v24  ;;  %v8730_v14 = vld [vmem:[#allocation21_spill] sm:$0xff]  ;;  %v8731_v24 = vld [vmem:[#allocation40_spill] sm:$0xff] }
 0xc91   :  { %2538 = vmatprep.subr.mxu0 %v6695_v11  ;;  %2609 = vmatprep.subr.mxu1 %v6698_v60  ;;  %v8732_v11 = vld [vmem:[#allocation22_spill] sm:$0xff]  ;;  %v8733_v60 = vld [vmem:[#allocation41_spill] sm:$0xff] }
 0xc92   :  { %2539 = vmatpush1.msra.mxu0 %v6701_v4  ;;  %2610 = vmatpush1.msra.mxu1 %v6704_v43  ;;  %v8734_v4 = vld [vmem:[#allocation23_spill] sm:$0xff]  ;;  %v8735_v43 = vld [vmem:[#allocation42_spill] sm:$0xff] }
 0xc93   :  { %2540 = vmatprep.subr.mxu0 %v6707_v5  ;;  %2611 = vmatprep.subr.mxu1 %v6710_v18  ;;  %v8736_v5 = vld [vmem:[#allocation24_spill] sm:$0xff]  ;;  %v8737_v18 = vld [vmem:[#allocation43_spill] sm:$0xff] }
 0xc94   :  { %2541 = vmatpush1.msra.mxu0 %v6713_v41  ;;  %2612 = vmatpush1.msra.mxu1 %v6716_v53  ;;  %v8738_v41 = vld [vmem:[#allocation25_spill] sm:$0xff]  ;;  %v8739_v53 = vld [vmem:[#allocation44_spill] sm:$0xff] }
 0xc95   :  { %2542 = vmatprep.subr.mxu0 %v6719_v36  ;;  %2613 = vmatprep.subr.mxu1 %v6722_v23  ;;  %v8740_v36 = vld [vmem:[#allocation26_spill] sm:$0xff]  ;;  %v8741_v23 = vld [vmem:[#allocation45_spill] sm:$0xff] }
 0xc96   :  { %2543 = vmatpush1.msra.mxu0 %v6725_v61  ;;  %2614 = vmatpush1.msra.mxu1 %v6728_v20  ;;  %v8742_v61 = vld [vmem:[#allocation27_spill] sm:$0xff]  ;;  %v8743_v20 = vld [vmem:[#allocation46_spill] sm:$0xff] }
 0xc97   :  { %2544 = vmatprep.subr.mxu0 %v6731_v13  ;;  %2615 = vmatprep.subr.mxu1 %v6734_v17  ;;  %v8744_v13 = vld [vmem:[#allocation28_spill] sm:$0xff]  ;;  %v8745_v17 = vld [vmem:[#allocation47_spill] sm:$0xff] }
 0xc98   :  { %2545 = vmatpush1.msra.mxu0 %v6737_v8  ;;  %2616 = vmatpush1.msra.mxu1 %v8722_v38  ;;  %v8746_v8 = vld [vmem:[#allocation29_spill] sm:$0xff]  ;;  %v2364_v38 = vcombine.high %v2356_v3, %v2356_v3 }
 0xc99   :  { %2546 = vmatprep.subr.mxu0 %v8723_v45  ;;  %2617 = vmatprep.subr.mxu1 %v8724_v54 }
 0xc9a   :  { %2547 = vmatpush1.msra.mxu0 %v8725_v2  ;;  %2618 = vmatpush1.msra.mxu1 %v8726_v30 }
 0xc9b   :  { %2548 = vmatprep.subr.mxu0 %v8727_v0  ;;  %2619 = vmatprep.subr.mxu1 %v8728_v7  ;;  %v2215_v7 = vadd.f32 %v2214_v15, %v5840_v49  ;;  %v8776_v15 = vld [vmem:[#allocation73_spill] sm:$0xff] }
 0xc9c   :  { %2549 = vmatpush1.msra.mxu0 %v8729_v26  ;;  %2620 = vmatpush1.msra.mxu1 %v8730_v14 }
 0xc9d   :  { %2550 = vmatprep.subr.mxu0 %v8731_v24  ;;  %2621 = vmatprep.subr.mxu1 %v8732_v11 }
 0xc9e   :  { %2551 = vmatpush1.msra.mxu0 %v8733_v60  ;;  %2622 = vmatpush1.msra.mxu1 %v8734_v4  ;;  %v2349_v60 = vcombine.high %v2347_v29, %v2347_v29  ;;  %v8777_v29 = vld [vmem:[#allocation74_spill] sm:$0xff] }
 0xc9f   :  { %2552 = vmatprep.subr.mxu0 %v8735_v43  ;;  %2623 = vmatprep.subr.mxu1 %v8736_v5 }
 0xca0   :  { %2553 = vmatpush1.msra.mxu0 %v8737_v18  ;;  %2624 = vmatpush1.msra.mxu1 %v8738_v41  ;;  %v2363_v43 = vrot.slane %v2349_v60, %v5830_v28  ;;  %v2217_v18 = vadd.f32 %v2216_v51, %v5845_v9  ;;  %v8780_v51 = vld [vmem:[#allocation77_spill] sm:$0xff] }
 0xca1   :  { %2554 = vmatprep.subr.mxu0 %v8739_v53  ;;  %2625 = vmatprep.subr.mxu1 %v8740_v36  ;;  %v8796_v60 = vld [vmem:[#allocation93_spill] sm:$0xff] }
 0xca2   :  { %2555 = vmatpush1.msra.mxu0 %v8741_v23  ;;  %2626 = vmatpush1.msra.mxu1 %v8742_v61 }
 0xca3   :  { %2556 = vmatprep.subr.mxu0 %v8743_v20  ;;  %2627 = vmatprep.subr.mxu1 %v8744_v13 }
 0xca4   :  { %2557 = vmatpush1.msra.mxu0 %v8745_v17  ;;  %2628 = vmatpush1.msra.mxu1 %v8746_v8 }
 0xca5   :  { %2558 = vmatprep.subr.mxu0 %v8747_v34  ;;  %2629 = vmatprep.subr.mxu1 %v8748_v40  ;;  %v8760_v40 = vld [vmem:[#allocation57_spill] sm:$0xff] }
 0xca6   :  { %2559 = vmatpush1.msra.mxu0 %v8749_v25  ;;  %2630 = vmatpush1.msra.mxu1 %v8750_v47  ;;  %v8761_v25 = vld [vmem:[#allocation58_spill] sm:$0xff]  ;;  %v8763_v47 = vld [vmem:[#allocation60_spill] sm:$0xff] }
 0xca7   :  { %2560 = vmatprep.subr.mxu0 %v8751_v46  ;;  %2631 = vmatprep.subr.mxu1 %v8752_v58  ;;  %v8764_v46 = vld [vmem:[#allocation61_spill] sm:$0xff]  ;;  %v8765_v58 = vld [vmem:[#allocation62_spill] sm:$0xff] }
 0xca8   :  { %2561 = vmatpush1.msra.mxu0 %v8753_v44  ;;  %2632 = vmatpush1.msra.mxu1 %v8754_v6  ;;  %v8769_v44 = vld [vmem:[#allocation66_spill] sm:$0xff]  ;;  %v8770_v6 = vld [vmem:[#allocation67_spill] sm:$0xff] }
 0xca9   :  { %2562 = vmatprep.subr.mxu0 %v8755_v33  ;;  %2633 = vmatprep.subr.mxu1 %v8756_v57  ;;  %v8771_v33 = vld [vmem:[#allocation68_spill] sm:$0xff]  ;;  %v8772_v57 = vld [vmem:[#allocation69_spill] sm:$0xff] }
 0xcaa   :  { %2563 = vmatpush1.msra.mxu0 %v8757_v32  ;;  %2596 = vmatprep.mubr.f32.mxu0 %v8417_v39  ;;  %v8773_v32 = vld [vmem:[#allocation70_spill] sm:$0xff] }
 0xcab   :  { %2634 = vmatpush1.msra.mxu1 %v8758_v52  ;;  %2667 = vmatprep.mubr.f32.mxu1 %v8417_v39  ;;  %v8774_v52 = vld [vmem:[#allocation71_spill] sm:$0xff] }
 0xcac   :  { %2823 = vmatprep.subr.mxu0 %v8759_v62  ;;  %4245 = vmatprep.subr.mxu1 %v8417_v39  ;;  %v8775_v62 = vld [vmem:[#allocation72_spill] sm:$0xff] }
 0xd4b   :  { %v2434_v10 = vpop.f32.mrf.mxu0  ;;  %v2505_v19 = vpop.f32.mrf.mxu1 }
 0xd4c   :  { %v2435_v31 = vadd.f32 %v2434_v10, %v2356_v3  ;;  %v2506_v53 = vadd.f32 %v2505_v19, %v2363_v43  ;;  %v8778_v3 = vld [vmem:[#allocation75_spill] sm:$0xff]  ;;  %v8781_v10 = vld [vmem:[#allocation78_spill] sm:$0xff] }
 0xd4d   :  { %v2436_v45 = vpop.f32.mrf.mxu0  ;;  %v4244_v54 = vpop.f32.mrf.mxu1  ;;  %v8782_v19 = vld [vmem:[#allocation79_spill] sm:$0xff] }
 0xd4e   :  { %v2509_v2 = vadd.f32 %v2435_v31, %v2146_v48  ;;  %v2437_v0 = vadd.f32 %v2436_v45, %v2364_v38  ;;  %v8783_v48 = vld [vmem:[#allocation80_spill] sm:$0xff]  ;;  %v8784_v31 = vld [vmem:[#allocation81_spill] sm:$0xff]  ;;  %v8785_v38 = vld [vmem:[#allocation82_spill] sm:$0xff] }
 0xd4f   :  { %v8786_v45 = vld [vmem:[#allocation83_spill] sm:$0xff]  ;;  %v8787_v54 = vld [vmem:[#allocation84_spill] sm:$0xff] }
 0xd50   :  { %v3926_v30 = vmul.f32 -1.442695, %v2509_v2  ;;  %v2516_v26 = vadd.f32 %v2437_v0, %v2215_v7  ;;  %v8788_v2 = vld [vmem:[#allocation85_spill] sm:$0xff]  ;;  %v8790_v0 = vld [vmem:[#allocation87_spill] sm:$0xff]  ;;  %v8791_v7 = vld [vmem:[#allocation88_spill] sm:$0xff] }
 0xd51   :  { %v8798_v43 = vld [vmem:[#allocation95_spill] sm:$0xff] }
 0xd52   :  { %4584 = vpow2.f32 %v3926_v30  ;;  %v3927_v14 = vmul.f32 -1.442695, %v2516_v26  ;;  %v8789_v30 = vld [vmem:[#allocation86_spill] sm:$0xff]  ;;  %v8792_v26 = vld [vmem:[#allocation89_spill] sm:$0xff] }
 0xd54   :  { %4586 = vpow2.f32 %v3927_v14  ;;  %v8793_v14 = vld [vmem:[#allocation90_spill] sm:$0xff] }
 0xd5f   :  { %v4585_v24 = vpop.eup %4584 }
 0xd60   :  { %v2513_v11 = vadd.f32 1.0, %v4585_v24  ;;  %v8794_v24 = vld [vmem:[#allocation91_spill] sm:$0xff] }
 0xd61   :  { %v4587_v4 = vpop.eup %4586 }
 0xd62   :  { %4588 = vrcp.f32 %v2513_v11  ;;  %v2520_v5 = vadd.f32 1.0, %v4587_v4  ;;  %v8795_v11 = vld [vmem:[#allocation92_spill] sm:$0xff]  ;;  %v8797_v4 = vld [vmem:[#allocation94_spill] sm:$0xff] }
 0xd64   :  { %4590 = vrcp.f32 %v2520_v5  ;;  %v8799_v5 = vld [vmem:[#allocation96_spill] sm:$0xff] }
 0xd6f   :  { %v4589_v41 = vpop.eup %4588 }
 0xd70   :  { %v2523_v36 = vmul.f32 %v4589_v41, %v2217_v18  ;;  %v8800_v18 = vld [vmem:[#allocation97_spill] sm:$0xff]  ;;  %v8801_v41 = vld [vmem:[#allocation35_spill] sm:$0xff] }
 0xd71   :  { %v4591_v61 = vpop.eup %4590 }
 0xd72   :  { %v2524_v23 = vadd.f32 %v2523_v36, %v2506_v53  ;;  %v2526_v20 = vsub.f32 1.0, %v4591_v61  ;;  %v2528_v8 = vmul.f32 %v4591_v61, %v6863_v50  ;;  %v8762_v50 = vld [vmem:[#allocation59_spill] sm:$0xff]  ;;  %v8802_v53 = vld [vmem:[#allocation98_spill] sm:$0xff]  ;;  %v8804_v61 = vld [vmem:[#allocation100_spill] sm:$0xff] }
 0xd73   :  { %v8803_v36 = vld [vmem:[#allocation99_spill] sm:$0xff] }
 0xd74   :  { %4592 = vtanh.f32 %v2524_v23  ;;  %v7246_v23 = vld [vmem:[#allocation9 + $0x1e8] sm:$0xff] }
 0xd81   :  { %v4593_v13 = vpop.eup %4592 }
 0xd82   :  { %v2527_v17 = vmul.f32 %v4593_v13, %v2526_v20  ;;  %v8805_v13 = vld [vmem:[#allocation34_spill] sm:$0xff] }
 0xd84   :  { %v7176_v34 = vadd.f32 %v2528_v8, %v2527_v17  ;;  %v7251_v8 = vld [vmem:[#allocation6 + $0x2] sm:$0x3] }
 0xd86   :  { %2531 = vst [vmem:[#allocation12 + $0x8] sm:$0x3] %v7176_v34  ;;  %2597 = vmatmul.mubr.f32.vlgmr.msra.gmra.mxu0 %v7176_v34  ;;  %2668 = vmatmul.mubr.f32.vlgmr.msra.gmra.mxu1 %v7176_v34 }
 0xd87   :  { %2824 = vmatpush1.msra.mxu0 %v6868_v56  ;;  %4246 = vmatpush3.msra.mxu1 %v6871_v37  ;;  %v8766_v56 = vld [vmem:[#allocation63_spill] sm:$0xff]  ;;  %v8767_v37 = vld [vmem:[#allocation64_spill] sm:$0xff] }
 0xd88   :  { %2825 = vmatprep.subr.mxu0 %v6874_v55  ;;  %4247 = vmatprep.subr.mxu1 %v8417_v39  ;;  %v8768_v55 = vld [vmem:[#allocation65_spill] sm:$0xff] }
 0xd89   :  { %2826 = vmatpush1.msra.mxu0 %v8760_v40  ;;  %4248 = vmatpush3.msra.mxu1 %v8761_v25  ;;  %v7254_v25 = vld [vmem:[#allocation6] sm:$0x3] }
 0xd8a   :  { %2827 = vmatprep.subr.mxu0 %v8762_v50  ;;  %4249 = vmatprep.subr.mxu1 %v8417_v39 }
 0xd8b   :  { %2828 = vmatpush1.msra.mxu0 %v8763_v47  ;;  %4250 = vmatpush3.msra.mxu1 %v8764_v46  ;;  %v7257_v47 = vld [vmem:[#allocation6 + $0x6] sm:$0x3] }
 0xd8c   :  { %2829 = vmatprep.subr.mxu0 %v8765_v58  ;;  %4251 = vmatprep.subr.mxu1 %v8417_v39  ;;  %v7260_v58 = vld [vmem:[#allocation6 + $0x4] sm:$0x3] }
 0xd8d   :  { %2830 = vmatpush1.msra.mxu0 %v8766_v56  ;;  %4252 = vmatpush3.msra.mxu1 %v8767_v37  ;;  %v7263_v37 = vld [vmem:[#allocation6 + $0xa] sm:$0x3] }
 0xd8e   :  { %2831 = vmatprep.subr.mxu0 %v8768_v55  ;;  %4253 = vmatprep.subr.mxu1 %v8417_v39 }
 0xd8f   :  { %2832 = vmatpush1.msra.mxu0 %v8769_v44  ;;  %4254 = vmatpush3.msra.mxu1 %v8770_v6  ;;  %v7266_v44 = vld [vmem:[#allocation6 + $0x8] sm:$0x3] }
 0xd90   :  { %2833 = vmatprep.subr.mxu0 %v8771_v33  ;;  %4255 = vmatprep.subr.mxu1 %v8417_v39  ;;  %v7269_v33 = vld [vmem:[#allocation6 + $0xe] sm:$0x3] }
 0xd91   :  { %2834 = vmatpush1.msra.mxu0 %v8772_v57  ;;  %4256 = vmatpush3.msra.mxu1 %v8773_v32  ;;  %v7272_v32 = vld [vmem:[#allocation6 + $0xc] sm:$0x3] }
 0xd92   :  { %2835 = vmatprep.subr.mxu0 %v8774_v52  ;;  %4257 = vmatprep.subr.mxu1 %v8417_v39 }
 0xd93   :  { %2836 = vmatpush1.msra.mxu0 %v8775_v62  ;;  %4258 = vmatpush3.msra.mxu1 %v8776_v15 }
 0xd94   :  { %2837 = vmatprep.subr.mxu0 %v8777_v29  ;;  %4259 = vmatprep.subr.mxu1 %v8417_v39  ;;  %v7278_v29 = vld [vmem:[%s7967_s5] ss:$0 sm:$0xff] }
 0xd95   :  { %2838 = vmatpush1.msra.mxu0 %v8778_v3  ;;  %4260 = vmatpush3.msra.mxu1 %v8779_v16 }
 0xd96   :  { %2839 = vmatprep.subr.mxu0 %v8780_v51  ;;  %4261 = vmatprep.subr.mxu1 %v8417_v39 }
 0xd97   :  { %2840 = vmatpush1.msra.mxu0 %v8781_v10  ;;  %4262 = vmatpush3.msra.mxu1 %v8782_v19 }
 0xd98   :  { %2841 = vmatprep.subr.mxu0 %v8783_v48  ;;  %4263 = vmatprep.subr.mxu1 %v8417_v39 }
 0xd99   :  { %2842 = vmatpush1.msra.mxu0 %v8784_v31  ;;  %4264 = vmatpush3.msra.mxu1 %v8785_v38 }
 0xd9a   :  { %2843 = vmatprep.subr.mxu0 %v8786_v45  ;;  %4265 = vmatprep.subr.mxu1 %v8417_v39 }
 0xd9b   :  { %2844 = vmatpush1.msra.mxu0 %v8787_v54  ;;  %4266 = vmatpush3.msra.mxu1 %v8788_v2 }
 0xd9c   :  { %2845 = vmatprep.subr.mxu0 %v8789_v30  ;;  %4267 = vmatprep.subr.mxu1 %v8417_v39 }
 0xd9d   :  { %2846 = vmatpush1.msra.mxu0 %v8790_v0  ;;  %4268 = vmatpush3.msra.mxu1 %v8791_v7 }
 0xd9e   :  { %2847 = vmatprep.subr.mxu0 %v8792_v26  ;;  %4269 = vmatprep.subr.mxu1 %v8417_v39 }
 0xd9f   :  { %2848 = vmatpush1.msra.mxu0 %v8793_v14  ;;  %4270 = vmatpush3.msra.mxu1 %v8794_v24 }
 0xda0   :  { %2849 = vmatprep.subr.mxu0 %v8795_v11  ;;  %4271 = vmatprep.subr.mxu1 %v8417_v39 }
 0xda1   :  { %2850 = vmatpush1.msra.mxu0 %v8796_v60  ;;  %4272 = vmatpush3.msra.mxu1 %v8797_v4 }
 0xda2   :  { %2851 = vmatprep.subr.mxu0 %v8798_v43  ;;  %4273 = vmatprep.subr.mxu1 %v8417_v39 }
 0xda3   :  { %2852 = vmatpush1.msra.mxu0 %v8799_v5  ;;  %4274 = vmatpush3.msra.mxu1 %v8800_v18 }
 0xda4   :  { %2853 = vmatprep.subr.mxu0 %v8801_v41  ;;  %4275 = vmatprep.subr.mxu1 %v8417_v39 }
 0xda5   :  { %2854 = vmatpush1.msra.mxu0 %v8802_v53  ;;  %2887 = vmatprep.mubr.f32.mxu0 %v8417_v39 }
 0xda6   :  { %4276 = vmatpush3.msra.mxu1 %v8803_v36  ;;  %4277 = vmatprep.mubr.msk.f32.mxu1 %vm5263_vm1, %v8417_v39 }
 0xda7   :  { %2987 = vmatprep.subr.mxu0 %v7246_v23  ;;  %3058 = vmatprep.subr.mxu1 %v8804_v61 }
 0xe46   :  { %v2598_v20 = vpop.f32.mrf.mxu0 }
 0xe47   :  { %v2599_v17 = vadd.f32 %v2598_v20, %v8805_v13 }
 0xe49   :  { %v2675_v40 = vadd.f32 %v7251_v8, %v2599_v17  ;;  %v2674_v50 = vadd.f32 %v7254_v25, %v2599_v17  ;;  %v2677_v46 = vadd.f32 %v7257_v47, %v2599_v17  ;;  %v2676_v56 = vadd.f32 %v7260_v58, %v2599_v17 }
 0xe4a   :  { %v2679_v55 = vadd.f32 %v7263_v37, %v2599_v17  ;;  %v2678_v6 = vadd.f32 %v7266_v44, %v2599_v17  ;;  %v2681_v57 = vadd.f32 %v7269_v33, %v2599_v17  ;;  %v2680_v52 = vadd.f32 %v7272_v32, %v2599_v17 }
 0xe4b   :  { %4594 = vtanh.f32 %v2675_v40 }
 0xe4c   :  { %4596 = vtanh.f32 %v2674_v50 }
 0xe4d   :  { %4598 = vtanh.f32 %v2677_v46 }
 0xe4e   :  { %4600 = vtanh.f32 %v2676_v56 }
 0xe4f   :  { %4602 = vtanh.f32 %v2679_v55 }
 0xe50   :  { %4604 = vtanh.f32 %v2678_v6 }
 0xe51   :  { %4606 = vtanh.f32 %v2681_v57 }
 0xe52   :  { %4608 = vtanh.f32 %v2680_v52 }
 0xe58   :  { %v4595_v62 = vpop.eup %4594 }
 0xe59   :  { %v4597_v15 = vpop.eup %4596  ;;  %v2691_v3 = vmul.f32 %v7278_v29, %v4595_v62 }
 0xe5a   :  { %v4599_v16 = vpop.eup %4598  ;;  %v2690_v51 = vmul.f32 %v7278_v29, %v4597_v15 }
 0xe5b   :  { %v4601_v10 = vpop.eup %4600  ;;  %v2701_v19 = vsel %vm424_vm0, %v2691_v3, 0.0  ;;  %v2693_v48 = vmul.f32 %v7278_v29, %v4599_v16 }
 0xe5c   :  { %v4603_v31 = vpop.eup %4602  ;;  %2702 = vadd.xlane.f32.xlu1 %v2701_v19  ;;  %v2698_v38 = vsel %vm424_vm0, %v2690_v51, 0.0  ;;  %v2692_v45 = vmul.f32 %v7278_v29, %v4601_v10 }
 0xe5d   :  { %v4605_v54 = vpop.eup %4604  ;;  %2699 = vadd.xlane.f32.xlu0 %v2698_v38  ;;  %v2707_v2 = vsel %vm424_vm0, %v2693_v48, 0.0  ;;  %v2695_v30 = vmul.f32 %v7278_v29, %v4603_v31 }
 0xe5e   :  { %v4607_v0 = vpop.eup %4606  ;;  %v2704_v7 = vsel %vm424_vm0, %v2692_v45, 0.0  ;;  %v2694_v26 = vmul.f32 %v7278_v29, %v4605_v54 }
 0xe5f   :  { %v4609_v14 = vpop.eup %4608  ;;  %v2713_v24 = vsel %vm424_vm0, %v2695_v30, 0.0  ;;  %v2697_v11 = vmul.f32 %v7278_v29, %v4607_v0 }
 0xe60   :  { %2708 = vadd.xlane.f32.xlu1 %v2707_v2  ;;  %v2710_v60 = vsel %vm424_vm0, %v2694_v26, 0.0  ;;  %v2696_v4 = vmul.f32 %v7278_v29, %v4609_v14 }
 0xe61   :  { %2705 = vadd.xlane.f32.xlu0 %v2704_v7  ;;  %v2719_v43 = vsel %vm424_vm0, %v2697_v11, 0.0 }
 0xe62   :  { %v2716_v5 = vsel %vm424_vm0, %v2696_v4, 0.0 }
 0xe64   :  { %2714 = vadd.xlane.f32.xlu1 %v2713_v24 }
 0xe65   :  { %2711 = vadd.xlane.f32.xlu0 %v2710_v60 }
 0xe68   :  { %2720 = vadd.xlane.f32.xlu1 %v2719_v43 }
 0xe69   :  { %2717 = vadd.xlane.f32.xlu0 %v2716_v5 }
 0xee5   :  { %v2703_v18 = vpop.xlane.xlu1 %2702 }
 0xee6   :  { %v2700_v41 = vpop.xlane.xlu0 %2699  ;;  %v2723_v50 = vsel %vm424_vm0, %v2703_v18, -inf }
 0xee7   :  { %v2722_v46 = vsel %vm424_vm0, %v2700_v41, -inf }
 0xee9   :  { %v2709_v53 = vpop.xlane.xlu1 %2708 }
 0xeea   :  { %v2706_v36 = vpop.xlane.xlu0 %2705  ;;  %v2725_v55 = vsel %vm424_vm0, %v2709_v53, -inf }
 0xeeb   :  { %v2724_v15 = vsel %vm424_vm0, %v2706_v36, -inf }
 0xeed   :  { %v2715_v61 = vpop.xlane.xlu1 %2714 }
 0xeee   :  { %v2712_v20 = vpop.xlane.xlu0 %2711  ;;  %v2728_v17 = vsel %vm424_vm0, %v2715_v61, -inf }
 0xeef   :  { %v2726_v40 = vsel %vm424_vm0, %v2712_v20, -inf  ;;  %v2729_v6 = vmax.f32 %v2723_v50, %v2728_v17 }
 0xef0   :  { %v2727_v57 = vmax.f32 %v2722_v46, %v2726_v40 }
 0xef1   :  { %v2721_v56 = vpop.xlane.xlu1 %2720 }
 0xef2   :  { %v2732_v52 = vsel %vm424_vm0, %v2721_v56, -inf  ;;  %v2718_v62 = vpop.xlane.xlu0 %2717  ;;  %v2734_v10 = vmax.f32 %v2727_v57, %v2729_v6 }
 0xef3   :  { %v2733_v3 = vmax.f32 %v2725_v55, %v2732_v52  ;;  %v2730_v16 = vsel %vm424_vm0, %v2718_v62, -inf }
 0xef4   :  { %v2731_v51 = vmax.f32 %v2724_v15, %v2730_v16 }
 0xef6   :  { %v2735_v19 = vmax.f32 %v2731_v51, %v2733_v3 }
 0xef8   :  { %v2736_v48 = vmax.f32 %v2734_v10, %v2735_v19 }
 0xefa   :  { %v2737_v31 = vsub.f32 %v2700_v41, %v2736_v48  ;;  %v2738_v38 = vsub.f32 %v2703_v18, %v2736_v48  ;;  %v2739_v45 = vsub.f32 %v2706_v36, %v2736_v48  ;;  %v2740_v54 = vsub.f32 %v2709_v53, %v2736_v48 }
 0xefb   :  { %v2741_v2 = vsub.f32 %v2712_v20, %v2736_v48  ;;  %v2742_v26 = vsub.f32 %v2715_v61, %v2736_v48  ;;  %v2743_v24 = vsub.f32 %v2718_v62, %v2736_v48  ;;  %v2744_v60 = vsub.f32 %v2721_v56, %v2736_v48 }
 0xefc   :  { %v2745_v30 = vmul.f32 1.442695, %v2737_v31  ;;  %v2747_v0 = vmul.f32 1.442695, %v2738_v38  ;;  %v2749_v7 = vmul.f32 1.442695, %v2739_v45 }
 0xefd   :  { %v2751_v14 = vmul.f32 1.442695, %v2740_v54  ;;  %v2753_v11 = vmul.f32 1.442695, %v2741_v2  ;;  %v2755_v4 = vmul.f32 1.442695, %v2742_v26 }
 0xefe   :  { %4610 = vpow2.f32 %v2745_v30  ;;  %v2757_v43 = vmul.f32 1.442695, %v2743_v24  ;;  %v2759_v5 = vmul.f32 1.442695, %v2744_v60 }
 0xeff   :  { %4612 = vpow2.f32 %v2747_v0 }
 0xf00   :  { %4614 = vpow2.f32 %v2749_v7 }
 0xf01   :  { %4616 = vpow2.f32 %v2751_v14 }
 0xf02   :  { %4618 = vpow2.f32 %v2753_v11 }
 0xf03   :  { %4620 = vpow2.f32 %v2755_v4 }
 0xf04   :  { %4622 = vpow2.f32 %v2757_v43 }
 0xf05   :  { %4624 = vpow2.f32 %v2759_v5 }
 0xf0b   :  { %v4611_v18 = vpop.eup %4610 }
 0xf0c   :  { %v4613_v41 = vpop.eup %4612  ;;  %v2761_v53 = vsel %vm424_vm0, %v4611_v18, 0.0  ;;  %v2777_v36 = vmul.f32 %v7065_v1, %v4611_v18 }
 0xf0d   :  { %v4615_v61 = vpop.eup %4614  ;;  %v2762_v20 = vsel %vm424_vm0, %v4613_v41, 0.0  ;;  %v2778_v17 = vmul.f32 %v7069_v12, %v4613_v41 }
 0xf0e   :  { %v4617_v40 = vpop.eup %4616  ;;  %v2763_v50 = vadd.f32 %v2762_v20, %v2761_v53  ;;  %v2785_v46 = vsel %vm424_vm0, %v2777_v36, 0.0  ;;  %v2764_v56 = vsel %vm424_vm0, %v4615_v61, 0.0  ;;  %v2779_v55 = vmul.f32 %v7074_v42, %v4615_v61  ;;  %v7334_v61 = vld [vmem:[#allocation9 + $0x1c8] sm:$0xff]  ;;  %v7340_v20 = vld [vmem:[#allocation9 + $0x1c0] sm:$0xff] }
 0xf0f   :  { %v2786_v6 = vsel %vm424_vm0, %v2778_v17, 0.0  ;;  %v4619_v57 = vpop.eup %4618  ;;  %v2766_v1 = vsel %vm424_vm0, %v4617_v40, 0.0  ;;  %v2780_v12 = vmul.f32 %v7080_v22, %v4617_v40  ;;  %v7343_v17 = vld [vmem:[#allocation9 + $0x1d0] sm:$0xff]  ;;  %v7346_v40 = vld [vmem:[#allocation9 + $0x1a8] sm:$0xff] }
 0xf10   :  { %v2765_v52 = vadd.f32 %v2764_v56, %v2763_v50  ;;  %v2787_v62 = vadd.f32 %v2786_v6, %v2785_v46  ;;  %v4621_v15 = vpop.eup %4620  ;;  %v2768_v16 = vsel %vm424_vm0, %v4619_v57, 0.0  ;;  %v2788_v51 = vsel %vm424_vm0, %v2779_v55, 0.0  ;;  %v7349_v50 = vld [vmem:[#allocation9 + $0x1b8] sm:$0xff]  ;;  %v7352_v46 = vld [vmem:[#allocation9 + $0x1a0] sm:$0xff]  ;;  %v7355_v56 = vld [vmem:[#allocation9 + $0x1b0] sm:$0xff] }
 0xf11   :  { %v4623_v10 = vpop.eup %4622  ;;  %v2770_v42 = vsel %vm424_vm0, %v4621_v15, 0.0  ;;  %v2781_v54 = vmul.f32 %v7086_v27, %v4619_v57  ;;  %v2790_v2 = vsel %vm424_vm0, %v2780_v12, 0.0  ;;  %v2782_v26 = vmul.f32 %v7091_v63, %v4621_v15  ;;  %v7328_v63 = vld [vmem:[#allocation9 + $0x1e0] sm:$0xff]  ;;  %v7358_v55 = vld [vmem:[#allocation9 + $0x188] sm:$0xff]  ;;  %v7361_v6 = vld [vmem:[#allocation9 + $0x198] sm:$0xff] }
 0xf12   :  { %v2767_v3 = vadd.f32 %v2766_v1, %v2765_v52  ;;  %v2789_v48 = vadd.f32 %v2788_v51, %v2787_v62  ;;  %v4625_v31 = vpop.eup %4624  ;;  %v2772_v45 = vsel %vm424_vm0, %v4623_v10, 0.0  ;;  %v2783_v11 = vmul.f32 %v7095_v21, %v4623_v10  ;;  %v7331_v21 = vld [vmem:[#allocation9 + $0x1f0] sm:$0xff]  ;;  %v7364_v57 = vld [vmem:[#allocation9 + $0x180] sm:$0xff]  ;;  %v7370_v62 = vld [vmem:[#allocation9 + $0x168] sm:$0xff] }
 0xf13   :  { %v2774_v7 = vsel %vm424_vm0, %v4625_v31, 0.0  ;;  %v2792_v14 = vsel %vm424_vm0, %v2781_v54, 0.0  ;;  %v2794_v60 = vsel %vm424_vm0, %v2782_v26, 0.0  ;;  %v2784_v27 = vmul.f32 %v7099_v59, %v4625_v31  ;;  %v7337_v59 = vld [vmem:[#allocation9 + $0x1d8] sm:$0xff]  ;;  %v7367_v52 = vld [vmem:[#allocation9 + $0x190] sm:$0xff]  ;;  %v7376_v15 = vld [vmem:[#allocation9 + $0x160] sm:$0xff] }
 0xf14   :  { %v2769_v19 = vadd.f32 %v2768_v16, %v2767_v3  ;;  %v2791_v0 = vadd.f32 %v2790_v2, %v2789_v48  ;;  %v2796_v43 = vsel %vm424_vm0, %v2783_v11, 0.0  ;;  %v7373_v1 = vld [vmem:[#allocation9 + $0x178] sm:$0xff]  ;;  %v7379_v3 = vld [vmem:[#allocation9 + $0x170] sm:$0xff]  ;;  %v7382_v16 = vld [vmem:[#allocation9 + $0x148] sm:$0xff] }
 0xf15   :  { %v2798_v18 = vsel %vm424_vm0, %v2784_v27, 0.0  ;;  %v7385_v12 = vld [vmem:[#allocation9 + $0x158] sm:$0xff]  ;;  %v7388_v51 = vld [vmem:[#allocation9 + $0x140] sm:$0xff]  ;;  %v7391_v10 = vld [vmem:[#allocation9 + $0x150] sm:$0xff] }
 0xf16   :  { %v2771_v38 = vadd.f32 %v2770_v42, %v2769_v19  ;;  %v2793_v24 = vadd.f32 %v2792_v14, %v2791_v0  ;;  %v7394_v19 = vld [vmem:[#allocation9 + $0x128] sm:$0xff]  ;;  %v7397_v48 = vld [vmem:[#allocation9 + $0x138] sm:$0xff]  ;;  %v7400_v42 = vld [vmem:[#allocation9 + $0x120] sm:$0xff] }
 0xf17   :  { %v7403_v31 = vld [vmem:[#allocation9 + $0x130] sm:$0xff]  ;;  %v7412_v54 = vld [vmem:[#allocation9 + $0x100] sm:$0xff]  ;;  %v7421_v0 = vld [vmem:[#allocation9 + $0xf8] sm:$0xff] }
 0xf18   :  { %v2773_v30 = vadd.f32 %v2772_v45, %v2771_v38  ;;  %v2795_v4 = vadd.f32 %v2794_v60, %v2793_v24  ;;  %8806 = vst [vmem:[#allocation17_spill] sm:$0xff] %v7403_v31  ;;  %v7406_v38 = vld [vmem:[#allocation9 + $0x108] sm:$0xff]  ;;  %v7409_v45 = vld [vmem:[#allocation9 + $0x118] sm:$0xff]  ;;  %8809 = vst [vmem:[#allocation37_spill] sm:$0xff] %v7412_v54 }
 0xf19   :  { %8807 = vst [vmem:[#allocation36_spill] sm:$0xff] %v7406_v38  ;;  %8808 = vst [vmem:[#allocation18_spill] sm:$0xff] %v7409_v45  ;;  %v7415_v2 = vld [vmem:[#allocation9 + $0x110] sm:$0xff]  ;;  %v7430_v26 = vld [vmem:[#allocation9 + $0xc8] sm:$0xff] }
 0xf1a   :  { %v2775_v22 = vadd.f32 %v2774_v7, %v2773_v30  ;;  %v2797_v5 = vadd.f32 %v2796_v43, %v2795_v4  ;;  %8810 = vst [vmem:[#allocation19_spill] sm:$0xff] %v7415_v2  ;;  %v7418_v30 = vld [vmem:[#allocation9 + $0xe8] sm:$0xff]  ;;  %8812 = vst [vmem:[#allocation20_spill] sm:$0xff] %v7421_v0  ;;  %v7424_v7 = vld [vmem:[#allocation9 + $0xe0] sm:$0xff] }
 0xf1b   :  { %8811 = vst [vmem:[#allocation38_spill] sm:$0xff] %v7418_v30  ;;  %8813 = vst [vmem:[#allocation39_spill] sm:$0xff] %v7424_v7  ;;  %v7433_v14 = vld [vmem:[#allocation9 + $0xd8] sm:$0xff]  ;;  %v7436_v24 = vld [vmem:[#allocation9 + $0xc0] sm:$0xff] }
 0xf1c   :  { %4626 = vrcp.f32 %v2775_v22  ;;  %v2799_v41 = vadd.f32 %v2798_v18, %v2797_v5  ;;  %v7427_v22 = vld [vmem:[#allocation9 + $0xf0] sm:$0xff]  ;;  %8815 = vst [vmem:[#allocation40_spill] sm:$0xff] %v7430_v26  ;;  %8816 = vst [vmem:[#allocation22_spill] sm:$0xff] %v7433_v14  ;;  %v7442_v60 = vld [vmem:[#allocation9 + $0xa8] sm:$0xff] }
 0xf1d   :  { %8814 = vst [vmem:[#allocation21_spill] sm:$0xff] %v7427_v22  ;;  %8817 = vst [vmem:[#allocation41_spill] sm:$0xff] %v7436_v24  ;;  %v7439_v11 = vld [vmem:[#allocation9 + $0xd0] sm:$0xff]  ;;  %v7445_v4 = vld [vmem:[#allocation9 + $0xb8] sm:$0xff] }
 0xf1e   :  { %8818 = vst [vmem:[#allocation23_spill] sm:$0xff] %v7439_v11  ;;  %8819 = vst [vmem:[#allocation42_spill] sm:$0xff] %v7442_v60  ;;  %v7448_v27 = vld [vmem:[#allocation9 + $0xa0] sm:$0xff]  ;;  %v7451_v43 = vld [vmem:[#allocation9 + $0xb0] sm:$0xff] }
 0xf1f   :  { %8820 = vst [vmem:[#allocation24_spill] sm:$0xff] %v7445_v4  ;;  %8821 = vst [vmem:[#allocation43_spill] sm:$0xff] %v7448_v27  ;;  %v7454_v5 = vld [vmem:[#allocation9 + $0x88] sm:$0xff]  ;;  %v7457_v18 = vld [vmem:[#allocation9 + $0x98] sm:$0xff] }
 0xf20   :  { %8822 = vst [vmem:[#allocation25_spill] sm:$0xff] %v7451_v43  ;;  %8823 = vst [vmem:[#allocation44_spill] sm:$0xff] %v7454_v5 }
 0xf21   :  { %8824 = vst [vmem:[#allocation26_spill] sm:$0xff] %v7457_v18 }
 0xf29   :  { %v4627_v53 = vpop.eup %4626 }
 0xf2a   :  { %v2800_v36 = vmul.f32 %v4627_v53, %v2799_v41  ;;  %v7460_v41 = vld [vmem:[#allocation9 + $0x80] sm:$0xff]  ;;  %v7463_v53 = vld [vmem:[#allocation9 + $0x90] sm:$0xff] }
 0xf2b   :  { %8825 = vst [vmem:[#allocation45_spill] sm:$0xff] %v7460_v41  ;;  %8826 = vst [vmem:[#allocation27_spill] sm:$0xff] %v7463_v53 }
 0xf2c   :  { %2888 = vmatmul.mubr.f32.vlgmr.msra.gmra.mxu0 %v2800_v36  ;;  %4278 = vmatmul.mubr.f32.vlgmr.msra.gmra.mxu1 %v2800_v36  ;;  %v7466_v36 = vld [vmem:[#allocation9 + $0x68] sm:$0xff] }
 0xf2d   :  { %2988 = vmatpush1.msra.mxu0 %v7328_v63  ;;  %3059 = vmatpush1.msra.mxu1 %v7331_v21  ;;  %8827 = vst [vmem:[#allocation46_spill] sm:$0xff] %v7466_v36 }
 0xf2e   :  { %2989 = vmatprep.subr.mxu0 %v7334_v61  ;;  %3060 = vmatprep.subr.mxu1 %v7337_v59 }
 0xf2f   :  { %2990 = vmatpush1.msra.mxu0 %v7340_v20  ;;  %3061 = vmatpush1.msra.mxu1 %v7343_v17 }
 0xf30   :  { %2991 = vmatprep.subr.mxu0 %v7346_v40  ;;  %3062 = vmatprep.subr.mxu1 %v7349_v50 }
 0xf31   :  { %2992 = vmatpush1.msra.mxu0 %v7352_v46  ;;  %3063 = vmatpush1.msra.mxu1 %v7355_v56 }
 0xf32   :  { %2993 = vmatprep.subr.mxu0 %v7358_v55  ;;  %3064 = vmatprep.subr.mxu1 %v7361_v6 }
 0xf33   :  { %2994 = vmatpush1.msra.mxu0 %v7364_v57  ;;  %3065 = vmatpush1.msra.mxu1 %v7367_v52 }
 0xf34   :  { %2995 = vmatprep.subr.mxu0 %v7370_v62  ;;  %3066 = vmatprep.subr.mxu1 %v7373_v1 }
 0xf35   :  { %2996 = vmatpush1.msra.mxu0 %v7376_v15  ;;  %3067 = vmatpush1.msra.mxu1 %v7379_v3 }
 0xf36   :  { %2997 = vmatprep.subr.mxu0 %v7382_v16  ;;  %3068 = vmatprep.subr.mxu1 %v7385_v12 }
 0xf37   :  { %2998 = vmatpush1.msra.mxu0 %v7388_v51  ;;  %3069 = vmatpush1.msra.mxu1 %v7391_v10 }
 0xf38   :  { %2999 = vmatprep.subr.mxu0 %v7394_v19  ;;  %3070 = vmatprep.subr.mxu1 %v7397_v48 }
 0xf39   :  { %3000 = vmatpush1.msra.mxu0 %v7400_v42  ;;  %3071 = vmatpush1.msra.mxu1 %v7403_v31 }
 0xf3a   :  { %3001 = vmatprep.subr.mxu0 %v7406_v38  ;;  %3072 = vmatprep.subr.mxu1 %v7409_v45 }
 0xf3b   :  { %3002 = vmatpush1.msra.mxu0 %v7412_v54  ;;  %3073 = vmatpush1.msra.mxu1 %v7415_v2 }
 0xf3c   :  { %3003 = vmatprep.subr.mxu0 %v7418_v30  ;;  %3074 = vmatprep.subr.mxu1 %v7421_v0 }
 0xf3d   :  { %3004 = vmatpush1.msra.mxu0 %v7424_v7  ;;  %3075 = vmatpush1.msra.mxu1 %v7427_v22 }
 0xf3e   :  { %3005 = vmatprep.subr.mxu0 %v7430_v26  ;;  %3076 = vmatprep.subr.mxu1 %v7433_v14 }
 0xf3f   :  { %3006 = vmatpush1.msra.mxu0 %v7436_v24  ;;  %3077 = vmatpush1.msra.mxu1 %v7439_v11 }
 0xf40   :  { %3007 = vmatprep.subr.mxu0 %v7442_v60  ;;  %3078 = vmatprep.subr.mxu1 %v7445_v4 }
 0xf41   :  { %3008 = vmatpush1.msra.mxu0 %v7448_v27  ;;  %3079 = vmatpush1.msra.mxu1 %v7451_v43  ;;  %v7469_v43 = vld [vmem:[#allocation9 + $0x78] sm:$0xff]  ;;  %v2600_v27 = vpop.f32.mrf.mxu0 }
 0xf42   :  { %3009 = vmatprep.subr.mxu0 %v7454_v5  ;;  %3080 = vmatprep.subr.mxu1 %v7457_v18  ;;  %8828 = vst [vmem:[#allocation28_spill] sm:$0xff] %v7469_v43  ;;  %v7472_v5 = vld [vmem:[#allocation9 + $0x60] sm:$0xff]  ;;  %v7475_v18 = vld [vmem:[#allocation9 + $0x70] sm:$0xff]  ;;  %v2601_v11 = vadd.f32 %v2600_v27, %v5834_v35 }
 0xf43   :  { %3010 = vmatpush1.msra.mxu0 %v7460_v41  ;;  %3081 = vmatpush1.msra.mxu1 %v7463_v53  ;;  %8829 = vst [vmem:[#allocation47_spill] sm:$0xff] %v7472_v5  ;;  %8830 = vst [vmem:[#allocation29_spill] sm:$0xff] %v7475_v18  ;;  %v7478_v41 = vld [vmem:[#allocation9 + $0x48] sm:$0xff]  ;;  %v7481_v53 = vld [vmem:[#allocation9 + $0x58] sm:$0xff] }
 0xf44   :  { %3011 = vmatprep.subr.mxu0 %v7466_v36  ;;  %3082 = vmatprep.subr.mxu1 %v7469_v43  ;;  %8831 = vst [vmem:[#allocation48_spill] sm:$0xff] %v7478_v41  ;;  %8832 = vst [vmem:[#allocation30_spill] sm:$0xff] %v7481_v53  ;;  %v7484_v36 = vld [vmem:[#allocation9 + $0x40] sm:$0xff]  ;;  %v7487_v43 = vld [vmem:[#allocation9 + $0x50] sm:$0xff] }
 0xf45   :  { %3012 = vmatpush1.msra.mxu0 %v7472_v5  ;;  %3083 = vmatpush1.msra.mxu1 %v7475_v18  ;;  %8833 = vst [vmem:[#allocation49_spill] sm:$0xff] %v7484_v36  ;;  %8834 = vst [vmem:[#allocation50_spill] sm:$0xff] %v7487_v43  ;;  %v7490_v5 = vld [vmem:[#allocation9 + $0x28] sm:$0xff]  ;;  %v7493_v18 = vld [vmem:[#allocation9 + $0x38] sm:$0xff] }
 0xf46   :  { %3013 = vmatprep.subr.mxu0 %v7478_v41  ;;  %3084 = vmatprep.subr.mxu1 %v7481_v53  ;;  %8835 = vst [vmem:[#allocation32_spill] sm:$0xff] %v7490_v5  ;;  %8836 = vst [vmem:[#allocation33_spill] sm:$0xff] %v7493_v18  ;;  %v7496_v41 = vld [vmem:[#allocation9 + $0x20] sm:$0xff]  ;;  %v7499_v53 = vld [vmem:[#allocation9 + $0x30] sm:$0xff] }
 0xf47   :  { %3014 = vmatpush1.msra.mxu0 %v7484_v36  ;;  %3085 = vmatpush1.msra.mxu1 %v7487_v43  ;;  %8837 = vst [vmem:[#allocation31_spill] sm:$0xff] %v7496_v41  ;;  %8838 = vst [vmem:[#allocation51_spill] sm:$0xff] %v7499_v53  ;;  %v7502_v36 = vld [vmem:[#allocation9 + $0x8] sm:$0xff]  ;;  %v7505_v43 = vld [vmem:[#allocation9 + $0x18] sm:$0xff] }
 0xf48   :  { %3015 = vmatprep.subr.mxu0 %v7490_v5  ;;  %3086 = vmatprep.subr.mxu1 %v7493_v18  ;;  %8839 = vst [vmem:[#allocation52_spill] sm:$0xff] %v7502_v36  ;;  %8840 = vst [vmem:[#allocation53_spill] sm:$0xff] %v7505_v43  ;;  %v7508_v5 = vld [vmem:[#allocation9] sm:$0xff]  ;;  %v7512_v18 = vld [vmem:[#allocation9 + $0x10] sm:$0xff] }
 0xf49   :  { %3016 = vmatpush1.msra.mxu0 %v7496_v41  ;;  %3087 = vmatpush1.msra.mxu1 %v7499_v53  ;;  %8841 = vst [vmem:[#allocation54_spill] sm:$0xff] %v7508_v5  ;;  %8842 = vst [vmem:[#allocation55_spill] sm:$0xff] %v7512_v18  ;;  %v7516_v53 = vld [vmem:[#allocation11 + $0x170] sm:$0xff] }
 0xf4a   :  { %3017 = vmatprep.subr.mxu0 %v7502_v36  ;;  %3088 = vmatprep.subr.mxu1 %v7505_v43  ;;  %8843 = vst [vmem:[#allocation56_spill] sm:$0xff] %v7516_v53  ;;  %v2669_v36 = vpop.f32.mrf.mxu1  ;;  %v2802_v43 = vld [vmem:[#allocation8 + $0x1e] sm:$0x3f] }
 0xf4b   :  { %3018 = vmatpush1.msra.mxu0 %v7508_v5  ;;  %3051 = vmatprep.mubr.f32.mxu0 %v8417_v39  ;;  %v2811_v41 = vrot.slane %v2802_v43, %v5830_v28  ;;  %v2804_v38 = vcombine.high %v2802_v43, %v2802_v43  ;;  %v7547_v43 = vld [vmem:[#allocation11 + $0x140] sm:$0xff] }
 0xf4c   :  { %3089 = vmatpush1.msra.mxu1 %v7512_v18  ;;  %3122 = vmatprep.mubr.f32.mxu1 %v8417_v39  ;;  %v2671_v5 = vpop.f32.mrf.mxu1  ;;  %8846 = vst [vmem:[#allocation59_spill] sm:$0xff] %v7547_v43 }
 0xf4d   :  { %3278 = vmatprep.subr.mxu0 %v7516_v53  ;;  %4280 = vmatprep.subr.mxu1 %v8417_v39  ;;  %v2819_v18 = vcombine.high %v2811_v41, %v2811_v41  ;;  %v2670_v53 = vadd.f32 %v2669_v36, %v5840_v49  ;;  %v2818_v27 = vrot.slane %v2804_v38, %v5830_v28  ;;  %v7534_v38 = vld [vmem:[#allocation11 + $0x178] sm:$0xff]  ;;  %v7561_v36 = vld [vmem:[#allocation11 + $0x120] sm:$0xff] }
 0xf4e   :  { %8850 = vst [vmem:[#allocation63_spill] sm:$0xff] %v7561_v36 }
 0xfec   :  { %v2889_v4 = vpop.f32.mrf.mxu0  ;;  %v2960_v60 = vpop.f32.mrf.mxu1 }
 0xfed   :  { %v2890_v24 = vadd.f32 %v2889_v4, %v2811_v41  ;;  %v2672_v41 = vadd.f32 %v2671_v5, %v5845_v9  ;;  %v7551_v5 = vld [vmem:[#allocation11 + $0x138] sm:$0xff] }
 0xfee   :  { %v2891_v14 = vpop.f32.mrf.mxu0  ;;  %v4279_v26 = vpop.f32.mrf.mxu1  ;;  %8847 = vst [vmem:[#allocation60_spill] sm:$0xff] %v7551_v5 }
 0xfef   :  { %v2964_v22 = vadd.f32 %v2890_v24, %v2601_v11  ;;  %v2892_v0 = vadd.f32 %v2891_v14, %v2819_v18  ;;  %v2961_v24 = vadd.f32 %v2960_v60, %v2818_v27  ;;  %v7537_v11 = vld [vmem:[#allocation11 + $0x158] sm:$0xff]  ;;  %v7544_v60 = vld [vmem:[#allocation11 + $0x160] sm:$0xff]  ;;  %v7554_v18 = vld [vmem:[#allocation11 + $0x148] sm:$0xff] }
 0xff0   :  { %8845 = vst [vmem:[#allocation58_spill] sm:$0xff] %v7544_v60  ;;  %8848 = vst [vmem:[#allocation61_spill] sm:$0xff] %v7554_v18  ;;  %v7564_v27 = vld [vmem:[#allocation11 + $0x130] sm:$0xff] }
 0xff1   :  { %v3928_v7 = vmul.f32 -1.442695, %v2964_v22  ;;  %v2971_v30 = vadd.f32 %v2892_v0, %v2670_v53  ;;  %v7557_v53 = vld [vmem:[#allocation11 + $0x128] sm:$0xff]  ;;  %8851 = vst [vmem:[#allocation64_spill] sm:$0xff] %v7564_v27 }
 0xff2   :  { %8849 = vst [vmem:[#allocation62_spill] sm:$0xff] %v7557_v53 }
 0xff3   :  { %4628 = vpow2.f32 %v3928_v7  ;;  %v3929_v2 = vmul.f32 -1.442695, %v2971_v30 }
 0xff5   :  { %4630 = vpow2.f32 %v3929_v2 }
0x1000   :  { %v4629_v54 = vpop.eup %4628 }
0x1001   :  { %v2968_v45 = vadd.f32 1.0, %v4629_v54 }
0x1002   :  { %v4631_v31 = vpop.eup %4630 }
0x1003   :  { %4632 = vrcp.f32 %v2968_v45  ;;  %v2975_v4 = vadd.f32 1.0, %v4631_v31  ;;  %v7531_v31 = vld [vmem:[#allocation11 + $0x168] sm:$0xff] }
0x1005   :  { %4634 = vrcp.f32 %v2975_v4  ;;  %v7567_v4 = vld [vmem:[#allocation11 + $0x110] sm:$0xff] }
0x1006   :  { %8852 = vst [vmem:[#allocation65_spill] sm:$0xff] %v7567_v4 }
0x1010   :  { %v4633_v26 = vpop.eup %4632 }
0x1011   :  { %v2978_v22 = vmul.f32 %v4633_v26, %v2672_v41  ;;  %v7571_v41 = vld [vmem:[#allocation11 + $0x108] sm:$0xff]  ;;  %v7574_v26 = vld [vmem:[#allocation11 + $0x118] sm:$0xff] }
0x1012   :  { %v4635_v7 = vpop.eup %4634  ;;  %8853 = vst [vmem:[#allocation66_spill] sm:$0xff] %v7571_v41  ;;  %8854 = vst [vmem:[#allocation67_spill] sm:$0xff] %v7574_v26 }
0x1013   :  { %v2979_v14 = vadd.f32 %v2978_v22, %v2961_v24  ;;  %v2981_v0 = vsub.f32 1.0, %v4635_v7  ;;  %v2983_v54 = vmul.f32 %v4635_v7, %v7176_v34  ;;  %v7541_v34 = vld [vmem:[#allocation11 + $0x150] sm:$0xff]  ;;  %v7577_v24 = vld [vmem:[#allocation11 + $0xf8] sm:$0xff]  ;;  %v7587_v7 = vld [vmem:[#allocation11 + $0xe0] sm:$0xff] }
0x1014   :  { %8844 = vst [vmem:[#allocation57_spill] sm:$0xff] %v7541_v34  ;;  %8855 = vst [vmem:[#allocation68_spill] sm:$0xff] %v7577_v24  ;;  %v7581_v22 = vld [vmem:[#allocation11 + $0xf0] sm:$0xff] }
0x1015   :  { %4636 = vtanh.f32 %v2979_v14  ;;  %8856 = vst [vmem:[#allocation69_spill] sm:$0xff] %v7581_v22  ;;  %v7584_v14 = vld [vmem:[#allocation11 + $0x100] sm:$0xff]  ;;  %8858 = vst [vmem:[#allocation71_spill] sm:$0xff] %v7587_v7 }
0x1016   :  { %8857 = vst [vmem:[#allocation70_spill] sm:$0xff] %v7584_v14 }
0x1022   :  { %v4637_v30 = vpop.eup %4636 }
0x1023   :  { %v2982_v2 = vmul.f32 %v4637_v30, %v2981_v0  ;;  %v7591_v0 = vld [vmem:[#allocation11 + $0xd8] sm:$0xff]  ;;  %v7594_v30 = vld [vmem:[#allocation11 + $0xe8] sm:$0xff] }
0x1024   :  { %8859 = vst [vmem:[#allocation72_spill] sm:$0xff] %v7591_v0  ;;  %8860 = vst [vmem:[#allocation73_spill] sm:$0xff] %v7594_v30 }
0x1025   :  { %v7526_v45 = vadd.f32 %v2983_v54, %v2982_v2  ;;  %v7597_v2 = vld [vmem:[#allocation11 + $0xc8] sm:$0xff]  ;;  %v7601_v54 = vld [vmem:[#allocation11 + $0xc0] sm:$0xff] }
0x1026   :  { %8861 = vst [vmem:[#allocation74_spill] sm:$0xff] %v7597_v2  ;;  %8862 = vst [vmem:[#allocation75_spill] sm:$0xff] %v7601_v54 }
0x1027   :  { %2986 = vst [vmem:[#allocation12 + $0xa] sm:$0x3] %v7526_v45  ;;  %3052 = vmatmul.mubr.f32.vlgmr.msra.gmra.mxu0 %v7526_v45  ;;  %3123 = vmatmul.mubr.f32.vlgmr.msra.gmra.mxu1 %v7526_v45 }
0x1028   :  { %3279 = vmatpush1.msra.mxu0 %v7531_v31  ;;  %4281 = vmatpush3.msra.mxu1 %v7534_v38 }
0x1029   :  { %3280 = vmatprep.subr.mxu0 %v7537_v11  ;;  %4282 = vmatprep.subr.mxu1 %v8417_v39 }
0x102a   :  { %3281 = vmatpush1.msra.mxu0 %v7541_v34  ;;  %4283 = vmatpush3.msra.mxu1 %v7544_v60 }
0x102b   :  { %3282 = vmatprep.subr.mxu0 %v7547_v43  ;;  %4284 = vmatprep.subr.mxu1 %v8417_v39 }
0x102c   :  { %3283 = vmatpush1.msra.mxu0 %v7551_v5  ;;  %4285 = vmatpush3.msra.mxu1 %v7554_v18 }
0x102d   :  { %3284 = vmatprep.subr.mxu0 %v7557_v53  ;;  %4286 = vmatprep.subr.mxu1 %v8417_v39 }
0x102e   :  { %3285 = vmatpush1.msra.mxu0 %v7561_v36  ;;  %4287 = vmatpush3.msra.mxu1 %v7564_v27 }
0x102f   :  { %3286 = vmatprep.subr.mxu0 %v7567_v4  ;;  %4288 = vmatprep.subr.mxu1 %v8417_v39 }
0x1030   :  { %3287 = vmatpush1.msra.mxu0 %v7571_v41  ;;  %4289 = vmatpush3.msra.mxu1 %v7574_v26 }
0x1031   :  { %3288 = vmatprep.subr.mxu0 %v7577_v24  ;;  %4290 = vmatprep.subr.mxu1 %v8417_v39 }
0x1032   :  { %3289 = vmatpush1.msra.mxu0 %v7581_v22  ;;  %4291 = vmatpush3.msra.mxu1 %v7584_v14  ;;  %v7607_v14 = vld [vmem:[#allocation11 + $0xb0] sm:$0xff] }
0x1033   :  { %3290 = vmatprep.subr.mxu0 %v7587_v7  ;;  %4292 = vmatprep.subr.mxu1 %v8417_v39  ;;  %v7604_v7 = vld [vmem:[#allocation11 + $0xd0] sm:$0xff]  ;;  %8864 = vst [vmem:[#allocation77_spill] sm:$0xff] %v7607_v14 }
0x1034   :  { %3291 = vmatpush1.msra.mxu0 %v7591_v0  ;;  %4293 = vmatpush3.msra.mxu1 %v7594_v30  ;;  %8863 = vst [vmem:[#allocation76_spill] sm:$0xff] %v7604_v7  ;;  %v7611_v30 = vld [vmem:[#allocation11 + $0xa8] sm:$0xff]  ;;  %v7617_v0 = vld [vmem:[#allocation11 + $0x98] sm:$0xff] }
0x1035   :  { %3292 = vmatprep.subr.mxu0 %v7597_v2  ;;  %4294 = vmatprep.subr.mxu1 %v8417_v39  ;;  %8865 = vst [vmem:[#allocation78_spill] sm:$0xff] %v7611_v30  ;;  %v7614_v2 = vld [vmem:[#allocation11 + $0xb8] sm:$0xff]  ;;  %8867 = vst [vmem:[#allocation80_spill] sm:$0xff] %v7617_v0 }
0x1036   :  { %3293 = vmatpush1.msra.mxu0 %v7601_v54  ;;  %4295 = vmatpush3.msra.mxu1 %v7604_v7  ;;  %8866 = vst [vmem:[#allocation79_spill] sm:$0xff] %v7614_v2  ;;  %v7621_v7 = vld [vmem:[#allocation11 + $0x90] sm:$0xff]  ;;  %v7627_v54 = vld [vmem:[#allocation11 + $0x80] sm:$0xff] }
0x1037   :  { %3294 = vmatprep.subr.mxu0 %v7607_v14  ;;  %4296 = vmatprep.subr.mxu1 %v8417_v39  ;;  %8868 = vst [vmem:[#allocation81_spill] sm:$0xff] %v7621_v7  ;;  %v7624_v14 = vld [vmem:[#allocation11 + $0xa0] sm:$0xff]  ;;  %8870 = vst [vmem:[#allocation83_spill] sm:$0xff] %v7627_v54 }
0x1038   :  { %3295 = vmatpush1.msra.mxu0 %v7611_v30  ;;  %4297 = vmatpush3.msra.mxu1 %v7614_v2  ;;  %8869 = vst [vmem:[#allocation82_spill] sm:$0xff] %v7624_v14  ;;  %v7631_v2 = vld [vmem:[#allocation11 + $0x78] sm:$0xff]  ;;  %v7637_v30 = vld [vmem:[#allocation11 + $0x68] sm:$0xff] }
0x1039   :  { %3296 = vmatprep.subr.mxu0 %v7617_v0  ;;  %4298 = vmatprep.subr.mxu1 %v8417_v39  ;;  %8871 = vst [vmem:[#allocation84_spill] sm:$0xff] %v7631_v2  ;;  %v7634_v0 = vld [vmem:[#allocation11 + $0x88] sm:$0xff]  ;;  %8873 = vst [vmem:[#allocation86_spill] sm:$0xff] %v7637_v30 }
0x103a   :  { %3297 = vmatpush1.msra.mxu0 %v7621_v7  ;;  %4299 = vmatpush3.msra.mxu1 %v7624_v14  ;;  %8872 = vst [vmem:[#allocation85_spill] sm:$0xff] %v7634_v0  ;;  %v7641_v14 = vld [vmem:[#allocation11 + $0x60] sm:$0xff]  ;;  %v7647_v7 = vld [vmem:[#allocation11 + $0x50] sm:$0xff] }
0x103b   :  { %3298 = vmatprep.subr.mxu0 %v7627_v54  ;;  %4300 = vmatprep.subr.mxu1 %v8417_v39  ;;  %8874 = vst [vmem:[#allocation87_spill] sm:$0xff] %v7641_v14  ;;  %v7644_v54 = vld [vmem:[#allocation11 + $0x70] sm:$0xff]  ;;  %8876 = vst [vmem:[#allocation89_spill] sm:$0xff] %v7647_v7 }
0x103c   :  { %3299 = vmatpush1.msra.mxu0 %v7631_v2  ;;  %4301 = vmatpush3.msra.mxu1 %v7634_v0  ;;  %8875 = vst [vmem:[#allocation88_spill] sm:$0xff] %v7644_v54  ;;  %v7651_v0 = vld [vmem:[#allocation11 + $0x48] sm:$0xff]  ;;  %v7657_v2 = vld [vmem:[#allocation11 + $0x38] sm:$0xff] }
0x103d   :  { %3300 = vmatprep.subr.mxu0 %v7637_v30  ;;  %4302 = vmatprep.subr.mxu1 %v8417_v39  ;;  %8877 = vst [vmem:[#allocation90_spill] sm:$0xff] %v7651_v0  ;;  %v7654_v30 = vld [vmem:[#allocation11 + $0x58] sm:$0xff]  ;;  %8879 = vst [vmem:[#allocation92_spill] sm:$0xff] %v7657_v2 }
0x103e   :  { %3301 = vmatpush1.msra.mxu0 %v7641_v14  ;;  %4303 = vmatpush3.msra.mxu1 %v7644_v54  ;;  %8878 = vst [vmem:[#allocation91_spill] sm:$0xff] %v7654_v30  ;;  %v7661_v54 = vld [vmem:[#allocation11 + $0x30] sm:$0xff]  ;;  %v7667_v14 = vld [vmem:[#allocation11 + $0x20] sm:$0xff] }
0x103f   :  { %3302 = vmatprep.subr.mxu0 %v7647_v7  ;;  %4304 = vmatprep.subr.mxu1 %v8417_v39  ;;  %8880 = vst [vmem:[#allocation93_spill] sm:$0xff] %v7661_v54  ;;  %v7664_v7 = vld [vmem:[#allocation11 + $0x40] sm:$0xff]  ;;  %8882 = vst [vmem:[#allocation95_spill] sm:$0xff] %v7667_v14 }
0x1040   :  { %3303 = vmatpush1.msra.mxu0 %v7651_v0  ;;  %4305 = vmatpush3.msra.mxu1 %v7654_v30  ;;  %8881 = vst [vmem:[#allocation94_spill] sm:$0xff] %v7664_v7  ;;  %v7671_v30 = vld [vmem:[#allocation11 + $0x18] sm:$0xff]  ;;  %v7677_v0 = vld [vmem:[#allocation11 + $0x8] sm:$0xff] }
0x1041   :  { %3304 = vmatprep.subr.mxu0 %v7657_v2  ;;  %4306 = vmatprep.subr.mxu1 %v8417_v39  ;;  %8883 = vst [vmem:[#allocation96_spill] sm:$0xff] %v7671_v30  ;;  %v7674_v2 = vld [vmem:[#allocation11 + $0x28] sm:$0xff]  ;;  %8885 = vst [vmem:[#allocation35_spill] sm:$0xff] %v7677_v0 }
0x1042   :  { %3305 = vmatpush1.msra.mxu0 %v7661_v54  ;;  %4307 = vmatpush3.msra.mxu1 %v7664_v7  ;;  %8884 = vst [vmem:[#allocation97_spill] sm:$0xff] %v7674_v2  ;;  %v7681_v7 = vld [vmem:[#allocation11] sm:$0xff] }
0x1043   :  { %3306 = vmatprep.subr.mxu0 %v7667_v14  ;;  %4308 = vmatprep.subr.mxu1 %v8417_v39  ;;  %8886 = vst [vmem:[#allocation98_spill] sm:$0xff] %v7681_v7  ;;  %v7685_v14 = vld [vmem:[#allocation11 + $0x10] sm:$0xff] }
0x1044   :  { %3307 = vmatpush1.msra.mxu0 %v7671_v30  ;;  %4309 = vmatpush3.msra.mxu1 %v7674_v2  ;;  %8887 = vst [vmem:[#allocation99_spill] sm:$0xff] %v7685_v14  ;;  %v5104_v2 = vld [vmem:[#allocation9 + $0x1f8] sm:$0xff] }
0x1045   :  { %3308 = vmatprep.subr.mxu0 %v7677_v0  ;;  %4310 = vmatprep.subr.mxu1 %v8417_v39 }
0x1046   :  { %3309 = vmatpush1.msra.mxu0 %v7681_v7  ;;  %3342 = vmatprep.mubr.f32.mxu0 %v8417_v39 }
0x1047   :  { %4311 = vmatpush3.msra.mxu1 %v7685_v14  ;;  %4312 = vmatprep.mubr.msk.f32.mxu1 %vm5263_vm1, %v8417_v39 }
0x1048   :  { %3442 = vmatprep.subr.mxu0 %v7246_v23  ;;  %3513 = vmatprep.subr.mxu1 %v5104_v2 }
0x10e7   :  { %v3053_v0 = vpop.f32.mrf.mxu0 }
0x10e8   :  { %v3054_v30 = vadd.f32 %v3053_v0, %v8805_v13 }
0x10ea   :  { %v3130_v54 = vadd.f32 %v7251_v8, %v3054_v30  ;;  %v3129_v7 = vadd.f32 %v7254_v25, %v3054_v30  ;;  %v3132_v22 = vadd.f32 %v7257_v47, %v3054_v30  ;;  %v3131_v24 = vadd.f32 %v7260_v58, %v3054_v30 }
0x10eb   :  { %v3134_v14 = vadd.f32 %v7263_v37, %v3054_v30  ;;  %v3133_v26 = vadd.f32 %v7266_v44, %v3054_v30  ;;  %v3136_v23 = vadd.f32 %v7269_v33, %v3054_v30  ;;  %v3135_v8 = vadd.f32 %v7272_v32, %v3054_v30 }
0x10ec   :  { %4638 = vtanh.f32 %v3130_v54 }
0x10ed   :  { %4640 = vtanh.f32 %v3129_v7 }
0x10ee   :  { %4642 = vtanh.f32 %v3132_v22 }
0x10ef   :  { %4644 = vtanh.f32 %v3131_v24 }
0x10f0   :  { %4646 = vtanh.f32 %v3134_v14 }
0x10f1   :  { %4648 = vtanh.f32 %v3133_v26 }
0x10f2   :  { %4650 = vtanh.f32 %v3136_v23 }
0x10f3   :  { %4652 = vtanh.f32 %v3135_v8 }
0x10f9   :  { %v4639_v25 = vpop.eup %4638 }
0x10fa   :  { %v4641_v47 = vpop.eup %4640  ;;  %v3146_v58 = vmul.f32 %v7278_v29, %v4639_v25 }
0x10fb   :  { %v4643_v0 = vpop.eup %4642  ;;  %v3145_v37 = vmul.f32 %v7278_v29, %v4641_v47 }
0x10fc   :  { %v4645_v7 = vpop.eup %4644  ;;  %v3156_v44 = vsel %vm424_vm0, %v3146_v58, 0.0  ;;  %v3148_v24 = vmul.f32 %v7278_v29, %v4643_v0 }
0x10fd   :  { %v4647_v22 = vpop.eup %4646  ;;  %3157 = vadd.xlane.f32.xlu1 %v3156_v44  ;;  %v3153_v33 = vsel %vm424_vm0, %v3145_v37, 0.0  ;;  %v3147_v32 = vmul.f32 %v7278_v29, %v4645_v7 }
0x10fe   :  { %v4649_v26 = vpop.eup %4648  ;;  %3154 = vadd.xlane.f32.xlu0 %v3153_v33  ;;  %v3162_v14 = vsel %vm424_vm0, %v3148_v24, 0.0  ;;  %v3150_v30 = vmul.f32 %v7278_v29, %v4647_v22 }
0x10ff   :  { %v4651_v2 = vpop.eup %4650  ;;  %v3159_v54 = vsel %vm424_vm0, %v3147_v32, 0.0  ;;  %v3149_v23 = vmul.f32 %v7278_v29, %v4649_v26 }
0x1100   :  { %v4653_v8 = vpop.eup %4652  ;;  %v3168_v25 = vsel %vm424_vm0, %v3150_v30, 0.0  ;;  %v3152_v47 = vmul.f32 %v7278_v29, %v4651_v2 }
0x1101   :  { %3163 = vadd.xlane.f32.xlu1 %v3162_v14  ;;  %v3165_v58 = vsel %vm424_vm0, %v3149_v23, 0.0  ;;  %v3151_v0 = vmul.f32 %v7278_v29, %v4653_v8 }
0x1102   :  { %3160 = vadd.xlane.f32.xlu0 %v3159_v54  ;;  %v3174_v37 = vsel %vm424_vm0, %v3152_v47, 0.0 }
0x1103   :  { %v3171_v7 = vsel %vm424_vm0, %v3151_v0, 0.0 }
0x1105   :  { %3169 = vadd.xlane.f32.xlu1 %v3168_v25 }
0x1106   :  { %3166 = vadd.xlane.f32.xlu0 %v3165_v58 }
0x1109   :  { %3175 = vadd.xlane.f32.xlu1 %v3174_v37 }
0x110a   :  { %3172 = vadd.xlane.f32.xlu0 %v3171_v7 }
0x1186   :  { %v3158_v44 = vpop.xlane.xlu1 %3157 }
0x1187   :  { %v3155_v24 = vpop.xlane.xlu0 %3154  ;;  %v3178_v2 = vsel %vm424_vm0, %v3158_v44, -inf }
0x1188   :  { %v3177_v29 = vsel %vm424_vm0, %v3155_v24, -inf }
0x118a   :  { %v3164_v22 = vpop.xlane.xlu1 %3163 }
0x118b   :  { %v3161_v33 = vpop.xlane.xlu0 %3160  ;;  %v3180_v23 = vsel %vm424_vm0, %v3164_v22, -inf }
0x118c   :  { %v3179_v0 = vsel %vm424_vm0, %v3161_v33, -inf }
0x118e   :  { %v3170_v32 = vpop.xlane.xlu1 %3169 }
0x118f   :  { %v3167_v26 = vpop.xlane.xlu0 %3166  ;;  %v3183_v14 = vsel %vm424_vm0, %v3170_v32, -inf }
0x1190   :  { %v3181_v30 = vsel %vm424_vm0, %v3167_v26, -inf  ;;  %v3184_v8 = vmax.f32 %v3178_v2, %v3183_v14 }
0x1191   :  { %v3182_v25 = vmax.f32 %v3177_v29, %v3181_v30 }
0x1192   :  { %v3176_v54 = vpop.xlane.xlu1 %3175 }
0x1193   :  { %v3187_v47 = vsel %vm424_vm0, %v3176_v54, -inf  ;;  %v3173_v58 = vpop.xlane.xlu0 %3172  ;;  %v3189_v41 = vmax.f32 %v3182_v25, %v3184_v8 }
0x1194   :  { %v3188_v37 = vmax.f32 %v3180_v23, %v3187_v47  ;;  %v3185_v7 = vsel %vm424_vm0, %v3173_v58, -inf }
0x1195   :  { %v3186_v13 = vmax.f32 %v3179_v0, %v3185_v7 }
0x1197   :  { %v3190_v4 = vmax.f32 %v3186_v13, %v3188_v37 }
0x1199   :  { %v3191_v27 = vmax.f32 %v3189_v41, %v3190_v4 }
0x119b   :  { %v3192_v36 = vsub.f32 %v3155_v24, %v3191_v27  ;;  %v3193_v53 = vsub.f32 %v3158_v44, %v3191_v27  ;;  %v3194_v18 = vsub.f32 %v3161_v33, %v3191_v27  ;;  %v3195_v5 = vsub.f32 %v3164_v22, %v3191_v27 }
0x119c   :  { %v3196_v43 = vsub.f32 %v3167_v26, %v3191_v27  ;;  %v3197_v2 = vsub.f32 %v3170_v32, %v3191_v27  ;;  %v3198_v34 = vsub.f32 %v3173_v58, %v3191_v27  ;;  %v3199_v47 = vsub.f32 %v3176_v54, %v3191_v27  ;;  %v7729_v27 = vld [vmem:[#allocation3 + $0x2] sm:$0x3]  ;;  %v7734_v32 = vld [vmem:[#allocation3 + $0x4] sm:$0x3] }
0x119d   :  { %v3200_v60 = vmul.f32 1.442695, %v3192_v36  ;;  %v3202_v14 = vmul.f32 1.442695, %v3193_v53  ;;  %v3204_v30 = vmul.f32 1.442695, %v3194_v18 }
0x119e   :  { %v3206_v29 = vmul.f32 1.442695, %v3195_v5  ;;  %v3208_v23 = vmul.f32 1.442695, %v3196_v43  ;;  %v3210_v8 = vmul.f32 1.442695, %v3197_v2 }
0x119f   :  { %4654 = vpow2.f32 %v3200_v60  ;;  %v3212_v13 = vmul.f32 1.442695, %v3198_v34  ;;  %v3214_v4 = vmul.f32 1.442695, %v3199_v47  ;;  %v7725_v53 = vld [vmem:[#allocation3] sm:$0x3] }
0x11a0   :  { %4656 = vpow2.f32 %v3202_v14  ;;  %v7740_v2 = vld [vmem:[#allocation3 + $0x6] sm:$0x3] }
0x11a1   :  { %4658 = vpow2.f32 %v3204_v30 }
0x11a2   :  { %4660 = vpow2.f32 %v3206_v29 }
0x11a3   :  { %4662 = vpow2.f32 %v3208_v23 }
0x11a4   :  { %4664 = vpow2.f32 %v3210_v8 }
0x11a5   :  { %4666 = vpow2.f32 %v3212_v13 }
0x11a6   :  { %4668 = vpow2.f32 %v3214_v4 }
0x11ac   :  { %v4655_v41 = vpop.eup %4654 }
0x11ad   :  { %v4657_v36 = vpop.eup %4656  ;;  %v3216_v18 = vsel %vm424_vm0, %v4655_v41, 0.0  ;;  %v3232_v60 = vmul.f32 %v7725_v53, %v4655_v41 }
0x11ae   :  { %v4659_v5 = vpop.eup %4658  ;;  %v3217_v43 = vsel %vm424_vm0, %v4657_v36, 0.0  ;;  %v3233_v44 = vmul.f32 %v7729_v27, %v4657_v36 }
0x11af   :  { %v4661_v34 = vpop.eup %4660  ;;  %v3218_v24 = vadd.f32 %v3217_v43, %v3216_v18  ;;  %v3240_v22 = vsel %vm424_vm0, %v3232_v60, 0.0  ;;  %v3219_v33 = vsel %vm424_vm0, %v4659_v5, 0.0  ;;  %v3234_v26 = vmul.f32 %v7734_v32, %v4659_v5  ;;  %v7746_v60 = vld [vmem:[#allocation3 + $0x8] sm:$0x3] }
0x11b0   :  { %v3241_v54 = vsel %vm424_vm0, %v3233_v44, 0.0  ;;  %v4663_v25 = vpop.eup %4662  ;;  %v3221_v37 = vsel %vm424_vm0, %v4661_v34, 0.0  ;;  %v3235_v29 = vmul.f32 %v7740_v2, %v4661_v34 }
0x11b1   :  { %v3220_v58 = vadd.f32 %v3219_v33, %v3218_v24  ;;  %v3242_v0 = vadd.f32 %v3241_v54, %v3240_v22  ;;  %v4665_v7 = vpop.eup %4664  ;;  %v3223_v30 = vsel %vm424_vm0, %v4663_v25, 0.0  ;;  %v3243_v23 = vsel %vm424_vm0, %v3234_v26, 0.0  ;;  %v7751_v33 = vld [vmem:[#allocation3 + $0xa] sm:$0x3] }
0x11b2   :  { %v4667_v47 = vpop.eup %4666  ;;  %v3225_v4 = vsel %vm424_vm0, %v4665_v7, 0.0  ;;  %v3236_v5 = vmul.f32 %v7746_v60, %v4663_v25  ;;  %v3245_v43 = vsel %vm424_vm0, %v3235_v29, 0.0  ;;  %v3237_v26 = vmul.f32 %v7751_v33, %v4665_v7 }
0x11b3   :  { %v3222_v14 = vadd.f32 %v3221_v37, %v3220_v58  ;;  %v3244_v13 = vadd.f32 %v3243_v23, %v3242_v0  ;;  %v4669_v41 = vpop.eup %4668  ;;  %v3227_v18 = vsel %vm424_vm0, %v4667_v47, 0.0  ;;  %v7755_v0 = vld [vmem:[#allocation3 + $0xc] sm:$0x3] }
0x11b4   :  { %v3229_v34 = vsel %vm424_vm0, %v4669_v41, 0.0  ;;  %v3247_v54 = vsel %vm424_vm0, %v3236_v5, 0.0  ;;  %v3238_v37 = vmul.f32 %v7755_v0, %v4667_v47  ;;  %v3249_v25 = vsel %vm424_vm0, %v3237_v26, 0.0  ;;  %v8913_v47 = vld [vmem:[#allocation48_spill] sm:$0xff]  ;;  %v8916_v5 = vld [vmem:[#allocation50_spill] sm:$0xff]  ;;  %v8922_v26 = vld [vmem:[#allocation53_spill] sm:$0xff] }
0x11b5   :  { %v3224_v8 = vadd.f32 %v3223_v30, %v3222_v14  ;;  %v3246_v24 = vadd.f32 %v3245_v43, %v3244_v13  ;;  %v7759_v30 = vld [vmem:[#allocation3 + $0xe] sm:$0x3]  ;;  %v8917_v43 = vld [vmem:[#allocation32_spill] sm:$0xff] }
0x11b6   :  { %v3239_v29 = vmul.f32 %v7759_v30, %v4669_v41  ;;  %v3251_v23 = vsel %vm424_vm0, %v3238_v37, 0.0  ;;  %v8914_v41 = vld [vmem:[#allocation30_spill] sm:$0xff]  ;;  %v8925_v37 = vld [vmem:[#allocation56_spill] sm:$0xff] }
0x11b7   :  { %v3226_v36 = vadd.f32 %v3225_v4, %v3224_v8  ;;  %v3248_v58 = vadd.f32 %v3247_v54, %v3246_v24  ;;  %v8919_v24 = vld [vmem:[#allocation31_spill] sm:$0xff]  ;;  %v8923_v54 = vld [vmem:[#allocation54_spill] sm:$0xff] }
0x11b8   :  { %v3253_v7 = vsel %vm424_vm0, %v3239_v29, 0.0 }
0x11b9   :  { %v3228_v44 = vadd.f32 %v3227_v18, %v3226_v36  ;;  %v3250_v14 = vadd.f32 %v3249_v25, %v3248_v58  ;;  %v8915_v18 = vld [vmem:[#allocation49_spill] sm:$0xff]  ;;  %v8924_v58 = vld [vmem:[#allocation55_spill] sm:$0xff]  ;;  %v3124_v25 = vpop.f32.mrf.mxu1 }
0x11bb   :  { %v3230_v22 = vadd.f32 %v3229_v34, %v3228_v44  ;;  %v3252_v8 = vadd.f32 %v3251_v23, %v3250_v14  ;;  %v8918_v44 = vld [vmem:[#allocation33_spill] sm:$0xff]  ;;  %v8920_v34 = vld [vmem:[#allocation51_spill] sm:$0xff]  ;;  %v3055_v23 = vpop.f32.mrf.mxu0 }
0x11bc   :  { %v3257_v14 = vld [vmem:[#allocation8 + $0x24] sm:$0x3f] }
0x11bd   :  { %4670 = vrcp.f32 %v3230_v22  ;;  %v3254_v13 = vadd.f32 %v3253_v7, %v3252_v8  ;;  %v8921_v22 = vld [vmem:[#allocation52_spill] sm:$0xff]  ;;  %v3266_v29 = vrot.slane %v3257_v14, %v5830_v28  ;;  %v3126_v8 = vpop.f32.mrf.mxu1 }
0x11ca   :  { %v4671_v4 = vpop.eup %4670 }
0x11cb   :  { %v3255_v36 = vmul.f32 %v4671_v4, %v3254_v13  ;;  %v3056_v4 = vadd.f32 %v3055_v23, %v5834_v35  ;;  %v8945_v23 = vld [vmem:[#allocation76_spill] sm:$0xff] }
0x11cd   :  { %3343 = vmatmul.mubr.f32.vlgmr.msra.gmra.mxu0 %v3255_v36  ;;  %4313 = vmatmul.mubr.f32.vlgmr.msra.gmra.mxu1 %v3255_v36 }
0x11ce   :  { %3443 = vmatpush1.msra.mxu0 %v7328_v63  ;;  %3514 = vmatpush1.msra.mxu1 %v7331_v21  ;;  %v8888_v63 = vld [vmem:[#allocation17_spill] sm:$0xff]  ;;  %v8889_v21 = vld [vmem:[#allocation36_spill] sm:$0xff] }
0x11cf   :  { %3444 = vmatprep.subr.mxu0 %v7334_v61  ;;  %3515 = vmatprep.subr.mxu1 %v7337_v59  ;;  %v8890_v61 = vld [vmem:[#allocation18_spill] sm:$0xff]  ;;  %v8891_v59 = vld [vmem:[#allocation37_spill] sm:$0xff] }
0x11d0   :  { %3445 = vmatpush1.msra.mxu0 %v7340_v20  ;;  %3516 = vmatpush1.msra.mxu1 %v7343_v17  ;;  %v8892_v20 = vld [vmem:[#allocation19_spill] sm:$0xff]  ;;  %v8893_v17 = vld [vmem:[#allocation38_spill] sm:$0xff] }
0x11d1   :  { %3446 = vmatprep.subr.mxu0 %v7346_v40  ;;  %3517 = vmatprep.subr.mxu1 %v7349_v50  ;;  %v8894_v40 = vld [vmem:[#allocation20_spill] sm:$0xff]  ;;  %v8895_v50 = vld [vmem:[#allocation39_spill] sm:$0xff] }
0x11d2   :  { %3447 = vmatpush1.msra.mxu0 %v7352_v46  ;;  %3518 = vmatpush1.msra.mxu1 %v7355_v56  ;;  %v8896_v46 = vld [vmem:[#allocation21_spill] sm:$0xff]  ;;  %v8897_v56 = vld [vmem:[#allocation40_spill] sm:$0xff] }
0x11d3   :  { %3448 = vmatprep.subr.mxu0 %v7358_v55  ;;  %3519 = vmatprep.subr.mxu1 %v7361_v6  ;;  %v8898_v55 = vld [vmem:[#allocation22_spill] sm:$0xff]  ;;  %v8899_v6 = vld [vmem:[#allocation41_spill] sm:$0xff] }
0x11d4   :  { %3449 = vmatpush1.msra.mxu0 %v7364_v57  ;;  %3520 = vmatpush1.msra.mxu1 %v7367_v52  ;;  %v8900_v57 = vld [vmem:[#allocation23_spill] sm:$0xff]  ;;  %v8901_v52 = vld [vmem:[#allocation42_spill] sm:$0xff] }
0x11d5   :  { %3450 = vmatprep.subr.mxu0 %v7370_v62  ;;  %3521 = vmatprep.subr.mxu1 %v7373_v1  ;;  %v8902_v62 = vld [vmem:[#allocation24_spill] sm:$0xff]  ;;  %v8903_v1 = vld [vmem:[#allocation43_spill] sm:$0xff] }
0x11d6   :  { %3451 = vmatpush1.msra.mxu0 %v7376_v15  ;;  %3522 = vmatpush1.msra.mxu1 %v7379_v3  ;;  %v8904_v15 = vld [vmem:[#allocation25_spill] sm:$0xff]  ;;  %v8905_v3 = vld [vmem:[#allocation44_spill] sm:$0xff] }
0x11d7   :  { %3452 = vmatprep.subr.mxu0 %v7382_v16  ;;  %3523 = vmatprep.subr.mxu1 %v7385_v12  ;;  %v8906_v16 = vld [vmem:[#allocation26_spill] sm:$0xff]  ;;  %v8907_v12 = vld [vmem:[#allocation45_spill] sm:$0xff] }
0x11d8   :  { %3453 = vmatpush1.msra.mxu0 %v7388_v51  ;;  %3524 = vmatpush1.msra.mxu1 %v7391_v10  ;;  %v8908_v51 = vld [vmem:[#allocation27_spill] sm:$0xff]  ;;  %v8909_v10 = vld [vmem:[#allocation46_spill] sm:$0xff] }
0x11d9   :  { %3454 = vmatprep.subr.mxu0 %v7394_v19  ;;  %3525 = vmatprep.subr.mxu1 %v7397_v48  ;;  %v8910_v19 = vld [vmem:[#allocation28_spill] sm:$0xff]  ;;  %v8911_v48 = vld [vmem:[#allocation47_spill] sm:$0xff] }
0x11da   :  { %3455 = vmatpush1.msra.mxu0 %v7400_v42  ;;  %3526 = vmatpush1.msra.mxu1 %v8888_v63  ;;  %v8912_v42 = vld [vmem:[#allocation29_spill] sm:$0xff]  ;;  %v3274_v63 = vcombine.high %v3266_v29, %v3266_v29 }
0x11db   :  { %3456 = vmatprep.subr.mxu0 %v8889_v21  ;;  %3527 = vmatprep.subr.mxu1 %v8890_v61 }
0x11dc   :  { %3457 = vmatpush1.msra.mxu0 %v8891_v59  ;;  %3528 = vmatpush1.msra.mxu1 %v8892_v20 }
0x11dd   :  { %3458 = vmatprep.subr.mxu0 %v8893_v17  ;;  %3529 = vmatprep.subr.mxu1 %v8894_v40  ;;  %v3125_v40 = vadd.f32 %v3124_v25, %v5840_v49  ;;  %v8942_v25 = vld [vmem:[#allocation73_spill] sm:$0xff] }
0x11de   :  { %3459 = vmatpush1.msra.mxu0 %v8895_v50  ;;  %3530 = vmatpush1.msra.mxu1 %v8896_v46 }
0x11df   :  { %3460 = vmatprep.subr.mxu0 %v8897_v56  ;;  %3531 = vmatprep.subr.mxu1 %v8898_v55 }
0x11e0   :  { %3461 = vmatpush1.msra.mxu0 %v8899_v6  ;;  %3532 = vmatpush1.msra.mxu1 %v8900_v57  ;;  %v3259_v6 = vcombine.high %v3257_v14, %v3257_v14  ;;  %v8943_v14 = vld [vmem:[#allocation74_spill] sm:$0xff] }
0x11e1   :  { %3462 = vmatprep.subr.mxu0 %v8901_v52  ;;  %3533 = vmatprep.subr.mxu1 %v8902_v62 }
0x11e2   :  { %3463 = vmatpush1.msra.mxu0 %v8903_v1  ;;  %3534 = vmatpush1.msra.mxu1 %v8904_v15  ;;  %v3273_v52 = vrot.slane %v3259_v6, %v5830_v28  ;;  %v3127_v1 = vadd.f32 %v3126_v8, %v5845_v9  ;;  %v8946_v8 = vld [vmem:[#allocation77_spill] sm:$0xff] }
0x11e3   :  { %3464 = vmatprep.subr.mxu0 %v8905_v3  ;;  %3535 = vmatprep.subr.mxu1 %v8906_v16  ;;  %v8962_v6 = vld [vmem:[#allocation93_spill] sm:$0xff] }
0x11e4   :  { %3465 = vmatpush1.msra.mxu0 %v8907_v12  ;;  %3536 = vmatpush1.msra.mxu1 %v8908_v51 }
0x11e5   :  { %3466 = vmatprep.subr.mxu0 %v8909_v10  ;;  %3537 = vmatprep.subr.mxu1 %v8910_v19 }
0x11e6   :  { %3467 = vmatpush1.msra.mxu0 %v8911_v48  ;;  %3538 = vmatpush1.msra.mxu1 %v8912_v42 }
0x11e7   :  { %3468 = vmatprep.subr.mxu0 %v8913_v47  ;;  %3539 = vmatprep.subr.mxu1 %v8914_v41  ;;  %v8926_v41 = vld [vmem:[#allocation57_spill] sm:$0xff] }
0x11e8   :  { %3469 = vmatpush1.msra.mxu0 %v8915_v18  ;;  %3540 = vmatpush1.msra.mxu1 %v8916_v5  ;;  %v8927_v18 = vld [vmem:[#allocation58_spill] sm:$0xff]  ;;  %v8929_v5 = vld [vmem:[#allocation60_spill] sm:$0xff] }
0x11e9   :  { %3470 = vmatprep.subr.mxu0 %v8917_v43  ;;  %3541 = vmatprep.subr.mxu1 %v8918_v44  ;;  %v8930_v43 = vld [vmem:[#allocation61_spill] sm:$0xff]  ;;  %v8931_v44 = vld [vmem:[#allocation62_spill] sm:$0xff] }
0x11ea   :  { %3471 = vmatpush1.msra.mxu0 %v8919_v24  ;;  %3542 = vmatpush1.msra.mxu1 %v8920_v34  ;;  %v8935_v24 = vld [vmem:[#allocation66_spill] sm:$0xff]  ;;  %v8936_v34 = vld [vmem:[#allocation67_spill] sm:$0xff] }
0x11eb   :  { %3472 = vmatprep.subr.mxu0 %v8921_v22  ;;  %3543 = vmatprep.subr.mxu1 %v8922_v26  ;;  %v8937_v22 = vld [vmem:[#allocation68_spill] sm:$0xff]  ;;  %v8938_v26 = vld [vmem:[#allocation69_spill] sm:$0xff] }
0x11ec   :  { %3473 = vmatpush1.msra.mxu0 %v8923_v54  ;;  %3506 = vmatprep.mubr.f32.mxu0 %v8417_v39  ;;  %v8939_v54 = vld [vmem:[#allocation70_spill] sm:$0xff] }
0x11ed   :  { %3544 = vmatpush1.msra.mxu1 %v8924_v58  ;;  %3577 = vmatprep.mubr.f32.mxu1 %v8417_v39  ;;  %v8940_v58 = vld [vmem:[#allocation71_spill] sm:$0xff] }
0x11ee   :  { %3733 = vmatprep.subr.mxu0 %v8925_v37  ;;  %4315 = vmatprep.subr.mxu1 %v8417_v39  ;;  %v8941_v37 = vld [vmem:[#allocation72_spill] sm:$0xff] }
0x128d   :  { %v3344_v7 = vpop.f32.mrf.mxu0  ;;  %v3415_v13 = vpop.f32.mrf.mxu1 }
0x128e   :  { %v3345_v36 = vadd.f32 %v3344_v7, %v3266_v29  ;;  %v3416_v3 = vadd.f32 %v3415_v13, %v3273_v52  ;;  %v8944_v29 = vld [vmem:[#allocation75_spill] sm:$0xff]  ;;  %v8947_v7 = vld [vmem:[#allocation78_spill] sm:$0xff] }
0x128f   :  { %v3346_v21 = vpop.f32.mrf.mxu0  ;;  %v4314_v61 = vpop.f32.mrf.mxu1  ;;  %v8948_v13 = vld [vmem:[#allocation79_spill] sm:$0xff] }
0x1290   :  { %v3419_v59 = vadd.f32 %v3345_v36, %v3056_v4  ;;  %v3347_v17 = vadd.f32 %v3346_v21, %v3274_v63  ;;  %v8949_v4 = vld [vmem:[#allocation80_spill] sm:$0xff]  ;;  %v8950_v36 = vld [vmem:[#allocation81_spill] sm:$0xff]  ;;  %v8951_v63 = vld [vmem:[#allocation82_spill] sm:$0xff] }
0x1291   :  { %v8952_v21 = vld [vmem:[#allocation83_spill] sm:$0xff]  ;;  %v8953_v61 = vld [vmem:[#allocation84_spill] sm:$0xff] }
0x1292   :  { %v3930_v20 = vmul.f32 -1.442695, %v3419_v59  ;;  %v3426_v50 = vadd.f32 %v3347_v17, %v3125_v40  ;;  %v8954_v59 = vld [vmem:[#allocation85_spill] sm:$0xff]  ;;  %v8956_v17 = vld [vmem:[#allocation87_spill] sm:$0xff]  ;;  %v8957_v40 = vld [vmem:[#allocation88_spill] sm:$0xff] }
0x1293   :  { %v8964_v52 = vld [vmem:[#allocation95_spill] sm:$0xff] }
0x1294   :  { %4672 = vpow2.f32 %v3930_v20  ;;  %v3931_v46 = vmul.f32 -1.442695, %v3426_v50  ;;  %v8955_v20 = vld [vmem:[#allocation86_spill] sm:$0xff]  ;;  %v8958_v50 = vld [vmem:[#allocation89_spill] sm:$0xff] }
0x1296   :  { %4674 = vpow2.f32 %v3931_v46  ;;  %v8959_v46 = vld [vmem:[#allocation90_spill] sm:$0xff] }
0x12a1   :  { %v4673_v56 = vpop.eup %4672 }
0x12a2   :  { %v3423_v55 = vadd.f32 1.0, %v4673_v56  ;;  %v8960_v56 = vld [vmem:[#allocation91_spill] sm:$0xff] }
0x12a3   :  { %v4675_v57 = vpop.eup %4674 }
0x12a4   :  { %4676 = vrcp.f32 %v3423_v55  ;;  %v3430_v62 = vadd.f32 1.0, %v4675_v57  ;;  %v8961_v55 = vld [vmem:[#allocation92_spill] sm:$0xff]  ;;  %v8963_v57 = vld [vmem:[#allocation94_spill] sm:$0xff] }
0x12a6   :  { %4678 = vrcp.f32 %v3430_v62  ;;  %v8965_v62 = vld [vmem:[#allocation96_spill] sm:$0xff] }
0x12b1   :  { %v4677_v15 = vpop.eup %4676 }
0x12b2   :  { %v3433_v16 = vmul.f32 %v4677_v15, %v3127_v1  ;;  %v8966_v1 = vld [vmem:[#allocation97_spill] sm:$0xff]  ;;  %v8967_v15 = vld [vmem:[#allocation35_spill] sm:$0xff] }
0x12b3   :  { %v4679_v51 = vpop.eup %4678 }
0x12b4   :  { %v3434_v12 = vadd.f32 %v3433_v16, %v3416_v3  ;;  %v3436_v10 = vsub.f32 1.0, %v4679_v51  ;;  %v3438_v42 = vmul.f32 %v4679_v51, %v7526_v45  ;;  %v8928_v45 = vld [vmem:[#allocation59_spill] sm:$0xff]  ;;  %v8968_v3 = vld [vmem:[#allocation98_spill] sm:$0xff] }
0x12b5   :  { %v8969_v16 = vld [vmem:[#allocation99_spill] sm:$0xff]  ;;  %v8970_v51 = vld [vmem:[#allocation34_spill] sm:$0xff] }
0x12b6   :  { %4680 = vtanh.f32 %v3434_v12 }
0x12c3   :  { %v4681_v19 = vpop.eup %4680 }
0x12c4   :  { %v3437_v48 = vmul.f32 %v4681_v19, %v3436_v10  ;;  %v5113_v19 = vld [vmem:[#allocation6 + $0x2] sm:$0x3] }
0x12c6   :  { %v7836_v47 = vadd.f32 %v3438_v42, %v3437_v48  ;;  %v5114_v42 = vld [vmem:[#allocation6] sm:$0x3] }
0x12c8   :  { %3441 = vst [vmem:[#allocation12 + $0xc] sm:$0x3] %v7836_v47  ;;  %3507 = vmatmul.mubr.f32.vlgmr.msra.gmra.mxu0 %v7836_v47  ;;  %3578 = vmatmul.mubr.f32.vlgmr.msra.gmra.mxu1 %v7836_v47 }
0x12c9   :  { %3734 = vmatpush1.msra.mxu0 %v7531_v31  ;;  %4316 = vmatpush3.msra.mxu1 %v7534_v38  ;;  %v8932_v31 = vld [vmem:[#allocation63_spill] sm:$0xff]  ;;  %v8933_v38 = vld [vmem:[#allocation64_spill] sm:$0xff] }
0x12ca   :  { %3735 = vmatprep.subr.mxu0 %v7537_v11  ;;  %4317 = vmatprep.subr.mxu1 %v8417_v39  ;;  %v8934_v11 = vld [vmem:[#allocation65_spill] sm:$0xff] }
0x12cb   :  { %3736 = vmatpush1.msra.mxu0 %v8926_v41  ;;  %4318 = vmatpush3.msra.mxu1 %v8927_v18  ;;  %v5115_v18 = vld [vmem:[#allocation6 + $0x6] sm:$0x3] }
0x12cc   :  { %3737 = vmatprep.subr.mxu0 %v8928_v45  ;;  %4319 = vmatprep.subr.mxu1 %v8417_v39 }
0x12cd   :  { %3738 = vmatpush1.msra.mxu0 %v8929_v5  ;;  %4320 = vmatpush3.msra.mxu1 %v8930_v43  ;;  %v5116_v5 = vld [vmem:[#allocation6 + $0x4] sm:$0x3] }
0x12ce   :  { %3739 = vmatprep.subr.mxu0 %v8931_v44  ;;  %4321 = vmatprep.subr.mxu1 %v8417_v39  ;;  %v5117_v44 = vld [vmem:[#allocation6 + $0xa] sm:$0x3] }
0x12cf   :  { %3740 = vmatpush1.msra.mxu0 %v8932_v31  ;;  %4322 = vmatpush3.msra.mxu1 %v8933_v38  ;;  %v5118_v38 = vld [vmem:[#allocation6 + $0x8] sm:$0x3] }
0x12d0   :  { %3741 = vmatprep.subr.mxu0 %v8934_v11  ;;  %4323 = vmatprep.subr.mxu1 %v8417_v39 }
0x12d1   :  { %3742 = vmatpush1.msra.mxu0 %v8935_v24  ;;  %4324 = vmatpush3.msra.mxu1 %v8936_v34  ;;  %v5120_v34 = vld [vmem:[#allocation6 + $0xc] sm:$0x3] }
0x12d2   :  { %3743 = vmatprep.subr.mxu0 %v8937_v22  ;;  %4325 = vmatprep.subr.mxu1 %v8417_v39 }
0x12d3   :  { %3744 = vmatpush1.msra.mxu0 %v8938_v26  ;;  %4326 = vmatpush3.msra.mxu1 %v8939_v54 }
0x12d4   :  { %3745 = vmatprep.subr.mxu0 %v8940_v58  ;;  %4327 = vmatprep.subr.mxu1 %v8417_v39  ;;  %v5121_v58 = vld [vmem:[%s7967_s5] ss:$0 sm:$0xff]  ;;  %s5265_s5 = smov [#allocation12]  }
0x12d5   :  { %3746 = vmatpush1.msra.mxu0 %v8941_v37  ;;  %4328 = vmatpush3.msra.mxu1 %v8942_v25  ;;  %s3903_s18 = sshll.u32 %s5265_s5, 4  ;;  %s3904_s18 = int_to_ptr.vmem [resolvable:$true] %s3903_s18 }
0x12d6   :  { %3747 = vmatprep.subr.mxu0 %v8943_v14  ;;  %4329 = vmatprep.subr.mxu1 %v8417_v39  ;;  %s5222_s1 = scalar_lea.vmem %s3904_s18, 256  ;;  %p5227_p12 = scmp.lt.s32.totalorder %s3904_s18, %s3904_s18 }
0x12d7   :  { %3748 = vmatpush1.msra.mxu0 %v8944_v29  ;;  %4330 = vmatpush3.msra.mxu1 %v8945_v23  ;;  %p5223_p11 = scmp.ne.s32.totalorder %s3904_s18, %s5222_s1  ;;  %p5228_p13 = scmp.lt.s32.totalorder %s5222_s1, %s5222_s1 }
0x12d8   :  { %3749 = vmatprep.subr.mxu0 %v8946_v8  ;;  %4331 = vmatprep.subr.mxu1 %v8417_v39 }
0x12d9   :  { %3750 = vmatpush1.msra.mxu0 %v8947_v7  ;;  %4332 = vmatpush3.msra.mxu1 %v8948_v13  ;;  %p5229_p0 = por %p5228_p13, %p5227_p12 }
0x12da   :  { %3751 = vmatprep.subr.mxu0 %v8949_v4  ;;  %4333 = vmatprep.subr.mxu1 %v8417_v39 }
0x12db   :  { %3752 = vmatpush1.msra.mxu0 %v8950_v36  ;;  %4334 = vmatpush3.msra.mxu1 %v8951_v63  ;;  %p5230_p1 = pnand %p5229_p0, %p5223_p11 }
0x12dc   :  { %3753 = vmatprep.subr.mxu0 %v8952_v21  ;;  %4335 = vmatprep.subr.mxu1 %v8417_v39 }
0x12dd   :  { %3754 = vmatpush1.msra.mxu0 %v8953_v61  ;;  %4336 = vmatpush3.msra.mxu1 %v8954_v59 }
0x12de   :  { %3755 = vmatprep.subr.mxu0 %v8955_v20  ;;  %4337 = vmatprep.subr.mxu1 %v8417_v39 }
0x12df   :  { %3756 = vmatpush1.msra.mxu0 %v8956_v17  ;;  %4338 = vmatpush3.msra.mxu1 %v8957_v40 }
0x12e0   :  { %3757 = vmatprep.subr.mxu0 %v8958_v50  ;;  %4339 = vmatprep.subr.mxu1 %v8417_v39 }
0x12e1   :  { %3758 = vmatpush1.msra.mxu0 %v8959_v46  ;;  %4340 = vmatpush3.msra.mxu1 %v8960_v56 }
0x12e2   :  { %3759 = vmatprep.subr.mxu0 %v8961_v55  ;;  %4341 = vmatprep.subr.mxu1 %v8417_v39 }
0x12e3   :  { %3760 = vmatpush1.msra.mxu0 %v8962_v6  ;;  %4342 = vmatpush3.msra.mxu1 %v8963_v57 }
0x12e4   :  { %3761 = vmatprep.subr.mxu0 %v8964_v52  ;;  %4343 = vmatprep.subr.mxu1 %v8417_v39 }
0x12e5   :  { %3762 = vmatpush1.msra.mxu0 %v8965_v62  ;;  %4344 = vmatpush3.msra.mxu1 %v8966_v1 }
0x12e6   :  { %3763 = vmatprep.subr.mxu0 %v8967_v15  ;;  %4345 = vmatprep.subr.mxu1 %v8417_v39 }
0x12e7   :  { %3764 = vmatpush1.msra.mxu0 %v8968_v3  ;;  %3797 = vmatprep.mubr.f32.mxu0 %v8417_v39 }
0x12e8   :  { %4346 = vmatpush3.msra.mxu1 %v8969_v16  ;;  %4347 = vmatprep.mubr.msk.f32.mxu1 %vm5263_vm1, %v8417_v39  ;;  %v5119_v39 = vld [vmem:[#allocation6 + $0xe] sm:$0x3] }
0x1388   :  { %v3508_v12 = vpop.f32.mrf.mxu0 }
0x1389   :  { %v3509_v10 = vadd.f32 %v3508_v12, %v8970_v51 }
0x138b   :  { %v3585_v48 = vadd.f32 %v5113_v19, %v3509_v10  ;;  %v3584_v41 = vadd.f32 %v5114_v42, %v3509_v10  ;;  %v3587_v45 = vadd.f32 %v5115_v18, %v3509_v10  ;;  %v3586_v43 = vadd.f32 %v5116_v5, %v3509_v10 }
0x138c   :  { %v3589_v31 = vadd.f32 %v5117_v44, %v3509_v10  ;;  %v3588_v11 = vadd.f32 %v5118_v38, %v3509_v10  ;;  %v3591_v24 = vadd.f32 %v5119_v39, %v3509_v10  ;;  %v3590_v22 = vadd.f32 %v5120_v34, %v3509_v10 }
0x138d   :  { %4682 = vtanh.f32 %v3585_v48 }
0x138e   :  { %4684 = vtanh.f32 %v3584_v41 }
0x138f   :  { %4686 = vtanh.f32 %v3587_v45 }
0x1390   :  { %4688 = vtanh.f32 %v3586_v43 }
0x1391   :  { %4690 = vtanh.f32 %v3589_v31 }
0x1392   :  { %4692 = vtanh.f32 %v3588_v11 }
0x1393   :  { %4694 = vtanh.f32 %v3591_v24 }
0x1394   :  { %4696 = vtanh.f32 %v3590_v22 }
0x139a   :  { %v4683_v26 = vpop.eup %4682 }
0x139b   :  { %v4685_v54 = vpop.eup %4684  ;;  %v3601_v37 = vmul.f32 %v5121_v58, %v4683_v26 }
0x139c   :  { %v4687_v25 = vpop.eup %4686  ;;  %v3600_v14 = vmul.f32 %v5121_v58, %v4685_v54 }
0x139d   :  { %v4689_v29 = vpop.eup %4688  ;;  %v3611_v23 = vsel %vm424_vm0, %v3601_v37, 0.0  ;;  %v3603_v8 = vmul.f32 %v5121_v58, %v4687_v25 }
0x139e   :  { %v4691_v7 = vpop.eup %4690  ;;  %3612 = vadd.xlane.f32.xlu1 %v3611_v23  ;;  %v3608_v13 = vsel %vm424_vm0, %v3600_v14, 0.0  ;;  %v3602_v4 = vmul.f32 %v5121_v58, %v4689_v29 }
0x139f   :  { %v4693_v36 = vpop.eup %4692  ;;  %3609 = vadd.xlane.f32.xlu0 %v3608_v13  ;;  %v3617_v63 = vsel %vm424_vm0, %v3603_v8, 0.0  ;;  %v3605_v21 = vmul.f32 %v5121_v58, %v4691_v7 }
0x13a0   :  { %v4695_v61 = vpop.eup %4694  ;;  %v3614_v59 = vsel %vm424_vm0, %v3602_v4, 0.0  ;;  %v3604_v20 = vmul.f32 %v5121_v58, %v4693_v36 }
0x13a1   :  { %v4697_v17 = vpop.eup %4696  ;;  %v3623_v40 = vsel %vm424_vm0, %v3605_v21, 0.0  ;;  %v3607_v50 = vmul.f32 %v5121_v58, %v4695_v61 }
0x13a2   :  { %3618 = vadd.xlane.f32.xlu1 %v3617_v63  ;;  %v3620_v46 = vsel %vm424_vm0, %v3604_v20, 0.0  ;;  %v3606_v56 = vmul.f32 %v5121_v58, %v4697_v17 }
0x13a3   :  { %3615 = vadd.xlane.f32.xlu0 %v3614_v59  ;;  %v3629_v55 = vsel %vm424_vm0, %v3607_v50, 0.0 }
0x13a4   :  { %v3626_v6 = vsel %vm424_vm0, %v3606_v56, 0.0 }
0x13a6   :  { %3624 = vadd.xlane.f32.xlu1 %v3623_v40 }
0x13a7   :  { %3621 = vadd.xlane.f32.xlu0 %v3620_v46 }
0x13aa   :  { %3630 = vadd.xlane.f32.xlu1 %v3629_v55 }
0x13ab   :  { %3627 = vadd.xlane.f32.xlu0 %v3626_v6 }
0x1427   :  { %v3613_v57 = vpop.xlane.xlu1 %3612 }
0x1428   :  { %v3610_v52 = vpop.xlane.xlu0 %3609  ;;  %v3633_v51 = vsel %vm424_vm0, %v3613_v57, -inf }
0x1429   :  { %v3632_v10 = vsel %vm424_vm0, %v3610_v52, -inf }
0x142b   :  { %v3619_v62 = vpop.xlane.xlu1 %3618 }
0x142c   :  { %v3616_v1 = vpop.xlane.xlu0 %3615  ;;  %v3635_v48 = vsel %vm424_vm0, %v3619_v62, -inf }
0x142d   :  { %v3634_v5 = vsel %vm424_vm0, %v3616_v1, -inf }
0x142f   :  { %v3625_v15 = vpop.xlane.xlu1 %3624 }
0x1430   :  { %v3622_v3 = vpop.xlane.xlu0 %3621  ;;  %v3638_v16 = vsel %vm424_vm0, %v3625_v15, -inf }
0x1431   :  { %v3636_v12 = vsel %vm424_vm0, %v3622_v3, -inf  ;;  %v3639_v42 = vmax.f32 %v3633_v51, %v3638_v16 }
0x1432   :  { %v3637_v41 = vmax.f32 %v3632_v10, %v3636_v12 }
0x1433   :  { %v3631_v19 = vpop.xlane.xlu1 %3630 }
0x1434   :  { %v3642_v18 = vsel %vm424_vm0, %v3631_v19, -inf  ;;  %v3628_v45 = vpop.xlane.xlu0 %3627  ;;  %v3644_v38 = vmax.f32 %v3637_v41, %v3639_v42 }
0x1435   :  { %v3643_v43 = vmax.f32 %v3635_v48, %v3642_v18  ;;  %v3640_v44 = vsel %vm424_vm0, %v3628_v45, -inf }
0x1436   :  { %v3641_v31 = vmax.f32 %v3634_v5, %v3640_v44 }
0x1438   :  { %v3645_v11 = vmax.f32 %v3641_v31, %v3643_v43 }
0x143a   :  { %v3646_v39 = vmax.f32 %v3644_v38, %v3645_v11 }
0x143c   :  { %v3647_v24 = vsub.f32 %v3610_v52, %v3646_v39  ;;  %v3648_v34 = vsub.f32 %v3613_v57, %v3646_v39  ;;  %v3649_v22 = vsub.f32 %v3616_v1, %v3646_v39  ;;  %v3650_v26 = vsub.f32 %v3619_v62, %v3646_v39 }
0x143d   :  { %v3651_v54 = vsub.f32 %v3622_v3, %v3646_v39  ;;  %v3652_v14 = vsub.f32 %v3625_v15, %v3646_v39  ;;  %v3653_v23 = vsub.f32 %v3628_v45, %v3646_v39  ;;  %v3654_v7 = vsub.f32 %v3631_v19, %v3646_v39 }
0x143e   :  { %v3655_v58 = vmul.f32 1.442695, %v3647_v24  ;;  %v3657_v37 = vmul.f32 1.442695, %v3648_v34  ;;  %v3659_v25 = vmul.f32 1.442695, %v3649_v22 }
0x143f   :  { %v3661_v29 = vmul.f32 1.442695, %v3650_v26  ;;  %v3663_v8 = vmul.f32 1.442695, %v3651_v54  ;;  %v3665_v13 = vmul.f32 1.442695, %v3652_v14 }
0x1440   :  { %4698 = vpow2.f32 %v3655_v58  ;;  %v3667_v4 = vmul.f32 1.442695, %v3653_v23  ;;  %v3669_v36 = vmul.f32 1.442695, %v3654_v7  ;;  %v3712_v14 = vld [vmem:[#allocation8 + $0x2a] sm:$0x3f] }
0x1441   :  { %4700 = vpow2.f32 %v3657_v37 }
0x1442   :  { %4702 = vpow2.f32 %v3659_v25 }
0x1443   :  { %4704 = vpow2.f32 %v3661_v29  ;;  %v3721_v29 = vrot.slane %v3712_v14, %v5830_v28 }
0x1444   :  { %4706 = vpow2.f32 %v3663_v8 }
0x1445   :  { %4708 = vpow2.f32 %v3665_v13 }
0x1446   :  { %4710 = vpow2.f32 %v3667_v4  ;;  %v3729_v4 = vcombine.high %v3721_v29, %v3721_v29 }
0x1447   :  { %4712 = vpow2.f32 %v3669_v36 }
0x144d   :  { %v4699_v63 = vpop.eup %4698 }
0x144e   :  { %v4701_v21 = vpop.eup %4700  ;;  %v3671_v61 = vsel %vm424_vm0, %v4699_v63, 0.0  ;;  %v3687_v59 = vmul.f32 %v7725_v53, %v4699_v63 }
0x144f   :  { %v4703_v20 = vpop.eup %4702  ;;  %v3672_v17 = vsel %vm424_vm0, %v4701_v21, 0.0  ;;  %v3688_v40 = vmul.f32 %v7729_v27, %v4701_v21 }
0x1450   :  { %v4705_v50 = vpop.eup %4704  ;;  %v3673_v46 = vadd.f32 %v3672_v17, %v3671_v61  ;;  %v3695_v56 = vsel %vm424_vm0, %v3687_v59, 0.0  ;;  %v3674_v55 = vsel %vm424_vm0, %v4703_v20, 0.0  ;;  %v3689_v6 = vmul.f32 %v7734_v32, %v4703_v20 }
0x1451   :  { %v3696_v57 = vsel %vm424_vm0, %v3688_v40, 0.0  ;;  %v4707_v52 = vpop.eup %4706  ;;  %v3676_v53 = vsel %vm424_vm0, %v4705_v50, 0.0  ;;  %v3690_v27 = vmul.f32 %v7740_v2, %v4705_v50 }
0x1452   :  { %v3675_v62 = vadd.f32 %v3674_v55, %v3673_v46  ;;  %v3697_v1 = vadd.f32 %v3696_v57, %v3695_v56  ;;  %v4709_v15 = vpop.eup %4708  ;;  %v3678_v16 = vsel %vm424_vm0, %v4707_v52, 0.0  ;;  %v3698_v12 = vsel %vm424_vm0, %v3689_v6, 0.0 }
0x1453   :  { %v4711_v51 = vpop.eup %4710  ;;  %v3680_v32 = vsel %vm424_vm0, %v4709_v15, 0.0  ;;  %v3691_v18 = vmul.f32 %v7746_v60, %v4707_v52  ;;  %v3700_v45 = vsel %vm424_vm0, %v3690_v27, 0.0  ;;  %v3692_v31 = vmul.f32 %v7751_v33, %v4709_v15  ;;  %v3579_v33 = vpop.f32.mrf.mxu1 }
0x1454   :  { %v3677_v3 = vadd.f32 %v3676_v53, %v3675_v62  ;;  %v3699_v19 = vadd.f32 %v3698_v12, %v3697_v1  ;;  %v4713_v48 = vpop.eup %4712  ;;  %v3682_v41 = vsel %vm424_vm0, %v4711_v51, 0.0  ;;  %v3693_v39 = vmul.f32 %v7755_v0, %v4711_v51  ;;  %v3510_v0 = vpop.f32.mrf.mxu0 }
0x1455   :  { %v3684_v44 = vsel %vm424_vm0, %v4713_v48, 0.0  ;;  %v3702_v38 = vsel %vm424_vm0, %v3691_v18, 0.0  ;;  %v3704_v24 = vsel %vm424_vm0, %v3692_v31, 0.0  ;;  %v3694_v60 = vmul.f32 %v7759_v30, %v4713_v48  ;;  %v3581_v23 = vpop.f32.mrf.mxu1 }
0x1456   :  { %v3679_v10 = vadd.f32 %v3678_v16, %v3677_v3  ;;  %v3701_v43 = vadd.f32 %v3700_v45, %v3699_v19  ;;  %v3706_v22 = vsel %vm424_vm0, %v3693_v39, 0.0  ;;  %v3511_v30 = vadd.f32 %v3510_v0, %v5834_v35 }
0x1457   :  { %v3708_v54 = vsel %vm424_vm0, %v3694_v60, 0.0  ;;  %v3580_v20 = vadd.f32 %v3579_v33, %v5840_v49  ;;  %v3714_v56 = vcombine.high %v3712_v14, %v3712_v14  ;;  %v3582_v57 = vadd.f32 %v3581_v23, %v5845_v9 }
0x1458   :  { %v3681_v42 = vadd.f32 %v3680_v32, %v3679_v10  ;;  %v3703_v11 = vadd.f32 %v3702_v38, %v3701_v43 }
0x1459   :  { %v3728_v35 = vrot.slane %v3714_v56, %v5830_v28 }
0x145a   :  { %v3683_v5 = vadd.f32 %v3682_v41, %v3681_v42  ;;  %v3705_v34 = vadd.f32 %v3704_v24, %v3703_v11 }
0x145c   :  { %v3685_v2 = vadd.f32 %v3684_v44, %v3683_v5  ;;  %v3707_v26 = vadd.f32 %v3706_v22, %v3705_v34 }
0x145e   :  { %4714 = vrcp.f32 %v3685_v2  ;;  %v3709_v58 = vadd.f32 %v3708_v54, %v3707_v26 }
0x146b   :  { %v4715_v37 = vpop.eup %4714 }
0x146c   :  { %v3710_v25 = vmul.f32 %v4715_v37, %v3709_v58 }
0x146e   :  { %3798 = vmatmul.mubr.f32.vlgmr.msra.gmra.mxu0 %v3710_v25  ;;  %4348 = vmatmul.mubr.f32.vlgmr.msra.gmra.mxu1 %v3710_v25 }
0x152e   :  { %v3799_v8 = vpop.f32.mrf.mxu0  ;;  %v3870_v7 = vpop.f32.mrf.mxu1 }
0x152f   :  { %v3800_v13 = vadd.f32 %v3799_v8, %v3721_v29  ;;  %v3871_v62 = vadd.f32 %v3870_v7, %v3728_v35 }
0x1530   :  { %v3801_v36 = vpop.f32.mrf.mxu0  ;;  %v4349_v63 = vpop.f32.mrf.mxu1 }
0x1531   :  { %v3874_v21 = vadd.f32 %v3800_v13, %v3511_v30  ;;  %v3802_v59 = vadd.f32 %v3801_v36, %v3729_v4 }
0x1533   :  { %v3932_v61 = vmul.f32 -1.442695, %v3874_v21  ;;  %v3881_v17 = vadd.f32 %v3802_v59, %v3580_v20 }
0x1535   :  { %4716 = vpow2.f32 %v3932_v61  ;;  %v3933_v40 = vmul.f32 -1.442695, %v3881_v17 }
0x1537   :  { %4718 = vpow2.f32 %v3933_v40 }
0x1542   :  { %v4717_v50 = vpop.eup %4716 }
0x1543   :  { %v3878_v46 = vadd.f32 1.0, %v4717_v50 }
0x1544   :  { %v4719_v55 = vpop.eup %4718 }
0x1545   :  { %4720 = vrcp.f32 %v3878_v46  ;;  %v3885_v6 = vadd.f32 1.0, %v4719_v55 }
0x1547   :  { %4722 = vrcp.f32 %v3885_v6 }
0x1552   :  { %v4721_v52 = vpop.eup %4720 }
0x1553   :  { %v3888_v1 = vmul.f32 %v4721_v52, %v3582_v57 }
0x1554   :  { %v4723_v49 = vpop.eup %4722 }
0x1555   :  { %v3889_v53 = vadd.f32 %v3888_v1, %v3871_v62  ;;  %v3891_v15 = vsub.f32 1.0, %v4723_v49  ;;  %v3893_v27 = vmul.f32 %v4723_v49, %v7836_v47 }
0x1557   :  { %4724 = vtanh.f32 %v3889_v53 }
0x1564   :  { %v4725_v3 = vpop.eup %4724 }
0x1565   :  { %v3892_v16 = vmul.f32 %v4725_v3, %v3891_v15 }
0x1567   :  { %v3894_v12 = vadd.f32 %v3893_v27, %v3892_v16 }
0x1569   :  { %3897 = vst [vmem:[#allocation2] sm:$0x3] %v3894_v12  ;;  %3896 = vst [vmem:[#allocation12 + $0xe] sm:$0x3] %v3894_v12 }
0x156a   :  { %5233 = shalt.err (!%p5230_p1)
}
0x156b   :  { %3909 = dma.vmem_to_hbm [thread:$0]  %s3904_s18, 256, %s7969_s7, [#allocation5], %s5252_s29, %s5252_s29, %s5253_s30  }
0x156c   :  { %5248 = dma.done.wait [#allocation5], 256  }
0x156d   :  { %5249 = vsyncadd [#allocation5], 4294967040 }
0x156e   :  { %3913 = vsyncpa [#allocation4], 1 }
0x156f   :  { %3914 = vsyncpa [#allocation7], 1 }
0x1570   :  { %3915 = vsyncpa [#allocation10], 1 }
0x1571   :  { %3916 = vsyncpa [#allocation5], 1 }

</bundles_post_ra>
